<compile_context>
chip_gen: v6e
topology: v6e:2x2x1
jax: 0.10.0
libtpu: 0.0.40
codegen_flags: <defaults>
</compile_context>

<pallas_src>
import functools
from collections import namedtuple

import jax
import jax.numpy as jnp
import numpy as np
from jax.experimental import pallas as pl
from jax.experimental.pallas import tpu as pltpu

CFG_LAYERS = [16, 'M', 32, 'M', 128, 128, 'M', 256, 256]
Cfg = namedtuple("Cfg", ["n_c_input", "n_classes", "max_normalize"])
Output = namedtuple("Output", ["logits", "state"])

# One entry per 3x3 conv layer.  next_kind in {"pool", "conv", "final"}.
ConvPlan = namedtuple("ConvPlan", ["H", "W", "cin", "cout", "next_kind"])


# ---------------------------------------------------------------------------
# Static plan / constant helpers
# ---------------------------------------------------------------------------
def _build_plan(H0, W0, c_in):
    plan = []
    H, W, c = H0, W0, c_in
    i = 0
    while i < len(CFG_LAYERS):
        v = CFG_LAYERS[i]
        assert v != 'M'
        cout = int(v)
        if i + 1 < len(CFG_LAYERS) and CFG_LAYERS[i + 1] == 'M':
            nxt, skip = "pool", 2
        elif i + 1 < len(CFG_LAYERS):
            nxt, skip = "conv", 1
        else:
            nxt, skip = "final", 1
        plan.append(ConvPlan(H, W, c, cout, nxt))
        c = cout
        if nxt == "pool":
            H, W = H // 2, W // 2
        i += skip
    return plan


def _pool_select_matrix(H, W):
    # Maps max4 (length Lp) -> next layer's flat padded layout ((Ho+2)*(Wo+2)).
    # P[r, s] = 1 selects the 2x2-max whose top-left flat index is s and places
    # it at interior position r; all-zero rows reproduce the zero padding.
    W2 = W + 2
    Ho, Wo = H // 2, W // 2
    Lp = (H - 2) * W2 + W
    P = np.zeros(((Ho + 2) * (Wo + 2), Lp), np.float32)
    for ho in range(Ho):
        for wo in range(Wo):
            P[(ho + 1) * (Wo + 2) + (wo + 1), 2 * ho * W2 + 2 * wo] = 1.0
    return P


def _mean_vector(H, W):
    # (L, 1) vector with 1/(H*W) at valid flat positions, 0 at the junk columns.
    W2 = W + 2
    L = H * W2 - 2
    v = np.zeros((L, 1), np.float32)
    for h in range(H):
        for w in range(W):
            v[h * W2 + w, 0] = 1.0 / (H * W)
    return v


# ---------------------------------------------------------------------------
# Fused kernel
# ---------------------------------------------------------------------------
def _make_fused_kernel(plan, n_classes, normalize):
    n_conv = len(plan)
    n_pool = sum(1 for p in plan if p.next_kind == "pool")

    def kernel(*refs):
        # ---- unpack refs: inputs, output, scratch (order matches pallas_call)
        i = 0
        x_ref = refs[i]; i += 1
        wb = []
        for _ in range(n_conv):
            wb.append((refs[i], refs[i + 1])); i += 2
        wf_ref, bf_ref = refs[i], refs[i + 1]; i += 2
        p_refs = list(refs[i:i + n_pool]); i += n_pool
        mv_ref = refs[i]; i += 1
        out_ref = refs[i]; i += 1
        pad_refs = list(refs[i:i + n_conv]); i += n_conv
        st_refs = list(refs[i:i + n_pool]); i += n_pool

        # ---- scatter the (1, H0, W0, Cin) image into the flat padded buffer
        H0, W0 = plan[0].H, plan[0].W
        W2 = W0 + 2
        pad0 = pad_refs[0]
        pad0[...] = jnp.zeros_like(pad0)
        for h in range(H0):
            row = x_ref[0, h]                             # (W0, Cin)
            if normalize:
                row = row * (1.0 / 255.0)
            pad0[pl.ds((h + 1) * W2 + 1, W0), :] = row

        pool_idx = 0
        y = None
        for li, lp in enumerate(plan):
            H, W, cout = lp.H, lp.W, lp.cout
            W2 = W + 2
            L = H * W2 - 2                                 # rows of conv output
            pad_ref = pad_refs[li]
            w_ref, b_ref = wb[li]

            # 3x3 SAME conv: 9 taps, each one whole-image matmul on the MXU.
            acc = jnp.zeros((L, cout), jnp.float32)
            for dh in range(3):
                for dw in range(3):
                    patch = pad_ref[pl.ds(dh * W2 + dw, L), :]      # (L, cin)
                    acc = acc + jnp.dot(patch, w_ref[dh, dw],
                                        preferred_element_type=jnp.float32)
            y = jnp.maximum(acc + b_ref[...], 0.0)         # (L, cout), junk at
                                                           # columns W, W+1 of each row
            if lp.next_kind == "pool":
                st_ref = st_refs[pool_idx]
                p_ref = p_refs[pool_idx]
                pool_idx += 1
                Lp = (H - 2) * W2 + W
                # Stage y in VMEM so we can take the 4 shifted views of the
                # 2x2 window; zero the 2 tail rows so every read is defined.
                st_ref[pl.ds(0, L), :] = y
                st_ref[pl.ds(L, 2), :] = jnp.zeros((2, cout), jnp.float32)
                a = st_ref[pl.ds(0, Lp), :]
                b = st_ref[pl.ds(1, Lp), :]
                c = st_ref[pl.ds(W2, Lp), :]
                d = st_ref[pl.ds(W2 + 1, Lp), :]
                m4 = jnp.maximum(jnp.maximum(a, b), jnp.maximum(c, d))
                # Selection matmul compacts the strided pool results and emits
                # the next conv's zero-padded flat buffer in one shot.
                pad_refs[li + 1][...] = jnp.dot(
                    p_ref[...], m4, preferred_element_type=jnp.float32)
            elif lp.next_kind == "conv":
                # Re-pad into the next conv's buffer: zero it, store y shifted
                # by one padded row+col, then re-zero the (adjacent) junk pairs.
                nxt = pad_refs[li + 1]
                nxt[...] = jnp.zeros_like(nxt)
                nxt[pl.ds(W + 3, L), :] = y
                for h in range(H - 1):
                    nxt[pl.ds((h + 1) * W2 + W + 1, 2), :] = jnp.zeros(
                        (2, cout), jnp.float32)
            # "final": handled below with the last y.

        # ---- final 1x1 conv + global spatial mean (linear => mean first)
        yw = y * mv_ref[...]                               # (L_last, C) * (L_last, 1)
        t = jnp.dot(yw, wf_ref[...],
                    preferred_element_type=jnp.float32)    # (L_last, n_classes)
        logits = jnp.sum(t, axis=0, keepdims=True) + bf_ref[...]
        out_ref[0] = logits.astype(out_ref.dtype)

    return kernel


def fused_forward_nhwc(x_nhwc, conv_params, final_params, n_classes, normalize):
    N, H0, W0, Cin = x_nhwc.shape
    plan = _build_plan(H0, W0, Cin)
    pools = [lp for lp in plan if lp.next_kind == "pool"]

    pool_mats = [jnp.asarray(_pool_select_matrix(lp.H, lp.W)) for lp in pools]
    mean_vec = jnp.asarray(_mean_vector(plan[-1].H, plan[-1].W))
    wf, bf = final_params

    inputs = [x_nhwc]
    in_specs = [pl.BlockSpec((1, H0, W0, Cin), lambda n: (n, 0, 0, 0))]
    for (w, b), lp in zip(conv_params, plan):
        inputs += [w, b]
        in_specs += [pl.BlockSpec(w.shape, lambda n: (0, 0, 0, 0)),
                     pl.BlockSpec(b.shape, lambda n: (0, 0))]
    inputs += [wf, bf]
    in_specs += [pl.BlockSpec(wf.shape, lambda n: (0, 0)),
                 pl.BlockSpec(bf.shape, lambda n: (0, 0))]
    for pm in pool_mats:
        inputs.append(pm)
        in_specs.append(pl.BlockSpec(pm.shape, lambda n: (0, 0)))
    inputs.append(mean_vec)
    in_specs.append(pl.BlockSpec(mean_vec.shape, lambda n: (0, 0)))

    scratch = []
    for lp in plan:                       # flat padded input buffer per conv
        scratch.append(pltpu.VMEM(((lp.H + 2) * (lp.W + 2), lp.cin), jnp.float32))
    for lp in pools:                      # staging buffer per maxpool
        scratch.append(pltpu.VMEM((lp.H * (lp.W + 2), lp.cout), jnp.float32))

    kernel = _make_fused_kernel(plan, n_classes, normalize)

    out = pl.pallas_call(
        kernel,
        out_shape=jax.ShapeDtypeStruct((N, 1, n_classes), jnp.float32),
        grid_spec=pltpu.PrefetchScalarGridSpec(
            num_scalar_prefetch=0,
            grid=(N,),
            in_specs=in_specs,
            out_specs=pl.BlockSpec((1, 1, n_classes), lambda n: (n, 0, 0)),
            scratch_shapes=scratch,
        ),
        compiler_params=pltpu.CompilerParams(
            dimension_semantics=("parallel",)),
    )(*inputs)
    return out.reshape(N, n_classes)


# ---------------------------------------------------------------------------
# Parameters / forward
# ---------------------------------------------------------------------------
def init_params(key, cfg):
    conv_params = []
    c_in = cfg.n_c_input
    for v in CFG_LAYERS:
        if v == 'M':
            continue
        key, kw, kb = jax.random.split(key, 3)
        w = jax.random.normal(kw, (3, 3, c_in, v), jnp.float32) * np.sqrt(2.0 / (9 * c_in))
        b = jax.random.normal(kb, (1, v), jnp.float32) * 0.01
        conv_params.append((w, b))
        c_in = v
    key, kw, kb = jax.random.split(key, 3)
    wf = jax.random.normal(kw, (c_in, cfg.n_classes), jnp.float32) * np.sqrt(1.0 / c_in)
    bf = jax.random.normal(kb, (1, cfg.n_classes), jnp.float32) * 0.01
    return conv_params, (wf, bf)


def forward(conv_params, final_params, x_BT, cfg):
    B, T, C, H, W = x_BT.shape
    x = x_BT.astype(jnp.float32).reshape(B * T, C, H, W)
    x = jnp.transpose(x, (0, 2, 3, 1))                      # NCHW -> NHWC (glue)
    # TODO(synk): FeaturesSaver().save(...) debug side effect has no Pallas equivalent; skipped.
    y = fused_forward_nhwc(x, conv_params, final_params,
                           cfg.n_classes, cfg.max_normalize)
    return Output(logits=y.reshape(B, T, -1), state=None)


def reference_forward(conv_params, final_params, x_BT, cfg):
    # Pure-JAX reference for validation.
    B, T, C, H, W = x_BT.shape
    x = x_BT.astype(jnp.float32)
    if cfg.max_normalize:
        x = x / 255.0
    feat = jnp.transpose(x.reshape(B * T, C, H, W), (0, 2, 3, 1))
    it = iter(conv_params)
    for v in CFG_LAYERS:
        if v == 'M':
            n, h, w, c = feat.shape
            feat = feat.reshape(n, h // 2, 2, w // 2, 2, c).max(axis=(2, 4))
        else:
            wk, bk = next(it)
            feat = jax.lax.conv_general_dilated(
                feat, wk, (1, 1), 'SAME',
                dimension_numbers=('NHWC', 'HWIO', 'NHWC'))
            feat = jnp.maximum(feat + bk.reshape(1, 1, 1, -1), 0.0)
    wf, bf = final_params
    y = jnp.einsum('nhwc,ck->nhwk', feat, wf) + bf.reshape(1, 1, 1, -1)
    y = y.mean(axis=(1, 2))
    return y.reshape(B, T, -1)


if __name__ == "__main__":
    cfg = Cfg(n_c_input=4, n_classes=10, max_normalize=True)
    B, T, Hs, Ws = 2, 3, 16, 16

    key = jax.random.PRNGKey(0)
    key, kp, kx = jax.random.split(key, 3)
    conv_params, final_params = init_params(kp, cfg)
    x_BT = jax.random.uniform(kx, (B, T, cfg.n_c_input, Hs, Ws),
                              jnp.float32, minval=0.0, maxval=255.0)

    out = forward(conv_params, final_params, x_BT, cfg)
    logits = jax.block_until_ready(out.logits)

    ref = jax.block_until_ready(reference_forward(conv_params, final_params, x_BT, cfg))
    np.testing.assert_allclose(np.asarray(logits), np.asarray(ref), rtol=1e-3, atol=1e-3)
    assert logits.shape == (B, T, cfg.n_classes)
    assert out.state is None

    print("KERNEL_OK")
</pallas_src>

<mosaic_0001>
module attributes {stable_mosaic.version = 11 : i64} {
  func.func @kernel(%arg0: i32, %arg1: memref<1x16x16x4xf32, #tpu.memory_space<vmem>>, %arg2: memref<3x3x4x16xf32, #tpu.memory_space<vmem>>, %arg3: memref<1x16xf32, #tpu.memory_space<vmem>>, %arg4: memref<3x3x16x32xf32, #tpu.memory_space<vmem>>, %arg5: memref<1x32xf32, #tpu.memory_space<vmem>>, %arg6: memref<3x3x32x128xf32, #tpu.memory_space<vmem>>, %arg7: memref<1x128xf32, #tpu.memory_space<vmem>>, %arg8: memref<3x3x128x128xf32, #tpu.memory_space<vmem>>, %arg9: memref<1x128xf32, #tpu.memory_space<vmem>>, %arg10: memref<3x3x128x256xf32, #tpu.memory_space<vmem>>, %arg11: memref<1x256xf32, #tpu.memory_space<vmem>>, %arg12: memref<3x3x256x256xf32, #tpu.memory_space<vmem>>, %arg13: memref<1x256xf32, #tpu.memory_space<vmem>>, %arg14: memref<256x10xf32, #tpu.memory_space<vmem>>, %arg15: memref<1x10xf32, #tpu.memory_space<vmem>>, %arg16: memref<100x268xf32, #tpu.memory_space<vmem>>, %arg17: memref<36x68xf32, #tpu.memory_space<vmem>>, %arg18: memref<16x16xf32, #tpu.memory_space<vmem>>, %arg19: memref<6x1xf32, #tpu.memory_space<vmem>>, %arg20: memref<1x1x10xf32, #tpu.memory_space<vmem>>, %arg21: memref<324x4xf32, #tpu.memory_space<vmem>>, %arg22: memref<100x16xf32, #tpu.memory_space<vmem>>, %arg23: memref<36x32xf32, #tpu.memory_space<vmem>>, %arg24: memref<36x128xf32, #tpu.memory_space<vmem>>, %arg25: memref<16x128xf32, #tpu.memory_space<vmem>>, %arg26: memref<16x256xf32, #tpu.memory_space<vmem>>, %arg27: memref<288x16xf32, #tpu.memory_space<vmem>>, %arg28: memref<80x32xf32, #tpu.memory_space<vmem>>, %arg29: memref<24x128xf32, #tpu.memory_space<vmem>>) attributes {dimension_semantics = [#tpu.dimension_semantics<parallel>], iteration_bounds = array<i64: 6>, scalar_prefetch = 0 : i64, scratch_operands = 9 : i64, tpu.core_type = #tpu.core_type<tc>, window_params = [{transform_indices = @transform_0, window_bounds = array<i64: 1, 16, 16, 4>}, {pipeline_mode = #tpu.pipeline_mode<synchronous>, transform_indices = @transform_1, window_bounds = array<i64: 3, 3, 4, 16>}, {pipeline_mode = #tpu.pipeline_mode<synchronous>, transform_indices = @transform_2, window_bounds = array<i64: 1, 16>}, {pipeline_mode = #tpu.pipeline_mode<synchronous>, transform_indices = @transform_3, window_bounds = array<i64: 3, 3, 16, 32>}, {pipeline_mode = #tpu.pipeline_mode<synchronous>, transform_indices = @transform_4, window_bounds = array<i64: 1, 32>}, {pipeline_mode = #tpu.pipeline_mode<synchronous>, transform_indices = @transform_5, window_bounds = array<i64: 3, 3, 32, 128>}, {pipeline_mode = #tpu.pipeline_mode<synchronous>, transform_indices = @transform_6, window_bounds = array<i64: 1, 128>}, {pipeline_mode = #tpu.pipeline_mode<synchronous>, transform_indices = @transform_7, window_bounds = array<i64: 3, 3, 128, 128>}, {pipeline_mode = #tpu.pipeline_mode<synchronous>, transform_indices = @transform_8, window_bounds = array<i64: 1, 128>}, {pipeline_mode = #tpu.pipeline_mode<synchronous>, transform_indices = @transform_9, window_bounds = array<i64: 3, 3, 128, 256>}, {pipeline_mode = #tpu.pipeline_mode<synchronous>, transform_indices = @transform_10, window_bounds = array<i64: 1, 256>}, {pipeline_mode = #tpu.pipeline_mode<synchronous>, transform_indices = @transform_11, window_bounds = array<i64: 3, 3, 256, 256>}, {pipeline_mode = #tpu.pipeline_mode<synchronous>, transform_indices = @transform_12, window_bounds = array<i64: 1, 256>}, {pipeline_mode = #tpu.pipeline_mode<synchronous>, transform_indices = @transform_13, window_bounds = array<i64: 256, 10>}, {pipeline_mode = #tpu.pipeline_mode<synchronous>, transform_indices = @transform_14, window_bounds = array<i64: 1, 10>}, {pipeline_mode = #tpu.pipeline_mode<synchronous>, transform_indices = @transform_15, window_bounds = array<i64: 100, 268>}, {pipeline_mode = #tpu.pipeline_mode<synchronous>, transform_indices = @transform_16, window_bounds = array<i64: 36, 68>}, {pipeline_mode = #tpu.pipeline_mode<synchronous>, transform_indices = @transform_17, window_bounds = array<i64: 16, 16>}, {pipeline_mode = #tpu.pipeline_mode<synchronous>, transform_indices = @transform_18, window_bounds = array<i64: 6, 1>}, {transform_indices = @transform_19, window_bounds = array<i64: 1, 1, 10>}]} {
    %cst = arith.constant 0.000000e+00 : f32
    %0 = vector.broadcast %cst : f32 to vector<324x4xf32>
    %c0 = arith.constant 0 : index
    %c0_0 = arith.constant 0 : index
    %1 = vector.load %arg21[%c0, %c0_0] : memref<324x4xf32, #tpu.memory_space<vmem>>, vector<324x4xf32>
    tpu.vector_store %arg21[%c0, %c0_0], %0 {strides = array<i32>} : memref<324x4xf32, #tpu.memory_space<vmem>>, vector<324x4xf32>,
    %c0_1 = arith.constant 0 : index
    %c0_2 = arith.constant 0 : index
    %c0_3 = arith.constant 0 : index
    %c0_4 = arith.constant 0 : index
    %2 = vector.load %arg1[%c0_1, %c0_2, %c0_3, %c0_4] : memref<1x16x16x4xf32, #tpu.memory_space<vmem>>, vector<1x1x16x4xf32>
    %3 = vector.shape_cast %2 : vector<1x1x16x4xf32> to vector<16x4xf32>
    %cst_5 = arith.constant 0.00392156886 : f32
    %4 = vector.broadcast %cst_5 : f32 to vector<16x4xf32>
    %5 = arith.mulf %3, %4 : vector<16x4xf32>
    %c19 = arith.constant 19 : index
    %c0_6 = arith.constant 0 : index
    %6 = vector.load %arg21[%c19, %c0_6] : memref<324x4xf32, #tpu.memory_space<vmem>>, vector<16x4xf32>
    tpu.vector_store %arg21[%c19, %c0_6], %5 {strides = array<i32>} : memref<324x4xf32, #tpu.memory_space<vmem>>, vector<16x4xf32>,
    %c0_7 = arith.constant 0 : index
    %c1 = arith.constant 1 : index
    %c0_8 = arith.constant 0 : index
    %c0_9 = arith.constant 0 : index
    %7 = vector.load %arg1[%c0_7, %c1, %c0_8, %c0_9] : memref<1x16x16x4xf32, #tpu.memory_space<vmem>>, vector<1x1x16x4xf32>
    %8 = vector.shape_cast %7 : vector<1x1x16x4xf32> to vector<16x4xf32>
    %cst_10 = arith.constant 0.00392156886 : f32
    %9 = vector.broadcast %cst_10 : f32 to vector<16x4xf32>
    %10 = arith.mulf %8, %9 : vector<16x4xf32>
    %c37 = arith.constant 37 : index
    %c0_11 = arith.constant 0 : index
    %11 = vector.load %arg21[%c37, %c0_11] : memref<324x4xf32, #tpu.memory_space<vmem>>, vector<16x4xf32>
    tpu.vector_store %arg21[%c37, %c0_11], %10 {strides = array<i32>} : memref<324x4xf32, #tpu.memory_space<vmem>>, vector<16x4xf32>,
    %c0_12 = arith.constant 0 : index
    %c2 = arith.constant 2 : index
    %c0_13 = arith.constant 0 : index
    %c0_14 = arith.constant 0 : index
    %12 = vector.load %arg1[%c0_12, %c2, %c0_13, %c0_14] : memref<1x16x16x4xf32, #tpu.memory_space<vmem>>, vector<1x1x16x4xf32>
    %13 = vector.shape_cast %12 : vector<1x1x16x4xf32> to vector<16x4xf32>
    %cst_15 = arith.constant 0.00392156886 : f32
    %14 = vector.broadcast %cst_15 : f32 to vector<16x4xf32>
    %15 = arith.mulf %13, %14 : vector<16x4xf32>
    %c55 = arith.constant 55 : index
    %c0_16 = arith.constant 0 : index
    %16 = vector.load %arg21[%c55, %c0_16] : memref<324x4xf32, #tpu.memory_space<vmem>>, vector<16x4xf32>
    tpu.vector_store %arg21[%c55, %c0_16], %15 {strides = array<i32>} : memref<324x4xf32, #tpu.memory_space<vmem>>, vector<16x4xf32>,
    %c0_17 = arith.constant 0 : index
    %c3 = arith.constant 3 : index
    %c0_18 = arith.constant 0 : index
    %c0_19 = arith.constant 0 : index
    %17 = vector.load %arg1[%c0_17, %c3, %c0_18, %c0_19] : memref<1x16x16x4xf32, #tpu.memory_space<vmem>>, vector<1x1x16x4xf32>
    %18 = vector.shape_cast %17 : vector<1x1x16x4xf32> to vector<16x4xf32>
    %cst_20 = arith.constant 0.00392156886 : f32
    %19 = vector.broadcast %cst_20 : f32 to vector<16x4xf32>
    %20 = arith.mulf %18, %19 : vector<16x4xf32>
    %c73 = arith.constant 73 : index
    %c0_21 = arith.constant 0 : index
    %21 = vector.load %arg21[%c73, %c0_21] : memref<324x4xf32, #tpu.memory_space<vmem>>, vector<16x4xf32>
    tpu.vector_store %arg21[%c73, %c0_21], %20 {strides = array<i32>} : memref<324x4xf32, #tpu.memory_space<vmem>>, vector<16x4xf32>,
    %c0_22 = arith.constant 0 : index
    %c4 = arith.constant 4 : index
    %c0_23 = arith.constant 0 : index
    %c0_24 = arith.constant 0 : index
    %22 = vector.load %arg1[%c0_22, %c4, %c0_23, %c0_24] : memref<1x16x16x4xf32, #tpu.memory_space<vmem>>, vector<1x1x16x4xf32>
    %23 = vector.shape_cast %22 : vector<1x1x16x4xf32> to vector<16x4xf32>
    %cst_25 = arith.constant 0.00392156886 : f32
    %24 = vector.broadcast %cst_25 : f32 to vector<16x4xf32>
    %25 = arith.mulf %23, %24 : vector<16x4xf32>
    %c91 = arith.constant 91 : index
    %c0_26 = arith.constant 0 : index
    %26 = vector.load %arg21[%c91, %c0_26] : memref<324x4xf32, #tpu.memory_space<vmem>>, vector<16x4xf32>
    tpu.vector_store %arg21[%c91, %c0_26], %25 {strides = array<i32>} : memref<324x4xf32, #tpu.memory_space<vmem>>, vector<16x4xf32>,
    %c0_27 = arith.constant 0 : index
    %c5 = arith.constant 5 : index
    %c0_28 = arith.constant 0 : index
    %c0_29 = arith.constant 0 : index
    %27 = vector.load %arg1[%c0_27, %c5, %c0_28, %c0_29] : memref<1x16x16x4xf32, #tpu.memory_space<vmem>>, vector<1x1x16x4xf32>
    %28 = vector.shape_cast %27 : vector<1x1x16x4xf32> to vector<16x4xf32>
    %cst_30 = arith.constant 0.00392156886 : f32
    %29 = vector.broadcast %cst_30 : f32 to vector<16x4xf32>
    %30 = arith.mulf %28, %29 : vector<16x4xf32>
    %c109 = arith.constant 109 : index
    %c0_31 = arith.constant 0 : index
    %31 = vector.load %arg21[%c109, %c0_31] : memref<324x4xf32, #tpu.memory_space<vmem>>, vector<16x4xf32>
    tpu.vector_store %arg21[%c109, %c0_31], %30 {strides = array<i32>} : memref<324x4xf32, #tpu.memory_space<vmem>>, vector<16x4xf32>,
    %c0_32 = arith.constant 0 : index
    %c6 = arith.constant 6 : index
    %c0_33 = arith.constant 0 : index
    %c0_34 = arith.constant 0 : index
    %32 = vector.load %arg1[%c0_32, %c6, %c0_33, %c0_34] : memref<1x16x16x4xf32, #tpu.memory_space<vmem>>, vector<1x1x16x4xf32>
    %33 = vector.shape_cast %32 : vector<1x1x16x4xf32> to vector<16x4xf32>
    %cst_35 = arith.constant 0.00392156886 : f32
    %34 = vector.broadcast %cst_35 : f32 to vector<16x4xf32>
    %35 = arith.mulf %33, %34 : vector<16x4xf32>
    %c127 = arith.constant 127 : index
    %c0_36 = arith.constant 0 : index
    %36 = vector.load %arg21[%c127, %c0_36] : memref<324x4xf32, #tpu.memory_space<vmem>>, vector<16x4xf32>
    tpu.vector_store %arg21[%c127, %c0_36], %35 {strides = array<i32>} : memref<324x4xf32, #tpu.memory_space<vmem>>, vector<16x4xf32>,
    %c0_37 = arith.constant 0 : index
    %c7 = arith.constant 7 : index
    %c0_38 = arith.constant 0 : index
    %c0_39 = arith.constant 0 : index
    %37 = vector.load %arg1[%c0_37, %c7, %c0_38, %c0_39] : memref<1x16x16x4xf32, #tpu.memory_space<vmem>>, vector<1x1x16x4xf32>
    %38 = vector.shape_cast %37 : vector<1x1x16x4xf32> to vector<16x4xf32>
    %cst_40 = arith.constant 0.00392156886 : f32
    %39 = vector.broadcast %cst_40 : f32 to vector<16x4xf32>
    %40 = arith.mulf %38, %39 : vector<16x4xf32>
    %c145 = arith.constant 145 : index
    %c0_41 = arith.constant 0 : index
    %41 = vector.load %arg21[%c145, %c0_41] : memref<324x4xf32, #tpu.memory_space<vmem>>, vector<16x4xf32>
    tpu.vector_store %arg21[%c145, %c0_41], %40 {strides = array<i32>} : memref<324x4xf32, #tpu.memory_space<vmem>>, vector<16x4xf32>,
    %c0_42 = arith.constant 0 : index
    %c8 = arith.constant 8 : index
    %c0_43 = arith.constant 0 : index
    %c0_44 = arith.constant 0 : index
    %42 = vector.load %arg1[%c0_42, %c8, %c0_43, %c0_44] : memref<1x16x16x4xf32, #tpu.memory_space<vmem>>, vector<1x1x16x4xf32>
    %43 = vector.shape_cast %42 : vector<1x1x16x4xf32> to vector<16x4xf32>
    %cst_45 = arith.constant 0.00392156886 : f32
    %44 = vector.broadcast %cst_45 : f32 to vector<16x4xf32>
    %45 = arith.mulf %43, %44 : vector<16x4xf32>
    %c163 = arith.constant 163 : index
    %c0_46 = arith.constant 0 : index
    %46 = vector.load %arg21[%c163, %c0_46] : memref<324x4xf32, #tpu.memory_space<vmem>>, vector<16x4xf32>
    tpu.vector_store %arg21[%c163, %c0_46], %45 {strides = array<i32>} : memref<324x4xf32, #tpu.memory_space<vmem>>, vector<16x4xf32>,
    %c0_47 = arith.constant 0 : index
    %c9 = arith.constant 9 : index
    %c0_48 = arith.constant 0 : index
    %c0_49 = arith.constant 0 : index
    %47 = vector.load %arg1[%c0_47, %c9, %c0_48, %c0_49] : memref<1x16x16x4xf32, #tpu.memory_space<vmem>>, vector<1x1x16x4xf32>
    %48 = vector.shape_cast %47 : vector<1x1x16x4xf32> to vector<16x4xf32>
    %cst_50 = arith.constant 0.00392156886 : f32
    %49 = vector.broadcast %cst_50 : f32 to vector<16x4xf32>
    %50 = arith.mulf %48, %49 : vector<16x4xf32>
    %c181 = arith.constant 181 : index
    %c0_51 = arith.constant 0 : index
    %51 = vector.load %arg21[%c181, %c0_51] : memref<324x4xf32, #tpu.memory_space<vmem>>, vector<16x4xf32>
    tpu.vector_store %arg21[%c181, %c0_51], %50 {strides = array<i32>} : memref<324x4xf32, #tpu.memory_space<vmem>>, vector<16x4xf32>,
    %c0_52 = arith.constant 0 : index
    %c10 = arith.constant 10 : index
    %c0_53 = arith.constant 0 : index
    %c0_54 = arith.constant 0 : index
    %52 = vector.load %arg1[%c0_52, %c10, %c0_53, %c0_54] : memref<1x16x16x4xf32, #tpu.memory_space<vmem>>, vector<1x1x16x4xf32>
    %53 = vector.shape_cast %52 : vector<1x1x16x4xf32> to vector<16x4xf32>
    %cst_55 = arith.constant 0.00392156886 : f32
    %54 = vector.broadcast %cst_55 : f32 to vector<16x4xf32>
    %55 = arith.mulf %53, %54 : vector<16x4xf32>
    %c199 = arith.constant 199 : index
    %c0_56 = arith.constant 0 : index
    %56 = vector.load %arg21[%c199, %c0_56] : memref<324x4xf32, #tpu.memory_space<vmem>>, vector<16x4xf32>
    tpu.vector_store %arg21[%c199, %c0_56], %55 {strides = array<i32>} : memref<324x4xf32, #tpu.memory_space<vmem>>, vector<16x4xf32>,
    %c0_57 = arith.constant 0 : index
    %c11 = arith.constant 11 : index
    %c0_58 = arith.constant 0 : index
    %c0_59 = arith.constant 0 : index
    %57 = vector.load %arg1[%c0_57, %c11, %c0_58, %c0_59] : memref<1x16x16x4xf32, #tpu.memory_space<vmem>>, vector<1x1x16x4xf32>
    %58 = vector.shape_cast %57 : vector<1x1x16x4xf32> to vector<16x4xf32>
    %cst_60 = arith.constant 0.00392156886 : f32
    %59 = vector.broadcast %cst_60 : f32 to vector<16x4xf32>
    %60 = arith.mulf %58, %59 : vector<16x4xf32>
    %c217 = arith.constant 217 : index
    %c0_61 = arith.constant 0 : index
    %61 = vector.load %arg21[%c217, %c0_61] : memref<324x4xf32, #tpu.memory_space<vmem>>, vector<16x4xf32>
    tpu.vector_store %arg21[%c217, %c0_61], %60 {strides = array<i32>} : memref<324x4xf32, #tpu.memory_space<vmem>>, vector<16x4xf32>,
    %c0_62 = arith.constant 0 : index
    %c12 = arith.constant 12 : index
    %c0_63 = arith.constant 0 : index
    %c0_64 = arith.constant 0 : index
    %62 = vector.load %arg1[%c0_62, %c12, %c0_63, %c0_64] : memref<1x16x16x4xf32, #tpu.memory_space<vmem>>, vector<1x1x16x4xf32>
    %63 = vector.shape_cast %62 : vector<1x1x16x4xf32> to vector<16x4xf32>
    %cst_65 = arith.constant 0.00392156886 : f32
    %64 = vector.broadcast %cst_65 : f32 to vector<16x4xf32>
    %65 = arith.mulf %63, %64 : vector<16x4xf32>
    %c235 = arith.constant 235 : index
    %c0_66 = arith.constant 0 : index
    %66 = vector.load %arg21[%c235, %c0_66] : memref<324x4xf32, #tpu.memory_space<vmem>>, vector<16x4xf32>
    tpu.vector_store %arg21[%c235, %c0_66], %65 {strides = array<i32>} : memref<324x4xf32, #tpu.memory_space<vmem>>, vector<16x4xf32>,
    %c0_67 = arith.constant 0 : index
    %c13 = arith.constant 13 : index
    %c0_68 = arith.constant 0 : index
    %c0_69 = arith.constant 0 : index
    %67 = vector.load %arg1[%c0_67, %c13, %c0_68, %c0_69] : memref<1x16x16x4xf32, #tpu.memory_space<vmem>>, vector<1x1x16x4xf32>
    %68 = vector.shape_cast %67 : vector<1x1x16x4xf32> to vector<16x4xf32>
    %cst_70 = arith.constant 0.00392156886 : f32
    %69 = vector.broadcast %cst_70 : f32 to vector<16x4xf32>
    %70 = arith.mulf %68, %69 : vector<16x4xf32>
    %c253 = arith.constant 253 : index
    %c0_71 = arith.constant 0 : index
    %71 = vector.load %arg21[%c253, %c0_71] : memref<324x4xf32, #tpu.memory_space<vmem>>, vector<16x4xf32>
    tpu.vector_store %arg21[%c253, %c0_71], %70 {strides = array<i32>} : memref<324x4xf32, #tpu.memory_space<vmem>>, vector<16x4xf32>,
    %c0_72 = arith.constant 0 : index
    %c14 = arith.constant 14 : index
    %c0_73 = arith.constant 0 : index
    %c0_74 = arith.constant 0 : index
    %72 = vector.load %arg1[%c0_72, %c14, %c0_73, %c0_74] : memref<1x16x16x4xf32, #tpu.memory_space<vmem>>, vector<1x1x16x4xf32>
    %73 = vector.shape_cast %72 : vector<1x1x16x4xf32> to vector<16x4xf32>
    %cst_75 = arith.constant 0.00392156886 : f32
    %74 = vector.broadcast %cst_75 : f32 to vector<16x4xf32>
    %75 = arith.mulf %73, %74 : vector<16x4xf32>
    %c271 = arith.constant 271 : index
    %c0_76 = arith.constant 0 : index
    %76 = vector.load %arg21[%c271, %c0_76] : memref<324x4xf32, #tpu.memory_space<vmem>>, vector<16x4xf32>
    tpu.vector_store %arg21[%c271, %c0_76], %75 {strides = array<i32>} : memref<324x4xf32, #tpu.memory_space<vmem>>, vector<16x4xf32>,
    %c0_77 = arith.constant 0 : index
    %c15 = arith.constant 15 : index
    %c0_78 = arith.constant 0 : index
    %c0_79 = arith.constant 0 : index
    %77 = vector.load %arg1[%c0_77, %c15, %c0_78, %c0_79] : memref<1x16x16x4xf32, #tpu.memory_space<vmem>>, vector<1x1x16x4xf32>
    %78 = vector.shape_cast %77 : vector<1x1x16x4xf32> to vector<16x4xf32>
    %cst_80 = arith.constant 0.00392156886 : f32
    %79 = vector.broadcast %cst_80 : f32 to vector<16x4xf32>
    %80 = arith.mulf %78, %79 : vector<16x4xf32>
    %c289 = arith.constant 289 : index
    %c0_81 = arith.constant 0 : index
    %81 = vector.load %arg21[%c289, %c0_81] : memref<324x4xf32, #tpu.memory_space<vmem>>, vector<16x4xf32>
    tpu.vector_store %arg21[%c289, %c0_81], %80 {strides = array<i32>} : memref<324x4xf32, #tpu.memory_space<vmem>>, vector<16x4xf32>,
    %cst_82 = arith.constant 0.000000e+00 : f32
    %82 = vector.broadcast %cst_82 : f32 to vector<286x16xf32>
    %c0_83 = arith.constant 0 : index
    %c0_84 = arith.constant 0 : index
    %83 = vector.load %arg21[%c0_83, %c0_84] : memref<324x4xf32, #tpu.memory_space<vmem>>, vector<286x4xf32>
    %c0_85 = arith.constant 0 : index
    %c0_86 = arith.constant 0 : index
    %c0_87 = arith.constant 0 : index
    %c0_88 = arith.constant 0 : index
    %84 = vector.load %arg2[%c0_85, %c0_86, %c0_87, %c0_88] : memref<3x3x4x16xf32, #tpu.memory_space<vmem>>, vector<1x1x4x16xf32>
    %85 = vector.shape_cast %84 : vector<1x1x4x16xf32> to vector<4x16xf32>
    %cst_89 = arith.constant dense<0.000000e+00> : vector<286x16xf32>
    %86 = tpu.matmul %83, %85, %cst_89 {dimension_numbers = #tpu.dot_dimension_numbers<[1], [0], [0], [1], [0, 0, 1, 1], [], []>} : vector<286x4xf32>, vector<4x16xf32>, vector<286x16xf32> -> vector<286x16xf32>
    %87 = arith.addf %82, %86 : vector<286x16xf32>
    %c1_90 = arith.constant 1 : index
    %c0_91 = arith.constant 0 : index
    %88 = vector.load %arg21[%c1_90, %c0_91] : memref<324x4xf32, #tpu.memory_space<vmem>>, vector<286x4xf32>
    %c0_92 = arith.constant 0 : index
    %c1_93 = arith.constant 1 : index
    %c0_94 = arith.constant 0 : index
    %c0_95 = arith.constant 0 : index
    %89 = vector.load %arg2[%c0_92, %c1_93, %c0_94, %c0_95] : memref<3x3x4x16xf32, #tpu.memory_space<vmem>>, vector<1x1x4x16xf32>
    %90 = vector.shape_cast %89 : vector<1x1x4x16xf32> to vector<4x16xf32>
    %cst_96 = arith.constant dense<0.000000e+00> : vector<286x16xf32>
    %91 = tpu.matmul %88, %90, %cst_96 {dimension_numbers = #tpu.dot_dimension_numbers<[1], [0], [0], [1], [0, 0, 1, 1], [], []>} : vector<286x4xf32>, vector<4x16xf32>, vector<286x16xf32> -> vector<286x16xf32>
    %92 = arith.addf %87, %91 : vector<286x16xf32>
    %c2_97 = arith.constant 2 : index
    %c0_98 = arith.constant 0 : index
    %93 = vector.load %arg21[%c2_97, %c0_98] : memref<324x4xf32, #tpu.memory_space<vmem>>, vector<286x4xf32>
    %c0_99 = arith.constant 0 : index
    %c2_100 = arith.constant 2 : index
    %c0_101 = arith.constant 0 : index
    %c0_102 = arith.constant 0 : index
    %94 = vector.load %arg2[%c0_99, %c2_100, %c0_101, %c0_102] : memref<3x3x4x16xf32, #tpu.memory_space<vmem>>, vector<1x1x4x16xf32>
    %95 = vector.shape_cast %94 : vector<1x1x4x16xf32> to vector<4x16xf32>
    %cst_103 = arith.constant dense<0.000000e+00> : vector<286x16xf32>
    %96 = tpu.matmul %93, %95, %cst_103 {dimension_numbers = #tpu.dot_dimension_numbers<[1], [0], [0], [1], [0, 0, 1, 1], [], []>} : vector<286x4xf32>, vector<4x16xf32>, vector<286x16xf32> -> vector<286x16xf32>
    %97 = arith.addf %92, %96 : vector<286x16xf32>
    %c18 = arith.constant 18 : index
    %c0_104 = arith.constant 0 : index
    %98 = vector.load %arg21[%c18, %c0_104] : memref<324x4xf32, #tpu.memory_space<vmem>>, vector<286x4xf32>
    %c1_105 = arith.constant 1 : index
    %c0_106 = arith.constant 0 : index
    %c0_107 = arith.constant 0 : index
    %c0_108 = arith.constant 0 : index
    %99 = vector.load %arg2[%c1_105, %c0_106, %c0_107, %c0_108] : memref<3x3x4x16xf32, #tpu.memory_space<vmem>>, vector<1x1x4x16xf32>
    %100 = vector.shape_cast %99 : vector<1x1x4x16xf32> to vector<4x16xf32>
    %cst_109 = arith.constant dense<0.000000e+00> : vector<286x16xf32>
    %101 = tpu.matmul %98, %100, %cst_109 {dimension_numbers = #tpu.dot_dimension_numbers<[1], [0], [0], [1], [0, 0, 1, 1], [], []>} : vector<286x4xf32>, vector<4x16xf32>, vector<286x16xf32> -> vector<286x16xf32>
    %102 = arith.addf %97, %101 : vector<286x16xf32>
    %c19_110 = arith.constant 19 : index
    %c0_111 = arith.constant 0 : index
    %103 = vector.load %arg21[%c19_110, %c0_111] : memref<324x4xf32, #tpu.memory_space<vmem>>, vector<286x4xf32>
    %c1_112 = arith.constant 1 : index
    %c1_113 = arith.constant 1 : index
    %c0_114 = arith.constant 0 : index
    %c0_115 = arith.constant 0 : index
    %104 = vector.load %arg2[%c1_112, %c1_113, %c0_114, %c0_115] : memref<3x3x4x16xf32, #tpu.memory_space<vmem>>, vector<1x1x4x16xf32>
    %105 = vector.shape_cast %104 : vector<1x1x4x16xf32> to vector<4x16xf32>
    %cst_116 = arith.constant dense<0.000000e+00> : vector<286x16xf32>
    %106 = tpu.matmul %103, %105, %cst_116 {dimension_numbers = #tpu.dot_dimension_numbers<[1], [0], [0], [1], [0, 0, 1, 1], [], []>} : vector<286x4xf32>, vector<4x16xf32>, vector<286x16xf32> -> vector<286x16xf32>
    %107 = arith.addf %102, %106 : vector<286x16xf32>
    %c20 = arith.constant 20 : index
    %c0_117 = arith.constant 0 : index
    %108 = vector.load %arg21[%c20, %c0_117] : memref<324x4xf32, #tpu.memory_space<vmem>>, vector<286x4xf32>
    %c1_118 = arith.constant 1 : index
    %c2_119 = arith.constant 2 : index
    %c0_120 = arith.constant 0 : index
    %c0_121 = arith.constant 0 : index
    %109 = vector.load %arg2[%c1_118, %c2_119, %c0_120, %c0_121] : memref<3x3x4x16xf32, #tpu.memory_space<vmem>>, vector<1x1x4x16xf32>
    %110 = vector.shape_cast %109 : vector<1x1x4x16xf32> to vector<4x16xf32>
    %cst_122 = arith.constant dense<0.000000e+00> : vector<286x16xf32>
    %111 = tpu.matmul %108, %110, %cst_122 {dimension_numbers = #tpu.dot_dimension_numbers<[1], [0], [0], [1], [0, 0, 1, 1], [], []>} : vector<286x4xf32>, vector<4x16xf32>, vector<286x16xf32> -> vector<286x16xf32>
    %112 = arith.addf %107, %111 : vector<286x16xf32>
    %c36 = arith.constant 36 : index
    %c0_123 = arith.constant 0 : index
    %113 = vector.load %arg21[%c36, %c0_123] : memref<324x4xf32, #tpu.memory_space<vmem>>, vector<286x4xf32>
    %c2_124 = arith.constant 2 : index
    %c0_125 = arith.constant 0 : index
    %c0_126 = arith.constant 0 : index
    %c0_127 = arith.constant 0 : index
    %114 = vector.load %arg2[%c2_124, %c0_125, %c0_126, %c0_127] : memref<3x3x4x16xf32, #tpu.memory_space<vmem>>, vector<1x1x4x16xf32>
    %115 = vector.shape_cast %114 : vector<1x1x4x16xf32> to vector<4x16xf32>
    %cst_128 = arith.constant dense<0.000000e+00> : vector<286x16xf32>
    %116 = tpu.matmul %113, %115, %cst_128 {dimension_numbers = #tpu.dot_dimension_numbers<[1], [0], [0], [1], [0, 0, 1, 1], [], []>} : vector<286x4xf32>, vector<4x16xf32>, vector<286x16xf32> -> vector<286x16xf32>
    %117 = arith.addf %112, %116 : vector<286x16xf32>
    %c37_129 = arith.constant 37 : index
    %c0_130 = arith.constant 0 : index
    %118 = vector.load %arg21[%c37_129, %c0_130] : memref<324x4xf32, #tpu.memory_space<vmem>>, vector<286x4xf32>
    %c2_131 = arith.constant 2 : index
    %c1_132 = arith.constant 1 : index
    %c0_133 = arith.constant 0 : index
    %c0_134 = arith.constant 0 : index
    %119 = vector.load %arg2[%c2_131, %c1_132, %c0_133, %c0_134] : memref<3x3x4x16xf32, #tpu.memory_space<vmem>>, vector<1x1x4x16xf32>
    %120 = vector.shape_cast %119 : vector<1x1x4x16xf32> to vector<4x16xf32>
    %cst_135 = arith.constant dense<0.000000e+00> : vector<286x16xf32>
    %121 = tpu.matmul %118, %120, %cst_135 {dimension_numbers = #tpu.dot_dimension_numbers<[1], [0], [0], [1], [0, 0, 1, 1], [], []>} : vector<286x4xf32>, vector<4x16xf32>, vector<286x16xf32> -> vector<286x16xf32>
    %122 = arith.addf %117, %121 : vector<286x16xf32>
    %c38 = arith.constant 38 : index
    %c0_136 = arith.constant 0 : index
    %123 = vector.load %arg21[%c38, %c0_136] : memref<324x4xf32, #tpu.memory_space<vmem>>, vector<286x4xf32>
    %c2_137 = arith.constant 2 : index
    %c2_138 = arith.constant 2 : index
    %c0_139 = arith.constant 0 : index
    %c0_140 = arith.constant 0 : index
    %124 = vector.load %arg2[%c2_137, %c2_138, %c0_139, %c0_140] : memref<3x3x4x16xf32, #tpu.memory_space<vmem>>, vector<1x1x4x16xf32>
    %125 = vector.shape_cast %124 : vector<1x1x4x16xf32> to vector<4x16xf32>
    %cst_141 = arith.constant dense<0.000000e+00> : vector<286x16xf32>
    %126 = tpu.matmul %123, %125, %cst_141 {dimension_numbers = #tpu.dot_dimension_numbers<[1], [0], [0], [1], [0, 0, 1, 1], [], []>} : vector<286x4xf32>, vector<4x16xf32>, vector<286x16xf32> -> vector<286x16xf32>
    %127 = arith.addf %122, %126 : vector<286x16xf32>
    %c0_142 = arith.constant 0 : index
    %c0_143 = arith.constant 0 : index
    %128 = vector.load %arg3[%c0_142, %c0_143] : memref<1x16xf32, #tpu.memory_space<vmem>>, vector<1x16xf32>
    %129 = vector.broadcast %128 : vector<1x16xf32> to vector<286x16xf32>
    %130 = arith.addf %127, %129 : vector<286x16xf32>
    %cst_144 = arith.constant 0.000000e+00 : f32
    %131 = vector.broadcast %cst_144 : f32 to vector<286x16xf32>
    %132 = arith.maximumf %130, %131 : vector<286x16xf32>
    %c0_145 = arith.constant 0 : index
    %c0_146 = arith.constant 0 : index
    %133 = vector.load %arg27[%c0_145, %c0_146] : memref<288x16xf32, #tpu.memory_space<vmem>>, vector<286x16xf32>
    tpu.vector_store %arg27[%c0_145, %c0_146], %132 {strides = array<i32>} : memref<288x16xf32, #tpu.memory_space<vmem>>, vector<286x16xf32>,
    %cst_147 = arith.constant 0.000000e+00 : f32
    %134 = vector.broadcast %cst_147 : f32 to vector<2x16xf32>
    %c286 = arith.constant 286 : index
    %c0_148 = arith.constant 0 : index
    %135 = vector.load %arg27[%c286, %c0_148] : memref<288x16xf32, #tpu.memory_space<vmem>>, vector<2x16xf32>
    tpu.vector_store %arg27[%c286, %c0_148], %134 {strides = array<i32>} : memref<288x16xf32, #tpu.memory_space<vmem>>, vector<2x16xf32>,
    %c0_149 = arith.constant 0 : index
    %c0_150 = arith.constant 0 : index
    %136 = vector.load %arg27[%c0_149, %c0_150] : memref<288x16xf32, #tpu.memory_space<vmem>>, vector<268x16xf32>
    %c1_151 = arith.constant 1 : index
    %c0_152 = arith.constant 0 : index
    %137 = vector.load %arg27[%c1_151, %c0_152] : memref<288x16xf32, #tpu.memory_space<vmem>>, vector<268x16xf32>
    %c18_153 = arith.constant 18 : index
    %c0_154 = arith.constant 0 : index
    %138 = vector.load %arg27[%c18_153, %c0_154] : memref<288x16xf32, #tpu.memory_space<vmem>>, vector<268x16xf32>
    %c19_155 = arith.constant 19 : index
    %c0_156 = arith.constant 0 : index
    %139 = vector.load %arg27[%c19_155, %c0_156] : memref<288x16xf32, #tpu.memory_space<vmem>>, vector<268x16xf32>
    %140 = arith.maximumf %136, %137 : vector<268x16xf32>
    %141 = arith.maximumf %138, %139 : vector<268x16xf32>
    %142 = arith.maximumf %140, %141 : vector<268x16xf32>
    %c0_157 = arith.constant 0 : index
    %c0_158 = arith.constant 0 : index
    %143 = vector.load %arg16[%c0_157, %c0_158] : memref<100x268xf32, #tpu.memory_space<vmem>>, vector<100x268xf32>
    %cst_159 = arith.constant dense<0.000000e+00> : vector<100x16xf32>
    %144 = tpu.matmul %143, %142, %cst_159 {dimension_numbers = #tpu.dot_dimension_numbers<[1], [0], [0], [1], [0, 0, 1, 1], [], []>} : vector<100x268xf32>, vector<268x16xf32>, vector<100x16xf32> -> vector<100x16xf32>
    %c0_160 = arith.constant 0 : index
    %c0_161 = arith.constant 0 : index
    %145 = vector.load %arg22[%c0_160, %c0_161] : memref<100x16xf32, #tpu.memory_space<vmem>>, vector<100x16xf32>
    tpu.vector_store %arg22[%c0_160, %c0_161], %144 {strides = array<i32>} : memref<100x16xf32, #tpu.memory_space<vmem>>, vector<100x16xf32>,
    %cst_162 = arith.constant 0.000000e+00 : f32
    %146 = vector.broadcast %cst_162 : f32 to vector<78x32xf32>
    %c0_163 = arith.constant 0 : index
    %c0_164 = arith.constant 0 : index
    %147 = vector.load %arg22[%c0_163, %c0_164] : memref<100x16xf32, #tpu.memory_space<vmem>>, vector<78x16xf32>
    %c0_165 = arith.constant 0 : index
    %c0_166 = arith.constant 0 : index
    %c0_167 = arith.constant 0 : index
    %c0_168 = arith.constant 0 : index
    %148 = vector.load %arg4[%c0_165, %c0_166, %c0_167, %c0_168] : memref<3x3x16x32xf32, #tpu.memory_space<vmem>>, vector<1x1x16x32xf32>
    %149 = vector.shape_cast %148 : vector<1x1x16x32xf32> to vector<16x32xf32>
    %cst_169 = arith.constant dense<0.000000e+00> : vector<78x32xf32>
    %150 = tpu.matmul %147, %149, %cst_169 {dimension_numbers = #tpu.dot_dimension_numbers<[1], [0], [0], [1], [0, 0, 1, 1], [], []>} : vector<78x16xf32>, vector<16x32xf32>, vector<78x32xf32> -> vector<78x32xf32>
    %151 = arith.addf %146, %150 : vector<78x32xf32>
    %c1_170 = arith.constant 1 : index
    %c0_171 = arith.constant 0 : index
    %152 = vector.load %arg22[%c1_170, %c0_171] : memref<100x16xf32, #tpu.memory_space<vmem>>, vector<78x16xf32>
    %c0_172 = arith.constant 0 : index
    %c1_173 = arith.constant 1 : index
    %c0_174 = arith.constant 0 : index
    %c0_175 = arith.constant 0 : index
    %153 = vector.load %arg4[%c0_172, %c1_173, %c0_174, %c0_175] : memref<3x3x16x32xf32, #tpu.memory_space<vmem>>, vector<1x1x16x32xf32>
    %154 = vector.shape_cast %153 : vector<1x1x16x32xf32> to vector<16x32xf32>
    %cst_176 = arith.constant dense<0.000000e+00> : vector<78x32xf32>
    %155 = tpu.matmul %152, %154, %cst_176 {dimension_numbers = #tpu.dot_dimension_numbers<[1], [0], [0], [1], [0, 0, 1, 1], [], []>} : vector<78x16xf32>, vector<16x32xf32>, vector<78x32xf32> -> vector<78x32xf32>
    %156 = arith.addf %151, %155 : vector<78x32xf32>
    %c2_177 = arith.constant 2 : index
    %c0_178 = arith.constant 0 : index
    %157 = vector.load %arg22[%c2_177, %c0_178] : memref<100x16xf32, #tpu.memory_space<vmem>>, vector<78x16xf32>
    %c0_179 = arith.constant 0 : index
    %c2_180 = arith.constant 2 : index
    %c0_181 = arith.constant 0 : index
    %c0_182 = arith.constant 0 : index
    %158 = vector.load %arg4[%c0_179, %c2_180, %c0_181, %c0_182] : memref<3x3x16x32xf32, #tpu.memory_space<vmem>>, vector<1x1x16x32xf32>
    %159 = vector.shape_cast %158 : vector<1x1x16x32xf32> to vector<16x32xf32>
    %cst_183 = arith.constant dense<0.000000e+00> : vector<78x32xf32>
    %160 = tpu.matmul %157, %159, %cst_183 {dimension_numbers = #tpu.dot_dimension_numbers<[1], [0], [0], [1], [0, 0, 1, 1], [], []>} : vector<78x16xf32>, vector<16x32xf32>, vector<78x32xf32> -> vector<78x32xf32>
    %161 = arith.addf %156, %160 : vector<78x32xf32>
    %c10_184 = arith.constant 10 : index
    %c0_185 = arith.constant 0 : index
    %162 = vector.load %arg22[%c10_184, %c0_185] : memref<100x16xf32, #tpu.memory_space<vmem>>, vector<78x16xf32>
    %c1_186 = arith.constant 1 : index
    %c0_187 = arith.constant 0 : index
    %c0_188 = arith.constant 0 : index
    %c0_189 = arith.constant 0 : index
    %163 = vector.load %arg4[%c1_186, %c0_187, %c0_188, %c0_189] : memref<3x3x16x32xf32, #tpu.memory_space<vmem>>, vector<1x1x16x32xf32>
    %164 = vector.shape_cast %163 : vector<1x1x16x32xf32> to vector<16x32xf32>
    %cst_190 = arith.constant dense<0.000000e+00> : vector<78x32xf32>
    %165 = tpu.matmul %162, %164, %cst_190 {dimension_numbers = #tpu.dot_dimension_numbers<[1], [0], [0], [1], [0, 0, 1, 1], [], []>} : vector<78x16xf32>, vector<16x32xf32>, vector<78x32xf32> -> vector<78x32xf32>
    %166 = arith.addf %161, %165 : vector<78x32xf32>
    %c11_191 = arith.constant 11 : index
    %c0_192 = arith.constant 0 : index
    %167 = vector.load %arg22[%c11_191, %c0_192] : memref<100x16xf32, #tpu.memory_space<vmem>>, vector<78x16xf32>
    %c1_193 = arith.constant 1 : index
    %c1_194 = arith.constant 1 : index
    %c0_195 = arith.constant 0 : index
    %c0_196 = arith.constant 0 : index
    %168 = vector.load %arg4[%c1_193, %c1_194, %c0_195, %c0_196] : memref<3x3x16x32xf32, #tpu.memory_space<vmem>>, vector<1x1x16x32xf32>
    %169 = vector.shape_cast %168 : vector<1x1x16x32xf32> to vector<16x32xf32>
    %cst_197 = arith.constant dense<0.000000e+00> : vector<78x32xf32>
    %170 = tpu.matmul %167, %169, %cst_197 {dimension_numbers = #tpu.dot_dimension_numbers<[1], [0], [0], [1], [0, 0, 1, 1], [], []>} : vector<78x16xf32>, vector<16x32xf32>, vector<78x32xf32> -> vector<78x32xf32>
    %171 = arith.addf %166, %170 : vector<78x32xf32>
    %c12_198 = arith.constant 12 : index
    %c0_199 = arith.constant 0 : index
    %172 = vector.load %arg22[%c12_198, %c0_199] : memref<100x16xf32, #tpu.memory_space<vmem>>, vector<78x16xf32>
    %c1_200 = arith.constant 1 : index
    %c2_201 = arith.constant 2 : index
    %c0_202 = arith.constant 0 : index
    %c0_203 = arith.constant 0 : index
    %173 = vector.load %arg4[%c1_200, %c2_201, %c0_202, %c0_203] : memref<3x3x16x32xf32, #tpu.memory_space<vmem>>, vector<1x1x16x32xf32>
    %174 = vector.shape_cast %173 : vector<1x1x16x32xf32> to vector<16x32xf32>
    %cst_204 = arith.constant dense<0.000000e+00> : vector<78x32xf32>
    %175 = tpu.matmul %172, %174, %cst_204 {dimension_numbers = #tpu.dot_dimension_numbers<[1], [0], [0], [1], [0, 0, 1, 1], [], []>} : vector<78x16xf32>, vector<16x32xf32>, vector<78x32xf32> -> vector<78x32xf32>
    %176 = arith.addf %171, %175 : vector<78x32xf32>
    %c20_205 = arith.constant 20 : index
    %c0_206 = arith.constant 0 : index
    %177 = vector.load %arg22[%c20_205, %c0_206] : memref<100x16xf32, #tpu.memory_space<vmem>>, vector<78x16xf32>
    %c2_207 = arith.constant 2 : index
    %c0_208 = arith.constant 0 : index
    %c0_209 = arith.constant 0 : index
    %c0_210 = arith.constant 0 : index
    %178 = vector.load %arg4[%c2_207, %c0_208, %c0_209, %c0_210] : memref<3x3x16x32xf32, #tpu.memory_space<vmem>>, vector<1x1x16x32xf32>
    %179 = vector.shape_cast %178 : vector<1x1x16x32xf32> to vector<16x32xf32>
    %cst_211 = arith.constant dense<0.000000e+00> : vector<78x32xf32>
    %180 = tpu.matmul %177, %179, %cst_211 {dimension_numbers = #tpu.dot_dimension_numbers<[1], [0], [0], [1], [0, 0, 1, 1], [], []>} : vector<78x16xf32>, vector<16x32xf32>, vector<78x32xf32> -> vector<78x32xf32>
    %181 = arith.addf %176, %180 : vector<78x32xf32>
    %c21 = arith.constant 21 : index
    %c0_212 = arith.constant 0 : index
    %182 = vector.load %arg22[%c21, %c0_212] : memref<100x16xf32, #tpu.memory_space<vmem>>, vector<78x16xf32>
    %c2_213 = arith.constant 2 : index
    %c1_214 = arith.constant 1 : index
    %c0_215 = arith.constant 0 : index
    %c0_216 = arith.constant 0 : index
    %183 = vector.load %arg4[%c2_213, %c1_214, %c0_215, %c0_216] : memref<3x3x16x32xf32, #tpu.memory_space<vmem>>, vector<1x1x16x32xf32>
    %184 = vector.shape_cast %183 : vector<1x1x16x32xf32> to vector<16x32xf32>
    %cst_217 = arith.constant dense<0.000000e+00> : vector<78x32xf32>
    %185 = tpu.matmul %182, %184, %cst_217 {dimension_numbers = #tpu.dot_dimension_numbers<[1], [0], [0], [1], [0, 0, 1, 1], [], []>} : vector<78x16xf32>, vector<16x32xf32>, vector<78x32xf32> -> vector<78x32xf32>
    %186 = arith.addf %181, %185 : vector<78x32xf32>
    %c22 = arith.constant 22 : index
    %c0_218 = arith.constant 0 : index
    %187 = vector.load %arg22[%c22, %c0_218] : memref<100x16xf32, #tpu.memory_space<vmem>>, vector<78x16xf32>
    %c2_219 = arith.constant 2 : index
    %c2_220 = arith.constant 2 : index
    %c0_221 = arith.constant 0 : index
    %c0_222 = arith.constant 0 : index
    %188 = vector.load %arg4[%c2_219, %c2_220, %c0_221, %c0_222] : memref<3x3x16x32xf32, #tpu.memory_space<vmem>>, vector<1x1x16x32xf32>
    %189 = vector.shape_cast %188 : vector<1x1x16x32xf32> to vector<16x32xf32>
    %cst_223 = arith.constant dense<0.000000e+00> : vector<78x32xf32>
    %190 = tpu.matmul %187, %189, %cst_223 {dimension_numbers = #tpu.dot_dimension_numbers<[1], [0], [0], [1], [0, 0, 1, 1], [], []>} : vector<78x16xf32>, vector<16x32xf32>, vector<78x32xf32> -> vector<78x32xf32>
    %191 = arith.addf %186, %190 : vector<78x32xf32>
    %c0_224 = arith.constant 0 : index
    %c0_225 = arith.constant 0 : index
    %192 = vector.load %arg5[%c0_224, %c0_225] : memref<1x32xf32, #tpu.memory_space<vmem>>, vector<1x32xf32>
    %193 = vector.broadcast %192 : vector<1x32xf32> to vector<78x32xf32>
    %194 = arith.addf %191, %193 : vector<78x32xf32>
    %cst_226 = arith.constant 0.000000e+00 : f32
    %195 = vector.broadcast %cst_226 : f32 to vector<78x32xf32>
    %196 = arith.maximumf %194, %195 : vector<78x32xf32>
    %c0_227 = arith.constant 0 : index
    %c0_228 = arith.constant 0 : index
    %197 = vector.load %arg28[%c0_227, %c0_228] : memref<80x32xf32, #tpu.memory_space<vmem>>, vector<78x32xf32>
    tpu.vector_store %arg28[%c0_227, %c0_228], %196 {strides = array<i32>} : memref<80x32xf32, #tpu.memory_space<vmem>>, vector<78x32xf32>,
    %cst_229 = arith.constant 0.000000e+00 : f32
    %198 = vector.broadcast %cst_229 : f32 to vector<2x32xf32>
    %c78 = arith.constant 78 : index
    %c0_230 = arith.constant 0 : index
    %199 = vector.load %arg28[%c78, %c0_230] : memref<80x32xf32, #tpu.memory_space<vmem>>, vector<2x32xf32>
    tpu.vector_store %arg28[%c78, %c0_230], %198 {strides = array<i32>} : memref<80x32xf32, #tpu.memory_space<vmem>>, vector<2x32xf32>,
    %c0_231 = arith.constant 0 : index
    %c0_232 = arith.constant 0 : index
    %200 = vector.load %arg28[%c0_231, %c0_232] : memref<80x32xf32, #tpu.memory_space<vmem>>, vector<68x32xf32>
    %c1_233 = arith.constant 1 : index
    %c0_234 = arith.constant 0 : index
    %201 = vector.load %arg28[%c1_233, %c0_234] : memref<80x32xf32, #tpu.memory_space<vmem>>, vector<68x32xf32>
    %c10_235 = arith.constant 10 : index
    %c0_236 = arith.constant 0 : index
    %202 = vector.load %arg28[%c10_235, %c0_236] : memref<80x32xf32, #tpu.memory_space<vmem>>, vector<68x32xf32>
    %c11_237 = arith.constant 11 : index
    %c0_238 = arith.constant 0 : index
    %203 = vector.load %arg28[%c11_237, %c0_238] : memref<80x32xf32, #tpu.memory_space<vmem>>, vector<68x32xf32>
    %204 = arith.maximumf %200, %201 : vector<68x32xf32>
    %205 = arith.maximumf %202, %203 : vector<68x32xf32>
    %206 = arith.maximumf %204, %205 : vector<68x32xf32>
    %c0_239 = arith.constant 0 : index
    %c0_240 = arith.constant 0 : index
    %207 = vector.load %arg17[%c0_239, %c0_240] : memref<36x68xf32, #tpu.memory_space<vmem>>, vector<36x68xf32>
    %cst_241 = arith.constant dense<0.000000e+00> : vector<36x32xf32>
    %208 = tpu.matmul %207, %206, %cst_241 {dimension_numbers = #tpu.dot_dimension_numbers<[1], [0], [0], [1], [0, 0, 1, 1], [], []>} : vector<36x68xf32>, vector<68x32xf32>, vector<36x32xf32> -> vector<36x32xf32>
    %c0_242 = arith.constant 0 : index
    %c0_243 = arith.constant 0 : index
    %209 = vector.load %arg23[%c0_242, %c0_243] : memref<36x32xf32, #tpu.memory_space<vmem>>, vector<36x32xf32>
    tpu.vector_store %arg23[%c0_242, %c0_243], %208 {strides = array<i32>} : memref<36x32xf32, #tpu.memory_space<vmem>>, vector<36x32xf32>,
    %cst_244 = arith.constant 0.000000e+00 : f32
    %210 = vector.broadcast %cst_244 : f32 to vector<22x128xf32>
    %c0_245 = arith.constant 0 : index
    %c0_246 = arith.constant 0 : index
    %211 = vector.load %arg23[%c0_245, %c0_246] : memref<36x32xf32, #tpu.memory_space<vmem>>, vector<22x32xf32>
    %c0_247 = arith.constant 0 : index
    %c0_248 = arith.constant 0 : index
    %c0_249 = arith.constant 0 : index
    %c0_250 = arith.constant 0 : index
    %212 = vector.load %arg6[%c0_247, %c0_248, %c0_249, %c0_250] : memref<3x3x32x128xf32, #tpu.memory_space<vmem>>, vector<1x1x32x128xf32>
    %213 = vector.shape_cast %212 : vector<1x1x32x128xf32> to vector<32x128xf32>
    %cst_251 = arith.constant dense<0.000000e+00> : vector<22x128xf32>
    %214 = tpu.matmul %211, %213, %cst_251 {dimension_numbers = #tpu.dot_dimension_numbers<[1], [0], [0], [1], [0, 0, 1, 1], [], []>} : vector<22x32xf32>, vector<32x128xf32>, vector<22x128xf32> -> vector<22x128xf32>
    %215 = arith.addf %210, %214 : vector<22x128xf32>
    %c1_252 = arith.constant 1 : index
    %c0_253 = arith.constant 0 : index
    %216 = vector.load %arg23[%c1_252, %c0_253] : memref<36x32xf32, #tpu.memory_space<vmem>>, vector<22x32xf32>
    %c0_254 = arith.constant 0 : index
    %c1_255 = arith.constant 1 : index
    %c0_256 = arith.constant 0 : index
    %c0_257 = arith.constant 0 : index
    %217 = vector.load %arg6[%c0_254, %c1_255, %c0_256, %c0_257] : memref<3x3x32x128xf32, #tpu.memory_space<vmem>>, vector<1x1x32x128xf32>
    %218 = vector.shape_cast %217 : vector<1x1x32x128xf32> to vector<32x128xf32>
    %cst_258 = arith.constant dense<0.000000e+00> : vector<22x128xf32>
    %219 = tpu.matmul %216, %218, %cst_258 {dimension_numbers = #tpu.dot_dimension_numbers<[1], [0], [0], [1], [0, 0, 1, 1], [], []>} : vector<22x32xf32>, vector<32x128xf32>, vector<22x128xf32> -> vector<22x128xf32>
    %220 = arith.addf %215, %219 : vector<22x128xf32>
    %c2_259 = arith.constant 2 : index
    %c0_260 = arith.constant 0 : index
    %221 = vector.load %arg23[%c2_259, %c0_260] : memref<36x32xf32, #tpu.memory_space<vmem>>, vector<22x32xf32>
    %c0_261 = arith.constant 0 : index
    %c2_262 = arith.constant 2 : index
    %c0_263 = arith.constant 0 : index
    %c0_264 = arith.constant 0 : index
    %222 = vector.load %arg6[%c0_261, %c2_262, %c0_263, %c0_264] : memref<3x3x32x128xf32, #tpu.memory_space<vmem>>, vector<1x1x32x128xf32>
    %223 = vector.shape_cast %222 : vector<1x1x32x128xf32> to vector<32x128xf32>
    %cst_265 = arith.constant dense<0.000000e+00> : vector<22x128xf32>
    %224 = tpu.matmul %221, %223, %cst_265 {dimension_numbers = #tpu.dot_dimension_numbers<[1], [0], [0], [1], [0, 0, 1, 1], [], []>} : vector<22x32xf32>, vector<32x128xf32>, vector<22x128xf32> -> vector<22x128xf32>
    %225 = arith.addf %220, %224 : vector<22x128xf32>
    %c6_266 = arith.constant 6 : index
    %c0_267 = arith.constant 0 : index
    %226 = vector.load %arg23[%c6_266, %c0_267] : memref<36x32xf32, #tpu.memory_space<vmem>>, vector<22x32xf32>
    %c1_268 = arith.constant 1 : index
    %c0_269 = arith.constant 0 : index
    %c0_270 = arith.constant 0 : index
    %c0_271 = arith.constant 0 : index
    %227 = vector.load %arg6[%c1_268, %c0_269, %c0_270, %c0_271] : memref<3x3x32x128xf32, #tpu.memory_space<vmem>>, vector<1x1x32x128xf32>
    %228 = vector.shape_cast %227 : vector<1x1x32x128xf32> to vector<32x128xf32>
    %cst_272 = arith.constant dense<0.000000e+00> : vector<22x128xf32>
    %229 = tpu.matmul %226, %228, %cst_272 {dimension_numbers = #tpu.dot_dimension_numbers<[1], [0], [0], [1], [0, 0, 1, 1], [], []>} : vector<22x32xf32>, vector<32x128xf32>, vector<22x128xf32> -> vector<22x128xf32>
    %230 = arith.addf %225, %229 : vector<22x128xf32>
    %c7_273 = arith.constant 7 : index
    %c0_274 = arith.constant 0 : index
    %231 = vector.load %arg23[%c7_273, %c0_274] : memref<36x32xf32, #tpu.memory_space<vmem>>, vector<22x32xf32>
    %c1_275 = arith.constant 1 : index
    %c1_276 = arith.constant 1 : index
    %c0_277 = arith.constant 0 : index
    %c0_278 = arith.constant 0 : index
    %232 = vector.load %arg6[%c1_275, %c1_276, %c0_277, %c0_278] : memref<3x3x32x128xf32, #tpu.memory_space<vmem>>, vector<1x1x32x128xf32>
    %233 = vector.shape_cast %232 : vector<1x1x32x128xf32> to vector<32x128xf32>
    %cst_279 = arith.constant dense<0.000000e+00> : vector<22x128xf32>
    %234 = tpu.matmul %231, %233, %cst_279 {dimension_numbers = #tpu.dot_dimension_numbers<[1], [0], [0], [1], [0, 0, 1, 1], [], []>} : vector<22x32xf32>, vector<32x128xf32>, vector<22x128xf32> -> vector<22x128xf32>
    %235 = arith.addf %230, %234 : vector<22x128xf32>
    %c8_280 = arith.constant 8 : index
    %c0_281 = arith.constant 0 : index
    %236 = vector.load %arg23[%c8_280, %c0_281] : memref<36x32xf32, #tpu.memory_space<vmem>>, vector<22x32xf32>
    %c1_282 = arith.constant 1 : index
    %c2_283 = arith.constant 2 : index
    %c0_284 = arith.constant 0 : index
    %c0_285 = arith.constant 0 : index
    %237 = vector.load %arg6[%c1_282, %c2_283, %c0_284, %c0_285] : memref<3x3x32x128xf32, #tpu.memory_space<vmem>>, vector<1x1x32x128xf32>
    %238 = vector.shape_cast %237 : vector<1x1x32x128xf32> to vector<32x128xf32>
    %cst_286 = arith.constant dense<0.000000e+00> : vector<22x128xf32>
    %239 = tpu.matmul %236, %238, %cst_286 {dimension_numbers = #tpu.dot_dimension_numbers<[1], [0], [0], [1], [0, 0, 1, 1], [], []>} : vector<22x32xf32>, vector<32x128xf32>, vector<22x128xf32> -> vector<22x128xf32>
    %240 = arith.addf %235, %239 : vector<22x128xf32>
    %c12_287 = arith.constant 12 : index
    %c0_288 = arith.constant 0 : index
    %241 = vector.load %arg23[%c12_287, %c0_288] : memref<36x32xf32, #tpu.memory_space<vmem>>, vector<22x32xf32>
    %c2_289 = arith.constant 2 : index
    %c0_290 = arith.constant 0 : index
    %c0_291 = arith.constant 0 : index
    %c0_292 = arith.constant 0 : index
    %242 = vector.load %arg6[%c2_289, %c0_290, %c0_291, %c0_292] : memref<3x3x32x128xf32, #tpu.memory_space<vmem>>, vector<1x1x32x128xf32>
    %243 = vector.shape_cast %242 : vector<1x1x32x128xf32> to vector<32x128xf32>
    %cst_293 = arith.constant dense<0.000000e+00> : vector<22x128xf32>
    %244 = tpu.matmul %241, %243, %cst_293 {dimension_numbers = #tpu.dot_dimension_numbers<[1], [0], [0], [1], [0, 0, 1, 1], [], []>} : vector<22x32xf32>, vector<32x128xf32>, vector<22x128xf32> -> vector<22x128xf32>
    %245 = arith.addf %240, %244 : vector<22x128xf32>
    %c13_294 = arith.constant 13 : index
    %c0_295 = arith.constant 0 : index
    %246 = vector.load %arg23[%c13_294, %c0_295] : memref<36x32xf32, #tpu.memory_space<vmem>>, vector<22x32xf32>
    %c2_296 = arith.constant 2 : index
    %c1_297 = arith.constant 1 : index
    %c0_298 = arith.constant 0 : index
    %c0_299 = arith.constant 0 : index
    %247 = vector.load %arg6[%c2_296, %c1_297, %c0_298, %c0_299] : memref<3x3x32x128xf32, #tpu.memory_space<vmem>>, vector<1x1x32x128xf32>
    %248 = vector.shape_cast %247 : vector<1x1x32x128xf32> to vector<32x128xf32>
    %cst_300 = arith.constant dense<0.000000e+00> : vector<22x128xf32>
    %249 = tpu.matmul %246, %248, %cst_300 {dimension_numbers = #tpu.dot_dimension_numbers<[1], [0], [0], [1], [0, 0, 1, 1], [], []>} : vector<22x32xf32>, vector<32x128xf32>, vector<22x128xf32> -> vector<22x128xf32>
    %250 = arith.addf %245, %249 : vector<22x128xf32>
    %c14_301 = arith.constant 14 : index
    %c0_302 = arith.constant 0 : index
    %251 = vector.load %arg23[%c14_301, %c0_302] : memref<36x32xf32, #tpu.memory_space<vmem>>, vector<22x32xf32>
    %c2_303 = arith.constant 2 : index
    %c2_304 = arith.constant 2 : index
    %c0_305 = arith.constant 0 : index
    %c0_306 = arith.constant 0 : index
    %252 = vector.load %arg6[%c2_303, %c2_304, %c0_305, %c0_306] : memref<3x3x32x128xf32, #tpu.memory_space<vmem>>, vector<1x1x32x128xf32>
    %253 = vector.shape_cast %252 : vector<1x1x32x128xf32> to vector<32x128xf32>
    %cst_307 = arith.constant dense<0.000000e+00> : vector<22x128xf32>
    %254 = tpu.matmul %251, %253, %cst_307 {dimension_numbers = #tpu.dot_dimension_numbers<[1], [0], [0], [1], [0, 0, 1, 1], [], []>} : vector<22x32xf32>, vector<32x128xf32>, vector<22x128xf32> -> vector<22x128xf32>
    %255 = arith.addf %250, %254 : vector<22x128xf32>
    %c0_308 = arith.constant 0 : index
    %c0_309 = arith.constant 0 : index
    %256 = vector.load %arg7[%c0_308, %c0_309] : memref<1x128xf32, #tpu.memory_space<vmem>>, vector<1x128xf32>
    %257 = vector.broadcast %256 : vector<1x128xf32> to vector<22x128xf32>
    %258 = arith.addf %255, %257 : vector<22x128xf32>
    %cst_310 = arith.constant 0.000000e+00 : f32
    %259 = vector.broadcast %cst_310 : f32 to vector<22x128xf32>
    %260 = arith.maximumf %258, %259 : vector<22x128xf32>
    %cst_311 = arith.constant 0.000000e+00 : f32
    %261 = vector.broadcast %cst_311 : f32 to vector<36x128xf32>
    %c0_312 = arith.constant 0 : index
    %c0_313 = arith.constant 0 : index
    %262 = vector.load %arg24[%c0_312, %c0_313] : memref<36x128xf32, #tpu.memory_space<vmem>>, vector<36x128xf32>
    tpu.vector_store %arg24[%c0_312, %c0_313], %261 {strides = array<i32>} : memref<36x128xf32, #tpu.memory_space<vmem>>, vector<36x128xf32>,
    %c7_314 = arith.constant 7 : index
    %c0_315 = arith.constant 0 : index
    %263 = vector.load %arg24[%c7_314, %c0_315] : memref<36x128xf32, #tpu.memory_space<vmem>>, vector<22x128xf32>
    tpu.vector_store %arg24[%c7_314, %c0_315], %260 {strides = array<i32>} : memref<36x128xf32, #tpu.memory_space<vmem>>, vector<22x128xf32>,
    %cst_316 = arith.constant 0.000000e+00 : f32
    %264 = vector.broadcast %cst_316 : f32 to vector<2x128xf32>
    %c11_317 = arith.constant 11 : index
    %c0_318 = arith.constant 0 : index
    %265 = vector.load %arg24[%c11_317, %c0_318] : memref<36x128xf32, #tpu.memory_space<vmem>>, vector<2x128xf32>
    tpu.vector_store %arg24[%c11_317, %c0_318], %264 {strides = array<i32>} : memref<36x128xf32, #tpu.memory_space<vmem>>, vector<2x128xf32>,
    %cst_319 = arith.constant 0.000000e+00 : f32
    %266 = vector.broadcast %cst_319 : f32 to vector<2x128xf32>
    %c17 = arith.constant 17 : index
    %c0_320 = arith.constant 0 : index
    %267 = vector.load %arg24[%c17, %c0_320] : memref<36x128xf32, #tpu.memory_space<vmem>>, vector<2x128xf32>
    tpu.vector_store %arg24[%c17, %c0_320], %266 {strides = array<i32>} : memref<36x128xf32, #tpu.memory_space<vmem>>, vector<2x128xf32>,
    %cst_321 = arith.constant 0.000000e+00 : f32
    %268 = vector.broadcast %cst_321 : f32 to vector<2x128xf32>
    %c23 = arith.constant 23 : index
    %c0_322 = arith.constant 0 : index
    %269 = vector.load %arg24[%c23, %c0_322] : memref<36x128xf32, #tpu.memory_space<vmem>>, vector<2x128xf32>
    tpu.vector_store %arg24[%c23, %c0_322], %268 {strides = array<i32>} : memref<36x128xf32, #tpu.memory_space<vmem>>, vector<2x128xf32>,
    %cst_323 = arith.constant 0.000000e+00 : f32
    %270 = vector.broadcast %cst_323 : f32 to vector<22x128xf32>
    %c0_324 = arith.constant 0 : index
    %c0_325 = arith.constant 0 : index
    %271 = vector.load %arg24[%c0_324, %c0_325] : memref<36x128xf32, #tpu.memory_space<vmem>>, vector<22x128xf32>
    %c0_326 = arith.constant 0 : index
    %c0_327 = arith.constant 0 : index
    %c0_328 = arith.constant 0 : index
    %c0_329 = arith.constant 0 : index
    %272 = vector.load %arg8[%c0_326, %c0_327, %c0_328, %c0_329] : memref<3x3x128x128xf32, #tpu.memory_space<vmem>>, vector<1x1x128x128xf32>
    %273 = vector.shape_cast %272 : vector<1x1x128x128xf32> to vector<128x128xf32>
    %cst_330 = arith.constant dense<0.000000e+00> : vector<22x128xf32>
    %274 = tpu.matmul %271, %273, %cst_330 {dimension_numbers = #tpu.dot_dimension_numbers<[1], [0], [0], [1], [0, 0, 1, 1], [], []>} : vector<22x128xf32>, vector<128x128xf32>, vector<22x128xf32> -> vector<22x128xf32>
    %275 = arith.addf %270, %274 : vector<22x128xf32>
    %c1_331 = arith.constant 1 : index
    %c0_332 = arith.constant 0 : index
    %276 = vector.load %arg24[%c1_331, %c0_332] : memref<36x128xf32, #tpu.memory_space<vmem>>, vector<22x128xf32>
    %c0_333 = arith.constant 0 : index
    %c1_334 = arith.constant 1 : index
    %c0_335 = arith.constant 0 : index
    %c0_336 = arith.constant 0 : index
    %277 = vector.load %arg8[%c0_333, %c1_334, %c0_335, %c0_336] : memref<3x3x128x128xf32, #tpu.memory_space<vmem>>, vector<1x1x128x128xf32>
    %278 = vector.shape_cast %277 : vector<1x1x128x128xf32> to vector<128x128xf32>
    %cst_337 = arith.constant dense<0.000000e+00> : vector<22x128xf32>
    %279 = tpu.matmul %276, %278, %cst_337 {dimension_numbers = #tpu.dot_dimension_numbers<[1], [0], [0], [1], [0, 0, 1, 1], [], []>} : vector<22x128xf32>, vector<128x128xf32>, vector<22x128xf32> -> vector<22x128xf32>
    %280 = arith.addf %275, %279 : vector<22x128xf32>
    %c2_338 = arith.constant 2 : index
    %c0_339 = arith.constant 0 : index
    %281 = vector.load %arg24[%c2_338, %c0_339] : memref<36x128xf32, #tpu.memory_space<vmem>>, vector<22x128xf32>
    %c0_340 = arith.constant 0 : index
    %c2_341 = arith.constant 2 : index
    %c0_342 = arith.constant 0 : index
    %c0_343 = arith.constant 0 : index
    %282 = vector.load %arg8[%c0_340, %c2_341, %c0_342, %c0_343] : memref<3x3x128x128xf32, #tpu.memory_space<vmem>>, vector<1x1x128x128xf32>
    %283 = vector.shape_cast %282 : vector<1x1x128x128xf32> to vector<128x128xf32>
    %cst_344 = arith.constant dense<0.000000e+00> : vector<22x128xf32>
    %284 = tpu.matmul %281, %283, %cst_344 {dimension_numbers = #tpu.dot_dimension_numbers<[1], [0], [0], [1], [0, 0, 1, 1], [], []>} : vector<22x128xf32>, vector<128x128xf32>, vector<22x128xf32> -> vector<22x128xf32>
    %285 = arith.addf %280, %284 : vector<22x128xf32>
    %c6_345 = arith.constant 6 : index
    %c0_346 = arith.constant 0 : index
    %286 = vector.load %arg24[%c6_345, %c0_346] : memref<36x128xf32, #tpu.memory_space<vmem>>, vector<22x128xf32>
    %c1_347 = arith.constant 1 : index
    %c0_348 = arith.constant 0 : index
    %c0_349 = arith.constant 0 : index
    %c0_350 = arith.constant 0 : index
    %287 = vector.load %arg8[%c1_347, %c0_348, %c0_349, %c0_350] : memref<3x3x128x128xf32, #tpu.memory_space<vmem>>, vector<1x1x128x128xf32>
    %288 = vector.shape_cast %287 : vector<1x1x128x128xf32> to vector<128x128xf32>
    %cst_351 = arith.constant dense<0.000000e+00> : vector<22x128xf32>
    %289 = tpu.matmul %286, %288, %cst_351 {dimension_numbers = #tpu.dot_dimension_numbers<[1], [0], [0], [1], [0, 0, 1, 1], [], []>} : vector<22x128xf32>, vector<128x128xf32>, vector<22x128xf32> -> vector<22x128xf32>
    %290 = arith.addf %285, %289 : vector<22x128xf32>
    %c7_352 = arith.constant 7 : index
    %c0_353 = arith.constant 0 : index
    %291 = vector.load %arg24[%c7_352, %c0_353] : memref<36x128xf32, #tpu.memory_space<vmem>>, vector<22x128xf32>
    %c1_354 = arith.constant 1 : index
    %c1_355 = arith.constant 1 : index
    %c0_356 = arith.constant 0 : index
    %c0_357 = arith.constant 0 : index
    %292 = vector.load %arg8[%c1_354, %c1_355, %c0_356, %c0_357] : memref<3x3x128x128xf32, #tpu.memory_space<vmem>>, vector<1x1x128x128xf32>
    %293 = vector.shape_cast %292 : vector<1x1x128x128xf32> to vector<128x128xf32>
    %cst_358 = arith.constant dense<0.000000e+00> : vector<22x128xf32>
    %294 = tpu.matmul %291, %293, %cst_358 {dimension_numbers = #tpu.dot_dimension_numbers<[1], [0], [0], [1], [0, 0, 1, 1], [], []>} : vector<22x128xf32>, vector<128x128xf32>, vector<22x128xf32> -> vector<22x128xf32>
    %295 = arith.addf %290, %294 : vector<22x128xf32>
    %c8_359 = arith.constant 8 : index
    %c0_360 = arith.constant 0 : index
    %296 = vector.load %arg24[%c8_359, %c0_360] : memref<36x128xf32, #tpu.memory_space<vmem>>, vector<22x128xf32>
    %c1_361 = arith.constant 1 : index
    %c2_362 = arith.constant 2 : index
    %c0_363 = arith.constant 0 : index
    %c0_364 = arith.constant 0 : index
    %297 = vector.load %arg8[%c1_361, %c2_362, %c0_363, %c0_364] : memref<3x3x128x128xf32, #tpu.memory_space<vmem>>, vector<1x1x128x128xf32>
    %298 = vector.shape_cast %297 : vector<1x1x128x128xf32> to vector<128x128xf32>
    %cst_365 = arith.constant dense<0.000000e+00> : vector<22x128xf32>
    %299 = tpu.matmul %296, %298, %cst_365 {dimension_numbers = #tpu.dot_dimension_numbers<[1], [0], [0], [1], [0, 0, 1, 1], [], []>} : vector<22x128xf32>, vector<128x128xf32>, vector<22x128xf32> -> vector<22x128xf32>
    %300 = arith.addf %295, %299 : vector<22x128xf32>
    %c12_366 = arith.constant 12 : index
    %c0_367 = arith.constant 0 : index
    %301 = vector.load %arg24[%c12_366, %c0_367] : memref<36x128xf32, #tpu.memory_space<vmem>>, vector<22x128xf32>
    %c2_368 = arith.constant 2 : index
    %c0_369 = arith.constant 0 : index
    %c0_370 = arith.constant 0 : index
    %c0_371 = arith.constant 0 : index
    %302 = vector.load %arg8[%c2_368, %c0_369, %c0_370, %c0_371] : memref<3x3x128x128xf32, #tpu.memory_space<vmem>>, vector<1x1x128x128xf32>
    %303 = vector.shape_cast %302 : vector<1x1x128x128xf32> to vector<128x128xf32>
    %cst_372 = arith.constant dense<0.000000e+00> : vector<22x128xf32>
    %304 = tpu.matmul %301, %303, %cst_372 {dimension_numbers = #tpu.dot_dimension_numbers<[1], [0], [0], [1], [0, 0, 1, 1], [], []>} : vector<22x128xf32>, vector<128x128xf32>, vector<22x128xf32> -> vector<22x128xf32>
    %305 = arith.addf %300, %304 : vector<22x128xf32>
    %c13_373 = arith.constant 13 : index
    %c0_374 = arith.constant 0 : index
    %306 = vector.load %arg24[%c13_373, %c0_374] : memref<36x128xf32, #tpu.memory_space<vmem>>, vector<22x128xf32>
    %c2_375 = arith.constant 2 : index
    %c1_376 = arith.constant 1 : index
    %c0_377 = arith.constant 0 : index
    %c0_378 = arith.constant 0 : index
    %307 = vector.load %arg8[%c2_375, %c1_376, %c0_377, %c0_378] : memref<3x3x128x128xf32, #tpu.memory_space<vmem>>, vector<1x1x128x128xf32>
    %308 = vector.shape_cast %307 : vector<1x1x128x128xf32> to vector<128x128xf32>
    %cst_379 = arith.constant dense<0.000000e+00> : vector<22x128xf32>
    %309 = tpu.matmul %306, %308, %cst_379 {dimension_numbers = #tpu.dot_dimension_numbers<[1], [0], [0], [1], [0, 0, 1, 1], [], []>} : vector<22x128xf32>, vector<128x128xf32>, vector<22x128xf32> -> vector<22x128xf32>
    %310 = arith.addf %305, %309 : vector<22x128xf32>
    %c14_380 = arith.constant 14 : index
    %c0_381 = arith.constant 0 : index
    %311 = vector.load %arg24[%c14_380, %c0_381] : memref<36x128xf32, #tpu.memory_space<vmem>>, vector<22x128xf32>
    %c2_382 = arith.constant 2 : index
    %c2_383 = arith.constant 2 : index
    %c0_384 = arith.constant 0 : index
    %c0_385 = arith.constant 0 : index
    %312 = vector.load %arg8[%c2_382, %c2_383, %c0_384, %c0_385] : memref<3x3x128x128xf32, #tpu.memory_space<vmem>>, vector<1x1x128x128xf32>
    %313 = vector.shape_cast %312 : vector<1x1x128x128xf32> to vector<128x128xf32>
    %cst_386 = arith.constant dense<0.000000e+00> : vector<22x128xf32>
    %314 = tpu.matmul %311, %313, %cst_386 {dimension_numbers = #tpu.dot_dimension_numbers<[1], [0], [0], [1], [0, 0, 1, 1], [], []>} : vector<22x128xf32>, vector<128x128xf32>, vector<22x128xf32> -> vector<22x128xf32>
    %315 = arith.addf %310, %314 : vector<22x128xf32>
    %c0_387 = arith.constant 0 : index
    %c0_388 = arith.constant 0 : index
    %316 = vector.load %arg9[%c0_387, %c0_388] : memref<1x128xf32, #tpu.memory_space<vmem>>, vector<1x128xf32>
    %317 = vector.broadcast %316 : vector<1x128xf32> to vector<22x128xf32>
    %318 = arith.addf %315, %317 : vector<22x128xf32>
    %cst_389 = arith.constant 0.000000e+00 : f32
    %319 = vector.broadcast %cst_389 : f32 to vector<22x128xf32>
    %320 = arith.maximumf %318, %319 : vector<22x128xf32>
    %c0_390 = arith.constant 0 : index
    %c0_391 = arith.constant 0 : index
    %321 = vector.load %arg29[%c0_390, %c0_391] : memref<24x128xf32, #tpu.memory_space<vmem>>, vector<22x128xf32>
    tpu.vector_store %arg29[%c0_390, %c0_391], %320 {strides = array<i32>} : memref<24x128xf32, #tpu.memory_space<vmem>>, vector<22x128xf32>,
    %cst_392 = arith.constant 0.000000e+00 : f32
    %322 = vector.broadcast %cst_392 : f32 to vector<2x128xf32>
    %c22_393 = arith.constant 22 : index
    %c0_394 = arith.constant 0 : index
    %323 = vector.load %arg29[%c22_393, %c0_394] : memref<24x128xf32, #tpu.memory_space<vmem>>, vector<2x128xf32>
    tpu.vector_store %arg29[%c22_393, %c0_394], %322 {strides = array<i32>} : memref<24x128xf32, #tpu.memory_space<vmem>>, vector<2x128xf32>,
    %c0_395 = arith.constant 0 : index
    %c0_396 = arith.constant 0 : index
    %324 = vector.load %arg29[%c0_395, %c0_396] : memref<24x128xf32, #tpu.memory_space<vmem>>, vector<16x128xf32>
    %c1_397 = arith.constant 1 : index
    %c0_398 = arith.constant 0 : index
    %325 = vector.load %arg29[%c1_397, %c0_398] : memref<24x128xf32, #tpu.memory_space<vmem>>, vector<16x128xf32>
    %c6_399 = arith.constant 6 : index
    %c0_400 = arith.constant 0 : index
    %326 = vector.load %arg29[%c6_399, %c0_400] : memref<24x128xf32, #tpu.memory_space<vmem>>, vector<16x128xf32>
    %c7_401 = arith.constant 7 : index
    %c0_402 = arith.constant 0 : index
    %327 = vector.load %arg29[%c7_401, %c0_402] : memref<24x128xf32, #tpu.memory_space<vmem>>, vector<16x128xf32>
    %328 = arith.maximumf %324, %325 : vector<16x128xf32>
    %329 = arith.maximumf %326, %327 : vector<16x128xf32>
    %330 = arith.maximumf %328, %329 : vector<16x128xf32>
    %c0_403 = arith.constant 0 : index
    %c0_404 = arith.constant 0 : index
    %331 = vector.load %arg18[%c0_403, %c0_404] : memref<16x16xf32, #tpu.memory_space<vmem>>, vector<16x16xf32>
    %cst_405 = arith.constant dense<0.000000e+00> : vector<16x128xf32>
    %332 = tpu.matmul %331, %330, %cst_405 {dimension_numbers = #tpu.dot_dimension_numbers<[1], [0], [0], [1], [0, 0, 1, 1], [], []>} : vector<16x16xf32>, vector<16x128xf32>, vector<16x128xf32> -> vector<16x128xf32>
    %c0_406 = arith.constant 0 : index
    %c0_407 = arith.constant 0 : index
    %333 = vector.load %arg25[%c0_406, %c0_407] : memref<16x128xf32, #tpu.memory_space<vmem>>, vector<16x128xf32>
    tpu.vector_store %arg25[%c0_406, %c0_407], %332 {strides = array<i32>} : memref<16x128xf32, #tpu.memory_space<vmem>>, vector<16x128xf32>,
    %cst_408 = arith.constant 0.000000e+00 : f32
    %334 = vector.broadcast %cst_408 : f32 to vector<6x256xf32>
    %c0_409 = arith.constant 0 : index
    %c0_410 = arith.constant 0 : index
    %335 = vector.load %arg25[%c0_409, %c0_410] : memref<16x128xf32, #tpu.memory_space<vmem>>, vector<6x128xf32>
    %c0_411 = arith.constant 0 : index
    %c0_412 = arith.constant 0 : index
    %c0_413 = arith.constant 0 : index
    %c0_414 = arith.constant 0 : index
    %336 = vector.load %arg10[%c0_411, %c0_412, %c0_413, %c0_414] : memref<3x3x128x256xf32, #tpu.memory_space<vmem>>, vector<1x1x128x256xf32>
    %337 = vector.shape_cast %336 : vector<1x1x128x256xf32> to vector<128x256xf32>
    %cst_415 = arith.constant dense<0.000000e+00> : vector<6x256xf32>
    %338 = tpu.matmul %335, %337, %cst_415 {dimension_numbers = #tpu.dot_dimension_numbers<[1], [0], [0], [1], [0, 0, 1, 1], [], []>} : vector<6x128xf32>, vector<128x256xf32>, vector<6x256xf32> -> vector<6x256xf32>
    %339 = arith.addf %334, %338 : vector<6x256xf32>
    %c1_416 = arith.constant 1 : index
    %c0_417 = arith.constant 0 : index
    %340 = vector.load %arg25[%c1_416, %c0_417] : memref<16x128xf32, #tpu.memory_space<vmem>>, vector<6x128xf32>
    %c0_418 = arith.constant 0 : index
    %c1_419 = arith.constant 1 : index
    %c0_420 = arith.constant 0 : index
    %c0_421 = arith.constant 0 : index
    %341 = vector.load %arg10[%c0_418, %c1_419, %c0_420, %c0_421] : memref<3x3x128x256xf32, #tpu.memory_space<vmem>>, vector<1x1x128x256xf32>
    %342 = vector.shape_cast %341 : vector<1x1x128x256xf32> to vector<128x256xf32>
    %cst_422 = arith.constant dense<0.000000e+00> : vector<6x256xf32>
    %343 = tpu.matmul %340, %342, %cst_422 {dimension_numbers = #tpu.dot_dimension_numbers<[1], [0], [0], [1], [0, 0, 1, 1], [], []>} : vector<6x128xf32>, vector<128x256xf32>, vector<6x256xf32> -> vector<6x256xf32>
    %344 = arith.addf %339, %343 : vector<6x256xf32>
    %c2_423 = arith.constant 2 : index
    %c0_424 = arith.constant 0 : index
    %345 = vector.load %arg25[%c2_423, %c0_424] : memref<16x128xf32, #tpu.memory_space<vmem>>, vector<6x128xf32>
    %c0_425 = arith.constant 0 : index
    %c2_426 = arith.constant 2 : index
    %c0_427 = arith.constant 0 : index
    %c0_428 = arith.constant 0 : index
    %346 = vector.load %arg10[%c0_425, %c2_426, %c0_427, %c0_428] : memref<3x3x128x256xf32, #tpu.memory_space<vmem>>, vector<1x1x128x256xf32>
    %347 = vector.shape_cast %346 : vector<1x1x128x256xf32> to vector<128x256xf32>
    %cst_429 = arith.constant dense<0.000000e+00> : vector<6x256xf32>
    %348 = tpu.matmul %345, %347, %cst_429 {dimension_numbers = #tpu.dot_dimension_numbers<[1], [0], [0], [1], [0, 0, 1, 1], [], []>} : vector<6x128xf32>, vector<128x256xf32>, vector<6x256xf32> -> vector<6x256xf32>
    %349 = arith.addf %344, %348 : vector<6x256xf32>
    %c4_430 = arith.constant 4 : index
    %c0_431 = arith.constant 0 : index
    %350 = vector.load %arg25[%c4_430, %c0_431] : memref<16x128xf32, #tpu.memory_space<vmem>>, vector<6x128xf32>
    %c1_432 = arith.constant 1 : index
    %c0_433 = arith.constant 0 : index
    %c0_434 = arith.constant 0 : index
    %c0_435 = arith.constant 0 : index
    %351 = vector.load %arg10[%c1_432, %c0_433, %c0_434, %c0_435] : memref<3x3x128x256xf32, #tpu.memory_space<vmem>>, vector<1x1x128x256xf32>
    %352 = vector.shape_cast %351 : vector<1x1x128x256xf32> to vector<128x256xf32>
    %cst_436 = arith.constant dense<0.000000e+00> : vector<6x256xf32>
    %353 = tpu.matmul %350, %352, %cst_436 {dimension_numbers = #tpu.dot_dimension_numbers<[1], [0], [0], [1], [0, 0, 1, 1], [], []>} : vector<6x128xf32>, vector<128x256xf32>, vector<6x256xf32> -> vector<6x256xf32>
    %354 = arith.addf %349, %353 : vector<6x256xf32>
    %c5_437 = arith.constant 5 : index
    %c0_438 = arith.constant 0 : index
    %355 = vector.load %arg25[%c5_437, %c0_438] : memref<16x128xf32, #tpu.memory_space<vmem>>, vector<6x128xf32>
    %c1_439 = arith.constant 1 : index
    %c1_440 = arith.constant 1 : index
    %c0_441 = arith.constant 0 : index
    %c0_442 = arith.constant 0 : index
    %356 = vector.load %arg10[%c1_439, %c1_440, %c0_441, %c0_442] : memref<3x3x128x256xf32, #tpu.memory_space<vmem>>, vector<1x1x128x256xf32>
    %357 = vector.shape_cast %356 : vector<1x1x128x256xf32> to vector<128x256xf32>
    %cst_443 = arith.constant dense<0.000000e+00> : vector<6x256xf32>
    %358 = tpu.matmul %355, %357, %cst_443 {dimension_numbers = #tpu.dot_dimension_numbers<[1], [0], [0], [1], [0, 0, 1, 1], [], []>} : vector<6x128xf32>, vector<128x256xf32>, vector<6x256xf32> -> vector<6x256xf32>
    %359 = arith.addf %354, %358 : vector<6x256xf32>
    %c6_444 = arith.constant 6 : index
    %c0_445 = arith.constant 0 : index
    %360 = vector.load %arg25[%c6_444, %c0_445] : memref<16x128xf32, #tpu.memory_space<vmem>>, vector<6x128xf32>
    %c1_446 = arith.constant 1 : index
    %c2_447 = arith.constant 2 : index
    %c0_448 = arith.constant 0 : index
    %c0_449 = arith.constant 0 : index
    %361 = vector.load %arg10[%c1_446, %c2_447, %c0_448, %c0_449] : memref<3x3x128x256xf32, #tpu.memory_space<vmem>>, vector<1x1x128x256xf32>
    %362 = vector.shape_cast %361 : vector<1x1x128x256xf32> to vector<128x256xf32>
    %cst_450 = arith.constant dense<0.000000e+00> : vector<6x256xf32>
    %363 = tpu.matmul %360, %362, %cst_450 {dimension_numbers = #tpu.dot_dimension_numbers<[1], [0], [0], [1], [0, 0, 1, 1], [], []>} : vector<6x128xf32>, vector<128x256xf32>, vector<6x256xf32> -> vector<6x256xf32>
    %364 = arith.addf %359, %363 : vector<6x256xf32>
    %c8_451 = arith.constant 8 : index
    %c0_452 = arith.constant 0 : index
    %365 = vector.load %arg25[%c8_451, %c0_452] : memref<16x128xf32, #tpu.memory_space<vmem>>, vector<6x128xf32>
    %c2_453 = arith.constant 2 : index
    %c0_454 = arith.constant 0 : index
    %c0_455 = arith.constant 0 : index
    %c0_456 = arith.constant 0 : index
    %366 = vector.load %arg10[%c2_453, %c0_454, %c0_455, %c0_456] : memref<3x3x128x256xf32, #tpu.memory_space<vmem>>, vector<1x1x128x256xf32>
    %367 = vector.shape_cast %366 : vector<1x1x128x256xf32> to vector<128x256xf32>
    %cst_457 = arith.constant dense<0.000000e+00> : vector<6x256xf32>
    %368 = tpu.matmul %365, %367, %cst_457 {dimension_numbers = #tpu.dot_dimension_numbers<[1], [0], [0], [1], [0, 0, 1, 1], [], []>} : vector<6x128xf32>, vector<128x256xf32>, vector<6x256xf32> -> vector<6x256xf32>
    %369 = arith.addf %364, %368 : vector<6x256xf32>
    %c9_458 = arith.constant 9 : index
    %c0_459 = arith.constant 0 : index
    %370 = vector.load %arg25[%c9_458, %c0_459] : memref<16x128xf32, #tpu.memory_space<vmem>>, vector<6x128xf32>
    %c2_460 = arith.constant 2 : index
    %c1_461 = arith.constant 1 : index
    %c0_462 = arith.constant 0 : index
    %c0_463 = arith.constant 0 : index
    %371 = vector.load %arg10[%c2_460, %c1_461, %c0_462, %c0_463] : memref<3x3x128x256xf32, #tpu.memory_space<vmem>>, vector<1x1x128x256xf32>
    %372 = vector.shape_cast %371 : vector<1x1x128x256xf32> to vector<128x256xf32>
    %cst_464 = arith.constant dense<0.000000e+00> : vector<6x256xf32>
    %373 = tpu.matmul %370, %372, %cst_464 {dimension_numbers = #tpu.dot_dimension_numbers<[1], [0], [0], [1], [0, 0, 1, 1], [], []>} : vector<6x128xf32>, vector<128x256xf32>, vector<6x256xf32> -> vector<6x256xf32>
    %374 = arith.addf %369, %373 : vector<6x256xf32>
    %c10_465 = arith.constant 10 : index
    %c0_466 = arith.constant 0 : index
    %375 = vector.load %arg25[%c10_465, %c0_466] : memref<16x128xf32, #tpu.memory_space<vmem>>, vector<6x128xf32>
    %c2_467 = arith.constant 2 : index
    %c2_468 = arith.constant 2 : index
    %c0_469 = arith.constant 0 : index
    %c0_470 = arith.constant 0 : index
    %376 = vector.load %arg10[%c2_467, %c2_468, %c0_469, %c0_470] : memref<3x3x128x256xf32, #tpu.memory_space<vmem>>, vector<1x1x128x256xf32>
    %377 = vector.shape_cast %376 : vector<1x1x128x256xf32> to vector<128x256xf32>
    %cst_471 = arith.constant dense<0.000000e+00> : vector<6x256xf32>
    %378 = tpu.matmul %375, %377, %cst_471 {dimension_numbers = #tpu.dot_dimension_numbers<[1], [0], [0], [1], [0, 0, 1, 1], [], []>} : vector<6x128xf32>, vector<128x256xf32>, vector<6x256xf32> -> vector<6x256xf32>
    %379 = arith.addf %374, %378 : vector<6x256xf32>
    %c0_472 = arith.constant 0 : index
    %c0_473 = arith.constant 0 : index
    %380 = vector.load %arg11[%c0_472, %c0_473] : memref<1x256xf32, #tpu.memory_space<vmem>>, vector<1x256xf32>
    %381 = vector.broadcast %380 : vector<1x256xf32> to vector<6x256xf32>
    %382 = arith.addf %379, %381 : vector<6x256xf32>
    %cst_474 = arith.constant 0.000000e+00 : f32
    %383 = vector.broadcast %cst_474 : f32 to vector<6x256xf32>
    %384 = arith.maximumf %382, %383 : vector<6x256xf32>
    %cst_475 = arith.constant 0.000000e+00 : f32
    %385 = vector.broadcast %cst_475 : f32 to vector<16x256xf32>
    %c0_476 = arith.constant 0 : index
    %c0_477 = arith.constant 0 : index
    %386 = vector.load %arg26[%c0_476, %c0_477] : memref<16x256xf32, #tpu.memory_space<vmem>>, vector<16x256xf32>
    tpu.vector_store %arg26[%c0_476, %c0_477], %385 {strides = array<i32>} : memref<16x256xf32, #tpu.memory_space<vmem>>, vector<16x256xf32>,
    %c5_478 = arith.constant 5 : index
    %c0_479 = arith.constant 0 : index
    %387 = vector.load %arg26[%c5_478, %c0_479] : memref<16x256xf32, #tpu.memory_space<vmem>>, vector<6x256xf32>
    tpu.vector_store %arg26[%c5_478, %c0_479], %384 {strides = array<i32>} : memref<16x256xf32, #tpu.memory_space<vmem>>, vector<6x256xf32>,
    %cst_480 = arith.constant 0.000000e+00 : f32
    %388 = vector.broadcast %cst_480 : f32 to vector<2x256xf32>
    %c7_481 = arith.constant 7 : index
    %c0_482 = arith.constant 0 : index
    %389 = vector.load %arg26[%c7_481, %c0_482] : memref<16x256xf32, #tpu.memory_space<vmem>>, vector<2x256xf32>
    tpu.vector_store %arg26[%c7_481, %c0_482], %388 {strides = array<i32>} : memref<16x256xf32, #tpu.memory_space<vmem>>, vector<2x256xf32>,
    %cst_483 = arith.constant 0.000000e+00 : f32
    %390 = vector.broadcast %cst_483 : f32 to vector<6x256xf32>
    %c0_484 = arith.constant 0 : index
    %c0_485 = arith.constant 0 : index
    %391 = vector.load %arg26[%c0_484, %c0_485] : memref<16x256xf32, #tpu.memory_space<vmem>>, vector<6x256xf32>
    %c0_486 = arith.constant 0 : index
    %c0_487 = arith.constant 0 : index
    %c0_488 = arith.constant 0 : index
    %c0_489 = arith.constant 0 : index
    %392 = vector.load %arg12[%c0_486, %c0_487, %c0_488, %c0_489] : memref<3x3x256x256xf32, #tpu.memory_space<vmem>>, vector<1x1x256x256xf32>
    %393 = vector.shape_cast %392 : vector<1x1x256x256xf32> to vector<256x256xf32>
    %cst_490 = arith.constant dense<0.000000e+00> : vector<6x256xf32>
    %394 = tpu.matmul %391, %393, %cst_490 {dimension_numbers = #tpu.dot_dimension_numbers<[1], [0], [0], [1], [0, 0, 1, 1], [], []>} : vector<6x256xf32>, vector<256x256xf32>, vector<6x256xf32> -> vector<6x256xf32>
    %395 = arith.addf %390, %394 : vector<6x256xf32>
    %c1_491 = arith.constant 1 : index
    %c0_492 = arith.constant 0 : index
    %396 = vector.load %arg26[%c1_491, %c0_492] : memref<16x256xf32, #tpu.memory_space<vmem>>, vector<6x256xf32>
    %c0_493 = arith.constant 0 : index
    %c1_494 = arith.constant 1 : index
    %c0_495 = arith.constant 0 : index
    %c0_496 = arith.constant 0 : index
    %397 = vector.load %arg12[%c0_493, %c1_494, %c0_495, %c0_496] : memref<3x3x256x256xf32, #tpu.memory_space<vmem>>, vector<1x1x256x256xf32>
    %398 = vector.shape_cast %397 : vector<1x1x256x256xf32> to vector<256x256xf32>
    %cst_497 = arith.constant dense<0.000000e+00> : vector<6x256xf32>
    %399 = tpu.matmul %396, %398, %cst_497 {dimension_numbers = #tpu.dot_dimension_numbers<[1], [0], [0], [1], [0, 0, 1, 1], [], []>} : vector<6x256xf32>, vector<256x256xf32>, vector<6x256xf32> -> vector<6x256xf32>
    %400 = arith.addf %395, %399 : vector<6x256xf32>
    %c2_498 = arith.constant 2 : index
    %c0_499 = arith.constant 0 : index
    %401 = vector.load %arg26[%c2_498, %c0_499] : memref<16x256xf32, #tpu.memory_space<vmem>>, vector<6x256xf32>
    %c0_500 = arith.constant 0 : index
    %c2_501 = arith.constant 2 : index
    %c0_502 = arith.constant 0 : index
    %c0_503 = arith.constant 0 : index
    %402 = vector.load %arg12[%c0_500, %c2_501, %c0_502, %c0_503] : memref<3x3x256x256xf32, #tpu.memory_space<vmem>>, vector<1x1x256x256xf32>
    %403 = vector.shape_cast %402 : vector<1x1x256x256xf32> to vector<256x256xf32>
    %cst_504 = arith.constant dense<0.000000e+00> : vector<6x256xf32>
    %404 = tpu.matmul %401, %403, %cst_504 {dimension_numbers = #tpu.dot_dimension_numbers<[1], [0], [0], [1], [0, 0, 1, 1], [], []>} : vector<6x256xf32>, vector<256x256xf32>, vector<6x256xf32> -> vector<6x256xf32>
    %405 = arith.addf %400, %404 : vector<6x256xf32>
    %c4_505 = arith.constant 4 : index
    %c0_506 = arith.constant 0 : index
    %406 = vector.load %arg26[%c4_505, %c0_506] : memref<16x256xf32, #tpu.memory_space<vmem>>, vector<6x256xf32>
    %c1_507 = arith.constant 1 : index
    %c0_508 = arith.constant 0 : index
    %c0_509 = arith.constant 0 : index
    %c0_510 = arith.constant 0 : index
    %407 = vector.load %arg12[%c1_507, %c0_508, %c0_509, %c0_510] : memref<3x3x256x256xf32, #tpu.memory_space<vmem>>, vector<1x1x256x256xf32>
    %408 = vector.shape_cast %407 : vector<1x1x256x256xf32> to vector<256x256xf32>
    %cst_511 = arith.constant dense<0.000000e+00> : vector<6x256xf32>
    %409 = tpu.matmul %406, %408, %cst_511 {dimension_numbers = #tpu.dot_dimension_numbers<[1], [0], [0], [1], [0, 0, 1, 1], [], []>} : vector<6x256xf32>, vector<256x256xf32>, vector<6x256xf32> -> vector<6x256xf32>
    %410 = arith.addf %405, %409 : vector<6x256xf32>
    %c5_512 = arith.constant 5 : index
    %c0_513 = arith.constant 0 : index
    %411 = vector.load %arg26[%c5_512, %c0_513] : memref<16x256xf32, #tpu.memory_space<vmem>>, vector<6x256xf32>
    %c1_514 = arith.constant 1 : index
    %c1_515 = arith.constant 1 : index
    %c0_516 = arith.constant 0 : index
    %c0_517 = arith.constant 0 : index
    %412 = vector.load %arg12[%c1_514, %c1_515, %c0_516, %c0_517] : memref<3x3x256x256xf32, #tpu.memory_space<vmem>>, vector<1x1x256x256xf32>
    %413 = vector.shape_cast %412 : vector<1x1x256x256xf32> to vector<256x256xf32>
    %cst_518 = arith.constant dense<0.000000e+00> : vector<6x256xf32>
    %414 = tpu.matmul %411, %413, %cst_518 {dimension_numbers = #tpu.dot_dimension_numbers<[1], [0], [0], [1], [0, 0, 1, 1], [], []>} : vector<6x256xf32>, vector<256x256xf32>, vector<6x256xf32> -> vector<6x256xf32>
    %415 = arith.addf %410, %414 : vector<6x256xf32>
    %c6_519 = arith.constant 6 : index
    %c0_520 = arith.constant 0 : index
    %416 = vector.load %arg26[%c6_519, %c0_520] : memref<16x256xf32, #tpu.memory_space<vmem>>, vector<6x256xf32>
    %c1_521 = arith.constant 1 : index
    %c2_522 = arith.constant 2 : index
    %c0_523 = arith.constant 0 : index
    %c0_524 = arith.constant 0 : index
    %417 = vector.load %arg12[%c1_521, %c2_522, %c0_523, %c0_524] : memref<3x3x256x256xf32, #tpu.memory_space<vmem>>, vector<1x1x256x256xf32>
    %418 = vector.shape_cast %417 : vector<1x1x256x256xf32> to vector<256x256xf32>
    %cst_525 = arith.constant dense<0.000000e+00> : vector<6x256xf32>
    %419 = tpu.matmul %416, %418, %cst_525 {dimension_numbers = #tpu.dot_dimension_numbers<[1], [0], [0], [1], [0, 0, 1, 1], [], []>} : vector<6x256xf32>, vector<256x256xf32>, vector<6x256xf32> -> vector<6x256xf32>
    %420 = arith.addf %415, %419 : vector<6x256xf32>
    %c8_526 = arith.constant 8 : index
    %c0_527 = arith.constant 0 : index
    %421 = vector.load %arg26[%c8_526, %c0_527] : memref<16x256xf32, #tpu.memory_space<vmem>>, vector<6x256xf32>
    %c2_528 = arith.constant 2 : index
    %c0_529 = arith.constant 0 : index
    %c0_530 = arith.constant 0 : index
    %c0_531 = arith.constant 0 : index
    %422 = vector.load %arg12[%c2_528, %c0_529, %c0_530, %c0_531] : memref<3x3x256x256xf32, #tpu.memory_space<vmem>>, vector<1x1x256x256xf32>
    %423 = vector.shape_cast %422 : vector<1x1x256x256xf32> to vector<256x256xf32>
    %cst_532 = arith.constant dense<0.000000e+00> : vector<6x256xf32>
    %424 = tpu.matmul %421, %423, %cst_532 {dimension_numbers = #tpu.dot_dimension_numbers<[1], [0], [0], [1], [0, 0, 1, 1], [], []>} : vector<6x256xf32>, vector<256x256xf32>, vector<6x256xf32> -> vector<6x256xf32>
    %425 = arith.addf %420, %424 : vector<6x256xf32>
    %c9_533 = arith.constant 9 : index
    %c0_534 = arith.constant 0 : index
    %426 = vector.load %arg26[%c9_533, %c0_534] : memref<16x256xf32, #tpu.memory_space<vmem>>, vector<6x256xf32>
    %c2_535 = arith.constant 2 : index
    %c1_536 = arith.constant 1 : index
    %c0_537 = arith.constant 0 : index
    %c0_538 = arith.constant 0 : index
    %427 = vector.load %arg12[%c2_535, %c1_536, %c0_537, %c0_538] : memref<3x3x256x256xf32, #tpu.memory_space<vmem>>, vector<1x1x256x256xf32>
    %428 = vector.shape_cast %427 : vector<1x1x256x256xf32> to vector<256x256xf32>
    %cst_539 = arith.constant dense<0.000000e+00> : vector<6x256xf32>
    %429 = tpu.matmul %426, %428, %cst_539 {dimension_numbers = #tpu.dot_dimension_numbers<[1], [0], [0], [1], [0, 0, 1, 1], [], []>} : vector<6x256xf32>, vector<256x256xf32>, vector<6x256xf32> -> vector<6x256xf32>
    %430 = arith.addf %425, %429 : vector<6x256xf32>
    %c10_540 = arith.constant 10 : index
    %c0_541 = arith.constant 0 : index
    %431 = vector.load %arg26[%c10_540, %c0_541] : memref<16x256xf32, #tpu.memory_space<vmem>>, vector<6x256xf32>
    %c2_542 = arith.constant 2 : index
    %c2_543 = arith.constant 2 : index
    %c0_544 = arith.constant 0 : index
    %c0_545 = arith.constant 0 : index
    %432 = vector.load %arg12[%c2_542, %c2_543, %c0_544, %c0_545] : memref<3x3x256x256xf32, #tpu.memory_space<vmem>>, vector<1x1x256x256xf32>
    %433 = vector.shape_cast %432 : vector<1x1x256x256xf32> to vector<256x256xf32>
    %cst_546 = arith.constant dense<0.000000e+00> : vector<6x256xf32>
    %434 = tpu.matmul %431, %433, %cst_546 {dimension_numbers = #tpu.dot_dimension_numbers<[1], [0], [0], [1], [0, 0, 1, 1], [], []>} : vector<6x256xf32>, vector<256x256xf32>, vector<6x256xf32> -> vector<6x256xf32>
    %435 = arith.addf %430, %434 : vector<6x256xf32>
    %c0_547 = arith.constant 0 : index
    %c0_548 = arith.constant 0 : index
    %436 = vector.load %arg13[%c0_547, %c0_548] : memref<1x256xf32, #tpu.memory_space<vmem>>, vector<1x256xf32>
    %437 = vector.broadcast %436 : vector<1x256xf32> to vector<6x256xf32>
    %438 = arith.addf %435, %437 : vector<6x256xf32>
    %cst_549 = arith.constant 0.000000e+00 : f32
    %439 = vector.broadcast %cst_549 : f32 to vector<6x256xf32>
    %440 = arith.maximumf %438, %439 : vector<6x256xf32>
    %c0_550 = arith.constant 0 : index
    %c0_551 = arith.constant 0 : index
    %441 = vector.load %arg19[%c0_550, %c0_551] : memref<6x1xf32, #tpu.memory_space<vmem>>, vector<6x1xf32>
    %442 = vector.broadcast %441 : vector<6x1xf32> to vector<6x256xf32>
    %443 = arith.mulf %440, %442 : vector<6x256xf32>
    %c0_552 = arith.constant 0 : index
    %c0_553 = arith.constant 0 : index
    %444 = vector.load %arg14[%c0_552, %c0_553] : memref<256x10xf32, #tpu.memory_space<vmem>>, vector<256x10xf32>
    %cst_554 = arith.constant dense<0.000000e+00> : vector<6x10xf32>
    %445 = tpu.matmul %443, %444, %cst_554 {dimension_numbers = #tpu.dot_dimension_numbers<[1], [0], [0], [1], [0, 0, 1, 1], [], []>} : vector<6x256xf32>, vector<256x10xf32>, vector<6x10xf32> -> vector<6x10xf32>
    %cst_555 = arith.constant dense<0.000000e+00> : vector<10xf32>
    %446 = vector.multi_reduction <add>, %445, %cst_555 [0] : vector<6x10xf32> to vector<10xf32>
    %447 = vector.shape_cast %446 : vector<10xf32> to vector<1x10xf32>
    %c0_556 = arith.constant 0 : index
    %c0_557 = arith.constant 0 : index
    %448 = vector.load %arg15[%c0_556, %c0_557] : memref<1x10xf32, #tpu.memory_space<vmem>>, vector<1x10xf32>
    %449 = arith.addf %447, %448 : vector<1x10xf32>
    %c0_558 = arith.constant 0 : index
    %c0_559 = arith.constant 0 : index
    %c0_560 = arith.constant 0 : index
    %450 = vector.load %arg20[%c0_558, %c0_559, %c0_560] : memref<1x1x10xf32, #tpu.memory_space<vmem>>, vector<1x1x10xf32>
    %451 = vector.shape_cast %450 : vector<1x1x10xf32> to vector<1x10xf32>
    %452 = vector.shape_cast %449 : vector<1x10xf32> to vector<1x1x10xf32>
    tpu.vector_store %arg20[%c0_558, %c0_559, %c0_560], %452 {strides = array<i32>} : memref<1x1x10xf32, #tpu.memory_space<vmem>>, vector<1x1x10xf32>,
    return
  }
  func.func @transform_0(%arg0: i32) -> (i32, i32, i32, i32) {
    %c0_i32 = arith.constant 0 : i32
    %c0_i32_0 = arith.constant 0 : i32
    %c0_i32_1 = arith.constant 0 : i32
    %c0_i32_2 = arith.constant 0 : i32
    return %arg0, %c0_i32, %c0_i32_0, %c0_i32_1 : i32, i32, i32, i32
  }
  func.func @transform_1(%arg0: i32) -> (i32, i32, i32, i32) {
    %c0_i32 = arith.constant 0 : i32
    %c0_i32_0 = arith.constant 0 : i32
    %c0_i32_1 = arith.constant 0 : i32
    %c0_i32_2 = arith.constant 0 : i32
    %c0_i32_3 = arith.constant 0 : i32
    return %c0_i32, %c0_i32_0, %c0_i32_1, %c0_i32_2 : i32, i32, i32, i32
  }
  func.func @transform_2(%arg0: i32) -> (i32, i32) {
    %c0_i32 = arith.constant 0 : i32
    %c0_i32_0 = arith.constant 0 : i32
    %c0_i32_1 = arith.constant 0 : i32
    return %c0_i32, %c0_i32_0 : i32, i32
  }
  func.func @transform_3(%arg0: i32) -> (i32, i32, i32, i32) {
    %c0_i32 = arith.constant 0 : i32
    %c0_i32_0 = arith.constant 0 : i32
    %c0_i32_1 = arith.constant 0 : i32
    %c0_i32_2 = arith.constant 0 : i32
    %c0_i32_3 = arith.constant 0 : i32
    return %c0_i32, %c0_i32_0, %c0_i32_1, %c0_i32_2 : i32, i32, i32, i32
  }
  func.func @transform_4(%arg0: i32) -> (i32, i32) {
    %c0_i32 = arith.constant 0 : i32
    %c0_i32_0 = arith.constant 0 : i32
    %c0_i32_1 = arith.constant 0 : i32
    return %c0_i32, %c0_i32_0 : i32, i32
  }
  func.func @transform_5(%arg0: i32) -> (i32, i32, i32, i32) {
    %c0_i32 = arith.constant 0 : i32
    %c0_i32_0 = arith.constant 0 : i32
    %c0_i32_1 = arith.constant 0 : i32
    %c0_i32_2 = arith.constant 0 : i32
    %c0_i32_3 = arith.constant 0 : i32
    return %c0_i32, %c0_i32_0, %c0_i32_1, %c0_i32_2 : i32, i32, i32, i32
  }
  func.func @transform_6(%arg0: i32) -> (i32, i32) {
    %c0_i32 = arith.constant 0 : i32
    %c0_i32_0 = arith.constant 0 : i32
    %c0_i32_1 = arith.constant 0 : i32
    return %c0_i32, %c0_i32_0 : i32, i32
  }
  func.func @transform_7(%arg0: i32) -> (i32, i32, i32, i32) {
    %c0_i32 = arith.constant 0 : i32
    %c0_i32_0 = arith.constant 0 : i32
    %c0_i32_1 = arith.constant 0 : i32
    %c0_i32_2 = arith.constant 0 : i32
    %c0_i32_3 = arith.constant 0 : i32
    return %c0_i32, %c0_i32_0, %c0_i32_1, %c0_i32_2 : i32, i32, i32, i32
  }
  func.func @transform_8(%arg0: i32) -> (i32, i32) {
    %c0_i32 = arith.constant 0 : i32
    %c0_i32_0 = arith.constant 0 : i32
    %c0_i32_1 = arith.constant 0 : i32
    return %c0_i32, %c0_i32_0 : i32, i32
  }
  func.func @transform_9(%arg0: i32) -> (i32, i32, i32, i32) {
    %c0_i32 = arith.constant 0 : i32
    %c0_i32_0 = arith.constant 0 : i32
    %c0_i32_1 = arith.constant 0 : i32
    %c0_i32_2 = arith.constant 0 : i32
    %c0_i32_3 = arith.constant 0 : i32
    return %c0_i32, %c0_i32_0, %c0_i32_1, %c0_i32_2 : i32, i32, i32, i32
  }
  func.func @transform_10(%arg0: i32) -> (i32, i32) {
    %c0_i32 = arith.constant 0 : i32
    %c0_i32_0 = arith.constant 0 : i32
    %c0_i32_1 = arith.constant 0 : i32
    return %c0_i32, %c0_i32_0 : i32, i32
  }
  func.func @transform_11(%arg0: i32) -> (i32, i32, i32, i32) {
    %c0_i32 = arith.constant 0 : i32
    %c0_i32_0 = arith.constant 0 : i32
    %c0_i32_1 = arith.constant 0 : i32
    %c0_i32_2 = arith.constant 0 : i32
    %c0_i32_3 = arith.constant 0 : i32
    return %c0_i32, %c0_i32_0, %c0_i32_1, %c0_i32_2 : i32, i32, i32, i32
  }
  func.func @transform_12(%arg0: i32) -> (i32, i32) {
    %c0_i32 = arith.constant 0 : i32
    %c0_i32_0 = arith.constant 0 : i32
    %c0_i32_1 = arith.constant 0 : i32
    return %c0_i32, %c0_i32_0 : i32, i32
  }
  func.func @transform_13(%arg0: i32) -> (i32, i32) {
    %c0_i32 = arith.constant 0 : i32
    %c0_i32_0 = arith.constant 0 : i32
    %c0_i32_1 = arith.constant 0 : i32
    return %c0_i32, %c0_i32_0 : i32, i32
  }
  func.func @transform_14(%arg0: i32) -> (i32, i32) {
    %c0_i32 = arith.constant 0 : i32
    %c0_i32_0 = arith.constant 0 : i32
    %c0_i32_1 = arith.constant 0 : i32
    return %c0_i32, %c0_i32_0 : i32, i32
  }
  func.func @transform_15(%arg0: i32) -> (i32, i32) {
    %c0_i32 = arith.constant 0 : i32
    %c0_i32_0 = arith.constant 0 : i32
    %c0_i32_1 = arith.constant 0 : i32
    return %c0_i32, %c0_i32_0 : i32, i32
  }
  func.func @transform_16(%arg0: i32) -> (i32, i32) {
    %c0_i32 = arith.constant 0 : i32
    %c0_i32_0 = arith.constant 0 : i32
    %c0_i32_1 = arith.constant 0 : i32
    return %c0_i32, %c0_i32_0 : i32, i32
  }
  func.func @transform_17(%arg0: i32) -> (i32, i32) {
    %c0_i32 = arith.constant 0 : i32
    %c0_i32_0 = arith.constant 0 : i32
    %c0_i32_1 = arith.constant 0 : i32
    return %c0_i32, %c0_i32_0 : i32, i32
  }
  func.func @transform_18(%arg0: i32) -> (i32, i32) {
    %c0_i32 = arith.constant 0 : i32
    %c0_i32_0 = arith.constant 0 : i32
    %c0_i32_1 = arith.constant 0 : i32
    return %c0_i32, %c0_i32_0 : i32, i32
  }
  func.func @transform_19(%arg0: i32) -> (i32, i32, i32) {
    %c0_i32 = arith.constant 0 : i32
    %c0_i32_0 = arith.constant 0 : i32
    %c0_i32_1 = arith.constant 0 : i32
    return %arg0, %c0_i32, %c0_i32_0 : i32, i32, i32
  }
}

</mosaic_0001>

<bundles_post_ra>
// kernel: tpu_custom_call.1
= control target key start
LH: loop header
LB: loop body
LE: loop exit
PB: predicated region body
PF: predicated region fallthrough
CT: control target
= control target key end

     0   :  { %s18989_s0 = inlined_call_operand.vmem [shape: f32[6,16,16,4], index: 0, kind: input, shape index: {}]   ;;  %s18990_s1 = inlined_call_operand.hbm [shape: f32[3,3,4,16], index: 1, kind: input, shape index: {}]   ;;  %s18991_s2 = inlined_call_operand.hbm [shape: f32[1,16], index: 2, kind: input, shape index: {}]   ;;  %s18992_s3 = inlined_call_operand.hbm [shape: f32[3,3,16,32], index: 3, kind: input, shape index: {}]   ;;  %s18993_s4 = inlined_call_operand.hbm [shape: f32[1,32], index: 4, kind: input, shape index: {}]   ;;  %s18994_s5 = inlined_call_operand.hbm [shape: f32[3,3,32,128], index: 5, kind: input, shape index: {}]   ;;  %s18995_s6 = inlined_call_operand.hbm [shape: f32[1,128], index: 6, kind: input, shape index: {}]   ;;  %s18996_s7 = inlined_call_operand.hbm [shape: f32[3,3,128,128], index: 7, kind: input, shape index: {}]   ;;  %s18997_s8 = inlined_call_operand.hbm [shape: f32[1,128], index: 8, kind: input, shape index: {}]   ;;  %s18998_s9 = inlined_call_operand.vmem [shape: f32[3,3,128,256], index: 9, kind: input, shape index: {}]   ;;  %s18999_s10 = inlined_call_operand.hbm [shape: f32[1,256], index: 10, kind: input, shape index: {}]   ;;  %s19000_s11 = inlined_call_operand.hbm [shape: f32[3,3,256,256], index: 11, kind: input, shape index: {}]   ;;  %s19001_s12 = inlined_call_operand.hbm [shape: f32[1,256], index: 12, kind: input, shape index: {}]   ;;  %s19002_s13 = inlined_call_operand.vmem [shape: f32[256,10], index: 13, kind: input, shape index: {}]   ;;  %s19003_s14 = inlined_call_operand.hbm [shape: f32[1,10], index: 14, kind: input, shape index: {}]   ;;  %s19004_s15 = inlined_call_operand.vmem [shape: f32[100,268], index: 15, kind: input, shape index: {}]   ;;  %s19005_s16 = inlined_call_operand.hbm [shape: f32[36,68], index: 16, kind: input, shape index: {}]   ;;  %s19006_s17 = inlined_call_operand.hbm [shape: f32[16,16], index: 17, kind: input, shape index: {}]   ;;  %s19007_s18 = inlined_call_operand.vmem [shape: f32[6,1], index: 18, kind: input, shape index: {}]   ;;  %s19008_s19 = inlined_call_operand.hbm [shape: f32[6,1,10], index: 19, kind: output, shape index: {}]  }
   0x1   :  { %19019 = sst [smem:[#allocation124_spill]] %s18989_s0 }
   0x2   :  { %19020 = sst [smem:[#allocation125_spill]] %s18990_s1 }
   0x3   :  { %19021 = sst [smem:[#allocation126_spill]] %s18991_s2 }
   0x4   :  { %19022 = sst [smem:[#allocation127_spill]] %s18992_s3 }
   0x5   :  { %19023 = sst [smem:[#allocation128_spill]] %s18993_s4 }
   0x6   :  { %19024 = sst [smem:[#allocation129_spill]] %s19008_s19 }
   0x7   :  { %24 = vsyncpa [#allocation12], 0 }
   0x8   :  { %25 = vsyncpa [#allocation15], 0 }
   0x9   :  { %26 = vsyncpa [#allocation18], 0 }
   0xa   :  { %27 = vsyncpa [#allocation21], 0 }
   0xb   :  { %28 = vsyncpa [#allocation24], 0 }
   0xc   :  { %29 = vsyncpa [#allocation27], 0 }
   0xd   :  { %30 = vsyncpa [#allocation30], 0 }
   0xe   :  { %31 = vsyncpa [#allocation33], 0 }
   0xf   :  { %32 = vsyncpa [#allocation13], 0 }
  0x10   :  { %34 = vsyncpa [#allocation13 + $0x1], 0  ;;  %s15454_s0 = smov 0   ;;  %s15456_s30 = smov 0  }
  0x11   :  { %s15458_s20 = smov 0   ;;  %s15460_s21 = smov 0  }
  0x12 LB: > { %19025 = sst [smem:[#allocation44_spill]] %s15316_s0  ;;  %s15475_s1 = sadd.s32 4294967295, %s15328_s21   ;;  %s15328_s21 = sphi %s15460_s21, %s19238_s21   ;;  %s15324_s20 = sphi %s15458_s20, %s19240_s20   ;;  %s15320_s30 = sphi %s15456_s30, %s19242_s30   ;;  %s15316_s0 = sphi %s15454_s0, %s19241_s0  }
  0x13   : > { %19026 = sst [smem:[#allocation45_spill]] %s15324_s20  ;;  %s11780_s22 = sadd.s32 4294967294, %s15328_s21  }
  0x14   : > { %19027 = sst [smem:[#allocation46_spill]] %s15328_s21  ;;  %s15479_s2 = sadd.s32 1, %s15328_s21  }
  0x15   : > { %19028 = sst [smem:[#allocation47_spill]] %s15479_s2  ;;  %s451_s23 = sadd.s32 1, %s15324_s20 }
  0x16   : > { %s448_s24 = ssub.s32 %s15328_s21, %s15479_s2  ;;  %p461_p0 = scmp.ne.s32.totalorder %s15324_s20, %s15320_s30 }
  0x17   : > { %p449_p1 = scmp.eq.s32.totalorder %s448_s24, 0  ;;  %p462_p2 = scmp.eq.s32.totalorder %s15475_s1, 5 }
  0x18   : > { %p467_p3 = scmp.ne.s32.totalorder %s15320_s30, %s15316_s0  ;;  %p468_p4 = scmp.eq.s32.totalorder %s11780_s22, 5 }
  0x19   : > { %s15490_s25 = scalar_select %p449_p1, %s15324_s20, %s451_s23  }
  0x1a   : > { %p15492_p5 = por %p462_p2, %p461_p0  ;;  %p15496_p6 = por %p468_p4, %p467_p3 }
  0x1b   : > { %19029 = sst [smem:[#allocation48_spill]] %s15490_s25  ;;  %p11781_p7 = scmp.ge.s32.totalorder %s15328_s21, 1 }
  0x1c   : > { %s19030_s3 = scalar_select %p15492_p5, 1, 0 }
  0x1d   : > { %s19031_s26 = scalar_select %p15496_p6, 1, 0 }
  0x1e   : > { %p475_p8 = scmp.lt.s32.totalorder %s15328_s21, 7  ;;  %p19015_p9 = scmp.eq.s32.totalorder %s15475_s1, 0 }
  0x1f   : > { %19032 = sst [smem:[#allocation49_spill]] %s19031_s26  ;;  %s15330_s28 = smov [#allocation14]  }
  0x20   : > { %p15503_p10 = pnand %p11781_p7, %p475_p8  ;;  %s501_s29 = sshll.u32 %s15330_s28, 4  ;;  %s502_s29 = int_to_ptr.vmem [resolvable:$true] %s501_s29 }
  0x21   : > { %s15331_s22 = smov [#allocation17]   ;;  %s15332_s25 = smov [#allocation20]  }
  0x22   : > { %s19033_s27 = scalar_select %p15503_p10, 1, 0 }
  0x23   : > { %p14734_p11 = pneg %p15503_p10  ;;  %s525_s23 = sshll.u32 %s15331_s22, 4  ;;  %s526_s23 = int_to_ptr.vmem [resolvable:$true] %s525_s23 }
  0x24   : > { %s549_s20 = sshll.u32 %s15332_s25, 4  ;;  %s14883_s28 = scalar_lea.vmem %s502_s29, 16  ;;  %s15515_s20 = int_to_ptr.vmem [resolvable:$true] %s549_s20 }
  0x25   : > { %p15511_p12 = pnand %p19015_p9, %p14734_p11  ;;  %p14884_p0 = scmp.ne.s32.totalorder %s502_s29, %s14883_s28 }
  0x26   : > { %s14890_s22 = scalar_lea.vmem %s502_s29, 32  ;;  %p14891_p3 = scmp.lt.s32.totalorder %s502_s29, %s502_s29 }
  0x27   : > { %p15519_p13 = pneg %p15511_p12  ;;  %p14892_p4 = scmp.lt.s32.totalorder %s14890_s22, %s14883_s28 }
  0x29   : > { %p14886_p1 = pnand %p14884_p0, %p15519_p13  ;;  %p14893_p7 = por %p14892_p4, %p14891_p3 }
  0x2b   : > { %p14887_p2 = pneg %p14886_p1 }
  0x2d   : > { %p14894_p8 = pnand %p14893_p7, %p14887_p2 }
  0x2f   : > { %14897 = shalt.err (!%p14894_p8)
}
  0x30   : > { %s19036_s0 = sld [smem:[#allocation126_spill]]  ;;  %s14909_s21 = scalar_lea.vmem %s526_s23, 16 }
  0x31   : > { %p14910_p11 = scmp.ne.s32.totalorder %s526_s23, %s14909_s21  ;;  %s14916_s19 = scalar_lea.vmem %s526_s23, 32 }
  0x32   : > { %p14917_p0 = scmp.lt.s32.totalorder %s526_s23, %s526_s23  ;;  %p14918_p1 = scmp.lt.s32.totalorder %s14916_s19, %s14909_s21 }
  0x33   : > { %p14912_p9 = pnand %p14910_p11, %p15519_p13 }
  0x34   : > { %p14919_p5 = por %p14918_p1, %p14917_p0 }
  0x35   : > { %p14913_p6 = pneg %p14912_p9 }
  0x36   : > { %14740 = dma.hbm_to_vmem [thread:$0]  (!%p15511_p12), %s19036_s0, 16, %s502_s29, [#allocation15]  }
  0x37   : > { %p14920_p10 = pnand %p14919_p5, %p14913_p6 }
  0x39   : > { %14923 = shalt.err (!%p14920_p10)
}
  0x3a   : > { %s19037_s4 = sld [smem:[#allocation128_spill]]  ;;  %s14935_s0 = scalar_lea.vmem %s15515_s20, 16 }
  0x3b   : > { %p14936_p2 = scmp.ne.s32.totalorder %s15515_s20, %s14935_s0  ;;  %s14942_s19 = scalar_lea.vmem %s15515_s20, 32 }
  0x3c   : > { %p14943_p5 = scmp.lt.s32.totalorder %s15515_s20, %s15515_s20  ;;  %p14944_p6 = scmp.lt.s32.totalorder %s14942_s19, %s14935_s0 }
  0x3d   : > { %p14938_p9 = pnand %p14936_p2, %p15519_p13 }
  0x3e   : > { %p14945_p10 = por %p14944_p6, %p14943_p5 }
  0x3f   : > { %p14939_p3 = pneg %p14938_p9 }
  0x40   : > { %14746 = dma.hbm_to_vmem [thread:$0]  (!%p15511_p12), %s19037_s4, 16, %s526_s23, [#allocation18]  }
  0x41   : > { %p14946_p4 = pnand %p14945_p10, %p14939_p3 }
  0x43   : > { %14949 = shalt.err (!%p14946_p4)
}
  0x44   : > { %14752 = dma.hbm_to_vmem [thread:$0]  (!%p15511_p12), %s18995_s6, 16, %s15515_s20, [#allocation21]  }
  0x45   : > { %s15333_s29 = smov [#allocation23]   ;;  %s15334_s25 = smov [#allocation26]  }
  0x46   : > { %s573_s23 = sshll.u32 %s15333_s29, 4  ;;  %s597_s28 = sshll.u32 %s15334_s25, 4  ;;  %s574_s23 = int_to_ptr.vmem [resolvable:$true] %s573_s23  ;;  %s598_s28 = int_to_ptr.vmem [resolvable:$true] %s597_s28 }
  0x47   : > { %s14961_s22 = scalar_lea.vmem %s574_s23, 16  ;;  %s14968_s0 = scalar_lea.vmem %s574_s23, 32 }
  0x48   : > { %p14962_p7 = scmp.ne.s32.totalorder %s574_s23, %s14961_s22  ;;  %p14969_p0 = scmp.lt.s32.totalorder %s574_s23, %s574_s23 }
  0x49   : > { %p14970_p1 = scmp.lt.s32.totalorder %s14968_s0, %s14961_s22 }
  0x4a   : > { %p14964_p8 = pnand %p14962_p7, %p15519_p13 }
  0x4b   : > { %p14971_p2 = por %p14970_p1, %p14969_p0 }
  0x4c   : > { %p14965_p11 = pneg %p14964_p8 }
  0x4e   : > { %p14972_p9 = pnand %p14971_p2, %p14965_p11 }
  0x50   : > { %14975 = shalt.err (!%p14972_p9)
}
  0x51   : > { %14758 = dma.hbm_to_vmem [thread:$0]  (!%p15511_p12), %s18997_s8, 16, %s574_s23, [#allocation24]  }
  0x52   : > { %s14987_s21 = scalar_lea.vmem %s598_s28, 73728  ;;  %p14995_p10 = scmp.lt.s32.totalorder %s598_s28, %s598_s28 }
  0x53   : > { %p14988_p3 = scmp.ne.s32.totalorder %s598_s28, %s14987_s21  ;;  %p14996_p4 = scmp.lt.s32.totalorder %s14987_s21, %s14987_s21 }
  0x55   : > { %p14990_p5 = pnand %p14988_p3, %p15519_p13  ;;  %p14997_p7 = por %p14996_p4, %p14995_p10 }
  0x57   : > { %p14991_p6 = pneg %p14990_p5 }
  0x59   : > { %p14998_p8 = pnand %p14997_p7, %p14991_p6 }
  0x5b   : > { %15001 = shalt.err (!%p14998_p8)
}
  0x5c   : > { %s15335_s26 = smov 256   ;;  %s15336_s29 = smov 16  }
  0x5d   : > { %14764 = dma.hbm_to_vmem [thread:$0]  (!%p15511_p12), %s19000_s11, 73728, %s598_s28, [#allocation27], %s15335_s26, %s15335_s26, %s15336_s29  }
  0x5e   : > { %s15337_s23 = smov [#allocation29]   ;;  %s15338_s19 = smov [#allocation11]  }
  0x5f   : > { %s625_s0 = sshll.u32 %s15337_s23, 4  ;;  %s487_s20 = sshll.u32 %s15338_s19, 4  ;;  %s626_s0 = int_to_ptr.vmem [resolvable:$true] %s625_s0  ;;  %s488_s20 = int_to_ptr.vmem [resolvable:$true] %s487_s20 }
  0x60   : > { %s15013_s4 = scalar_lea.vmem %s626_s0, 16  ;;  %s15020_s21 = scalar_lea.vmem %s626_s0, 32 }
  0x61   : > { %p15014_p11 = scmp.ne.s32.totalorder %s626_s0, %s15013_s4  ;;  %p15021_p2 = scmp.lt.s32.totalorder %s626_s0, %s626_s0 }
  0x62   : > { %p15022_p9 = scmp.lt.s32.totalorder %s15020_s21, %s15013_s4 }
  0x63   : > { %p15016_p0 = pnand %p15014_p11, %p15519_p13 }
  0x64   : > { %p15023_p3 = por %p15022_p9, %p15021_p2 }
  0x65   : > { %p15017_p1 = pneg %p15016_p0 }
  0x67   : > { %p15024_p5 = pnand %p15023_p3, %p15017_p1 }
  0x69   : > { %15027 = shalt.err (!%p15024_p5)
}
  0x6a   : > { %14770 = dma.hbm_to_vmem [thread:$0]  (!%p15511_p12), %s19003_s14, 16, %s626_s0, [#allocation30]  }
  0x6b   : > { %s15039_s26 = scalar_lea.vmem %s488_s20, 576  ;;  %p15047_p7 = scmp.lt.s32.totalorder %s488_s20, %s488_s20 }
  0x6c   : > { %p15040_p6 = scmp.ne.s32.totalorder %s488_s20, %s15039_s26  ;;  %p15048_p8 = scmp.lt.s32.totalorder %s15039_s26, %s15039_s26 }
  0x6e   : > { %p15042_p10 = pnand %p15040_p6, %p15519_p13  ;;  %p15049_p11 = por %p15048_p8, %p15047_p7 }
  0x70   : > { %p15043_p4 = pneg %p15042_p10 }
  0x72   : > { %p15050_p0 = pnand %p15049_p11, %p15043_p4 }
  0x74   : > { %15053 = shalt.err (!%p15050_p0)
}
  0x75   : > { %s15339_s4 = smov 64   ;;  %s15340_s29 = smov 4  }
  0x76   : > { %s19038_s19 = sld [smem:[#allocation125_spill]]  ;;  %s15341_s0 = smov [#allocation16]  }
  0x77   : > { %s511_s21 = sshll.u32 %s15341_s0, 4  ;;  %s512_s21 = int_to_ptr.vmem [resolvable:$true] %s511_s21 }
  0x78   : > { %s15065_s25 = scalar_lea.vmem %s512_s21, 2304  ;;  %p15073_p3 = scmp.lt.s32.totalorder %s512_s21, %s512_s21 }
  0x79   : > { %p15066_p1 = scmp.ne.s32.totalorder %s512_s21, %s15065_s25  ;;  %p15074_p5 = scmp.lt.s32.totalorder %s15065_s25, %s15065_s25 }
  0x7b   : > { %p15068_p2 = pnand %p15066_p1, %p15519_p13  ;;  %p15075_p6 = por %p15074_p5, %p15073_p3 }
  0x7c   : > { %14737 = dma.hbm_to_vmem [thread:$0]  (!%p15511_p12), %s19038_s19, 576, %s488_s20, [#allocation12], %s15339_s4, %s15339_s4, %s15340_s29  }
  0x7d   : > { %p15069_p9 = pneg %p15068_p2 }
  0x7f   : > { %p15076_p10 = pnand %p15075_p6, %p15069_p9 }
  0x81   : > { %15079 = shalt.err (!%p15076_p10)
}
  0x82   : > { %s15342_s28 = smov 128   ;;  %s15343_s26 = smov 8  }
  0x83   : > { %s19039_s29 = sld [smem:[#allocation127_spill]]  ;;  %s15344_s22 = smov [#allocation19]  }
  0x84   : > { %s535_s23 = sshll.u32 %s15344_s22, 4  ;;  %s15345_s19 = smov [#allocation22]   ;;  %s536_s23 = int_to_ptr.vmem [resolvable:$true] %s535_s23 }
  0x85   : > { %s559_s0 = sshll.u32 %s15345_s19, 4  ;;  %s15091_s25 = scalar_lea.vmem %s536_s23, 4608  ;;  %s560_s0 = int_to_ptr.vmem [resolvable:$true] %s559_s0 }
  0x86   : > { %p15092_p4 = scmp.ne.s32.totalorder %s536_s23, %s15091_s25  ;;  %p15099_p11 = scmp.lt.s32.totalorder %s536_s23, %s536_s23 }
  0x87   : > { %p15100_p0 = scmp.lt.s32.totalorder %s15091_s25, %s15091_s25 }
  0x88   : > { %p15094_p7 = pnand %p15092_p4, %p15519_p13 }
  0x89   : > { %14743 = dma.hbm_to_vmem [thread:$0]  (!%p15511_p12), %s19039_s29, 2304, %s512_s21, [#allocation15], %s15342_s28, %s15342_s28, %s15343_s26  }
  0x8a   : > { %p15095_p8 = pneg %p15094_p7  ;;  %p15101_p1 = por %p15100_p0, %p15099_p11 }
  0x8c   : > { %p15102_p2 = pnand %p15101_p1, %p15095_p8 }
  0x8e   : > { %15105 = shalt.err (!%p15102_p2)
}
  0x8f   : > { %14749 = dma.hbm_to_vmem [thread:$0]  (!%p15511_p12), %s18994_s5, 4608, %s536_s23, [#allocation18], %s15342_s28, %s15342_s28, %s15343_s26  }
  0x90   : > { %s15117_s4 = scalar_lea.vmem %s560_s0, 18432  ;;  %p15125_p6 = scmp.lt.s32.totalorder %s560_s0, %s560_s0 }
  0x91   : > { %p15118_p9 = scmp.ne.s32.totalorder %s560_s0, %s15117_s4  ;;  %p15126_p10 = scmp.lt.s32.totalorder %s15117_s4, %s15117_s4 }
  0x93   : > { %p15120_p3 = pnand %p15118_p9, %p15519_p13  ;;  %p15127_p4 = por %p15126_p10, %p15125_p6 }
  0x95   : > { %p15121_p5 = pneg %p15120_p3 }
  0x97   : > { %p15128_p7 = pnand %p15127_p4, %p15121_p5 }
  0x99   : > { %15131 = shalt.err (!%p15128_p7)
}
  0x9a   : > { %14755 = dma.hbm_to_vmem [thread:$0]  (!%p15511_p12), %s18996_s7, 18432, %s560_s0, [#allocation21], %s15342_s28, %s15342_s28, %s15343_s26  }
  0x9b   : > { %s15346_s23 = smov [#allocation25]   ;;  %s15347_s25 = smov [#allocation28]  }
  0x9c   : > { %s587_s19 = sshll.u32 %s15346_s23, 4  ;;  %s611_s21 = sshll.u32 %s15347_s25, 4  ;;  %s588_s19 = int_to_ptr.vmem [resolvable:$true] %s587_s19  ;;  %s612_s21 = int_to_ptr.vmem [resolvable:$true] %s611_s21 }
  0x9d   : > { %s15143_s20 = scalar_lea.vmem %s588_s19, 32  ;;  %p15151_p1 = scmp.lt.s32.totalorder %s588_s19, %s588_s19 }
  0x9e   : > { %p15144_p8 = scmp.ne.s32.totalorder %s588_s19, %s15143_s20  ;;  %p15152_p2 = scmp.lt.s32.totalorder %s15143_s20, %s15143_s20 }
  0xa0   : > { %p15146_p11 = pnand %p15144_p8, %p15519_p13  ;;  %p15153_p9 = por %p15152_p2, %p15151_p1 }
  0xa2   : > { %p15147_p0 = pneg %p15146_p11 }
  0xa4   : > { %p15154_p3 = pnand %p15153_p9, %p15147_p0 }
  0xa6   : > { %15157 = shalt.err (!%p15154_p3)
}
  0xa7   : > { %14761 = dma.hbm_to_vmem [thread:$0]  (!%p15511_p12), %s18999_s10, 32, %s588_s19, [#allocation24]  }
  0xa8   : > { %s15169_s29 = scalar_lea.vmem %s612_s21, 32  ;;  %p15177_p4 = scmp.lt.s32.totalorder %s612_s21, %s612_s21 }
  0xa9   : > { %p15170_p5 = scmp.ne.s32.totalorder %s612_s21, %s15169_s29  ;;  %p15178_p7 = scmp.lt.s32.totalorder %s15169_s29, %s15169_s29 }
  0xab   : > { %p15172_p6 = pnand %p15170_p5, %p15519_p13  ;;  %p15179_p8 = por %p15178_p7, %p15177_p4 }
  0xad   : > { %p15173_p10 = pneg %p15172_p6 }
  0xaf   : > { %p15180_p11 = pnand %p15179_p8, %p15173_p10 }
  0xb1   : > { %15183 = shalt.err (!%p15180_p11)
}
  0xb2   : > { %14767 = dma.hbm_to_vmem [thread:$0]  (!%p15511_p12), %s19001_s12, 32, %s612_s21, [#allocation27]  }
  0xb3   : > { %s15348_s25 = smov [#allocation31]   ;;  %s15349_s19 = smov [#allocation32]  }
  0xb4   : > { %s638_s20 = sshll.u32 %s15348_s25, 4  ;;  %s651_s4 = sshll.u32 %s15349_s19, 4  ;;  %s639_s20 = int_to_ptr.vmem [resolvable:$true] %s638_s20  ;;  %s652_s4 = int_to_ptr.vmem [resolvable:$true] %s651_s4 }
  0xb5   : > { %s15195_s0 = scalar_lea.vmem %s639_s20, 640  ;;  %p15203_p9 = scmp.lt.s32.totalorder %s639_s20, %s639_s20 }
  0xb6   : > { %p15196_p0 = scmp.ne.s32.totalorder %s639_s20, %s15195_s0  ;;  %p15204_p3 = scmp.lt.s32.totalorder %s15195_s0, %s15195_s0 }
  0xb8   : > { %p15198_p1 = pnand %p15196_p0, %p15519_p13  ;;  %p15205_p5 = por %p15204_p3, %p15203_p9 }
  0xba   : > { %p15199_p2 = pneg %p15198_p1 }
  0xbc   : > { %p15206_p6 = pnand %p15205_p5, %p15199_p2 }
  0xbe   : > { %15209 = shalt.err (!%p15206_p6)
}
  0xbf   : > { %14773 = dma.hbm_to_vmem [thread:$0]  (!%p15511_p12), %s19005_s16, 640, %s639_s20, [#allocation30], %s15342_s28, %s15342_s28, %s15343_s26  }
  0xc0   : > { %s15221_s22 = scalar_lea.vmem %s652_s4, 256  ;;  %p15229_p8 = scmp.lt.s32.totalorder %s652_s4, %s652_s4 }
  0xc1   : > { %p15222_p10 = scmp.ne.s32.totalorder %s652_s4, %s15221_s22  ;;  %p15230_p11 = scmp.lt.s32.totalorder %s15221_s22, %s15221_s22 }
  0xc3   : > { %p15224_p4 = pnand %p15222_p10, %p15519_p13  ;;  %p15231_p0 = por %p15230_p11, %p15229_p8 }
  0xc5   : > { %p15225_p7 = pneg %p15224_p4 }
  0xc7   : > { %p15232_p1 = pnand %p15231_p0, %p15225_p7 }
  0xc9   : > { %15235 = shalt.err (!%p15232_p1)
}
  0xca   : > { %14776 = dma.hbm_to_vmem [thread:$0]  (!%p15511_p12), %s19006_s17, 256, %s652_s4, [#allocation33], %s15342_s28, %s15342_s28, %s15343_s26  }
  0xcb   : > { %p19040_p2 = scmp.ne.s32.totalorder %s19033_s27, 0 }
  0xcd   : > { %678 = sbr.rel (%p19040_p2) target bundleno = 3543 (0xdd7), region = 96 }
  0xd2   : > { %p19041_p13 = scmp.eq.s32.totalorder %s15475_s1, 0 }
  0xd4   : > { %15279 = dma.done.wait (%p19041_p13), [#allocation12], 576   ;;  %p19042_p9 = pmov %p19041_p13 }
  0xd6   : > { %15281 = vsyncadd (%p19042_p9), [#allocation12], 4294966720  ;;  %p19043_p3 = pmov %p19042_p9 }
  0xd8   : > { %15283 = dma.done.wait (%p19043_p3), [#allocation15], 2320   ;;  %p19044_p5 = pmov %p19043_p3 }
  0xd9   : > { %p19045_p6 = pmov %p19043_p3 }
  0xda   : > { %15285 = vsyncadd (%p19044_p5), [#allocation15], 4294964976 }
  0xdb   : > { %15287 = dma.done.wait (%p19045_p6), [#allocation18], 4624   ;;  %p19046_p12 = pmov %p19043_p3 }
  0xdc   : > { %p19047_p10 = pmov %p19043_p3 }
  0xdd   : > { %15289 = vsyncadd (%p19046_p12), [#allocation18], 4294962672 }
  0xde   : > { %15291 = dma.done.wait (%p19047_p10), [#allocation21], 18448   ;;  %p19048_p4 = pmov %p19043_p3 }
  0xdf   : > { %p19049_p7 = pmov %p19043_p3 }
  0xe0   : > { %15293 = vsyncadd (%p19048_p4), [#allocation21], 4294948848 }
  0xe1   : > { %15295 = dma.done.wait (%p19049_p7), [#allocation24], 48   ;;  %p19050_p8 = pmov %p19043_p3 }
  0xe2   : > { %p19051_p11 = pmov %p19043_p3 }
  0xe3   : > { %15297 = vsyncadd (%p19050_p8), [#allocation24], 4294967248 }
  0xe4   : > { %15299 = dma.done.wait (%p19051_p11), [#allocation27], 73760   ;;  %p19052_p0 = pmov %p19043_p3 }
  0xe6   : > { %15301 = vsyncadd (%p19052_p0), [#allocation27], 4294893536  ;;  %p19053_p1 = pmov %p19052_p0 }
  0xe7   : > { %p19054_p2 = pmov %p19052_p0 }
  0xe8   : > { %15303 = dma.done.wait (%p19053_p1), [#allocation30], 656  }
  0xe9   : > { %15305 = vsyncadd (%p19054_p2), [#allocation30], 4294966640  ;;  %p19055_p13 = pmov %p19052_p0 }
  0xea   : > { %p19056_p9 = pmov %p19052_p0 }
  0xeb   : > { %15307 = dma.done.wait (%p19055_p13), [#allocation33], 256  }
  0xec   : > { %15309 = vsyncadd (%p19056_p9), [#allocation33], 4294967040  ;;  %vm790_vm0 = vcmask 31744   ;;  %p785_p3 = scmp.lt.s32.totalorder %s15475_s1, 5  ;;  %v15350_v0 = vmov 0.0   ;;  %vm1127_vm1 = vcmask 1043456  }
  0xed   : > { %791 = vst.msk [vmem:[#allocation2] sm:$0xff] %vm790_vm0, %v15350_v0  ;;  %792 = vst.msk [vmem:[#allocation2 + $0x8] sm:$0xff] %vm790_vm0, %v15350_v0  ;;  %s19057_s26 = sld [smem:[#allocation124_spill]]  ;;  %v1018_v1 = vld [vmem:[#allocation11 + $0x4] sm:$0xf]  ;;  %vm831_vm2 = vcmask 27648  }
  0xee   : > { %793 = vst.msk [vmem:[#allocation2 + $0x10] sm:$0xff] %vm790_vm0, %v15350_v0  ;;  %794 = vst.msk [vmem:[#allocation2 + $0x18] sm:$0xff] %vm790_vm0, %v15350_v0  ;;  %s786_s2 = scalar_select %p785_p3, %s15475_s1, 5  ;;  %13394 = vmatprep.subr.msk.mxu0 %vm1127_vm1, %v1018_v1  ;;  %14674 = vmatprep.subr.msk.mxu1 %vm1127_vm1, %v1018_v1  ;;  %v980_v21 = vld [vmem:[#allocation11] sm:$0xf]  ;;  %vm4859_vm3 = vcmask 123904  }
  0xef   : > { %795 = vst.msk [vmem:[#allocation2 + $0x20] sm:$0xff] %vm790_vm0, %v15350_v0  ;;  %796 = vst.msk [vmem:[#allocation2 + $0x28] sm:$0xff] %vm790_vm0, %v15350_v0  ;;  %13395 = vmatpush3.msk.msra.mxu0 %vm1127_vm1, %v1018_v1  ;;  %14675 = vmatpush3.msk.msra.mxu1 %vm1127_vm1, %v1018_v1  ;;  %vm4821_vm4 = vcmask 130048   ;;  %vm4857_vm5 = vcmask 128000   ;;  %vm15351_vm6 = vmmov 0   ;;  %vm5138_vm7 = vcmask 97280  }
  0xf0   : > { %797 = vst.msk [vmem:[#allocation2 + $0x30] sm:$0xff] %vm790_vm0, %v15350_v0  ;;  %798 = vst.msk [vmem:[#allocation2 + $0x38] sm:$0xff] %vm790_vm0, %v15350_v0  ;;  %s12579_s27 = sshll.u32 %s786_s2, 8  ;;  %13450 = vmatprep.subr.msk.mxu1 %vm1127_vm1, %v980_v21  ;;  %vm5453_vm8 = vcmask 125952   ;;  %vm6985_vm9 = vcmask 254976   ;;  %vm6973_vm10 = vcmask 261120  }
  0xf1   : > { %799 = vst.msk [vmem:[#allocation2 + $0x40] sm:$0xff] %vm790_vm0, %v15350_v0  ;;  %800 = vst.msk [vmem:[#allocation2 + $0x48] sm:$0xff] %vm790_vm0, %v15350_v0  ;;  %vm6983_vm11 = vcmask 259072   ;;  %vm7055_vm12 = vcmask 556032   ;;  %vm7168_vm13 = vcmask 257024   ;;  %vm10924_vm14 = vcmask 1041408  }
  0xf2   : > { %801 = vst.msk [vmem:[#allocation2 + $0x50] sm:$0xff] %vm790_vm0, %v15350_v0  ;;  %802 = vst.msk [vmem:[#allocation2 + $0x58] sm:$0xff] %vm790_vm0, %v15350_v0  ;;  %vm10769_vm15 = vcmask 1042432   ;;  %s783_s23 = sand.u32 1, %s15320_s30   ;;  %s12576_s25 = sshll.u32 %s15475_s1, 4 }
  0xf3   : > { %803 = vst.msk [vmem:[#allocation2 + $0x60] sm:$0xff] %vm790_vm0, %v15350_v0  ;;  %804 = vst.msk [vmem:[#allocation2 + $0x68] sm:$0xff] %vm790_vm0, %v15350_v0  ;;  %s15773_s20 = scalar_lea.vmem %s19057_s26, %s12579_s27  ;;  %s784_s2 = scalar_lea.vmem [#allocation34], %s783_s23 }
  0xf4   : > { %805 = vst.msk [vmem:[#allocation2 + $0x70] sm:$0xff] %vm790_vm0, %v15350_v0  ;;  %806 = vst.msk [vmem:[#allocation2 + $0x78] sm:$0xff] %vm790_vm0, %v15350_v0  ;;  %v833_v2 = vld [vmem:[%s15773_s20] sm:$0xff]  ;;  %v11838_v3 = vld [vmem:[%s15773_s20 + $0xd0] sm:$0xff]  ;;  %s11589_s27 = sshll.u32 %s784_s2, 4  ;;  %s19232_s26 = sld [smem:[#allocation129_spill]]  ;;  %s11590_s27 = int_to_ptr.vmem [resolvable:$true] %s11589_s27 }
  0xf5   : > { %807 = vst.msk [vmem:[#allocation2 + $0x80] sm:$0xff] %vm790_vm0, %v15350_v0  ;;  %808 = vst.msk [vmem:[#allocation2 + $0x88] sm:$0xff] %vm790_vm0, %v15350_v0  ;;  %v981_v4 = vld [vmem:[#allocation2 + $0x1] sm:$0xff]  ;;  %v982_v5 = vld [vmem:[#allocation2 + $0x9] sm:$0xff]  ;;  %v835_v6 = vmul.f32 0.003921569, %v833_v2 }
  0xf6   : > { %809 = vst.msk [vmem:[#allocation2 + $0x90] sm:$0xff] %vm790_vm0, %v15350_v0  ;;  %810 = vst.msk [vmem:[#allocation2 + $0x98] sm:$0xff] %vm790_vm0, %v15350_v0  ;;  %v11839_v7 = vld [vmem:[%s15773_s20 + $0xd8] sm:$0xff]  ;;  %13396 = vmatprep.mubr.msk.f32.mxu0 %vm790_vm0, %v981_v4  ;;  %v926_v8 = vmul.f32 0.003921569, %v11838_v3  ;;  %v834_v10 = vld [vmem:[%s15773_s20 + $0x8] sm:$0xff] }
  0xf7   : > { %811 = vst.msk [vmem:[#allocation2 + $0xa0] sm:$0xff] %vm790_vm0, %v15350_v0  ;;  %812 = vst.msk [vmem:[#allocation2 + $0xa8] sm:$0xff] %vm790_vm0, %v15350_v0  ;;  %v927_v9 = vmul.f32 0.003921569, %v11839_v7  ;;  %v11840_v11 = vld [vmem:[%s15773_s20 + $0xe0] sm:$0xff]  ;;  %13397 = vmatmul.mubr.msk.f32.vlgmr.msra.gmra.mxu0 %vm790_vm0, %v982_v5  ;;  %v11814_v14 = vld [vmem:[%s15773_s20 + $0x10] sm:$0xff] }
  0xf8   : > { %813 = vst.msk [vmem:[#allocation2 + $0xb0] sm:$0xff] %vm790_vm0, %v15350_v0  ;;  %814 = vst.msk [vmem:[#allocation2 + $0xb8] sm:$0xff] %vm790_vm0, %v15350_v0  ;;  %v836_v12 = vmul.f32 0.003921569, %v834_v10  ;;  %v933_v13 = vmul.f32 0.003921569, %v11840_v11 }
  0xf9   : > { %815 = vst.msk [vmem:[#allocation2 + $0xc0] sm:$0xff] %vm790_vm0, %v15350_v0  ;;  %816 = vst.msk [vmem:[#allocation2 + $0xc8] sm:$0xff] %vm790_vm0, %v15350_v0  ;;  %v11841_v15 = vld [vmem:[%s15773_s20 + $0xe8] sm:$0xff]  ;;  %v842_v16 = vmul.f32 0.003921569, %v11814_v14  ;;  %v11815_v18 = vld [vmem:[%s15773_s20 + $0x18] sm:$0xff] }
  0xfa   : > { %817 = vst.msk [vmem:[#allocation2 + $0xd0] sm:$0xff] %vm790_vm0, %v15350_v0  ;;  %818 = vst.msk [vmem:[#allocation2 + $0xd8] sm:$0xff] %vm790_vm0, %v15350_v0  ;;  %v934_v17 = vmul.f32 0.003921569, %v11841_v15  ;;  %v11816_v19 = vld [vmem:[%s15773_s20 + $0x20] sm:$0xff]  ;;  %v11817_v23 = vld [vmem:[%s15773_s20 + $0x28] sm:$0xff] }
  0xfb   : > { %819 = vst.msk [vmem:[#allocation2 + $0xe0] sm:$0xff] %vm790_vm0, %v15350_v0  ;;  %820 = vst.msk [vmem:[#allocation2 + $0xe8] sm:$0xff] %vm790_vm0, %v15350_v0  ;;  %v843_v20 = vmul.f32 0.003921569, %v11815_v18  ;;  %v849_v22 = vmul.f32 0.003921569, %v11816_v19 }
  0xfc   : > { %821 = vst.msk [vmem:[#allocation2 + $0xf0] sm:$0xff] %vm790_vm0, %v15350_v0  ;;  %822 = vst.msk [vmem:[#allocation2 + $0xf8] sm:$0xff] %vm790_vm0, %v15350_v0  ;;  %v850_v24 = vmul.f32 0.003921569, %v11817_v23  ;;  %v11818_v25 = vld [vmem:[%s15773_s20 + $0x30] sm:$0xff]  ;;  %v11819_v26 = vld [vmem:[%s15773_s20 + $0x38] sm:$0xff] }
  0xfd   : > { %823 = vst.msk [vmem:[#allocation2 + $0x100] sm:$0xff] %vm790_vm0, %v15350_v0  ;;  %824 = vst.msk [vmem:[#allocation2 + $0x108] sm:$0xff] %vm790_vm0, %v15350_v0  ;;  %v11820_v27 = vld [vmem:[%s15773_s20 + $0x40] sm:$0xff]  ;;  %v856_v28 = vmul.f32 0.003921569, %v11818_v25  ;;  %v11821_v31 = vld [vmem:[%s15773_s20 + $0x48] sm:$0xff] }
  0xfe   : > { %825 = vst.msk [vmem:[#allocation2 + $0x110] sm:$0xff] %vm790_vm0, %v15350_v0  ;;  %826 = vst.msk [vmem:[#allocation2 + $0x118] sm:$0xff] %vm790_vm0, %v15350_v0  ;;  %v857_v29 = vmul.f32 0.003921569, %v11819_v26  ;;  %v863_v30 = vmul.f32 0.003921569, %v11820_v27 }
  0xff   : > { %827 = vst.msk [vmem:[#allocation2 + $0x120] sm:$0xff] %vm790_vm0, %v15350_v0  ;;  %828 = vst.msk [vmem:[#allocation2 + $0x128] sm:$0xff] %vm790_vm0, %v15350_v0  ;;  %v11822_v32 = vld [vmem:[%s15773_s20 + $0x50] sm:$0xff]  ;;  %v11823_v33 = vld [vmem:[%s15773_s20 + $0x58] sm:$0xff]  ;;  %v864_v35 = vmul.f32 0.003921569, %v11821_v31 }
 0x100   : > { %829 = vst.msk [vmem:[#allocation2 + $0x130] sm:$0xff] %vm790_vm0, %v15350_v0  ;;  %830 = vst.msk [vmem:[#allocation2 + $0x138] sm:$0xff] %vm790_vm0, %v15350_v0  ;;  %v870_v36 = vmul.f32 0.003921569, %v11822_v32  ;;  %v871_v38 = vmul.f32 0.003921569, %v11823_v33 }
 0x101   : > { %8076 = vst [vmem:[#allocation5] sm:$0xff] %v15350_v0  ;;  %8077 = vst [vmem:[#allocation5 + $0x8] sm:$0xff] %v15350_v0  ;;  %v11824_v39 = vld [vmem:[%s15773_s20 + $0x60] sm:$0xff]  ;;  %v11825_v40 = vld [vmem:[%s15773_s20 + $0x68] sm:$0xff]  ;;  %s11577_s19 = scalar_lea.sflag [#allocation13], %s783_s23  ;;  %s15236_s4 = scalar_lea.vmem %s11590_s27, 16 }
 0x102   : > { %8078 = vst [vmem:[#allocation5 + $0x10] sm:$0xff] %v15350_v0  ;;  %8079 = vst [vmem:[#allocation5 + $0x18] sm:$0xff] %v15350_v0  ;;  %v877_v43 = vmul.f32 0.003921569, %v11824_v39  ;;  %v878_v46 = vmul.f32 0.003921569, %v11825_v40  ;;  %p15237_p5 = scmp.ne.s32.totalorder %s11590_s27, %s15236_s4 }
 0x103   : > { %8080 = vst [vmem:[#allocation5 + $0x20] sm:$0xf] %v15350_v0  ;;  %9023 = vst [vmem:[#allocation10 + $0x16] sm:$0x3] %v15350_v0  ;;  %v944_v50 = vld [vmem:[#allocation2] sm:$0xff]  ;;  %v11826_v51 = vld [vmem:[%s15773_s20 + $0x70] sm:$0xff] }
 0x104   : > { %10097 = vst [vmem:[#allocation7 + $0x10] sm:$0xff] %v15350_v0  ;;  %10098 = vst [vmem:[#allocation7] sm:$0xff] %v15350_v0  ;;  %v884_v52 = vmul.f32 0.003921569, %v11826_v51  ;;  %v945_v54 = vld [vmem:[#allocation2 + $0x8] sm:$0xff]  ;;  %v11827_v57 = vld [vmem:[%s15773_s20 + $0x78] sm:$0xff] }
 0x105   : > { %10099 = vst [vmem:[#allocation7 + $0x18] sm:$0xff] %v15350_v0  ;;  %10100 = vst [vmem:[#allocation7 + $0x8] sm:$0xff] %v15350_v0  ;;  %v885_v58 = vmul.f32 0.003921569, %v11827_v57  ;;  %v11828_v59 = vld [vmem:[%s15773_s20 + $0x80] sm:$0xff]  ;;  %v11829_v2 = vld [vmem:[%s15773_s20 + $0x88] sm:$0xff] }
 0x106   : > { %837 = vst.msk [vmem:[#allocation2 + $0x13] sm:$0xff] %vm790_vm0, %v835_v6  ;;  %928 = vst.msk [vmem:[#allocation2 + $0xfd] sm:$0xff] %vm790_vm0, %v926_v8  ;;  %v891_v63 = vmul.f32 0.003921569, %v11828_v59  ;;  %v1769_v3 = vld [vmem:[#allocation11 + $0x8] sm:$0xf] }
 0x107   : > { %929 = vst.msk [vmem:[#allocation2 + $0x105] sm:$0xff] %vm790_vm0, %v927_v9  ;;  %838 = vst.msk [vmem:[#allocation2 + $0x1b] sm:$0xff] %vm790_vm0, %v836_v12  ;;  %v892_v5 = vmul.f32 0.003921569, %v11829_v2  ;;  %13506 = vmatprep.subr.msk.mxu0 %vm1127_vm1, %v1769_v3  ;;  %v11830_v6 = vld [vmem:[%s15773_s20 + $0x90] sm:$0xff]  ;;  %v11831_v7 = vld [vmem:[%s15773_s20 + $0x98] sm:$0xff] }
 0x108   : > { %935 = vst.msk [vmem:[#allocation2 + $0x10f] sm:$0xff] %vm790_vm0, %v933_v13  ;;  %844 = vst.msk [vmem:[#allocation2 + $0x25] sm:$0xff] %vm790_vm0, %v842_v16  ;;  %v898_v10 = vmul.f32 0.003921569, %v11830_v6  ;;  %v899_v11 = vmul.f32 0.003921569, %v11831_v7  ;;  %13507 = vmatpush3.msk.msra.mxu0 %vm1127_vm1, %v1769_v3 }
 0x109   : > { %936 = vst.msk [vmem:[#allocation2 + $0x117] sm:$0xff] %vm790_vm0, %v934_v17  ;;  %845 = vst.msk [vmem:[#allocation2 + $0x2d] sm:$0xff] %vm790_vm0, %v843_v20  ;;  %v11832_v13 = vld [vmem:[%s15773_s20 + $0xa0] sm:$0xff]  ;;  %v11833_v14 = vld [vmem:[%s15773_s20 + $0xa8] sm:$0xff]  ;;  %p19233_p6 = scmp.ne.s32.totalorder %s19030_s3, 0  ;;  %s15353_s0 = smov [#allocation34]  }
 0x10a   : > { %851 = vst.msk [vmem:[#allocation2 + $0x37] sm:$0xff] %vm790_vm0, %v849_v22  ;;  %852 = vst.msk [vmem:[#allocation2 + $0x3f] sm:$0xff] %vm790_vm0, %v850_v24  ;;  %v905_v15 = vmul.f32 0.003921569, %v11832_v13  ;;  %v906_v16 = vmul.f32 0.003921569, %v11833_v14 }
 0x10b   : > { %858 = vst.msk [vmem:[#allocation2 + $0x49] sm:$0xff] %vm790_vm0, %v856_v28  ;;  %859 = vst.msk [vmem:[#allocation2 + $0x51] sm:$0xff] %vm790_vm0, %v857_v29  ;;  %v11834_v17 = vld [vmem:[%s15773_s20 + $0xb0] sm:$0xff]  ;;  %v11835_v18 = vld [vmem:[%s15773_s20 + $0xb8] sm:$0xff]  ;;  %p15238_p12 = pnand %p15237_p5, %p19233_p6  ;;  %s15240_s21 = sshll.u32 %s15353_s0, 4  ;;  %s15241_s21 = int_to_ptr.vmem [resolvable:$false] %s15240_s21 }
 0x10c   : > { %865 = vst.msk [vmem:[#allocation2 + $0x5b] sm:$0xff] %vm790_vm0, %v863_v30  ;;  %866 = vst.msk [vmem:[#allocation2 + $0x63] sm:$0xff] %vm790_vm0, %v864_v35  ;;  %v912_v19 = vmul.f32 0.003921569, %v11834_v17  ;;  %v913_v20 = vmul.f32 0.003921569, %v11835_v18  ;;  %p15243_p4 = scmp.lt.s32.totalorder %s11590_s27, %s15241_s21 }
 0x10d   : > { %v983_v34 = vld [vmem:[#allocation2 + $0x11] sm:$0xff]  ;;  %872 = vst.msk [vmem:[#allocation2 + $0x6d] sm:$0xff] %vm790_vm0, %v870_v36  ;;  %873 = vst.msk [vmem:[#allocation2 + $0x75] sm:$0xff] %vm790_vm0, %v871_v38  ;;  %v11837_v22 = vld [vmem:[%s15773_s20 + $0xc8] sm:$0xff]  ;;  %p15239_p10 = pneg %p15238_p12  ;;  %s15242_s1 = scalar_lea.vmem %s15241_s21, 32 }
 0x10e   : > { %13399 = vmatprep.mubr.msk.f32.mxu0 %vm790_vm0, %v983_v34  ;;  %v1013_v37 = vld [vmem:[#allocation2 + $0x101] sm:$0xff]  ;;  %v984_v41 = vld [vmem:[#allocation2 + $0x19] sm:$0xff]  ;;  %879 = vst.msk [vmem:[#allocation2 + $0x7f] sm:$0xff] %vm790_vm0, %v877_v43  ;;  %880 = vst.msk [vmem:[#allocation2 + $0x87] sm:$0xff] %vm790_vm0, %v878_v46  ;;  %v920_v24 = vmul.f32 0.003921569, %v11837_v22  ;;  %p15244_p7 = scmp.lt.s32.totalorder %s15242_s1, %s15236_s4 }
 0x10f   : > { %13444 = vmatprep.mubr.msk.f32.mxu1 %vm790_vm0, %v1013_v37  ;;  %v1014_v42 = vld [vmem:[#allocation2 + $0x109] sm:$0xff]  ;;  %13400 = vmatmul.mubr.msk.f32.gmra.mxu0 %vm790_vm0, %v984_v41  ;;  %v985_v44 = vld [vmem:[#allocation2 + $0x21] sm:$0xff]  ;;  %886 = vst.msk [vmem:[#allocation2 + $0x91] sm:$0xff] %vm790_vm0, %v884_v52  ;;  %v947_v61 = vld [vmem:[#allocation2 + $0x18] sm:$0xff] }
 0x110   : > { %13445 = vmatmul.mubr.msk.f32.vlgmr.msra.gmra.mxu1 %vm790_vm0, %v1014_v42  ;;  %v1015_v45 = vld [vmem:[#allocation2 + $0x111] sm:$0xff]  ;;  %13402 = vmatprep.mubr.msk.f32.mxu0 %vm790_vm0, %v985_v44  ;;  %v986_v47 = vld [vmem:[#allocation2 + $0x29] sm:$0xff]  ;;  %v1016_v48 = vld [vmem:[#allocation2 + $0x119] sm:$0x3f]  ;;  %887 = vst.msk [vmem:[#allocation2 + $0x99] sm:$0xff] %vm790_vm0, %v885_v58  ;;  %p15245_p8 = por %p15244_p7, %p15243_p4 }
 0x111   : > { %13447 = vmatprep.mubr.msk.f32.mxu1 %vm790_vm0, %v1015_v45  ;;  %v987_v49 = vld [vmem:[#allocation2 + $0x31] sm:$0xff]  ;;  %13451 = vmatpush3.msk.msra.mxu1 %vm1127_vm1, %v980_v21  ;;  %v988_v53 = vld [vmem:[#allocation2 + $0x39] sm:$0xff]  ;;  %v989_v55 = vld [vmem:[#allocation2 + $0x41] sm:$0xff]  ;;  %893 = vst.msk [vmem:[#allocation2 + $0xa3] sm:$0xff] %vm790_vm0, %v891_v63 }
 0x112   : > { %v946_v56 = vld [vmem:[#allocation2 + $0x10] sm:$0xff]  ;;  %v948_v62 = vld [vmem:[#allocation2 + $0x20] sm:$0xff]  ;;  %v949_v4 = vld [vmem:[#allocation2 + $0x28] sm:$0xff]  ;;  %894 = vst.msk [vmem:[#allocation2 + $0xab] sm:$0xff] %vm790_vm0, %v892_v5  ;;  %p15246_p11 = pnand %p15245_p8, %p15239_p10 }
 0x113   : > { %13403 = vmatmul.mubr.msk.f32.gmra.mxu0 %vm790_vm0, %v986_v47  ;;  %v990_v60 = vld [vmem:[#allocation2 + $0x49] sm:$0xff]  ;;  %v991_v1 = vld [vmem:[#allocation2 + $0x51] sm:$0xff]  ;;  %v992_v8 = vld [vmem:[#allocation2 + $0x59] sm:$0xff]  ;;  %900 = vst.msk [vmem:[#allocation2 + $0xb5] sm:$0xff] %vm790_vm0, %v898_v10 }
 0x114   : > { %13448 = vmatmul.mubr.msk.f32.gmra.mxu1 %vm790_vm0, %v1016_v48  ;;  %13405 = vmatprep.mubr.msk.f32.mxu0 %vm790_vm0, %v987_v49  ;;  %v950_v9 = vld [vmem:[#allocation2 + $0x30] sm:$0xff]  ;;  %v993_v12 = vld [vmem:[#allocation2 + $0x61] sm:$0xff]  ;;  %901 = vst.msk [vmem:[#allocation2 + $0xbd] sm:$0xff] %vm790_vm0, %v899_v11  ;;  %907 = vst.msk [vmem:[#allocation2 + $0xc7] sm:$0xff] %vm790_vm0, %v905_v15 }
 0x115   : > { %13452 = vmatprep.mubr.msk.f32.mxu1 %vm790_vm0, %v944_v50  ;;  %v11836_v21 = vld [vmem:[%s15773_s20 + $0xc0] sm:$0xff]  ;;  %908 = vst.msk [vmem:[#allocation2 + $0xcf] sm:$0xff] %vm790_vm0, %v906_v16  ;;  %v994_v25 = vld [vmem:[#allocation2 + $0x69] sm:$0xff]  ;;  %v951_v26 = vld [vmem:[#allocation2 + $0x38] sm:$0xff] }
 0x116   : > { %v919_v23 = vmul.f32 0.003921569, %v11836_v21  ;;  %914 = vst.msk [vmem:[#allocation2 + $0xd9] sm:$0xff] %vm790_vm0, %v912_v19  ;;  %915 = vst.msk [vmem:[#allocation2 + $0xe1] sm:$0xff] %vm790_vm0, %v913_v20  ;;  %v995_v27 = vld [vmem:[#allocation2 + $0x71] sm:$0xff]  ;;  %v952_v28 = vld [vmem:[#allocation2 + $0x40] sm:$0xff] }
 0x117   : > { %13406 = vmatmul.mubr.msk.f32.gmra.mxu0 %vm790_vm0, %v988_v53  ;;  %922 = vst.msk [vmem:[#allocation2 + $0xf3] sm:$0xff] %vm790_vm0, %v920_v24  ;;  %v996_v29 = vld [vmem:[#allocation2 + $0x79] sm:$0xff]  ;;  %v953_v30 = vld [vmem:[#allocation2 + $0x48] sm:$0xff]  ;;  %v954_v32 = vld [vmem:[#allocation2 + $0x50] sm:$0xff] }
 0x118   : > { %13453 = vmatmul.mubr.msk.f32.vlgmr.msra.gmra.mxu1 %vm790_vm0, %v945_v54  ;;  %13408 = vmatprep.mubr.msk.f32.mxu0 %vm790_vm0, %v989_v55  ;;  %921 = vst.msk [vmem:[#allocation2 + $0xeb] sm:$0xff] %vm790_vm0, %v919_v23  ;;  %v997_v31 = vld [vmem:[#allocation2 + $0x81] sm:$0xff]  ;;  %v998_v33 = vld [vmem:[#allocation2 + $0x89] sm:$0xff]  ;;  %v955_v34 = vld [vmem:[#allocation2 + $0x58] sm:$0xff] }
 0x119   : > { %13455 = vmatprep.mubr.msk.f32.mxu1 %vm790_vm0, %v946_v56  ;;  %v999_v35 = vld [vmem:[#allocation2 + $0x91] sm:$0xff]  ;;  %v956_v36 = vld [vmem:[#allocation2 + $0x60] sm:$0xff]  ;;  %v957_v38 = vld [vmem:[#allocation2 + $0x68] sm:$0xff]  ;;  %832 = vst.msk [vmem:[#allocation2 + $0x140] sm:$0xf] %vm831_vm2, %v15350_v0 }
 0x11a   : > { %v1000_v37 = vld [vmem:[#allocation2 + $0x99] sm:$0xff]  ;;  %v2199_v39 = vld [vmem:[#allocation11 + $0xc] sm:$0xf]  ;;  %v958_v41 = vld [vmem:[#allocation2 + $0x70] sm:$0xff] }
 0x11b   : > { %13409 = vmatmul.mubr.msk.f32.gmra.mxu0 %vm790_vm0, %v990_v60  ;;  %v1001_v40 = vld [vmem:[#allocation2 + $0xa1] sm:$0xff]  ;;  %13562 = vmatprep.subr.msk.mxu1 %vm1127_vm1, %v2199_v39  ;;  %v1002_v42 = vld [vmem:[#allocation2 + $0xa9] sm:$0xff]  ;;  %v959_v43 = vld [vmem:[#allocation2 + $0x78] sm:$0xff] }
 0x11c   : > { %13456 = vmatmul.mubr.msk.f32.gmra.mxu1 %vm790_vm0, %v947_v61  ;;  %13411 = vmatprep.mubr.msk.f32.mxu0 %vm790_vm0, %v991_v1  ;;  %v1003_v44 = vld [vmem:[#allocation2 + $0xb1] sm:$0xff]  ;;  %v960_v45 = vld [vmem:[#allocation2 + $0x80] sm:$0xff]  ;;  %v15885_v46 = vld [vmem:[#allocation11 + $0x10] sm:$0xf] }
 0x11d   : > { %13458 = vmatprep.mubr.msk.f32.mxu1 %vm790_vm0, %v948_v62  ;;  %13563 = vmatpush3.msk.msra.mxu1 %vm1127_vm1, %v2199_v39  ;;  %v1004_v47 = vld [vmem:[#allocation2 + $0xb9] sm:$0xff]  ;;  %v961_v48 = vld [vmem:[#allocation2 + $0x88] sm:$0xff]  ;;  %v962_v50 = vld [vmem:[#allocation2 + $0x90] sm:$0xff] }
 0x11e   : > { %13618 = vmatprep.subr.msk.mxu0 %vm1127_vm1, %v15885_v46  ;;  %v1005_v49 = vld [vmem:[#allocation2 + $0xc1] sm:$0xff]  ;;  %v1006_v51 = vld [vmem:[#allocation2 + $0xc9] sm:$0xff]  ;;  %v963_v52 = vld [vmem:[#allocation2 + $0x98] sm:$0xff] }
 0x11f   : > { %13412 = vmatmul.mubr.msk.f32.gmra.mxu0 %vm790_vm0, %v992_v8  ;;  %v11842_v53 = vld [vmem:[%s15773_s20 + $0xf0] sm:$0xff]  ;;  %v964_v55 = vld [vmem:[#allocation2 + $0xa0] sm:$0xff]  ;;  %v11843_v57 = vld [vmem:[%s15773_s20 + $0xf8] sm:$0xff]  ;;  %s11587_s20 = scalar_lea.hbm %s19232_s26, %s12576_s25 }
 0x120   : > { %13459 = vmatmul.mubr.msk.f32.gmra.mxu1 %vm790_vm0, %v949_v4  ;;  %13414 = vmatprep.mubr.msk.f32.mxu0 %vm790_vm0, %v993_v12  ;;  %v1007_v54 = vld [vmem:[#allocation2 + $0xd1] sm:$0xff]  ;;  %v940_v56 = vmul.f32 0.003921569, %v11842_v53  ;;  %v941_v58 = vmul.f32 0.003921569, %v11843_v57  ;;  %v1008_v60 = vld [vmem:[#allocation2 + $0xd9] sm:$0xff] }
 0x121   : > { %13461 = vmatprep.mubr.msk.f32.mxu1 %vm790_vm0, %v950_v9  ;;  %v15899_v59 = vld [vmem:[#allocation11 + $0x14] sm:$0xf]  ;;  %v1009_v62 = vld [vmem:[#allocation2 + $0xe1] sm:$0xff]  ;;  %v966_v63 = vld [vmem:[#allocation2 + $0xb0] sm:$0xff] }
 0x122   : > { %942 = vst.msk [vmem:[#allocation2 + $0x121] sm:$0xff] %vm790_vm0, %v940_v56  ;;  %v965_v61 = vld [vmem:[#allocation2 + $0xa8] sm:$0xff]  ;;  %943 = vst.msk [vmem:[#allocation2 + $0x129] sm:$0xff] %vm790_vm0, %v941_v58  ;;  %13674 = vmatprep.subr.msk.mxu1 %vm1127_vm1, %v15899_v59  ;;  %v967_v2 = vld [vmem:[#allocation2 + $0xb8] sm:$0xff] }
 0x123   : > { %13415 = vmatmul.mubr.msk.f32.gmra.mxu0 %vm790_vm0, %v994_v25  ;;  %v1010_v1 = vld [vmem:[#allocation2 + $0xe9] sm:$0xff]  ;;  %v1011_v3 = vld [vmem:[#allocation2 + $0xf1] sm:$0xff]  ;;  %v968_v4 = vld [vmem:[#allocation2 + $0xc0] sm:$0xff] }
 0x124   : > { %13462 = vmatmul.mubr.msk.f32.gmra.mxu1 %vm790_vm0, %v951_v26  ;;  %13417 = vmatprep.mubr.msk.f32.mxu0 %vm790_vm0, %v995_v27  ;;  %v1012_v5 = vld [vmem:[#allocation2 + $0xf9] sm:$0xff]  ;;  %v969_v6 = vld [vmem:[#allocation2 + $0xc8] sm:$0xff]  ;;  %v970_v7 = vld [vmem:[#allocation2 + $0xd0] sm:$0xff] }
 0x125   : > { %13464 = vmatprep.mubr.msk.f32.mxu1 %vm790_vm0, %v952_v28  ;;  %v1732_v8 = vld [vmem:[#allocation2 + $0x2] sm:$0xff]  ;;  %v971_v9 = vld [vmem:[#allocation2 + $0xd8] sm:$0xff]  ;;  %v1733_v10 = vld [vmem:[#allocation2 + $0xa] sm:$0xff] }
 0x126   : > { %v972_v11 = vld [vmem:[#allocation2 + $0xe0] sm:$0xff]  ;;  %v1734_v12 = vld [vmem:[#allocation2 + $0x12] sm:$0xff]  ;;  %v973_v14 = vld [vmem:[#allocation2 + $0xe8] sm:$0xff] }
 0x127   : > { %13418 = vmatmul.mubr.msk.f32.gmra.mxu0 %vm790_vm0, %v996_v29  ;;  %v15923_v13 = vld [vmem:[#allocation11 + $0x18] sm:$0xf]  ;;  %v1735_v15 = vld [vmem:[#allocation2 + $0x1a] sm:$0xff]  ;;  %v1736_v17 = vld [vmem:[#allocation2 + $0x22] sm:$0xff] }
 0x128   : > { %13465 = vmatmul.mubr.msk.f32.gmra.mxu1 %vm790_vm0, %v953_v30  ;;  %13420 = vmatprep.mubr.msk.f32.mxu0 %vm790_vm0, %v997_v31  ;;  %v974_v16 = vld [vmem:[#allocation2 + $0xf0] sm:$0xff]  ;;  %v975_v18 = vld [vmem:[#allocation2 + $0xf8] sm:$0xff]  ;;  %v976_v20 = vld [vmem:[#allocation2 + $0x100] sm:$0xff] }
 0x129   : > { %13467 = vmatprep.mubr.msk.f32.mxu1 %vm790_vm0, %v954_v32  ;;  %v1737_v19 = vld [vmem:[#allocation2 + $0x2a] sm:$0xff]  ;;  %v1738_v21 = vld [vmem:[#allocation2 + $0x32] sm:$0xff]  ;;  %v1739_v23 = vld [vmem:[#allocation2 + $0x3a] sm:$0xff] }
 0x12a   : > { %v977_v22 = vld [vmem:[#allocation2 + $0x108] sm:$0xff]  ;;  %v978_v24 = vld [vmem:[#allocation2 + $0x110] sm:$0xff]  ;;  %v979_v26 = vld [vmem:[#allocation2 + $0x118] sm:$0x3f] }
 0x12b   : > { %13421 = vmatmul.mubr.msk.f32.gmra.mxu0 %vm790_vm0, %v998_v33  ;;  %v1740_v25 = vld [vmem:[#allocation2 + $0x42] sm:$0xff]  ;;  %v1741_v27 = vld [vmem:[#allocation2 + $0x4a] sm:$0xff]  ;;  %v1742_v28 = vld [vmem:[#allocation2 + $0x52] sm:$0xff] }
 0x12c   : > { %13468 = vmatmul.mubr.msk.f32.gmra.mxu1 %vm790_vm0, %v955_v34  ;;  %13423 = vmatprep.mubr.msk.f32.mxu0 %vm790_vm0, %v999_v35  ;;  %v1743_v29 = vld [vmem:[#allocation2 + $0x5a] sm:$0xff]  ;;  %v1744_v30 = vld [vmem:[#allocation2 + $0x62] sm:$0xff]  ;;  %v1745_v31 = vld [vmem:[#allocation2 + $0x6a] sm:$0xff] }
 0x12d   : > { %13470 = vmatprep.mubr.msk.f32.mxu1 %vm790_vm0, %v956_v36  ;;  %v1746_v32 = vld [vmem:[#allocation2 + $0x72] sm:$0xff]  ;;  %v1747_v33 = vld [vmem:[#allocation2 + $0x7a] sm:$0xff]  ;;  %v1748_v34 = vld [vmem:[#allocation2 + $0x82] sm:$0xff] }
 0x12e   : > { %v1749_v35 = vld [vmem:[#allocation2 + $0x8a] sm:$0xff]  ;;  %v1750_v36 = vld [vmem:[#allocation2 + $0x92] sm:$0xff]  ;;  %v1752_v39 = vld [vmem:[#allocation2 + $0xa2] sm:$0xff] }
 0x12f   : > { %13424 = vmatmul.mubr.msk.f32.gmra.mxu0 %vm790_vm0, %v1000_v37  ;;  %v1751_v37 = vld [vmem:[#allocation2 + $0x9a] sm:$0xff]  ;;  %v1766_v53 = vld [vmem:[#allocation2 + $0x112] sm:$0xff]  ;;  %v2594_v57 = vld [vmem:[#allocation2 + $0x23] sm:$0xff] }
 0x130   : > { %13471 = vmatmul.mubr.msk.f32.gmra.mxu1 %vm790_vm0, %v957_v38  ;;  %13426 = vmatprep.mubr.msk.f32.mxu0 %vm790_vm0, %v1001_v40  ;;  %v15965_v38 = vld [vmem:[#allocation11 + $0x1c] sm:$0xf]  ;;  %v1753_v40 = vld [vmem:[#allocation2 + $0xaa] sm:$0xff]  ;;  %v2593_v56 = vld [vmem:[#allocation2 + $0x1b] sm:$0xff] }
 0x131   : > { %13473 = vmatprep.mubr.msk.f32.mxu1 %vm790_vm0, %v958_v41  ;;  %v1754_v41 = vld [vmem:[#allocation2 + $0xb2] sm:$0xff]  ;;  %v2197_v0 = vld [vmem:[#allocation2 + $0x12a] sm:$0x3f] }
 0x132   : > { %v16007_v58 = vld [vmem:[#allocation11 + $0x20] sm:$0xf] }
 0x133   : > { %13427 = vmatmul.mubr.msk.f32.gmra.mxu0 %vm790_vm0, %v1002_v42  ;;  %v1755_v42 = vld [vmem:[#allocation2 + $0xba] sm:$0xff] }
 0x134   : > { %13474 = vmatmul.mubr.msk.f32.gmra.mxu1 %vm790_vm0, %v959_v43  ;;  %13429 = vmatprep.mubr.msk.f32.mxu0 %vm790_vm0, %v1003_v44  ;;  %v1756_v43 = vld [vmem:[#allocation2 + $0xc2] sm:$0xff]  ;;  %v1757_v44 = vld [vmem:[#allocation2 + $0xca] sm:$0xff] }
 0x135   : > { %13476 = vmatprep.mubr.msk.f32.mxu1 %vm790_vm0, %v960_v45  ;;  %v1758_v45 = vld [vmem:[#allocation2 + $0xd2] sm:$0xff] }
 0x137   : > { %13430 = vmatmul.mubr.msk.f32.gmra.mxu0 %vm790_vm0, %v1004_v47  ;;  %v1760_v47 = vld [vmem:[#allocation2 + $0xe2] sm:$0xff] }
 0x138   : > { %13477 = vmatmul.mubr.msk.f32.gmra.mxu1 %vm790_vm0, %v961_v48  ;;  %13432 = vmatprep.mubr.msk.f32.mxu0 %vm790_vm0, %v1005_v49  ;;  %v1761_v48 = vld [vmem:[#allocation2 + $0xea] sm:$0xff]  ;;  %v1762_v49 = vld [vmem:[#allocation2 + $0xf2] sm:$0xff] }
 0x139   : > { %13479 = vmatprep.mubr.msk.f32.mxu1 %vm790_vm0, %v962_v50  ;;  %v1763_v50 = vld [vmem:[#allocation2 + $0xfa] sm:$0xff] }
 0x13b   : > { %13433 = vmatmul.mubr.msk.f32.gmra.mxu0 %vm790_vm0, %v1006_v51  ;;  %v1764_v51 = vld [vmem:[#allocation2 + $0x102] sm:$0xff] }
 0x13c   : > { %13480 = vmatmul.mubr.msk.f32.gmra.mxu1 %vm790_vm0, %v963_v52  ;;  %13435 = vmatprep.mubr.msk.f32.mxu0 %vm790_vm0, %v1007_v54  ;;  %v1765_v52 = vld [vmem:[#allocation2 + $0x10a] sm:$0xff]  ;;  %v1767_v54 = vld [vmem:[#allocation2 + $0x11a] sm:$0x3f] }
 0x13d   : > { %13482 = vmatprep.mubr.msk.f32.mxu1 %vm790_vm0, %v964_v55  ;;  %v2592_v55 = vld [vmem:[#allocation2 + $0x13] sm:$0xff] }
 0x13f   : > { %13436 = vmatmul.mubr.msk.f32.gmra.mxu0 %vm790_vm0, %v1008_v60  ;;  %v2596_v60 = vld [vmem:[#allocation2 + $0x33] sm:$0xff] }
 0x140   : > { %13483 = vmatmul.mubr.msk.f32.gmra.mxu1 %vm790_vm0, %v965_v61  ;;  %13438 = vmatprep.mubr.msk.f32.mxu0 %vm790_vm0, %v1009_v62  ;;  %v2597_v61 = vld [vmem:[#allocation2 + $0x3b] sm:$0xff]  ;;  %v2598_v62 = vld [vmem:[#allocation2 + $0x43] sm:$0xff] }
 0x141   : > { %13485 = vmatprep.mubr.msk.f32.mxu1 %vm790_vm0, %v966_v63  ;;  %v2195_v63 = vld [vmem:[#allocation2 + $0x11a] sm:$0xff] }
 0x143   : > { %13439 = vmatmul.mubr.msk.f32.gmra.mxu0 %vm790_vm0, %v1010_v1  ;;  %v2599_v1 = vld [vmem:[#allocation2 + $0x4b] sm:$0xff] }
 0x144   : > { %13486 = vmatmul.mubr.msk.f32.gmra.mxu1 %vm790_vm0, %v967_v2  ;;  %13441 = vmatprep.mubr.msk.f32.mxu0 %vm790_vm0, %v1011_v3  ;;  %v2196_v2 = vld [vmem:[#allocation2 + $0x122] sm:$0xff]  ;;  %v2600_v3 = vld [vmem:[#allocation2 + $0x53] sm:$0xff] }
 0x145   : > { %13488 = vmatprep.mubr.msk.f32.mxu1 %vm790_vm0, %v968_v4  ;;  %v2601_v4 = vld [vmem:[#allocation2 + $0x5b] sm:$0xff] }
 0x147   : > { %13442 = vmatmul.mubr.msk.f32.gmra.mxu0 %vm790_vm0, %v1012_v5  ;;  %v2602_v5 = vld [vmem:[#allocation2 + $0x63] sm:$0xff] }
 0x148   : > { %13489 = vmatmul.mubr.msk.f32.gmra.mxu1 %vm790_vm0, %v969_v6  ;;  %13508 = vmatprep.mubr.msk.f32.mxu0 %vm790_vm0, %v1732_v8  ;;  %v3022_v6 = vld [vmem:[#allocation2 + $0x14] sm:$0xff]  ;;  %v3023_v8 = vld [vmem:[#allocation2 + $0x1c] sm:$0xff] }
 0x149   : > { %13491 = vmatprep.mubr.msk.f32.mxu1 %vm790_vm0, %v970_v7  ;;  %v2603_v7 = vld [vmem:[#allocation2 + $0x6b] sm:$0xff] }
 0x14b   : > { %13509 = vmatmul.mubr.msk.f32.vlgmr.msra.gmra.mxu0 %vm790_vm0, %v1733_v10  ;;  %v16032_v10 = vld [vmem:[#allocation2 + $0x24] sm:$0xff] }
 0x14c   : > { %13492 = vmatmul.mubr.msk.f32.gmra.mxu1 %vm790_vm0, %v971_v9  ;;  %13511 = vmatprep.mubr.msk.f32.mxu0 %vm790_vm0, %v1734_v12  ;;  %v2604_v9 = vld [vmem:[#allocation2 + $0x73] sm:$0xff] }
 0x14d   : > { %13494 = vmatprep.mubr.msk.f32.mxu1 %vm790_vm0, %v972_v11  ;;  %13619 = vmatpush3.msk.msra.mxu0 %vm1127_vm1, %v15885_v46  ;;  %v1759_v46 = vld [vmem:[#allocation2 + $0xda] sm:$0xff] }
 0x14e   : > { %13730 = vmatprep.subr.msk.mxu0 %vm1127_vm1, %v15923_v13  ;;  %v2605_v11 = vld [vmem:[#allocation2 + $0x7b] sm:$0xff] }
 0x14f   : > { %13512 = vmatmul.mubr.msk.f32.gmra.mxu0 %vm790_vm0, %v1735_v15 }
 0x150   : > { %13495 = vmatmul.mubr.msk.f32.gmra.mxu1 %vm790_vm0, %v973_v14  ;;  %13514 = vmatprep.mubr.msk.f32.mxu0 %vm790_vm0, %v1736_v17  ;;  %v16041_v14 = vld [vmem:[#allocation2 + $0x34] sm:$0xff] }
 0x151   : > { %13497 = vmatprep.mubr.msk.f32.mxu1 %vm790_vm0, %v974_v16  ;;  %v16051_v16 = vld [vmem:[#allocation2 + $0x3c] sm:$0xff] }
 0x153   : > { %13515 = vmatmul.mubr.msk.f32.gmra.mxu0 %vm790_vm0, %v1737_v19 }
 0x154   : > { %13498 = vmatmul.mubr.msk.f32.gmra.mxu1 %vm790_vm0, %v975_v18  ;;  %13517 = vmatprep.mubr.msk.f32.mxu0 %vm790_vm0, %v1738_v21  ;;  %v16053_v18 = vld [vmem:[#allocation2 + $0x44] sm:$0xff] }
 0x155   : > { %13500 = vmatprep.mubr.msk.f32.mxu1 %vm790_vm0, %v976_v20  ;;  %v16061_v20 = vld [vmem:[#allocation2 + $0x4c] sm:$0xff] }
 0x157   : > { %13518 = vmatmul.mubr.msk.f32.gmra.mxu0 %vm790_vm0, %v1739_v23 }
 0x158   : > { %13501 = vmatmul.mubr.msk.f32.gmra.mxu1 %vm790_vm0, %v977_v22  ;;  %13520 = vmatprep.mubr.msk.f32.mxu0 %vm790_vm0, %v1740_v25  ;;  %v16063_v22 = vld [vmem:[#allocation2 + $0x54] sm:$0xff] }
 0x159   : > { %13503 = vmatprep.mubr.msk.f32.mxu1 %vm790_vm0, %v978_v24  ;;  %v16071_v24 = vld [vmem:[#allocation2 + $0x5c] sm:$0xff] }
 0x15b   : > { %13521 = vmatmul.mubr.msk.f32.gmra.mxu0 %vm790_vm0, %v1741_v27 }
 0x15c   : > { %13504 = vmatmul.mubr.msk.f32.gmra.mxu1 %vm790_vm0, %v979_v26  ;;  %13523 = vmatprep.mubr.msk.f32.mxu0 %vm790_vm0, %v1742_v28  ;;  %v16073_v26 = vld [vmem:[#allocation2 + $0x64] sm:$0xff] }
 0x15d   : > { %13564 = vmatprep.mubr.msk.f32.mxu1 %vm790_vm0, %v1734_v12  ;;  %v16039_v12 = vld [vmem:[#allocation2 + $0x2c] sm:$0xff] }
 0x15f   : > { %13524 = vmatmul.mubr.msk.f32.gmra.mxu0 %vm790_vm0, %v1743_v29 }
 0x160   : > { %13565 = vmatmul.mubr.msk.f32.vlgmr.msra.gmra.mxu1 %vm790_vm0, %v1735_v15  ;;  %13526 = vmatprep.mubr.msk.f32.mxu0 %vm790_vm0, %v1744_v30  ;;  %v2607_v15 = vld [vmem:[#allocation2 + $0x8b] sm:$0xff] }
 0x161   : > { %13567 = vmatprep.mubr.msk.f32.mxu1 %vm790_vm0, %v1736_v17  ;;  %13675 = vmatpush3.msk.msra.mxu1 %vm1127_vm1, %v15899_v59  ;;  %v2595_v59 = vld [vmem:[#allocation2 + $0x2b] sm:$0xff]  ;;  %v2608_v17 = vld [vmem:[#allocation2 + $0x93] sm:$0xff] }
 0x162   : > { %13786 = vmatprep.subr.msk.mxu1 %vm1127_vm1, %v15965_v38 }
 0x163   : > { %13527 = vmatmul.mubr.msk.f32.gmra.mxu0 %vm790_vm0, %v1745_v31 }
 0x164   : > { %13568 = vmatmul.mubr.msk.f32.gmra.mxu1 %vm790_vm0, %v1737_v19  ;;  %13529 = vmatprep.mubr.msk.f32.mxu0 %vm790_vm0, %v1746_v32  ;;  %v2609_v19 = vld [vmem:[#allocation2 + $0x9b] sm:$0xff] }
 0x165   : > { %13570 = vmatprep.mubr.msk.f32.mxu1 %vm790_vm0, %v1738_v21  ;;  %v2610_v21 = vld [vmem:[#allocation2 + $0xa3] sm:$0xff] }
 0x167   : > { %13530 = vmatmul.mubr.msk.f32.gmra.mxu0 %vm790_vm0, %v1747_v33 }
 0x168   : > { %13571 = vmatmul.mubr.msk.f32.gmra.mxu1 %vm790_vm0, %v1739_v23  ;;  %13532 = vmatprep.mubr.msk.f32.mxu0 %vm790_vm0, %v1748_v34  ;;  %v2611_v23 = vld [vmem:[#allocation2 + $0xab] sm:$0xff] }
 0x169   : > { %13573 = vmatprep.mubr.msk.f32.mxu1 %vm790_vm0, %v1740_v25  ;;  %v2612_v25 = vld [vmem:[#allocation2 + $0xb3] sm:$0xff] }
 0x16b   : > { %13533 = vmatmul.mubr.msk.f32.gmra.mxu0 %vm790_vm0, %v1749_v35 }
 0x16c   : > { %13574 = vmatmul.mubr.msk.f32.gmra.mxu1 %vm790_vm0, %v1741_v27  ;;  %13535 = vmatprep.mubr.msk.f32.mxu0 %vm790_vm0, %v1750_v36  ;;  %v2613_v27 = vld [vmem:[#allocation2 + $0xbb] sm:$0xff] }
 0x16d   : > { %13576 = vmatprep.mubr.msk.f32.mxu1 %vm790_vm0, %v1742_v28  ;;  %v16081_v28 = vld [vmem:[#allocation2 + $0x6c] sm:$0xff] }
 0x16f   : > { %13536 = vmatmul.mubr.msk.f32.gmra.mxu0 %vm790_vm0, %v1751_v37 }
 0x170   : > { %13577 = vmatmul.mubr.msk.f32.gmra.mxu1 %vm790_vm0, %v1743_v29  ;;  %13538 = vmatprep.mubr.msk.f32.mxu0 %vm790_vm0, %v1752_v39  ;;  %v2614_v29 = vld [vmem:[#allocation2 + $0xc3] sm:$0xff] }
 0x171   : > { %13579 = vmatprep.mubr.msk.f32.mxu1 %vm790_vm0, %v1744_v30  ;;  %v16083_v30 = vld [vmem:[#allocation2 + $0x74] sm:$0xff] }
 0x173   : > { %13539 = vmatmul.mubr.msk.f32.gmra.mxu0 %vm790_vm0, %v1753_v40 }
 0x174   : > { %13580 = vmatmul.mubr.msk.f32.gmra.mxu1 %vm790_vm0, %v1745_v31  ;;  %13541 = vmatprep.mubr.msk.f32.mxu0 %vm790_vm0, %v1754_v41  ;;  %v2615_v31 = vld [vmem:[#allocation2 + $0xcb] sm:$0xff] }
 0x175   : > { %13582 = vmatprep.mubr.msk.f32.mxu1 %vm790_vm0, %v1746_v32  ;;  %v16091_v32 = vld [vmem:[#allocation2 + $0x7c] sm:$0xff] }
 0x177   : > { %13542 = vmatmul.mubr.msk.f32.gmra.mxu0 %vm790_vm0, %v1755_v42 }
 0x178   : > { %13583 = vmatmul.mubr.msk.f32.gmra.mxu1 %vm790_vm0, %v1747_v33  ;;  %13544 = vmatprep.mubr.msk.f32.mxu0 %vm790_vm0, %v1756_v43  ;;  %v2616_v33 = vld [vmem:[#allocation2 + $0xd3] sm:$0xff] }
 0x179   : > { %13585 = vmatprep.mubr.msk.f32.mxu1 %vm790_vm0, %v1748_v34  ;;  %v16093_v34 = vld [vmem:[#allocation2 + $0x84] sm:$0xff] }
 0x17b   : > { %13545 = vmatmul.mubr.msk.f32.gmra.mxu0 %vm790_vm0, %v1757_v44 }
 0x17c   : > { %13586 = vmatmul.mubr.msk.f32.gmra.mxu1 %vm790_vm0, %v1749_v35  ;;  %13547 = vmatprep.mubr.msk.f32.mxu0 %vm790_vm0, %v1758_v45  ;;  %v2617_v35 = vld [vmem:[#allocation2 + $0xdb] sm:$0xff] }
 0x17d   : > { %13588 = vmatprep.mubr.msk.f32.mxu1 %vm790_vm0, %v1750_v36  ;;  %v16101_v36 = vld [vmem:[#allocation2 + $0x8c] sm:$0xff] }
 0x17f   : > { %13548 = vmatmul.mubr.msk.f32.gmra.mxu0 %vm790_vm0, %v1759_v46 }
 0x180   : > { %13589 = vmatmul.mubr.msk.f32.gmra.mxu1 %vm790_vm0, %v1751_v37  ;;  %13550 = vmatprep.mubr.msk.f32.mxu0 %vm790_vm0, %v1760_v47  ;;  %v2618_v37 = vld [vmem:[#allocation2 + $0xe3] sm:$0xff] }
 0x181   : > { %13591 = vmatprep.mubr.msk.f32.mxu1 %vm790_vm0, %v1752_v39  ;;  %v2619_v39 = vld [vmem:[#allocation2 + $0xeb] sm:$0xff] }
 0x183   : > { %13551 = vmatmul.mubr.msk.f32.gmra.mxu0 %vm790_vm0, %v1761_v48 }
 0x184   : > { %13592 = vmatmul.mubr.msk.f32.gmra.mxu1 %vm790_vm0, %v1753_v40  ;;  %13553 = vmatprep.mubr.msk.f32.mxu0 %vm790_vm0, %v1762_v49  ;;  %v16111_v40 = vld [vmem:[#allocation2 + $0x9c] sm:$0xff] }
 0x185   : > { %13594 = vmatprep.mubr.msk.f32.mxu1 %vm790_vm0, %v1754_v41  ;;  %v2620_v41 = vld [vmem:[#allocation2 + $0xf3] sm:$0xff] }
 0x187   : > { %13554 = vmatmul.mubr.msk.f32.gmra.mxu0 %vm790_vm0, %v1763_v50 }
 0x188   : > { %13595 = vmatmul.mubr.msk.f32.gmra.mxu1 %vm790_vm0, %v1755_v42  ;;  %13556 = vmatprep.mubr.msk.f32.mxu0 %vm790_vm0, %v1764_v51  ;;  %v16113_v42 = vld [vmem:[#allocation2 + $0xa4] sm:$0xff] }
 0x189   : > { %13597 = vmatprep.mubr.msk.f32.mxu1 %vm790_vm0, %v1756_v43  ;;  %v2621_v43 = vld [vmem:[#allocation2 + $0xfb] sm:$0xff] }
 0x18b   : > { %13557 = vmatmul.mubr.msk.f32.gmra.mxu0 %vm790_vm0, %v1765_v52 }
 0x18c   : > { %13598 = vmatmul.mubr.msk.f32.gmra.mxu1 %vm790_vm0, %v1757_v44  ;;  %13559 = vmatprep.mubr.msk.f32.mxu0 %vm790_vm0, %v1766_v53  ;;  %v16121_v44 = vld [vmem:[#allocation2 + $0xac] sm:$0xff] }
 0x18d   : > { %13600 = vmatprep.mubr.msk.f32.mxu1 %vm790_vm0, %v1758_v45 }
 0x18f   : > { %13560 = vmatmul.mubr.msk.f32.gmra.mxu0 %vm790_vm0, %v1767_v54 }
 0x190   : > { %13601 = vmatmul.mubr.msk.f32.gmra.mxu1 %vm790_vm0, %v1759_v46  ;;  %13620 = vmatprep.mubr.msk.f32.mxu0 %vm790_vm0, %v2592_v55  ;;  %v2622_v46 = vld [vmem:[#allocation2 + $0x103] sm:$0xff]  ;;  %v2625_v55 = vld [vmem:[#allocation2 + $0x11b] sm:$0xff] }
 0x191   : > { %13603 = vmatprep.mubr.msk.f32.mxu1 %vm790_vm0, %v1760_v47  ;;  %v16123_v47 = vld [vmem:[#allocation2 + $0xb4] sm:$0xff] }
 0x193   : > { %13621 = vmatmul.mubr.msk.f32.vlgmr.msra.gmra.mxu0 %vm790_vm0, %v2593_v56  ;;  %v16143_v56 = vld [vmem:[#allocation2 + $0xcc] sm:$0xff] }
 0x194   : > { %13604 = vmatmul.mubr.msk.f32.gmra.mxu1 %vm790_vm0, %v1761_v48  ;;  %13623 = vmatprep.mubr.msk.f32.mxu0 %vm790_vm0, %v2594_v57  ;;  %v2623_v48 = vld [vmem:[#allocation2 + $0x10b] sm:$0xff] }
 0x195   : > { %13606 = vmatprep.mubr.msk.f32.mxu1 %vm790_vm0, %v1762_v49  ;;  %13731 = vmatpush3.msk.msra.mxu0 %vm1127_vm1, %v15923_v13  ;;  %v2606_v13 = vld [vmem:[#allocation2 + $0x83] sm:$0xff] }
 0x196   : > { %13842 = vmatprep.subr.msk.mxu0 %vm1127_vm1, %v16007_v58  ;;  %v16131_v49 = vld [vmem:[#allocation2 + $0xbc] sm:$0xff] }
 0x197   : > { %13624 = vmatmul.mubr.msk.f32.gmra.mxu0 %vm790_vm0, %v2595_v59 }
 0x198   : > { %13607 = vmatmul.mubr.msk.f32.gmra.mxu1 %vm790_vm0, %v1763_v50  ;;  %13626 = vmatprep.mubr.msk.f32.mxu0 %vm790_vm0, %v2596_v60  ;;  %v2626_v60 = vld [vmem:[#allocation2 + $0x123] sm:$0xff] }
 0x199   : > { %13609 = vmatprep.mubr.msk.f32.mxu1 %vm790_vm0, %v1764_v51  ;;  %v2624_v51 = vld [vmem:[#allocation2 + $0x113] sm:$0xff] }
 0x19b   : > { %13627 = vmatmul.mubr.msk.f32.gmra.mxu0 %vm790_vm0, %v2597_v61  ;;  %v16147_v61 = vld [vmem:[#allocation2 + $0xd4] sm:$0xff] }
 0x19c   : > { %13610 = vmatmul.mubr.msk.f32.gmra.mxu1 %vm790_vm0, %v1765_v52  ;;  %13629 = vmatprep.mubr.msk.f32.mxu0 %vm790_vm0, %v2598_v62  ;;  %v16133_v52 = vld [vmem:[#allocation2 + $0xc4] sm:$0xff] }
 0x19d   : > { %13612 = vmatprep.mubr.msk.f32.mxu1 %vm790_vm0, %v1766_v53 }
 0x19f   : > { %13630 = vmatmul.mubr.msk.f32.gmra.mxu0 %vm790_vm0, %v2599_v1  ;;  %v2627_v1 = vld [vmem:[#allocation2 + $0x12b] sm:$0x3f] }
 0x1a0   : > { %13613 = vmatmul.mubr.msk.f32.gmra.mxu1 %vm790_vm0, %v2195_v63  ;;  %13632 = vmatprep.mubr.msk.f32.mxu0 %vm790_vm0, %v2600_v3 }
 0x1a1   : > { %13615 = vmatprep.mubr.msk.f32.mxu1 %vm790_vm0, %v2196_v2  ;;  %v16157_v2 = vld [vmem:[#allocation2 + $0xdc] sm:$0xff] }
 0x1a3   : > { %13633 = vmatmul.mubr.msk.f32.gmra.mxu0 %vm790_vm0, %v2601_v4  ;;  %v16161_v4 = vld [vmem:[#allocation2 + $0xe4] sm:$0xff] }
 0x1a4   : > { %13616 = vmatmul.mubr.msk.f32.gmra.mxu1 %vm790_vm0, %v2197_v0  ;;  %13635 = vmatprep.mubr.msk.f32.mxu0 %vm790_vm0, %v2602_v5 }
 0x1a5   : > { %13676 = vmatprep.mubr.msk.f32.mxu1 %vm790_vm0, %v3022_v6 }
 0x1a7   : > { %13636 = vmatmul.mubr.msk.f32.gmra.mxu0 %vm790_vm0, %v2603_v7 }
 0x1a8   : > { %13677 = vmatmul.mubr.msk.f32.vlgmr.msra.gmra.mxu1 %vm790_vm0, %v3023_v8  ;;  %13638 = vmatprep.mubr.msk.f32.mxu0 %vm790_vm0, %v2604_v9  ;;  %v16172_v8 = vld [vmem:[#allocation2 + $0xec] sm:$0xff] }
 0x1a9   : > { %13679 = vmatprep.mubr.msk.f32.mxu1 %vm790_vm0, %v16032_v10  ;;  %13787 = vmatpush3.msk.msra.mxu1 %vm1127_vm1, %v15965_v38  ;;  %v16103_v38 = vld [vmem:[#allocation2 + $0x94] sm:$0xff] }
 0x1ab   : > { %13639 = vmatmul.mubr.msk.f32.gmra.mxu0 %vm790_vm0, %v2605_v11 }
 0x1ac   : > { %13680 = vmatmul.mubr.msk.f32.gmra.mxu1 %vm790_vm0, %v16039_v12  ;;  %13641 = vmatprep.mubr.msk.f32.mxu0 %vm790_vm0, %v2606_v13  ;;  %v16174_v13 = vld [vmem:[#allocation2 + $0xf4] sm:$0xff] }
 0x1ad   : > { %13682 = vmatprep.mubr.msk.f32.mxu1 %vm790_vm0, %v16041_v14 }
 0x1af   : > { %13642 = vmatmul.mubr.msk.f32.gmra.mxu0 %vm790_vm0, %v2607_v15 }
 0x1b0   : > { %13683 = vmatmul.mubr.msk.f32.gmra.mxu1 %vm790_vm0, %v16051_v16  ;;  %13644 = vmatprep.mubr.msk.f32.mxu0 %vm790_vm0, %v2608_v17 }
 0x1b1   : > { %13685 = vmatprep.mubr.msk.f32.mxu1 %vm790_vm0, %v16053_v18 }
 0x1b3   : > { %13645 = vmatmul.mubr.msk.f32.gmra.mxu0 %vm790_vm0, %v2609_v19 }
 0x1b4   : > { %13686 = vmatmul.mubr.msk.f32.gmra.mxu1 %vm790_vm0, %v16061_v20  ;;  %13647 = vmatprep.mubr.msk.f32.mxu0 %vm790_vm0, %v2610_v21 }
 0x1b5   : > { %13688 = vmatprep.mubr.msk.f32.mxu1 %vm790_vm0, %v16063_v22 }
 0x1b7   : > { %13648 = vmatmul.mubr.msk.f32.gmra.mxu0 %vm790_vm0, %v2611_v23  ;;  %v13398_v45 = vpop.f32.mrf.mxu0 }
 0x1b8   : > { %13689 = vmatmul.mubr.msk.f32.gmra.mxu1 %vm790_vm0, %v16071_v24  ;;  %13650 = vmatprep.mubr.msk.f32.mxu0 %vm790_vm0, %v2612_v25 }
 0x1b9   : > { %13691 = vmatprep.mubr.msk.f32.mxu1 %vm790_vm0, %v16073_v26  ;;  %v1197_v50 = vpop.f32.mrf.mxu0 }
 0x1bb   : > { %13651 = vmatmul.mubr.msk.f32.gmra.mxu0 %vm790_vm0, %v2613_v27  ;;  %v16190_v27 = vld [vmem:[#allocation2 + $0x104] sm:$0xff] }
 0x1bc   : > { %13692 = vmatmul.mubr.msk.f32.gmra.mxu1 %vm790_vm0, %v16081_v28  ;;  %13653 = vmatprep.mubr.msk.f32.mxu0 %vm790_vm0, %v2614_v29 }
 0x1bd   : > { %13694 = vmatprep.mubr.msk.f32.mxu1 %vm790_vm0, %v16083_v30 }
 0x1bf   : > { %13654 = vmatmul.mubr.msk.f32.gmra.mxu0 %vm790_vm0, %v2615_v31 }
 0x1c0   : > { %13695 = vmatmul.mubr.msk.f32.gmra.mxu1 %vm790_vm0, %v16091_v32  ;;  %13656 = vmatprep.mubr.msk.f32.mxu0 %vm790_vm0, %v2616_v33  ;;  %v16206_v33 = vld [vmem:[#allocation2 + $0x10c] sm:$0xff] }
 0x1c1   : > { %13697 = vmatprep.mubr.msk.f32.mxu1 %vm790_vm0, %v16093_v34 }
 0x1c3   : > { %13657 = vmatmul.mubr.msk.f32.gmra.mxu0 %vm790_vm0, %v2617_v35 }
 0x1c4   : > { %13698 = vmatmul.mubr.msk.f32.gmra.mxu1 %vm790_vm0, %v16101_v36  ;;  %13659 = vmatprep.mubr.msk.f32.mxu0 %vm790_vm0, %v2618_v37  ;;  %v16208_v37 = vld [vmem:[#allocation2 + $0x114] sm:$0xff] }
 0x1c5   : > { %13700 = vmatprep.mubr.msk.f32.mxu1 %vm790_vm0, %v16103_v38 }
 0x1c7   : > { %13660 = vmatmul.mubr.msk.f32.gmra.mxu0 %vm790_vm0, %v2619_v39 }
 0x1c8   : > { %13701 = vmatmul.mubr.msk.f32.gmra.mxu1 %vm790_vm0, %v16111_v40  ;;  %13662 = vmatprep.mubr.msk.f32.mxu0 %vm790_vm0, %v2620_v41 }
 0x1c9   : > { %13703 = vmatprep.mubr.msk.f32.mxu1 %vm790_vm0, %v16113_v42 }
 0x1cb   : > { %13663 = vmatmul.mubr.msk.f32.gmra.mxu0 %vm790_vm0, %v2621_v43 }
 0x1cc   : > { %13704 = vmatmul.mubr.msk.f32.gmra.mxu1 %vm790_vm0, %v16121_v44  ;;  %13665 = vmatprep.mubr.msk.f32.mxu0 %vm790_vm0, %v2622_v46 }
 0x1cd   : > { %13706 = vmatprep.mubr.msk.f32.mxu1 %vm790_vm0, %v16123_v47 }
 0x1cf   : > { %v13401_v53 = vpop.f32.mrf.mxu0  ;;  %13666 = vmatmul.mubr.msk.f32.gmra.mxu0 %vm790_vm0, %v2623_v48  ;;  %v16224_v48 = vld [vmem:[#allocation2 + $0x124] sm:$0xff] }
 0x1d0   : > { %v16135_v54 = vpop.f32.mrf.mxu1  ;;  %13707 = vmatmul.mubr.msk.f32.gmra.mxu1 %vm790_vm0, %v16131_v49  ;;  %13668 = vmatprep.mubr.msk.f32.mxu0 %vm790_vm0, %v2624_v51 }
 0x1d1   : > { %13709 = vmatprep.mubr.msk.f32.mxu1 %vm790_vm0, %v16133_v52  ;;  %v1207_v57 = vpop.f32.mrf.mxu0 }
 0x1d2   : > { %v16145_v59 = vpop.f32.mrf.mxu1 }
 0x1d3   : > { %19058 = vst [vmem:[#allocation50_spill] sm:$0xff] %v16145_v59  ;;  %v13404_v62 = vpop.f32.mrf.mxu0  ;;  %13669 = vmatmul.mubr.msk.f32.gmra.mxu0 %vm790_vm0, %v2625_v55 }
 0x1d4   : > { %v16149_v63 = vpop.f32.mrf.mxu1  ;;  %13710 = vmatmul.mubr.msk.f32.gmra.mxu1 %vm790_vm0, %v16143_v56  ;;  %13671 = vmatprep.mubr.msk.f32.mxu0 %vm790_vm0, %v2626_v60  ;;  %v3882_v60 = vld [vmem:[#allocation2 + $0x25] sm:$0xff] }
 0x1d5   : > { %13712 = vmatprep.mubr.msk.f32.mxu1 %vm790_vm0, %v16147_v61  ;;  %v1217_v3 = vpop.f32.mrf.mxu0 }
 0x1d6   : > { %v16159_v0 = vpop.f32.mrf.mxu1 }
 0x1d7   : > { %19059 = vst [vmem:[#allocation51_spill] sm:$0xff] %v16159_v0  ;;  %v13407_v5 = vpop.f32.mrf.mxu0  ;;  %13672 = vmatmul.mubr.msk.f32.gmra.mxu0 %vm790_vm0, %v2627_v1 }
 0x1d8   : > { %v13454_v6 = vpop.f32.mrf.mxu1  ;;  %13713 = vmatmul.mubr.msk.f32.gmra.mxu1 %vm790_vm0, %v16157_v2  ;;  %13732 = vmatprep.mubr.msk.f32.mxu0 %vm790_vm0, %v16032_v10  ;;  %v16188_v10 = vld [vmem:[#allocation2 + $0xfc] sm:$0xff] }
 0x1d9   : > { %v16166_v7 = vadd.f32 %v13454_v6, %v13398_v45  ;;  %13715 = vmatprep.mubr.msk.f32.mxu1 %vm790_vm0, %v16161_v4  ;;  %v1227_v9 = vpop.f32.mrf.mxu0 }
 0x1da   : > { %v1553_v11 = vpop.f32.mrf.mxu1 }
 0x1db   : > { %v16176_v15 = vadd.f32 %v1553_v11, %v1197_v50  ;;  %v13410_v17 = vpop.f32.mrf.mxu0  ;;  %13733 = vmatmul.mubr.msk.f32.vlgmr.msra.gmra.mxu0 %vm790_vm0, %v16039_v12 }
 0x1dc   : > { %v13457_v19 = vpop.f32.mrf.mxu1  ;;  %13716 = vmatmul.mubr.msk.f32.gmra.mxu1 %vm790_vm0, %v16172_v8  ;;  %13735 = vmatprep.mubr.msk.f32.mxu0 %vm790_vm0, %v16041_v14 }
 0x1dd   : > { %v16182_v21 = vadd.f32 %v13457_v19, %v13401_v53  ;;  %13718 = vmatprep.mubr.msk.f32.mxu1 %vm790_vm0, %v16174_v13  ;;  %v1237_v23 = vpop.f32.mrf.mxu0  ;;  %13843 = vmatpush3.msk.msra.mxu0 %vm1127_vm1, %v16007_v58 }
 0x1de   : > { %v1563_v25 = vpop.f32.mrf.mxu1 }
 0x1df   : > { %v16194_v29 = vadd.f32 %v1563_v25, %v1207_v57  ;;  %v13413_v12 = vpop.f32.mrf.mxu0  ;;  %13736 = vmatmul.mubr.msk.f32.gmra.mxu0 %vm790_vm0, %v16051_v16 }
 0x1e0   : > { %v13460_v31 = vpop.f32.mrf.mxu1  ;;  %13719 = vmatmul.mubr.msk.f32.gmra.mxu1 %vm790_vm0, %v16188_v10  ;;  %13738 = vmatprep.mubr.msk.f32.mxu0 %vm790_vm0, %v16053_v18  ;;  %v16222_v18 = vld [vmem:[#allocation2 + $0x11c] sm:$0xff] }
 0x1e1   : > { %v16200_v14 = vadd.f32 %v13460_v31, %v13404_v62  ;;  %13721 = vmatprep.mubr.msk.f32.mxu1 %vm790_vm0, %v16190_v27  ;;  %v1247_v58 = vpop.f32.mrf.mxu0 }
 0x1e2   : > { %v1573_v35 = vpop.f32.mrf.mxu1 }
 0x1e3   : > { %v16210_v39 = vadd.f32 %v1573_v35, %v1217_v3  ;;  %v13416_v41 = vpop.f32.mrf.mxu0  ;;  %13739 = vmatmul.mubr.msk.f32.gmra.mxu0 %vm790_vm0, %v16061_v20 }
 0x1e4   : > { %v13463_v43 = vpop.f32.mrf.mxu1  ;;  %13722 = vmatmul.mubr.msk.f32.gmra.mxu1 %vm790_vm0, %v16206_v33  ;;  %13741 = vmatprep.mubr.msk.f32.mxu0 %vm790_vm0, %v16063_v22  ;;  %v3057_v22 = vld [vmem:[#allocation2 + $0x12c] sm:$0x3f] }
 0x1e5   : > { %v16216_v16 = vadd.f32 %v13463_v43, %v13407_v5  ;;  %13724 = vmatprep.mubr.msk.f32.mxu1 %vm790_vm0, %v16208_v37  ;;  %v1257_v45 = vpop.f32.mrf.mxu0 }
 0x1e6   : > { %v1583_v46 = vpop.f32.mrf.mxu1 }
 0x1e7   : > { %v16226_v50 = vadd.f32 %v1583_v46, %v1227_v9  ;;  %v13419_v51 = vpop.f32.mrf.mxu0  ;;  %13742 = vmatmul.mubr.msk.f32.gmra.mxu0 %vm790_vm0, %v16071_v24  ;;  %v3884_v9 = vld [vmem:[#allocation2 + $0x35] sm:$0xff] }
 0x1e8   : > { %v13466_v53 = vpop.f32.mrf.mxu1  ;;  %13725 = vmatmul.mubr.msk.f32.gmra.mxu1 %vm790_vm0, %v16222_v18  ;;  %13744 = vmatprep.mubr.msk.f32.mxu0 %vm790_vm0, %v16073_v26  ;;  %v3883_v26 = vld [vmem:[#allocation2 + $0x2d] sm:$0xff]  ;;  %v3888_v46 = vld [vmem:[#allocation2 + $0x55] sm:$0xff] }
 0x1e9   : > { %v16232_v20 = vadd.f32 %v13466_v53, %v13410_v17  ;;  %13727 = vmatprep.mubr.msk.f32.mxu1 %vm790_vm0, %v16224_v48  ;;  %v1267_v55 = vpop.f32.mrf.mxu0 }
 0x1ea   : > { %v1593_v57 = vpop.f32.mrf.mxu1 }
 0x1eb   : > { %v16238_v62 = vadd.f32 %v1593_v57, %v1237_v23  ;;  %v13422_v1 = vpop.f32.mrf.mxu0  ;;  %13745 = vmatmul.mubr.msk.f32.gmra.mxu0 %vm790_vm0, %v16081_v28 }
 0x1ec   : > { %v13469_v3 = vpop.f32.mrf.mxu1  ;;  %13728 = vmatmul.mubr.msk.f32.gmra.mxu1 %vm790_vm0, %v3057_v22  ;;  %13747 = vmatprep.mubr.msk.f32.mxu0 %vm790_vm0, %v16083_v30  ;;  %v3885_v30 = vld [vmem:[#allocation2 + $0x3d] sm:$0xff] }
 0x1ed   : > { %v16243_v24 = vadd.f32 %v13469_v3, %v13413_v12  ;;  %13788 = vmatprep.mubr.msk.f32.mxu1 %vm790_vm0, %v3882_v60  ;;  %v1277_v5 = vpop.f32.mrf.mxu0  ;;  %v3886_v12 = vld [vmem:[#allocation2 + $0x45] sm:$0xff] }
 0x1ee   : > { %v1603_v6 = vpop.f32.mrf.mxu1  ;;  %v3890_v60 = vld [vmem:[#allocation2 + $0x65] sm:$0xff] }
 0x1ef   : > { %v16248_v11 = vadd.f32 %v1603_v6, %v1247_v58  ;;  %v13425_v17 = vpop.f32.mrf.mxu0  ;;  %13748 = vmatmul.mubr.msk.f32.gmra.mxu0 %vm790_vm0, %v16091_v32 }
 0x1f0   : > { %v13472_v19 = vpop.f32.mrf.mxu1  ;;  %13789 = vmatmul.mubr.msk.f32.vlgmr.msra.gmra.mxu1 %vm790_vm0, %v3883_v26  ;;  %13750 = vmatprep.mubr.msk.f32.mxu0 %vm790_vm0, %v16093_v34  ;;  %v3887_v34 = vld [vmem:[#allocation2 + $0x4d] sm:$0xff] }
 0x1f1   : > { %v16253_v28 = vadd.f32 %v13472_v19, %v13416_v41  ;;  %13791 = vmatprep.mubr.msk.f32.mxu1 %vm790_vm0, %v3884_v9  ;;  %v1287_v23 = vpop.f32.mrf.mxu0  ;;  %v3892_v9 = vld [vmem:[#allocation2 + $0x75] sm:$0xff] }
 0x1f2   : > { %v1613_v25 = vpop.f32.mrf.mxu1 }
 0x1f3   : > { %v16258_v31 = vadd.f32 %v1613_v25, %v1257_v45  ;;  %v13428_v58 = vpop.f32.mrf.mxu0  ;;  %13751 = vmatmul.mubr.msk.f32.gmra.mxu0 %vm790_vm0, %v16101_v36 }
 0x1f4   : > { %v13475_v35 = vpop.f32.mrf.mxu1  ;;  %13792 = vmatmul.mubr.msk.f32.gmra.mxu1 %vm790_vm0, %v3885_v30  ;;  %13753 = vmatprep.mubr.msk.f32.mxu0 %vm790_vm0, %v16103_v38  ;;  %v3889_v38 = vld [vmem:[#allocation2 + $0x5d] sm:$0xff] }
 0x1f5   : > { %v16263_v32 = vadd.f32 %v13475_v35, %v13419_v51  ;;  %13794 = vmatprep.mubr.msk.f32.mxu1 %vm790_vm0, %v3886_v12  ;;  %v1297_v41 = vpop.f32.mrf.mxu0  ;;  %v3894_v12 = vld [vmem:[#allocation2 + $0x85] sm:$0xff] }
 0x1f6   : > { %v1623_v43 = vpop.f32.mrf.mxu1 }
 0x1f7   : > { %v16268_v45 = vadd.f32 %v1623_v43, %v1267_v55  ;;  %v13431_v53 = vpop.f32.mrf.mxu0  ;;  %13754 = vmatmul.mubr.msk.f32.gmra.mxu0 %vm790_vm0, %v16111_v40 }
 0x1f8   : > { %v13478_v22 = vpop.f32.mrf.mxu1  ;;  %13795 = vmatmul.mubr.msk.f32.gmra.mxu1 %vm790_vm0, %v3887_v34  ;;  %13756 = vmatprep.mubr.msk.f32.mxu0 %vm790_vm0, %v16113_v42  ;;  %v3891_v42 = vld [vmem:[#allocation2 + $0x6d] sm:$0xff] }
 0x1f9   : > { %v16273_v36 = vadd.f32 %v13478_v22, %v13422_v1  ;;  %13797 = vmatprep.mubr.msk.f32.mxu1 %vm790_vm0, %v3888_v46  ;;  %v1307_v51 = vpop.f32.mrf.mxu0  ;;  %v3896_v46 = vld [vmem:[#allocation2 + $0x95] sm:$0xff] }
 0x1fa   : > { %v1633_v57 = vpop.f32.mrf.mxu1 }
 0x1fb   : > { %v16278_v55 = vadd.f32 %v1633_v57, %v1277_v5  ;;  %v13434_v3 = vpop.f32.mrf.mxu0  ;;  %13757 = vmatmul.mubr.msk.f32.gmra.mxu0 %vm790_vm0, %v16121_v44 }
 0x1fc   : > { %v13481_v26 = vpop.f32.mrf.mxu1  ;;  %13798 = vmatmul.mubr.msk.f32.gmra.mxu1 %vm790_vm0, %v3889_v38  ;;  %13759 = vmatprep.mubr.msk.f32.mxu0 %vm790_vm0, %v16123_v47  ;;  %v3893_v47 = vld [vmem:[#allocation2 + $0x7d] sm:$0xff] }
 0x1fd   : > { %v16283_v40 = vadd.f32 %v13481_v26, %v13425_v17  ;;  %13800 = vmatprep.mubr.msk.f32.mxu1 %vm790_vm0, %v3890_v60  ;;  %v1317_v1 = vpop.f32.mrf.mxu0  ;;  %v3898_v60 = vld [vmem:[#allocation2 + $0xa5] sm:$0xff] }
 0x1fe   : > { %v1643_v6 = vpop.f32.mrf.mxu1 }
 0x1ff   : > { %v16288_v5 = vadd.f32 %v1643_v6, %v1287_v23  ;;  %v13437_v19 = vpop.f32.mrf.mxu0  ;;  %13760 = vmatmul.mubr.msk.f32.gmra.mxu0 %vm790_vm0, %v16131_v49 }
 0x200   : > { %v13484_v30 = vpop.f32.mrf.mxu1  ;;  %13801 = vmatmul.mubr.msk.f32.gmra.mxu1 %vm790_vm0, %v3891_v42  ;;  %13762 = vmatprep.mubr.msk.f32.mxu0 %vm790_vm0, %v16133_v52  ;;  %v3895_v52 = vld [vmem:[#allocation2 + $0x8d] sm:$0xff] }
 0x201   : > { %v16293_v44 = vadd.f32 %v13484_v30, %v13428_v58  ;;  %13803 = vmatprep.mubr.msk.f32.mxu1 %vm790_vm0, %v3892_v9  ;;  %v1327_v17 = vpop.f32.mrf.mxu0  ;;  %v3900_v9 = vld [vmem:[#allocation2 + $0xb5] sm:$0xff] }
 0x202   : > { %v1653_v25 = vpop.f32.mrf.mxu1 }
 0x203   : > { %v16298_v23 = vadd.f32 %v1653_v25, %v1297_v41  ;;  %v13440_v35 = vpop.f32.mrf.mxu0  ;;  %13763 = vmatmul.mubr.msk.f32.gmra.mxu0 %vm790_vm0, %v16143_v56 }
 0x204   : > { %v13487_v34 = vpop.f32.mrf.mxu1  ;;  %13804 = vmatmul.mubr.msk.f32.gmra.mxu1 %vm790_vm0, %v3893_v47  ;;  %13765 = vmatprep.mubr.msk.f32.mxu0 %vm790_vm0, %v16147_v61  ;;  %v3897_v61 = vld [vmem:[#allocation2 + $0x9d] sm:$0xff] }
 0x205   : > { %v16303_v49 = vadd.f32 %v13487_v34, %v13431_v53  ;;  %13806 = vmatprep.mubr.msk.f32.mxu1 %vm790_vm0, %v3894_v12  ;;  %v1337_v58 = vpop.f32.mrf.mxu0  ;;  %v3902_v12 = vld [vmem:[#allocation2 + $0xc5] sm:$0xff] }
 0x206   : > { %v1663_v43 = vpop.f32.mrf.mxu1 }
 0x207   : > { %v16308_v41 = vadd.f32 %v1663_v43, %v1307_v51  ;;  %v13443_v22 = vpop.f32.mrf.mxu0  ;;  %13766 = vmatmul.mubr.msk.f32.gmra.mxu0 %vm790_vm0, %v16157_v2 }
 0x208   : > { %v13490_v38 = vpop.f32.mrf.mxu1  ;;  %13807 = vmatmul.mubr.msk.f32.gmra.mxu1 %vm790_vm0, %v3895_v52  ;;  %13768 = vmatprep.mubr.msk.f32.mxu0 %vm790_vm0, %v16161_v4  ;;  %v3899_v4 = vld [vmem:[#allocation2 + $0xad] sm:$0xff] }
 0x209   : > { %v16313_v56 = vadd.f32 %v13490_v38, %v13434_v3  ;;  %13809 = vmatprep.mubr.msk.f32.mxu1 %vm790_vm0, %v3896_v46  ;;  %v1347_v53 = vpop.f32.mrf.mxu0  ;;  %v3904_v46 = vld [vmem:[#allocation2 + $0xd5] sm:$0xff] }
 0x20a   : > { %v1673_v57 = vpop.f32.mrf.mxu1 }
 0x20b   : > { %v16318_v51 = vadd.f32 %v1673_v57, %v1317_v1  ;;  %v13510_v42 = vpop.f32.mrf.mxu0  ;;  %13769 = vmatmul.mubr.msk.f32.gmra.mxu0 %vm790_vm0, %v16172_v8 }
 0x20c   : > { %v13493_v26 = vpop.f32.mrf.mxu1  ;;  %13810 = vmatmul.mubr.msk.f32.gmra.mxu1 %vm790_vm0, %v3897_v61  ;;  %v16326_v3 = vadd.f32 %v13510_v42, %v16166_v7  ;;  %13771 = vmatprep.mubr.msk.f32.mxu0 %vm790_vm0, %v16174_v13 }
 0x20d   : > { %v16323_v2 = vadd.f32 %v13493_v26, %v13437_v19  ;;  %13812 = vmatprep.mubr.msk.f32.mxu1 %vm790_vm0, %v3898_v60  ;;  %v1947_v6 = vpop.f32.mrf.mxu0  ;;  %v3486_v60 = vld [vmem:[#allocation2 + $0x134] sm:$0xff]  ;;  %v3906_v26 = vld [vmem:[#allocation2 + $0xe5] sm:$0xff] }
 0x20e   : > { %v1683_v1 = vpop.f32.mrf.mxu1  ;;  %v16334_v8 = vadd.f32 %v1947_v6, %v16176_v15 }
 0x20f   : > { %v16331_v30 = vadd.f32 %v1683_v1, %v1327_v17  ;;  %v13513_v19 = vpop.f32.mrf.mxu0  ;;  %13772 = vmatmul.mubr.msk.f32.gmra.mxu0 %vm790_vm0, %v16188_v10  ;;  %v3901_v17 = vld [vmem:[#allocation2 + $0xbd] sm:$0xff]  ;;  %v3907_v1 = vld [vmem:[#allocation2 + $0xed] sm:$0xff] }
 0x210   : > { %v13496_v47 = vpop.f32.mrf.mxu1  ;;  %13813 = vmatmul.mubr.msk.f32.gmra.mxu1 %vm790_vm0, %v3899_v4  ;;  %v16342_v13 = vadd.f32 %v13513_v19, %v16182_v21  ;;  %13774 = vmatprep.mubr.msk.f32.mxu0 %vm790_vm0, %v16190_v27 }
 0x211   : > { %v16339_v7 = vadd.f32 %v13496_v47, %v13440_v35  ;;  %13815 = vmatprep.mubr.msk.f32.mxu1 %vm790_vm0, %v3900_v9  ;;  %v1957_v25 = vpop.f32.mrf.mxu0  ;;  %v3908_v9 = vld [vmem:[#allocation2 + $0xf5] sm:$0xff]  ;;  %v4312_v47 = vld [vmem:[#allocation2 + $0x26] sm:$0xff] }
 0x212   : > { %v1693_v15 = vpop.f32.mrf.mxu1  ;;  %v16350_v10 = vadd.f32 %v1957_v25, %v16194_v29 }
 0x213   : > { %v16347_v34 = vadd.f32 %v1693_v15, %v1337_v58  ;;  %v13516_v35 = vpop.f32.mrf.mxu0  ;;  %13775 = vmatmul.mubr.msk.f32.gmra.mxu0 %vm790_vm0, %v16206_v33  ;;  %v3903_v58 = vld [vmem:[#allocation2 + $0xcd] sm:$0xff] }
 0x214   : > { %v13499_v52 = vpop.f32.mrf.mxu1  ;;  %13816 = vmatmul.mubr.msk.f32.gmra.mxu1 %vm790_vm0, %v3901_v17  ;;  %v16358_v27 = vadd.f32 %v13516_v35, %v16200_v14  ;;  %13777 = vmatprep.mubr.msk.f32.mxu0 %vm790_vm0, %v16208_v37  ;;  %v3485_v37 = vld [vmem:[#allocation2 + $0x12c] sm:$0xff] }
 0x215   : > { %v16355_v21 = vadd.f32 %v13499_v52, %v13443_v22  ;;  %13818 = vmatprep.mubr.msk.f32.mxu1 %vm790_vm0, %v3902_v12  ;;  %v1967_v43 = vpop.f32.mrf.mxu0  ;;  %v3909_v12 = vld [vmem:[#allocation2 + $0xfd] sm:$0xff]  ;;  %v4313_v52 = vld [vmem:[#allocation2 + $0x2e] sm:$0xff] }
 0x216   : > { %v1703_v29 = vpop.f32.mrf.mxu1  ;;  %v16366_v33 = vadd.f32 %v1967_v43, %v16210_v39 }
 0x217   : > { %v16363_v38 = vadd.f32 %v1703_v29, %v1347_v53  ;;  %v13519_v22 = vpop.f32.mrf.mxu0  ;;  %13778 = vmatmul.mubr.msk.f32.gmra.mxu0 %vm790_vm0, %v16222_v18  ;;  %v3905_v53 = vld [vmem:[#allocation2 + $0xdd] sm:$0xff] }
 0x218   : > { %v16368_v61 = vpop.f32.mrf.mxu1  ;;  %13819 = vmatmul.mubr.msk.f32.gmra.mxu1 %vm790_vm0, %v3903_v58  ;;  %v16374_v14 = vadd.f32 %v13519_v22, %v16216_v16  ;;  %13780 = vmatprep.mubr.msk.f32.mxu0 %vm790_vm0, %v16224_v48  ;;  %v3487_v48 = vld [vmem:[#allocation2 + $0x13c] sm:$0x3f]  ;;  %v3910_v58 = vld [vmem:[#allocation2 + $0x105] sm:$0xff] }
 0x219   : > { %13821 = vmatprep.mubr.msk.f32.mxu1 %vm790_vm0, %v3904_v46  ;;  %v1977_v57 = vpop.f32.mrf.mxu0  ;;  %v4314_v29 = vld [vmem:[#allocation2 + $0x36] sm:$0xff] }
 0x21a   : > { %v16379_v39 = vpop.f32.mrf.mxu1  ;;  %v16382_v42 = vadd.f32 %v1977_v57, %v16226_v50 }
 0x21b   : > { %19060 = vst [vmem:[#allocation52_spill] sm:$0xff] %v16379_v39  ;;  %v13522_v4 = vpop.f32.mrf.mxu0  ;;  %13781 = vmatmul.mubr.msk.f32.gmra.mxu0 %vm790_vm0, %v3485_v37  ;;  %v3911_v37 = vld [vmem:[#allocation2 + $0x10d] sm:$0xff] }
 0x21c   : > { %v16384_v18 = vpop.f32.mrf.mxu1  ;;  %13822 = vmatmul.mubr.msk.f32.gmra.mxu1 %vm790_vm0, %v3905_v53  ;;  %v16389_v16 = vadd.f32 %v13522_v4, %v16232_v20  ;;  %13783 = vmatprep.mubr.msk.f32.mxu0 %vm790_vm0, %v3486_v60  ;;  %v4315_v53 = vld [vmem:[#allocation2 + $0x3e] sm:$0xff]  ;;  %v3912_v60 = vld [vmem:[#allocation2 + $0x115] sm:$0xff] }
 0x21d   : > { %13824 = vmatprep.mubr.msk.f32.mxu1 %vm790_vm0, %v3906_v26  ;;  %v1987_v50 = vpop.f32.mrf.mxu0  ;;  %v4316_v26 = vld [vmem:[#allocation2 + $0x46] sm:$0xff] }
 0x21e   : > { %v16393_v6 = vpop.f32.mrf.mxu1  ;;  %v16396_v19 = vadd.f32 %v1987_v50, %v16238_v62  ;;  %v3913_v50 = vld [vmem:[#allocation2 + $0x11d] sm:$0xff] }
 0x21f   : > { %19061 = vst [vmem:[#allocation53_spill] sm:$0xff] %v16393_v6  ;;  %v13525_v17 = vpop.f32.mrf.mxu0  ;;  %13784 = vmatmul.mubr.msk.f32.gmra.mxu0 %vm790_vm0, %v3487_v48 }
 0x220   : > { %v13566_v15 = vpop.f32.mrf.mxu1  ;;  %13825 = vmatmul.mubr.msk.f32.gmra.mxu1 %vm790_vm0, %v3907_v1  ;;  %v16401_v20 = vadd.f32 %v13525_v17, %v16243_v24  ;;  %13844 = vmatprep.mubr.msk.f32.mxu0 %vm790_vm0, %v4312_v47  ;;  %v3914_v17 = vld [vmem:[#allocation2 + $0x125] sm:$0xff] }
 0x221   : > { %v16404_v25 = vadd.f32 %v13566_v15, %v16326_v3  ;;  %13827 = vmatprep.mubr.msk.f32.mxu1 %vm790_vm0, %v3908_v9  ;;  %v1997_v62 = vpop.f32.mrf.mxu0  ;;  %v4317_v9 = vld [vmem:[#allocation2 + $0x4e] sm:$0xff]  ;;  %v4318_v15 = vld [vmem:[#allocation2 + $0x56] sm:$0xff] }
 0x222   : > { %v16408_v35 = vpop.f32.mrf.mxu1  ;;  %v16411_v43 = vadd.f32 %v1997_v62, %v16248_v11 }
 0x223   : > { %v13528_v46 = vpop.f32.mrf.mxu0  ;;  %13845 = vmatmul.mubr.msk.f32.vlgmr.msra.gmra.mxu0 %vm790_vm0, %v4313_v52 }
 0x224   : > { %v13569_v24 = vpop.f32.mrf.mxu1  ;;  %13828 = vmatmul.mubr.msk.f32.gmra.mxu1 %vm790_vm0, %v3909_v12  ;;  %v16416_v3 = vadd.f32 %v13528_v46, %v16253_v28  ;;  %13847 = vmatprep.mubr.msk.f32.mxu0 %vm790_vm0, %v4314_v29  ;;  %v4319_v29 = vld [vmem:[#allocation2 + $0x5e] sm:$0xff] }
 0x225   : > { %v16419_v22 = vadd.f32 %v13569_v24, %v16342_v13  ;;  %13830 = vmatprep.mubr.msk.f32.mxu1 %vm790_vm0, %v3910_v58  ;;  %v2007_v11 = vpop.f32.mrf.mxu0  ;;  %v3915_v58 = vld [vmem:[#allocation2 + $0x12d] sm:$0xff]  ;;  %v3916_v24 = vld [vmem:[#allocation2 + $0x135] sm:$0xff] }
 0x226   : > { %v16423_v57 = vpop.f32.mrf.mxu1  ;;  %v16426_v4 = vadd.f32 %v2007_v11, %v16258_v31 }
 0x227   : > { %v13531_v48 = vpop.f32.mrf.mxu0  ;;  %13848 = vmatmul.mubr.msk.f32.gmra.mxu0 %vm790_vm0, %v4315_v53 }
 0x228   : > { %v13572_v28 = vpop.f32.mrf.mxu1  ;;  %13831 = vmatmul.mubr.msk.f32.gmra.mxu1 %vm790_vm0, %v3911_v37  ;;  %v16431_v13 = vadd.f32 %v13531_v48, %v16263_v32  ;;  %13850 = vmatprep.mubr.msk.f32.mxu0 %vm790_vm0, %v4316_v26  ;;  %v4320_v37 = vld [vmem:[#allocation2 + $0x66] sm:$0xff]  ;;  %v3917_v26 = vld [vmem:[#allocation2 + $0x13d] sm:$0x3f]  ;;  %v4321_v48 = vld [vmem:[#allocation2 + $0x6e] sm:$0xff] }
 0x229   : > { %v16434_v1 = vadd.f32 %v13572_v28, %v16358_v27  ;;  %13833 = vmatprep.mubr.msk.f32.mxu1 %vm790_vm0, %v3912_v60  ;;  %v2017_v31 = vpop.f32.mrf.mxu0 }
 0x22a   : > { %v16438_v47 = vpop.f32.mrf.mxu1  ;;  %v16441_v12 = vadd.f32 %v2017_v31, %v16268_v45 }
 0x22b   : > { %v13534_v52 = vpop.f32.mrf.mxu0  ;;  %13851 = vmatmul.mubr.msk.f32.gmra.mxu0 %vm790_vm0, %v4317_v9 }
 0x22c   : > { %19062 = vst [vmem:[#allocation54_spill] sm:$0xff] %v16441_v12  ;;  %v13575_v32 = vpop.f32.mrf.mxu1  ;;  %13834 = vmatmul.mubr.msk.f32.gmra.mxu1 %vm790_vm0, %v3913_v50  ;;  %v16446_v27 = vadd.f32 %v13534_v52, %v16273_v36  ;;  %13853 = vmatprep.mubr.msk.f32.mxu0 %vm790_vm0, %v4318_v15  ;;  %v4322_v50 = vld [vmem:[#allocation2 + $0x76] sm:$0xff]  ;;  %v4323_v15 = vld [vmem:[#allocation2 + $0x7e] sm:$0xff] }
 0x22d   : > { %v16449_v62 = vadd.f32 %v13575_v32, %v16374_v14  ;;  %13836 = vmatprep.mubr.msk.f32.mxu1 %vm790_vm0, %v3914_v17  ;;  %v2027_v45 = vpop.f32.mrf.mxu0 }
 0x22e   : > { %v16453_v46 = vpop.f32.mrf.mxu1  ;;  %v16456_v53 = vadd.f32 %v2027_v45, %v16278_v55 }
 0x22f   : > { %v13537_v11 = vpop.f32.mrf.mxu0  ;;  %13854 = vmatmul.mubr.msk.f32.gmra.mxu0 %vm790_vm0, %v4319_v29 }
 0x230   : > { %19063 = vst [vmem:[#allocation55_spill] sm:$0xff] %v16456_v53  ;;  %v13578_v36 = vpop.f32.mrf.mxu1  ;;  %13837 = vmatmul.mubr.msk.f32.gmra.mxu1 %vm790_vm0, %v3915_v58  ;;  %v2145_v14 = vadd.f32 %v13537_v11, %v16283_v40  ;;  %13856 = vmatprep.mubr.msk.f32.mxu0 %vm790_vm0, %v4320_v37  ;;  %v4324_v58 = vld [vmem:[#allocation2 + $0x86] sm:$0xff] }
 0x231   : > { %v16462_v60 = vadd.f32 %v13578_v36, %v16389_v16  ;;  %13839 = vmatprep.mubr.msk.f32.mxu1 %vm790_vm0, %v3916_v24  ;;  %v2037_v28 = vpop.f32.mrf.mxu0  ;;  %v4326_v36 = vld [vmem:[#allocation2 + $0x96] sm:$0xff] }
 0x232   : > { %v16466_v55 = vpop.f32.mrf.mxu1  ;;  %v16469_v9 = vadd.f32 %v2037_v28, %v16288_v5 }
 0x233   : > { %v13540_v31 = vpop.f32.mrf.mxu0  ;;  %13857 = vmatmul.mubr.msk.f32.gmra.mxu0 %vm790_vm0, %v4321_v48 }
 0x234   : > { %19064 = vst [vmem:[#allocation56_spill] sm:$0xff] %v16469_v9  ;;  %v13581_v17 = vpop.f32.mrf.mxu1  ;;  %13840 = vmatmul.mubr.msk.f32.gmra.mxu1 %vm790_vm0, %v3917_v26  ;;  %v2147_v40 = vadd.f32 %v13540_v31, %v16293_v44  ;;  %13859 = vmatprep.mubr.msk.f32.mxu0 %vm790_vm0, %v4322_v50 }
 0x235   : > { %v16475_v16 = vadd.f32 %v13581_v17, %v16401_v20  ;;  %v2047_v52 = vpop.f32.mrf.mxu0  ;;  %v4325_v20 = vld [vmem:[#allocation2 + $0x8e] sm:$0xff]  ;;  %v4328_v17 = vld [vmem:[#allocation2 + $0xa6] sm:$0xff] }
 0x236   : > { %v16478_v32 = vpop.f32.mrf.mxu1  ;;  %v16481_v5 = vadd.f32 %v2047_v52, %v16298_v23 }
 0x237   : > { %v13543_v29 = vpop.f32.mrf.mxu0  ;;  %13860 = vmatmul.mubr.msk.f32.gmra.mxu0 %vm790_vm0, %v4323_v15 }
 0x238   : > { %19065 = vst [vmem:[#allocation57_spill] sm:$0xff] %v16481_v5  ;;  %v13584_v45 = vpop.f32.mrf.mxu1  ;;  %v2149_v24 = vadd.f32 %v13543_v29, %v16303_v49  ;;  %13862 = vmatprep.mubr.msk.f32.mxu0 %vm790_vm0, %v4324_v58 }
 0x239   : > { %v16486_v44 = vadd.f32 %v13584_v45, %v16416_v3  ;;  %v2057_v37 = vpop.f32.mrf.mxu0  ;;  %v4327_v3 = vld [vmem:[#allocation2 + $0x9e] sm:$0xff] }
 0x23a   : > { %v16489_v11 = vpop.f32.mrf.mxu1  ;;  %v16492_v26 = vadd.f32 %v2057_v37, %v16308_v41 }
 0x23b   : > { %v13546_v23 = vpop.f32.mrf.mxu0  ;;  %13863 = vmatmul.mubr.msk.f32.gmra.mxu0 %vm790_vm0, %v4325_v20  ;;  %v4330_v20 = vld [vmem:[#allocation2 + $0xb6] sm:$0xff] }
 0x23c   : > { %19066 = vst [vmem:[#allocation58_spill] sm:$0xff] %v16492_v26  ;;  %v13587_v48 = vpop.f32.mrf.mxu1  ;;  %v2151_v28 = vadd.f32 %v13546_v23, %v16313_v56  ;;  %13865 = vmatprep.mubr.msk.f32.mxu0 %vm790_vm0, %v4326_v36 }
 0x23d   : > { %v16497_v49 = vadd.f32 %v13587_v48, %v16431_v13  ;;  %v2067_v50 = vpop.f32.mrf.mxu0  ;;  %v4329_v13 = vld [vmem:[#allocation2 + $0xae] sm:$0xff] }
 0x23e   : > { %v16500_v31 = vpop.f32.mrf.mxu1  ;;  %v16503_v15 = vadd.f32 %v2067_v50, %v16318_v51  ;;  %v4332_v50 = vld [vmem:[#allocation2 + $0xc6] sm:$0xff] }
 0x23f   : > { %19067 = vst [vmem:[#allocation59_spill] sm:$0xff] %v16500_v31  ;;  %v13549_v41 = vpop.f32.mrf.mxu0  ;;  %13866 = vmatmul.mubr.msk.f32.gmra.mxu0 %vm790_vm0, %v4327_v3 }
 0x240   : > { %19068 = vst [vmem:[#allocation60_spill] sm:$0xff] %v16503_v15  ;;  %v13590_v52 = vpop.f32.mrf.mxu1  ;;  %v2153_v58 = vadd.f32 %v13549_v41, %v16323_v2  ;;  %13868 = vmatprep.mubr.msk.f32.mxu0 %vm790_vm0, %v4328_v17 }
 0x241   : > { %v16508_v56 = vadd.f32 %v13590_v52, %v16446_v27  ;;  %v2077_v29 = vpop.f32.mrf.mxu0  ;;  %v4331_v27 = vld [vmem:[#allocation2 + $0xbe] sm:$0xff] }
 0x242   : > { %v16511_v45 = vpop.f32.mrf.mxu1  ;;  %v16514_v37 = vadd.f32 %v2077_v29, %v16331_v30 }
 0x243   : > { %19069 = vst [vmem:[#allocation61_spill] sm:$0xff] %v16511_v45  ;;  %v13552_v51 = vpop.f32.mrf.mxu0  ;;  %13869 = vmatmul.mubr.msk.f32.gmra.mxu0 %vm790_vm0, %v4329_v13 }
 0x244   : > { %19070 = vst [vmem:[#allocation62_spill] sm:$0xff] %v16514_v37  ;;  %v13593_v36 = vpop.f32.mrf.mxu1  ;;  %v2155_v23 = vadd.f32 %v13552_v51, %v16339_v7  ;;  %13871 = vmatprep.mubr.msk.f32.mxu0 %vm790_vm0, %v4330_v20  ;;  %v4333_v7 = vld [vmem:[#allocation2 + $0xce] sm:$0xff]  ;;  %v4334_v20 = vld [vmem:[#allocation2 + $0xd6] sm:$0xff]  ;;  %v1719_v51 = vadd.f32 %v16368_v61, %v16135_v54  ;;  %v1729_v54 = vadd.f32 %v16384_v18, %v16149_v63 }
 0x245   : > { %v16518_v2 = vadd.f32 %v13593_v36, %v2145_v14  ;;  %v2087_v48 = vpop.f32.mrf.mxu0 }
 0x246   : > { %v16521_v3 = vpop.f32.mrf.mxu1  ;;  %v16524_v17 = vadd.f32 %v2087_v48, %v16347_v34 }
 0x247   : > { %19071 = vst [vmem:[#allocation63_spill] sm:$0xff] %v16521_v3  ;;  %v13555_v30 = vpop.f32.mrf.mxu0  ;;  %13872 = vmatmul.mubr.msk.f32.gmra.mxu0 %vm790_vm0, %v4331_v27  ;;  %v4335_v27 = vld [vmem:[#allocation2 + $0xde] sm:$0xff] }
 0x248   : > { %19072 = vst [vmem:[#allocation64_spill] sm:$0xff] %v16524_v17  ;;  %v13596_v41 = vpop.f32.mrf.mxu1  ;;  %v2157_v52 = vadd.f32 %v13555_v30, %v16355_v21  ;;  %13874 = vmatprep.mubr.msk.f32.mxu0 %vm790_vm0, %v4332_v50 }
 0x249   : > { %v16528_v13 = vadd.f32 %v13596_v41, %v2147_v40  ;;  %v2097_v14 = vpop.f32.mrf.mxu0  ;;  %v4336_v41 = vld [vmem:[#allocation2 + $0xe6] sm:$0xff] }
 0x24a   : > { %v16531_v29 = vpop.f32.mrf.mxu1  ;;  %v16536_v34 = vadd.f32 %v2097_v14, %v16363_v38 }
 0x24b   : > { %19073 = vst [vmem:[#allocation65_spill] sm:$0xff] %v16531_v29  ;;  %v13558_v36 = vpop.f32.mrf.mxu0  ;;  %13875 = vmatmul.mubr.msk.f32.gmra.mxu0 %vm790_vm0, %v4333_v7 }
 0x24c   : > { %19074 = vst [vmem:[#allocation66_spill] sm:$0xff] %v16536_v34  ;;  %v13599_v48 = vpop.f32.mrf.mxu1  ;;  %v2159_v21 = vadd.f32 %v13558_v36, %v1719_v51  ;;  %13877 = vmatprep.mubr.msk.f32.mxu0 %vm790_vm0, %v4334_v20  ;;  %v4338_v36 = vld [vmem:[#allocation2 + $0xf6] sm:$0xff] }
 0x24d   : > { %v16539_v40 = vadd.f32 %v13599_v48, %v2149_v24  ;;  %v16542_v50 = vpop.f32.mrf.mxu0  ;;  %v4337_v24 = vld [vmem:[#allocation2 + $0xee] sm:$0xff] }
 0x24e   : > { %19075 = vst [vmem:[#allocation67_spill] sm:$0xff] %v16542_v50  ;;  %v16544_v30 = vpop.f32.mrf.mxu1 }
 0x24f   : > { %19076 = vst [vmem:[#allocation68_spill] sm:$0xff] %v16544_v30  ;;  %v13561_v38 = vpop.f32.mrf.mxu0  ;;  %13878 = vmatmul.mubr.msk.f32.gmra.mxu0 %vm790_vm0, %v4335_v27 }
 0x250   : > { %v13602_v61 = vpop.f32.mrf.mxu1  ;;  %v2161_v14 = vadd.f32 %v13561_v38, %v1729_v54  ;;  %13880 = vmatprep.mubr.msk.f32.mxu0 %vm790_vm0, %v4336_v41  ;;  %v4340_v54 = vld [vmem:[#allocation2 + $0x106] sm:$0xff] }
 0x251   : > { %v16549_v7 = vadd.f32 %v13602_v61, %v2151_v28  ;;  %v16552_v20 = vpop.f32.mrf.mxu0  ;;  %v4339_v28 = vld [vmem:[#allocation2 + $0xfe] sm:$0xff] }
 0x252   : > { %19077 = vst [vmem:[#allocation69_spill] sm:$0xff] %v16552_v20  ;;  %v16554_v51 = vpop.f32.mrf.mxu1 }
 0x253   : > { %19078 = vst [vmem:[#allocation70_spill] sm:$0xff] %v16554_v51  ;;  %v13622_v6 = vpop.f32.mrf.mxu0  ;;  %13881 = vmatmul.mubr.msk.f32.gmra.mxu0 %vm790_vm0, %v4337_v24 }
 0x254   : > { %v13605_v48 = vpop.f32.mrf.mxu1  ;;  %v2987_v18 = vadd.f32 %v13622_v6, %v16404_v25  ;;  %13883 = vmatprep.mubr.msk.f32.mxu0 %vm790_vm0, %v4338_v36  ;;  %v4342_v36 = vld [vmem:[#allocation2 + $0x116] sm:$0xff] }
 0x255   : > { %v16557_v63 = vadd.f32 %v13605_v48, %v2153_v58  ;;  %v16563_v41 = vpop.f32.mrf.mxu0  ;;  %v4341_v58 = vld [vmem:[#allocation2 + $0x10e] sm:$0xff] }
 0x256   : > { %v16561_v27 = vpop.f32.mrf.mxu1 }
 0x257   : > { %19079 = vst [vmem:[#allocation71_spill] sm:$0xff] %v16561_v27  ;;  %v13625_v61 = vpop.f32.mrf.mxu0  ;;  %13884 = vmatmul.mubr.msk.f32.gmra.mxu0 %vm790_vm0, %v4339_v28 }
 0x258   : > { %v13608_v38 = vpop.f32.mrf.mxu1  ;;  %v2989_v24 = vadd.f32 %v13625_v61, %v16419_v22  ;;  %13886 = vmatprep.mubr.msk.f32.mxu0 %vm790_vm0, %v4340_v54 }
 0x259   : > { %v16566_v20 = vadd.f32 %v13608_v38, %v2155_v23  ;;  %v16572_v25 = vpop.f32.mrf.mxu0  ;;  %v4343_v23 = vld [vmem:[#allocation2 + $0x11e] sm:$0xff]  ;;  %v4344_v38 = vld [vmem:[#allocation2 + $0x126] sm:$0xff] }
 0x25a   : > { %v16570_v6 = vpop.f32.mrf.mxu1 }
 0x25b   : > { %19080 = vst [vmem:[#allocation72_spill] sm:$0xff] %v16570_v6  ;;  %v13628_v0 = vpop.f32.mrf.mxu0  ;;  %13887 = vmatmul.mubr.msk.f32.gmra.mxu0 %vm790_vm0, %v4341_v58 }
 0x25c   : > { %v13611_v48 = vpop.f32.mrf.mxu1  ;;  %v2991_v28 = vadd.f32 %v13628_v0, %v16434_v1  ;;  %13889 = vmatprep.mubr.msk.f32.mxu0 %vm790_vm0, %v4342_v36  ;;  %v4346_v36 = vld [vmem:[#allocation2 + $0x136] sm:$0xff] }
 0x25d   : > { %v16575_v50 = vadd.f32 %v13611_v48, %v2157_v52  ;;  %v16581_v54 = vpop.f32.mrf.mxu0  ;;  %v4345_v52 = vld [vmem:[#allocation2 + $0x12e] sm:$0xff] }
 0x25e   : > { %v16579_v22 = vpop.f32.mrf.mxu1 }
 0x25f   : > { %19081 = vst [vmem:[#allocation73_spill] sm:$0xff] %v16579_v22  ;;  %v13631_v34 = vpop.f32.mrf.mxu0  ;;  %13890 = vmatmul.mubr.msk.f32.gmra.mxu0 %vm790_vm0, %v4343_v23 }
 0x260   : > { %v13614_v61 = vpop.f32.mrf.mxu1  ;;  %v2993_v58 = vadd.f32 %v13631_v34, %v16449_v62  ;;  %13892 = vmatprep.mubr.msk.f32.mxu0 %vm790_vm0, %v4344_v38 }
 0x261   : > { %v16584_v39 = vadd.f32 %v13614_v61, %v2159_v21  ;;  %v16590_v1 = vpop.f32.mrf.mxu0  ;;  %v4347_v21 = vld [vmem:[#allocation2 + $0x13e] sm:$0x3f] }
 0x262   : > { %v16588_v0 = vpop.f32.mrf.mxu1 }
 0x263   : > { %19082 = vst [vmem:[#allocation74_spill] sm:$0xff] %v16588_v0  ;;  %v13634_v22 = vpop.f32.mrf.mxu0  ;;  %13893 = vmatmul.mubr.msk.f32.gmra.mxu0 %vm790_vm0, %v4345_v52 }
 0x264   : > { %v13617_v48 = vpop.f32.mrf.mxu1  ;;  %v2995_v23 = vadd.f32 %v13634_v22, %v16462_v60  ;;  %13895 = vmatprep.mubr.msk.f32.mxu0 %vm790_vm0, %v4346_v36 }
 0x265   : > { %v16593_v59 = vadd.f32 %v13617_v48, %v2161_v14  ;;  %v16599_v34 = vpop.f32.mrf.mxu0 }
 0x266   : > { %v16597_v62 = vpop.f32.mrf.mxu1 }
 0x267   : > { %19083 = vst [vmem:[#allocation75_spill] sm:$0xff] %v16597_v62  ;;  %v13637_v38 = vpop.f32.mrf.mxu0  ;;  %13896 = vmatmul.mubr.msk.f32.gmra.mxu0 %vm790_vm0, %v4347_v21  ;;  %vm11564_vm0 = vcmask 78848  }
 0x268   : > { %v13678_v61 = vpop.f32.mrf.mxu1  ;;  %v2997_v0 = vadd.f32 %v13637_v38, %v16475_v16 }
 0x269   : > { %v16603_v6 = vadd.f32 %v13678_v61, %v2987_v18  ;;  %v16605_v52 = vpop.f32.mrf.mxu0 }
 0x26a   : > { %v16607_v14 = vpop.f32.mrf.mxu1 }
 0x26b   : > { %v13640_v60 = vpop.f32.mrf.mxu0 }
 0x26c   : > { %v13681_v22 = vpop.f32.mrf.mxu1  ;;  %v2999_v36 = vadd.f32 %v13640_v60, %v16486_v44 }
 0x26d   : > { %v16610_v48 = vadd.f32 %v13681_v22, %v2989_v24  ;;  %v16612_v62 = vpop.f32.mrf.mxu0 }
 0x26e   : > { %19084 = vst [vmem:[#allocation76_spill] sm:$0xff] %v16612_v62  ;;  %v16614_v17 = vpop.f32.mrf.mxu1 }
 0x26f   : > { %v13643_v27 = vpop.f32.mrf.mxu0 }
 0x270   : > { %v13684_v21 = vpop.f32.mrf.mxu1  ;;  %v3001_v16 = vadd.f32 %v13643_v27, %v16497_v49 }
 0x271   : > { %v16617_v18 = vadd.f32 %v13684_v21, %v2991_v28  ;;  %v16619_v38 = vpop.f32.mrf.mxu0 }
 0x272   : > { %19085 = vst [vmem:[#allocation77_spill] sm:$0xff] %v16619_v38  ;;  %v16621_v61 = vpop.f32.mrf.mxu1 }
 0x273   : > { %v13646_v37 = vpop.f32.mrf.mxu0 }
 0x274   : > { %v13687_v51 = vpop.f32.mrf.mxu1  ;;  %v3003_v44 = vadd.f32 %v13646_v37, %v16508_v56 }
 0x275   : > { %v16624_v24 = vadd.f32 %v13687_v51, %v2993_v58  ;;  %v16626_v60 = vpop.f32.mrf.mxu0 }
 0x276   : > { %19086 = vst [vmem:[#allocation78_spill] sm:$0xff] %v16626_v60  ;;  %v16628_v22 = vpop.f32.mrf.mxu1 }
 0x277   : > { %v13649_v15 = vpop.f32.mrf.mxu0 }
 0x278   : > { %v13690_v30 = vpop.f32.mrf.mxu1  ;;  %v3005_v49 = vadd.f32 %v13649_v15, %v16518_v2 }
 0x279   : > { %v16631_v27 = vadd.f32 %v13690_v30, %v2995_v23  ;;  %v16633_v28 = vpop.f32.mrf.mxu0 }
 0x27a   : > { %19087 = vst [vmem:[#allocation79_spill] sm:$0xff] %v16633_v28  ;;  %v16635_v21 = vpop.f32.mrf.mxu1 }
 0x27b   : > { %v13652_v26 = vpop.f32.mrf.mxu0 }
 0x27c   : > { %v13693_v29 = vpop.f32.mrf.mxu1  ;;  %v3007_v56 = vadd.f32 %v13652_v26, %v16528_v13 }
 0x27d   : > { %v16638_v37 = vadd.f32 %v13693_v29, %v2997_v0  ;;  %v16640_v51 = vpop.f32.mrf.mxu0 }
 0x27e   : > { %19088 = vst [vmem:[#allocation80_spill] sm:$0xff] %v16640_v51  ;;  %v16642_v58 = vpop.f32.mrf.mxu1 }
 0x27f   : > { %19089 = vst [vmem:[#allocation81_spill] sm:$0xff] %v16642_v58  ;;  %v13655_v5 = vpop.f32.mrf.mxu0 }
 0x280   : > { %v13696_v3 = vpop.f32.mrf.mxu1  ;;  %v3009_v15 = vadd.f32 %v13655_v5, %v16539_v40 }
 0x281   : > { %v16645_v2 = vadd.f32 %v13696_v3, %v2999_v36  ;;  %v16647_v30 = vpop.f32.mrf.mxu0 }
 0x282   : > { %19090 = vst [vmem:[#allocation82_spill] sm:$0xff] %v16647_v30  ;;  %v16649_v23 = vpop.f32.mrf.mxu1 }
 0x283   : > { %19091 = vst [vmem:[#allocation83_spill] sm:$0xff] %v16649_v23  ;;  %v13658_v28 = vpop.f32.mrf.mxu0 }
 0x284   : > { %v13699_v9 = vpop.f32.mrf.mxu1  ;;  %v3011_v26 = vadd.f32 %v13658_v28, %v16549_v7 }
 0x285   : > { %v16652_v13 = vadd.f32 %v13699_v9, %v3001_v16  ;;  %v16654_v29 = vpop.f32.mrf.mxu0 }
 0x286   : > { %19092 = vst [vmem:[#allocation84_spill] sm:$0xff] %v16654_v29  ;;  %v16656_v0 = vpop.f32.mrf.mxu1 }
 0x287   : > { %19093 = vst [vmem:[#allocation85_spill] sm:$0xff] %v16656_v0  ;;  %v13661_v51 = vpop.f32.mrf.mxu0 }
 0x288   : > { %v13702_v60 = vpop.f32.mrf.mxu1  ;;  %v3013_v5 = vadd.f32 %v13661_v51, %v16557_v63 }
 0x289   : > { %v16659_v3 = vadd.f32 %v13702_v60, %v3003_v44  ;;  %v16661_v40 = vpop.f32.mrf.mxu0 }
 0x28a   : > { %19094 = vst [vmem:[#allocation86_spill] sm:$0xff] %v16661_v40  ;;  %v16663_v36 = vpop.f32.mrf.mxu1 }
 0x28b   : > { %19095 = vst [vmem:[#allocation87_spill] sm:$0xff] %v16663_v36  ;;  %v13664_v30 = vpop.f32.mrf.mxu0 }
 0x28c   : > { %v13705_v45 = vpop.f32.mrf.mxu1  ;;  %v3015_v7 = vadd.f32 %v13664_v30, %v16566_v20 }
 0x28d   : > { %v16666_v9 = vadd.f32 %v13705_v45, %v3005_v49  ;;  %v16668_v16 = vpop.f32.mrf.mxu0 }
 0x28e   : > { %19096 = vst [vmem:[#allocation88_spill] sm:$0xff] %v16668_v16  ;;  %v16670_v28 = vpop.f32.mrf.mxu1 }
 0x28f   : > { %19097 = vst [vmem:[#allocation89_spill] sm:$0xff] %v16670_v28  ;;  %v13667_v29 = vpop.f32.mrf.mxu0 }
 0x290   : > { %v13708_v0 = vpop.f32.mrf.mxu1  ;;  %v3017_v63 = vadd.f32 %v13667_v29, %v16575_v50 }
 0x291   : > { %v16673_v44 = vadd.f32 %v13708_v0, %v3007_v56  ;;  %v16675_v60 = vpop.f32.mrf.mxu0 }
 0x292   : > { %19098 = vst [vmem:[#allocation90_spill] sm:$0xff] %v16675_v60  ;;  %v16677_v51 = vpop.f32.mrf.mxu1 }
 0x293   : > { %19099 = vst [vmem:[#allocation91_spill] sm:$0xff] %v16677_v51  ;;  %v13670_v40 = vpop.f32.mrf.mxu0 }
 0x294   : > { %v13711_v36 = vpop.f32.mrf.mxu1  ;;  %v3019_v20 = vadd.f32 %v13670_v40, %v16584_v39 }
 0x295   : > { %v16680_v45 = vadd.f32 %v13711_v36, %v3009_v15  ;;  %v16682_v49 = vpop.f32.mrf.mxu0 }
 0x296   : > { %19100 = vst [vmem:[#allocation92_spill] sm:$0xff] %v16682_v49  ;;  %v16684_v30 = vpop.f32.mrf.mxu1 }
 0x297   : > { %19101 = vst [vmem:[#allocation93_spill] sm:$0xff] %v16684_v30  ;;  %v13673_v16 = vpop.f32.mrf.mxu0 }
 0x298   : > { %v13714_v28 = vpop.f32.mrf.mxu1  ;;  %v3021_v50 = vadd.f32 %v13673_v16, %v16593_v59 }
 0x299   : > { %v16687_v56 = vadd.f32 %v13714_v28, %v3011_v26  ;;  %v16689_v29 = vpop.f32.mrf.mxu0 }
 0x29a   : > { %19102 = vst [vmem:[#allocation94_spill] sm:$0xff] %v16689_v29  ;;  %v16691_v0 = vpop.f32.mrf.mxu1 }
 0x29b   : > { %19103 = vst [vmem:[#allocation95_spill] sm:$0xff] %v16691_v0  ;;  %v13734_v51 = vpop.f32.mrf.mxu0 }
 0x29c   : > { %v13717_v60 = vpop.f32.mrf.mxu1  ;;  %v16696_v39 = vadd.f32 %v13734_v51, %v16603_v6 }
 0x29d   : > { %v16693_v53 = vadd.f32 %v13717_v60, %v3013_v5  ;;  %v16700_v40 = vpop.f32.mrf.mxu0 }
 0x29e   : > { %v16698_v15 = vpop.f32.mrf.mxu1 }
 0x29f   : > { %19104 = vst [vmem:[#allocation96_spill] sm:$0xff] %v16698_v15  ;;  %v13737_v49 = vpop.f32.mrf.mxu0 }
 0x2a0   : > { %v13720_v36 = vpop.f32.mrf.mxu1  ;;  %v16705_v26 = vadd.f32 %v13737_v49, %v16610_v48 }
 0x2a1   : > { %v16702_v59 = vadd.f32 %v13720_v36, %v3015_v7  ;;  %v16709_v28 = vpop.f32.mrf.mxu0 }
 0x2a2   : > { %v16707_v16 = vpop.f32.mrf.mxu1 }
 0x2a3   : > { %19105 = vst [vmem:[#allocation97_spill] sm:$0xff] %v16707_v16  ;;  %v13740_v60 = vpop.f32.mrf.mxu0 }
 0x2a4   : > { %v13723_v5 = vpop.f32.mrf.mxu1  ;;  %v16714_v6 = vadd.f32 %v13740_v60, %v16617_v18 }
 0x2a5   : > { %v16711_v29 = vadd.f32 %v13723_v5, %v3017_v63  ;;  %v16718_v15 = vpop.f32.mrf.mxu0 }
 0x2a6   : > { %v16716_v51 = vpop.f32.mrf.mxu1 }
 0x2a7   : > { %19106 = vst [vmem:[#allocation98_spill] sm:$0xff] %v16716_v51  ;;  %v13743_v36 = vpop.f32.mrf.mxu0 }
 0x2a8   : > { %v13726_v7 = vpop.f32.mrf.mxu1  ;;  %v16723_v48 = vadd.f32 %v13743_v36, %v16624_v24 }
 0x2a9   : > { %v16720_v0 = vadd.f32 %v13726_v7, %v3019_v20  ;;  %v16727_v16 = vpop.f32.mrf.mxu0 }
 0x2aa   : > { %v16725_v49 = vpop.f32.mrf.mxu1 }
 0x2ab   : > { %19107 = vst [vmem:[#allocation99_spill] sm:$0xff] %v16725_v49  ;;  %v13746_v5 = vpop.f32.mrf.mxu0 }
 0x2ac   : > { %v13729_v63 = vpop.f32.mrf.mxu1  ;;  %v16732_v18 = vadd.f32 %v13746_v5, %v16631_v27 }
 0x2ad   : > { %v16729_v30 = vadd.f32 %v13729_v63, %v3021_v50  ;;  %v16736_v51 = vpop.f32.mrf.mxu0  ;;  %v14866_v50 = vld [vmem:[#allocation5] sm:$0xff] }
 0x2ae   : > { %v16734_v60 = vpop.f32.mrf.mxu1  ;;  %4860 = vst.msk [vmem:[#allocation8 + $0x11e] sm:$0x3] %vm4859_vm3, %v14866_v50 }
 0x2af   : > { %19108 = vst [vmem:[#allocation100_spill] sm:$0xff] %v16734_v60  ;;  %v13749_v20 = vpop.f32.mrf.mxu0 }
 0x2b0   : > { %v16738_v7 = vpop.f32.mrf.mxu1  ;;  %v16741_v24 = vadd.f32 %v13749_v20, %v16638_v37 }
 0x2b1   : > { %v16743_v36 = vpop.f32.mrf.mxu0 }
 0x2b2   : > { %19109 = vst [vmem:[#allocation101_spill] sm:$0xff] %v16741_v24  ;;  %19110 = vst [vmem:[#allocation102_spill] sm:$0xff] %v16743_v36  ;;  %v16745_v49 = vpop.f32.mrf.mxu1 }
 0x2b3   : > { %v13752_v63 = vpop.f32.mrf.mxu0 }
 0x2b4   : > { %v16747_v27 = vpop.f32.mrf.mxu1  ;;  %v16750_v5 = vadd.f32 %v13752_v63, %v16645_v2 }
 0x2b5   : > { %v16752_v60 = vpop.f32.mrf.mxu0 }
 0x2b6   : > { %19111 = vst [vmem:[#allocation103_spill] sm:$0xff] %v16750_v5  ;;  %19112 = vst [vmem:[#allocation104_spill] sm:$0xff] %v16752_v60  ;;  %v16754_v38 = vpop.f32.mrf.mxu1 }
 0x2b7   : > { %v13755_v23 = vpop.f32.mrf.mxu0 }
 0x2b8   : > { %v16756_v37 = vpop.f32.mrf.mxu1  ;;  %v16759_v20 = vadd.f32 %v13755_v23, %v16652_v13 }
 0x2b9   : > { %v16761_v31 = vpop.f32.mrf.mxu0 }
 0x2ba   : > { %19113 = vst [vmem:[#allocation105_spill] sm:$0xff] %v16759_v20  ;;  %19114 = vst [vmem:[#allocation106_spill] sm:$0xff] %v16761_v31  ;;  %v16763_v12 = vpop.f32.mrf.mxu1 }
 0x2bb   : > { %v13758_v50 = vpop.f32.mrf.mxu0 }
 0x2bc   : > { %v16765_v24 = vpop.f32.mrf.mxu1  ;;  %v16768_v2 = vadd.f32 %v13758_v50, %v16659_v3 }
 0x2bd   : > { %v16770_v63 = vpop.f32.mrf.mxu0 }
 0x2be   : > { %19115 = vst [vmem:[#allocation107_spill] sm:$0xff] %v16768_v2  ;;  %19116 = vst [vmem:[#allocation108_spill] sm:$0xff] %v16770_v63  ;;  %v16772_v5 = vpop.f32.mrf.mxu1 }
 0x2bf   : > { %v13761_v60 = vpop.f32.mrf.mxu0 }
 0x2c0   : > { %v16774_v36 = vpop.f32.mrf.mxu1  ;;  %v16777_v23 = vadd.f32 %v13761_v60, %v16666_v9 }
 0x2c1   : > { %v16779_v13 = vpop.f32.mrf.mxu0 }
 0x2c2   : > { %19117 = vst [vmem:[#allocation109_spill] sm:$0xff] %v16777_v23  ;;  %19118 = vst [vmem:[#allocation110_spill] sm:$0xff] %v16779_v13  ;;  %v16781_v20 = vpop.f32.mrf.mxu1 }
 0x2c3   : > { %v13764_v31 = vpop.f32.mrf.mxu0 }
 0x2c4   : > { %v16783_v62 = vpop.f32.mrf.mxu1  ;;  %v16786_v3 = vadd.f32 %v13764_v31, %v16673_v44 }
 0x2c5   : > { %19119 = vst [vmem:[#allocation111_spill] sm:$0xff] %v16783_v62  ;;  %v16788_v50 = vpop.f32.mrf.mxu0 }
 0x2c6   : > { %19120 = vst [vmem:[#allocation112_spill] sm:$0xff] %v16786_v3  ;;  %19121 = vst [vmem:[#allocation113_spill] sm:$0xff] %v16788_v50  ;;  %v16790_v2 = vpop.f32.mrf.mxu1 }
 0x2c7   : > { %v13767_v63 = vpop.f32.mrf.mxu0 }
 0x2c8   : > { %v16793_v58 = vadd.f32 %v13767_v63, %v16680_v45  ;;  %v16795_v9 = vpop.f32.mrf.mxu1 }
 0x2c9   : > { %v16797_v60 = vpop.f32.mrf.mxu0 }
 0x2ca   : > { %19122 = vst [vmem:[#allocation114_spill] sm:$0xff] %v16793_v58  ;;  %19123 = vst [vmem:[#allocation115_spill] sm:$0xff] %v16797_v60  ;;  %v16802_v62 = vpop.f32.mrf.mxu1 }
 0x2cb   : > { %v13770_v23 = vpop.f32.mrf.mxu0 }
 0x2cc   : > { %v16800_v13 = vadd.f32 %v13770_v23, %v16687_v56  ;;  %v16809_v50 = vpop.f32.mrf.mxu1 }
 0x2cd   : > { %v16804_v31 = vpop.f32.mrf.mxu0 }
 0x2ce   : > { %19124 = vst [vmem:[#allocation116_spill] sm:$0xff] %v16800_v13  ;;  %19125 = vst [vmem:[#allocation117_spill] sm:$0xff] %v16804_v31  ;;  %v16816_v60 = vpop.f32.mrf.mxu1 }
 0x2cf   : > { %v13773_v44 = vpop.f32.mrf.mxu0 }
 0x2d0   : > { %v16807_v3 = vadd.f32 %v13773_v44, %v16693_v53  ;;  %v16823_v31 = vpop.f32.mrf.mxu1 }
 0x2d1   : > { %v16811_v45 = vpop.f32.mrf.mxu0 }
 0x2d2   : > { %19126 = vst [vmem:[#allocation118_spill] sm:$0xff] %v16807_v3  ;;  %19127 = vst [vmem:[#allocation119_spill] sm:$0xff] %v16811_v45  ;;  %v5100_v3 = vld [vmem:[%s19004_s15 + $0x8] sm:$0xff] }
 0x2d3   : > { %v13776_v63 = vpop.f32.mrf.mxu0  ;;  %5245 = vmatprep.mubr.f32.mxu1 %v5100_v3 }
 0x2d4   : > { %v16814_v58 = vadd.f32 %v13776_v63, %v16702_v59  ;;  %v2556_v59 = vadd.f32 %v16408_v35, %v16334_v8 }
 0x2d5   : > { %v16818_v56 = vpop.f32.mrf.mxu0 }
 0x2d6   : > { %19128 = vst [vmem:[#allocation120_spill] sm:$0xff] %v16814_v58  ;;  %19129 = vst [vmem:[#allocation121_spill] sm:$0xff] %v16818_v56  ;;  %v16835_v58 = vpop.f32.mrf.mxu1 }
 0x2d7   : > { %v13779_v23 = vpop.f32.mrf.mxu0 }
 0x2d8   : > { %v16821_v13 = vadd.f32 %v13779_v23, %v16711_v29  ;;  %v2986_v23 = vadd.f32 %v16563_v41, %v2556_v59  ;;  %v16846_v8 = vpop.f32.mrf.mxu1  ;;  %v4277_v41 = vadd.f32 %v16738_v7, %v16696_v39  ;;  %v4279_v39 = vadd.f32 %v16747_v27, %v16705_v26 }
 0x2d9   : > { %v16825_v53 = vpop.f32.mrf.mxu0  ;;  %v2562_v7 = vadd.f32 %v16453_v46, %v16382_v42  ;;  %v4281_v42 = vadd.f32 %v16756_v37, %v16714_v6 }
 0x2da   : > { %19130 = vst [vmem:[#allocation122_spill] sm:$0xff] %v16821_v13  ;;  %19131 = vst [vmem:[#allocation123_spill] sm:$0xff] %v16825_v53  ;;  %v2558_v53 = vadd.f32 %v16423_v57, %v16350_v10  ;;  %v3416_v56 = vadd.f32 %v16607_v14, %v2986_v23  ;;  %v16856_v57 = vld [vmem:[#allocation14] ss:$0 sm:$0xff]  ;;  %v16861_v23 = vpop.f32.mrf.mxu1 }
 0x2db   : > { %v13782_v44 = vpop.f32.mrf.mxu0 }
 0x2dc   : > { %v16833_v63 = vadd.f32 %v13782_v44, %v16720_v0  ;;  %v2988_v0 = vadd.f32 %v16572_v25, %v2558_v53  ;;  %v3846_v3 = vadd.f32 %v16700_v40, %v3416_v56  ;;  %v2560_v44 = vadd.f32 %v16438_v47, %v16366_v33  ;;  %v16874_v27 = vpop.f32.mrf.mxu1 }
 0x2dd   : > { %v16837_v29 = vpop.f32.mrf.mxu0 }
 0x2de   : > { %v3418_v14 = vadd.f32 %v16614_v17, %v2988_v0  ;;  %v2990_v59 = vadd.f32 %v16581_v54, %v2560_v44 }
 0x2df   : > { %v13785_v13 = vpop.f32.mrf.mxu0 }
 0x2e0   : > { %v16844_v45 = vadd.f32 %v13785_v13, %v16729_v30  ;;  %v4276_v30 = vadd.f32 %v16745_v49, %v3846_v3  ;;  %v3848_v40 = vadd.f32 %v16709_v28, %v3418_v14  ;;  %v3420_v17 = vadd.f32 %v16621_v61, %v2990_v59 }
 0x2e1   : > { %v16848_v35 = vpop.f32.mrf.mxu0  ;;  %v2992_v28 = vadd.f32 %v16590_v1, %v2562_v7 }
 0x2e2   : > { %v4278_v54 = vadd.f32 %v16754_v38, %v3848_v40  ;;  %v3850_v26 = vadd.f32 %v16718_v15, %v3420_v17 }
 0x2e3   : > { %v13846_v10 = vpop.f32.mrf.mxu0  ;;  %v3422_v44 = vadd.f32 %v16628_v22, %v2992_v28 }
 0x2e4   : > { %v4707_v13 = vadd.f32 %v13846_v10, %v4277_v41  ;;  %v2564_v41 = vadd.f32 %v16466_v55, %v16396_v19  ;;  %v4280_v15 = vadd.f32 %v16763_v12, %v3850_v26  ;;  %v4283_v19 = vadd.f32 %v16765_v24, %v16723_v48  ;;  %v19134_v26 = vld [vmem:[#allocation102_spill] sm:$0xff] }
 0x2e5   : > { %v4527_v25 = vpop.f32.mrf.mxu0 }
 0x2e6   : > { %v4750_v33 = vadd.f32 %v16856_v57, %v4707_v13  ;;  %v4706_v47 = vadd.f32 %v4527_v25, %v4276_v30  ;;  %v2994_v37 = vadd.f32 %v16599_v34, %v2564_v41  ;;  %v3852_v30 = vadd.f32 %v16727_v16, %v3422_v44  ;;  %v16888_v13 = vpop.f32.mrf.mxu1  ;;  %v19137_v44 = vld [vmem:[#allocation54_spill] sm:$0xff] }
 0x2e7   : > { %v13849_v49 = vpop.f32.mrf.mxu0  ;;  %v2566_v25 = vadd.f32 %v16478_v32, %v16411_v43  ;;  %v4285_v43 = vadd.f32 %v16774_v36, %v16732_v18  ;;  %v19133_v36 = vld [vmem:[#allocation76_spill] sm:$0xff] }
 0x2e8   : > { %v4786_v56 = vmax.f32 %v4750_v33, 0.0  ;;  %v4749_v53 = vadd.f32 %v16856_v57, %v4706_v47  ;;  %v4709_v0 = vadd.f32 %v13849_v49, %v4279_v39  ;;  %v3424_v40 = vadd.f32 %v16635_v21, %v2994_v37  ;;  %v16902_v7 = vpop.f32.mrf.mxu1 }
 0x2e9   : > { %v4537_v3 = vpop.f32.mrf.mxu0  ;;  %v4282_v16 = vadd.f32 %v16772_v5, %v3852_v30  ;;  %v2996_v24 = vadd.f32 %v16605_v52, %v2566_v25  ;;  %v2568_v49 = vadd.f32 %v16489_v11, %v16426_v4  ;;  %v19136_v4 = vld [vmem:[#allocation111_spill] sm:$0xff] }
 0x2ea   : > { %4823 = vst.msk [vmem:[#allocation8 + $0x8] sm:$0xff] %vm4821_vm4, %v4786_v56  ;;  %v4785_v46 = vmax.f32 %v4749_v53, 0.0  ;;  %v4752_v61 = vadd.f32 %v16856_v57, %v4709_v0  ;;  %v4708_v38 = vadd.f32 %v4537_v3, %v4278_v54  ;;  %v3854_v47 = vadd.f32 %v16736_v51, %v3424_v40  ;;  %v19132_v54 = vld [vmem:[#allocation81_spill] sm:$0xff] }
 0x2eb   : > { %v13852_v1 = vpop.f32.mrf.mxu0  ;;  %v3426_v56 = vadd.f32 %v19132_v54, %v2996_v24  ;;  %v2998_v28 = vadd.f32 %v19133_v36, %v2568_v49  ;;  %v19143_v24 = vld [vmem:[#allocation55_spill] sm:$0xff]  ;;  %v19148_v36 = vld [vmem:[#allocation105_spill] sm:$0xff] }
 0x2ec   : > { %4822 = vst.msk [vmem:[#allocation8] sm:$0xff] %vm4821_vm4, %v4785_v46  ;;  %v4788_v10 = vmax.f32 %v4752_v61, 0.0  ;;  %v4751_v14 = vadd.f32 %v16856_v57, %v4708_v38  ;;  %v4711_v6 = vadd.f32 %v13852_v1, %v4281_v42  ;;  %v4284_v51 = vadd.f32 %v16781_v20, %v3854_v47  ;;  %v16916_v42 = vpop.f32.mrf.mxu1  ;;  %v19135_v61 = vld [vmem:[#allocation101_spill] sm:$0xff]  ;;  %v19138_v1 = vld [vmem:[#allocation59_spill] sm:$0xff] }
 0x2ed   : > { %v4547_v59 = vpop.f32.mrf.mxu0  ;;  %v3856_v3 = vadd.f32 %v19134_v26, %v3426_v56  ;;  %v4287_v11 = vadd.f32 %v19136_v4, %v19135_v61  ;;  %v19144_v47 = vld [vmem:[#allocation61_spill] sm:$0xff]  ;;  %v19146_v56 = vld [vmem:[#allocation78_spill] sm:$0xff]  ;;  %v19150_v61 = vld [vmem:[#allocation63_spill] sm:$0xff] }
 0x2ee   : > { %4825 = vst.msk [vmem:[#allocation8 + $0x18] sm:$0xff] %vm4821_vm4, %v4788_v10  ;;  %v4787_v55 = vmax.f32 %v4751_v14, 0.0  ;;  %v4754_v12 = vadd.f32 %v16856_v57, %v4711_v6  ;;  %v4710_v22 = vadd.f32 %v4547_v59, %v4280_v15  ;;  %v2570_v15 = vadd.f32 %v19138_v1, %v19137_v44  ;;  %v19139_v10 = vld [vmem:[#allocation83_spill] sm:$0xff]  ;;  %v16930_v40 = vpop.f32.mrf.mxu1 }
 0x2ef   : > { %v13855_v34 = vpop.f32.mrf.mxu0  ;;  %v3428_v14 = vadd.f32 %v19139_v10, %v2998_v28  ;;  %v4286_v37 = vadd.f32 %v16790_v2, %v3856_v3  ;;  %v4291_v28 = vadd.f32 %v16809_v50, %v19148_v36 }
 0x2f0   : > { %4824 = vst.msk [vmem:[#allocation8 + $0x10] sm:$0xff] %vm4821_vm4, %v4787_v55  ;;  %v4790_v39 = vmax.f32 %v4754_v12, 0.0  ;;  %v4753_v33 = vadd.f32 %v16856_v57, %v4710_v22  ;;  %v4713_v48 = vadd.f32 %v13855_v34, %v4283_v19  ;;  %v19140_v55 = vld [vmem:[#allocation77_spill] sm:$0xff]  ;;  %v19141_v22 = vld [vmem:[#allocation104_spill] sm:$0xff] }
 0x2f1   : > { %v4557_v17 = vpop.f32.mrf.mxu0  ;;  %v3000_v12 = vadd.f32 %v19140_v55, %v2570_v15  ;;  %v3858_v25 = vadd.f32 %v19141_v22, %v3428_v14  ;;  %v19152_v15 = vld [vmem:[#allocation79_spill] sm:$0xff]  ;;  %v19153_v14 = vld [vmem:[#allocation108_spill] sm:$0xff]  ;;  %v19155_v22 = vld [vmem:[#allocation57_spill] sm:$0xff] }
 0x2f2   : > { %4827 = vst.msk [vmem:[#allocation8 + $0x28] sm:$0xff] %vm4821_vm4, %v4790_v39  ;;  %v4789_v32 = vmax.f32 %v4753_v33, 0.0  ;;  %v4756_v21 = vadd.f32 %v16856_v57, %v4713_v48  ;;  %v4712_v5 = vadd.f32 %v4557_v17, %v4282_v16  ;;  %v19142_v16 = vld [vmem:[#allocation103_spill] sm:$0xff]  ;;  %v2572_v17 = vadd.f32 %v19144_v47, %v19143_v24  ;;  %v19158_v47 = vld [vmem:[#allocation80_spill] sm:$0xff] }
 0x2f3   : > { %v13858_v52 = vpop.f32.mrf.mxu0  ;;  %v4289_v39 = vadd.f32 %v16795_v9, %v19142_v16  ;;  %v19157_v16 = vld [vmem:[#allocation89_spill] sm:$0xff] }
 0x2f4   : > { %4826 = vst.msk [vmem:[#allocation8 + $0x20] sm:$0xff] %vm4821_vm4, %v4789_v32  ;;  %v4792_v53 = vmax.f32 %v4756_v21, 0.0  ;;  %v4755_v0 = vadd.f32 %v16856_v57, %v4712_v5  ;;  %v4715_v18 = vadd.f32 %v13858_v52, %v4285_v43  ;;  %v19145_v43 = vld [vmem:[#allocation85_spill] sm:$0xff]  ;;  %v4288_v5 = vadd.f32 %v16802_v62, %v3858_v25 }
 0x2f5   : > { %v4567_v46 = vpop.f32.mrf.mxu0  ;;  %v3430_v32 = vadd.f32 %v19145_v43, %v3000_v12  ;;  %v3002_v52 = vadd.f32 %v19146_v56, %v2572_v17  ;;  %v19156_v25 = vld [vmem:[#allocation65_spill] sm:$0xff]  ;;  %v19159_v43 = vld [vmem:[#allocation110_spill] sm:$0xff] }
 0x2f6   : > { %4829 = vst.msk [vmem:[#allocation8 + $0x38] sm:$0xff] %vm4821_vm4, %v4792_v53  ;;  %v4791_v38 = vmax.f32 %v4755_v0, 0.0  ;;  %v4758_v20 = vadd.f32 %v16856_v57, %v4715_v18  ;;  %v4714_v41 = vadd.f32 %v4567_v46, %v4284_v51  ;;  %v19147_v51 = vld [vmem:[#allocation106_spill] sm:$0xff]  ;;  %v16944_v0 = vpop.f32.mrf.mxu1  ;;  %v19149_v46 = vld [vmem:[#allocation56_spill] sm:$0xff] }
 0x2f7   : > { %v13861_v6 = vpop.f32.mrf.mxu0  ;;  %v3860_v53 = vadd.f32 %v19147_v51, %v3430_v32  ;;  %v2574_v4 = vadd.f32 %v19150_v61, %v19149_v46  ;;  %v19162_v51 = vld [vmem:[#allocation68_spill] sm:$0xff]  ;;  %v19164_v46 = vld [vmem:[#allocation82_spill] sm:$0xff] }
 0x2f8   : > { %4828 = vst.msk [vmem:[#allocation8 + $0x30] sm:$0xff] %vm4821_vm4, %v4791_v38  ;;  %v4794_v30 = vmax.f32 %v4758_v20, 0.0  ;;  %v4757_v59 = vadd.f32 %v16856_v57, %v4714_v41  ;;  %v4717_v19 = vadd.f32 %v13861_v6, %v4287_v11  ;;  %v19151_v11 = vld [vmem:[#allocation87_spill] sm:$0xff] }
 0x2f9   : > { %v4577_v34 = vpop.f32.mrf.mxu0  ;;  %v3432_v38 = vadd.f32 %v19151_v11, %v3002_v52  ;;  %v4290_v41 = vadd.f32 %v16816_v60, %v3860_v53  ;;  %v3004_v10 = vadd.f32 %v19152_v15, %v2574_v4  ;;  %v19161_v52 = vld [vmem:[#allocation58_spill] sm:$0xff]  ;;  %v19165_v4 = vld [vmem:[#allocation113_spill] sm:$0xff]  ;;  %v19167_v15 = vld [vmem:[#allocation60_spill] sm:$0xff] }
 0x2fa   : > { %4831 = vst.msk [vmem:[#allocation8 + $0x48] sm:$0xff] %vm4821_vm4, %v4794_v30  ;;  %v4793_v33 = vmax.f32 %v4757_v59, 0.0  ;;  %v4760_v2 = vadd.f32 %v16856_v57, %v4717_v19  ;;  %v4716_v48 = vadd.f32 %v4577_v34, %v4286_v37  ;;  %v16958_v37 = vpop.f32.mrf.mxu1  ;;  %v19154_v59 = vld [vmem:[#allocation107_spill] sm:$0xff]  ;;  %v2576_v34 = vadd.f32 %v19156_v25, %v19155_v22 }
 0x2fb   : > { %v13864_v21 = vpop.f32.mrf.mxu0  ;;  %v3862_v6 = vadd.f32 %v19153_v14, %v3432_v38  ;;  %v4293_v19 = vadd.f32 %v16823_v31, %v19154_v59  ;;  %v2578_v53 = vadd.f32 %v19162_v51, %v19161_v52  ;;  %v19171_v25 = vld [vmem:[#allocation115_spill] sm:$0xff]  ;;  %v19177_v52 = vld [vmem:[#allocation117_spill] sm:$0xff] }
 0x2fc   : > { %4830 = vst.msk [vmem:[#allocation8 + $0x40] sm:$0xff] %vm4821_vm4, %v4793_v33  ;;  %v4796_v49 = vmax.f32 %v4760_v2, 0.0  ;;  %v4759_v54 = vadd.f32 %v16856_v57, %v4716_v48  ;;  %v4719_v9 = vadd.f32 %v13864_v21, %v4289_v39  ;;  %v3434_v39 = vadd.f32 %v19157_v16, %v3004_v10  ;;  %v16972_v21 = vpop.f32.mrf.mxu1  ;;  %v19168_v10 = vld [vmem:[#allocation70_spill] sm:$0xff] }
 0x2fd   : > { %v4587_v18 = vpop.f32.mrf.mxu0  ;;  %v4292_v2 = vadd.f32 %v16835_v58, %v3862_v6  ;;  %v3006_v17 = vadd.f32 %v19158_v47, %v2576_v34  ;;  %v3008_v61 = vadd.f32 %v19164_v46, %v2578_v53  ;;  %v2580_v14 = vadd.f32 %v19168_v10, %v19167_v15  ;;  %v19169_v6 = vld [vmem:[#allocation93_spill] sm:$0xff]  ;;  %v19174_v47 = vld [vmem:[#allocation71_spill] sm:$0xff] }
 0x2fe   : > { %4833 = vst.msk [vmem:[#allocation8 + $0x58] sm:$0xff] %vm4821_vm4, %v4796_v49  ;;  %v4795_v26 = vmax.f32 %v4759_v54, 0.0  ;;  %v4762_v62 = vadd.f32 %v16856_v57, %v4719_v9  ;;  %v4718_v3 = vadd.f32 %v4587_v18, %v4288_v5  ;;  %v3864_v32 = vadd.f32 %v19159_v43, %v3434_v39  ;;  %v19160_v49 = vld [vmem:[#allocation109_spill] sm:$0xff]  ;;  %v19163_v18 = vld [vmem:[#allocation91_spill] sm:$0xff]  ;;  %v16986_v38 = vpop.f32.mrf.mxu1 }
 0x2ff   : > { %v13867_v20 = vpop.f32.mrf.mxu0  ;;  %v4295_v54 = vadd.f32 %v16846_v8, %v19160_v49  ;;  %v3436_v36 = vadd.f32 %v19163_v18, %v3006_v17  ;;  %v19175_v43 = vld [vmem:[#allocation95_spill] sm:$0xff] }
 0x300   : > { %4832 = vst.msk [vmem:[#allocation8 + $0x50] sm:$0xff] %vm4821_vm4, %v4795_v26  ;;  %v4798_v44 = vmax.f32 %v4762_v62, 0.0  ;;  %v4761_v1 = vadd.f32 %v16856_v57, %v4718_v3  ;;  %v4721_v50 = vadd.f32 %v13867_v20, %v4291_v28  ;;  %v4294_v26 = vadd.f32 %v16861_v23, %v3864_v32  ;;  %v17000_v16 = vpop.f32.mrf.mxu1 }
 0x301   : > { %v4597_v30 = vpop.f32.mrf.mxu0  ;;  %v3866_v11 = vadd.f32 %v19165_v4, %v3436_v36  ;;  %v19178_v36 = vld [vmem:[#allocation116_spill] sm:$0xff] }
 0x302   : > { %4835 = vst.msk [vmem:[#allocation8 + $0x68] sm:$0xff] %vm4821_vm4, %v4798_v44  ;;  %v4797_v55 = vmax.f32 %v4761_v1, 0.0  ;;  %v4764_v60 = vadd.f32 %v16856_v57, %v4721_v50  ;;  %v4720_v12 = vadd.f32 %v4597_v30, %v4290_v41  ;;  %v19166_v41 = vld [vmem:[#allocation112_spill] sm:$0xff]  ;;  %v3438_v30 = vadd.f32 %v19169_v6, %v3008_v61  ;;  %v13835_v53 = vpop.f32.mrf.mxu1  ;;  %v19184_v6 = vld [vmem:[#allocation118_spill] sm:$0xff] }
 0x303   : > { %v13870_v33 = vpop.f32.mrf.mxu0  ;;  %v4297_v44 = vadd.f32 %v16874_v27, %v19166_v41  ;;  %v19181_v61 = vld [vmem:[#allocation96_spill] sm:$0xff] }
 0x304   : > { %4834 = vst.msk [vmem:[#allocation8 + $0x60] sm:$0xff] %vm4821_vm4, %v4797_v55  ;;  %v4800_v48 = vmax.f32 %v4764_v60, 0.0  ;;  %v4763_v24 = vadd.f32 %v16856_v57, %v4720_v12  ;;  %v4723_v31 = vadd.f32 %v13870_v33, %v4293_v19  ;;  %v4296_v19 = vadd.f32 %v16888_v13, %v3866_v11  ;;  %v19170_v12 = vld [vmem:[#allocation84_spill] sm:$0xff]  ;;  %v19172_v33 = vld [vmem:[#allocation114_spill] sm:$0xff]  ;;  %v4247_v10 = vpop.f32.mrf.mxu1 }
 0x305   : > { %v4607_v5 = vpop.f32.mrf.mxu0  ;;  %v3010_v22 = vadd.f32 %v19170_v12, %v2580_v14  ;;  %v3868_v34 = vadd.f32 %v19171_v25, %v3438_v30  ;;  %v4303_v30 = vadd.f32 %v16958_v37, %v19184_v6  ;;  %v19187_v12 = vld [vmem:[#allocation66_spill] sm:$0xff] }
 0x306   : > { %4837 = vst.msk [vmem:[#allocation8 + $0x78] sm:$0xff] %vm4821_vm4, %v4800_v48  ;;  %v4799_v9 = vmax.f32 %v4763_v24, 0.0  ;;  %v4766_v58 = vadd.f32 %v16856_v57, %v4723_v31  ;;  %v4722_v56 = vadd.f32 %v4607_v5, %v4292_v2  ;;  %v4299_v2 = vadd.f32 %v16902_v7, %v19172_v33  ;;  %v19173_v31 = vld [vmem:[#allocation62_spill] sm:$0xff] }
 0x307   : > { %v13873_v28 = vpop.f32.mrf.mxu0  ;;  %v2582_v17 = vadd.f32 %v19174_v47, %v19173_v31  ;;  %v3440_v32 = vadd.f32 %v19175_v43, %v3010_v22  ;;  %v4298_v49 = vadd.f32 %v16916_v42, %v3868_v34  ;;  %v19188_v22 = vld [vmem:[#allocation73_spill] sm:$0xff]  ;;  %v19191_v47 = vld [vmem:[#allocation90_spill] sm:$0xff] }
 0x308   : > { %4836 = vst.msk [vmem:[#allocation8 + $0x70] sm:$0xff] %vm4821_vm4, %v4799_v9  ;;  %v4802_v62 = vmax.f32 %v4766_v58, 0.0  ;;  %v4765_v3 = vadd.f32 %v16856_v57, %v4722_v56  ;;  %v4725_v8 = vadd.f32 %v13873_v28, %v4295_v54  ;;  %v19176_v58 = vld [vmem:[#allocation86_spill] sm:$0xff]  ;;  %v4301_v28 = vadd.f32 %v16930_v40, %v19178_v36  ;;  %v19189_v34 = vld [vmem:[#allocation97_spill] sm:$0xff] }
 0x309   : > { %v4617_v20 = vpop.f32.mrf.mxu0  ;;  %v3012_v56 = vadd.f32 %v19176_v58, %v2582_v17  ;;  %v3870_v51 = vadd.f32 %v19177_v52, %v3440_v32  ;;  %v2586_v25 = vadd.f32 %v19188_v22, %v19187_v12  ;;  %v19192_v43 = vld [vmem:[#allocation121_spill] sm:$0xff]  ;;  %v19204_v12 = vld [vmem:[#allocation94_spill] sm:$0xff] }
 0x30a   : > { %4839 = vst.msk [vmem:[#allocation8 + $0x88] sm:$0xff] %vm4821_vm4, %v4802_v62  ;;  %v4801_v1 = vmax.f32 %v4765_v3, 0.0  ;;  %v4768_v23 = vadd.f32 %v16856_v57, %v4725_v8  ;;  %v4724_v50 = vadd.f32 %v4617_v20, %v4294_v26  ;;  %v19179_v3 = vld [vmem:[#allocation64_spill] sm:$0xff]  ;;  %v19195_v52 = vld [vmem:[#allocation53_spill] sm:$0xff] }
 0x30b   : > { %v13876_v59 = vpop.f32.mrf.mxu0  ;;  %v19180_v8 = vld [vmem:[#allocation72_spill] sm:$0xff]  ;;  %v3442_v4 = vadd.f32 %v19181_v61, %v3012_v56  ;;  %v4300_v20 = vadd.f32 %v16944_v0, %v3870_v51  ;;  %v3016_v17 = vadd.f32 %v19191_v47, %v2586_v25  ;;  %v19194_v56 = vld [vmem:[#allocation51_spill] sm:$0xff] }
 0x30c   : > { %4838 = vst.msk [vmem:[#allocation8 + $0x80] sm:$0xff] %vm4821_vm4, %v4801_v1  ;;  %v4804_v55 = vmax.f32 %v4768_v23, 0.0  ;;  %v4767_v60 = vadd.f32 %v16856_v57, %v4724_v50  ;;  %v4727_v27 = vadd.f32 %v13876_v59, %v4297_v44  ;;  %v2584_v46 = vadd.f32 %v19180_v8, %v19179_v3  ;;  %v19182_v1 = vld [vmem:[#allocation88_spill] sm:$0xff]  ;;  %v19183_v50 = vld [vmem:[#allocation119_spill] sm:$0xff] }
 0x30d   : > { %v4627_v39 = vpop.f32.mrf.mxu0  ;;  %v3872_v15 = vadd.f32 %v19183_v50, %v3442_v4  ;;  %v1724_v51 = vadd.f32 %v19195_v52, %v19194_v56  ;;  %v19199_v4 = vld [vmem:[#allocation92_spill] sm:$0xff] }
 0x30e   : > { %4841 = vst.msk [vmem:[#allocation8 + $0x98] sm:$0xff] %vm4821_vm4, %v4804_v55  ;;  %v4803_v48 = vmax.f32 %v4767_v60, 0.0  ;;  %v4770_v13 = vadd.f32 %v16856_v57, %v4727_v27  ;;  %v4726_v24 = vadd.f32 %v4627_v39, %v4296_v19  ;;  %v3014_v23 = vadd.f32 %v19182_v1, %v2584_v46  ;;  %v19185_v55 = vld [vmem:[#allocation50_spill] sm:$0xff]  ;;  %v19186_v60 = vld [vmem:[#allocation52_spill] sm:$0xff]  ;;  %v19198_v46 = vld [vmem:[#allocation69_spill] sm:$0xff] }
 0x30f   : > { %v13879_v5 = vpop.f32.mrf.mxu0  ;;  %v1714_v27 = vadd.f32 %v19186_v60, %v19185_v55  ;;  %v2160_v61 = vadd.f32 %v19198_v46, %v1724_v51  ;;  %v19201_v1 = vld [vmem:[#allocation122_spill] sm:$0xff] }
 0x310   : > { %4840 = vst.msk [vmem:[#allocation8 + $0x90] sm:$0xff] %vm4821_vm4, %v4803_v48  ;;  %v4806_v54 = vmax.f32 %v4770_v13, 0.0  ;;  %v4769_v9 = vadd.f32 %v16856_v57, %v4726_v24  ;;  %v4729_v7 = vadd.f32 %v13879_v5, %v4299_v2  ;;  %v3444_v39 = vadd.f32 %v19189_v34, %v3014_v23  ;;  %v19190_v24 = vld [vmem:[#allocation67_spill] sm:$0xff]  ;;  %v13838_v5 = vpop.f32.mrf.mxu1 }
 0x311   : > { %v4637_v18 = vpop.f32.mrf.mxu0  ;;  %v4302_v2 = vadd.f32 %v16972_v21, %v3872_v15  ;;  %v2158_v31 = vadd.f32 %v19190_v24, %v1714_v27  ;;  %v4307_v23 = vadd.f32 %v13835_v53, %v19201_v1 }
 0x312   : > { %4843 = vst.msk [vmem:[#allocation8 + $0xa8] sm:$0xff] %vm4821_vm4, %v4806_v54  ;;  %v4805_v26 = vmax.f32 %v4769_v9, 0.0  ;;  %v4772_v42 = vadd.f32 %v16856_v57, %v4729_v7  ;;  %v4728_v62 = vadd.f32 %v4637_v18, %v4298_v49  ;;  %v3874_v32 = vadd.f32 %v19192_v43, %v3444_v39  ;;  %v19193_v54 = vld [vmem:[#allocation120_spill] sm:$0xff]  ;;  %v19196_v18 = vld [vmem:[#allocation74_spill] sm:$0xff] }
 0x313   : > { %v13882_v11 = vpop.f32.mrf.mxu0  ;;  %v4305_v9 = vadd.f32 %v16986_v38, %v19193_v54  ;;  %v2588_v36 = vadd.f32 %v19196_v18, %v2158_v31  ;;  %v4309_v39 = vadd.f32 %v13838_v5, %v16833_v63 }
 0x314   : > { %4842 = vst.msk [vmem:[#allocation8 + $0xa0] sm:$0xff] %vm4821_vm4, %v4805_v26  ;;  %v4808_v41 = vmax.f32 %v4772_v42, 0.0  ;;  %v4771_v44 = vadd.f32 %v16856_v57, %v4728_v62  ;;  %v4731_v40 = vadd.f32 %v13882_v11, %v4301_v28  ;;  %v19197_v28 = vld [vmem:[#allocation98_spill] sm:$0xff]  ;;  %v4304_v62 = vadd.f32 %v17000_v16, %v3874_v32 }
 0x315   : > { %v4647_v14 = vpop.f32.mrf.mxu0  ;;  %v3446_v26 = vadd.f32 %v19197_v28, %v3016_v17  ;;  %v3018_v11 = vadd.f32 %v19199_v4, %v2588_v36 }
 0x316   : > { %4845 = vst.msk [vmem:[#allocation8 + $0xb8] sm:$0xff] %vm4821_vm4, %v4808_v41  ;;  %v4807_v59 = vmax.f32 %v4771_v44, 0.0  ;;  %v4774_v0 = vadd.f32 %v16856_v57, %v4731_v40  ;;  %v4730_v19 = vadd.f32 %v4647_v14, %v4300_v20  ;;  %v19200_v20 = vld [vmem:[#allocation123_spill] sm:$0xff]  ;;  %v4257_v44 = vpop.f32.mrf.mxu1 }
 0x317   : > { %v13885_v33 = vpop.f32.mrf.mxu0  ;;  %v3876_v41 = vadd.f32 %v19200_v20, %v3446_v26  ;;  %v19202_v14 = vld [vmem:[#allocation75_spill] sm:$0xff]  ;;  %v4910_v26 = vld [vmem:[#allocation8 + $0x79] sm:$0xff] }
 0x318   : > { %4844 = vst.msk [vmem:[#allocation8 + $0xb0] sm:$0xff] %vm4821_vm4, %v4807_v59  ;;  %v4810_v37 = vmax.f32 %v4774_v0, 0.0  ;;  %v4773_v48 = vadd.f32 %v16856_v57, %v4730_v19  ;;  %v4733_v13 = vadd.f32 %v13885_v33, %v4303_v30  ;;  %v2590_v6 = vadd.f32 %v19202_v14, %v2160_v61  ;;  %v19203_v30 = vld [vmem:[#allocation99_spill] sm:$0xff]  ;;  %v13841_v25 = vpop.f32.mrf.mxu1 }
 0x319   : > { %v4657_v49 = vpop.f32.mrf.mxu0  ;;  %v3448_v59 = vadd.f32 %v19203_v30, %v3018_v11  ;;  %v4306_v19 = vadd.f32 %v4247_v10, %v3876_v41  ;;  %v4311_v32 = vadd.f32 %v13841_v25, %v16844_v45  ;;  %v4876_v11 = vld [vmem:[#allocation8 + $0x78] sm:$0xff]  ;;  %v4908_v30 = vld [vmem:[#allocation8 + $0x69] sm:$0xff] }
 0x31a   : > { %4847 = vst.msk [vmem:[#allocation8 + $0xc8] sm:$0xff] %vm4821_vm4, %v4810_v37  ;;  %v4809_v21 = vmax.f32 %v4773_v48, 0.0  ;;  %v4776_v7 = vadd.f32 %v16856_v57, %v4733_v13  ;;  %v4732_v58 = vadd.f32 %v4657_v49, %v4302_v2  ;;  %v3020_v53 = vadd.f32 %v19204_v12, %v2590_v6  ;;  %v19205_v37 = vld [vmem:[#allocation100_spill] sm:$0xff]  ;;  %v4267_v43 = vpop.f32.mrf.mxu1 }
 0x31b   : > { %v13888_v42 = vpop.f32.mrf.mxu0  ;;  %v3878_v22 = vadd.f32 %v16837_v29, %v3448_v59  ;;  %v4942_v59 = vld [vmem:[#allocation8 + $0x7a] sm:$0xff] }
 0x31c   : > { %4846 = vst.msk [vmem:[#allocation8 + $0xc0] sm:$0xff] %vm4821_vm4, %v4809_v21  ;;  %v4812_v3 = vmax.f32 %v4776_v7, 0.0  ;;  %v4775_v38 = vadd.f32 %v16856_v57, %v4732_v58  ;;  %v4735_v8 = vadd.f32 %v13888_v42, %v4305_v9  ;;  %v3450_v48 = vadd.f32 %v19205_v37, %v3020_v53  ;;  %v4944_v42 = vld [vmem:[#allocation8 + $0x8a] sm:$0xff]  ;;  %v4907_v37 = vld [vmem:[#allocation8 + $0x61] sm:$0xff] }
 0x31d   : > { %v4667_v40 = vpop.f32.mrf.mxu0  ;;  %v4308_v24 = vadd.f32 %v4257_v44, %v3878_v22  ;;  %v4875_v44 = vld [vmem:[#allocation8 + $0x70] sm:$0xff] }
 0x31e   : > { %4849 = vst.msk [vmem:[#allocation8 + $0xd8] sm:$0xff] %vm4821_vm4, %v4812_v3  ;;  %v4811_v50 = vmax.f32 %v4775_v38, 0.0  ;;  %v4778_v16 = vadd.f32 %v16856_v57, %v4735_v8  ;;  %v4734_v15 = vadd.f32 %v4667_v40, %v4304_v62  ;;  %v3880_v17 = vadd.f32 %v16848_v35, %v3450_v48  ;;  %v4978_v62 = vld [vmem:[#allocation8 + $0x8b] sm:$0xff]  ;;  %v4943_v3 = vld [vmem:[#allocation8 + $0x82] sm:$0xff]  ;;  %v4975_v48 = vld [vmem:[#allocation8 + $0x73] sm:$0xff] }
 0x31f   : > { %v13891_v0 = vpop.f32.mrf.mxu0  ;;  %v4977_v38 = vld [vmem:[#allocation8 + $0x83] sm:$0xff]  ;;  %v4909_v40 = vld [vmem:[#allocation8 + $0x71] sm:$0xff] }
 0x320   : > { %4848 = vst.msk [vmem:[#allocation8 + $0xd0] sm:$0xff] %vm4821_vm4, %v4811_v50  ;;  %v4814_v55 = vmax.f32 %v4778_v16, 0.0  ;;  %v4777_v60 = vadd.f32 %v16856_v57, %v4734_v15  ;;  %v4737_v27 = vadd.f32 %v13891_v0, %v4307_v23  ;;  %v4310_v21 = vadd.f32 %v4267_v43, %v3880_v17  ;;  %v4976_v0 = vld [vmem:[#allocation8 + $0x7b] sm:$0xff] }
 0x321   : > { %v4677_v34 = vpop.f32.mrf.mxu0  ;;  %v5046_v50 = vmax.f32 %v4944_v42, %v4978_v62  ;;  %v4871_v42 = vld [vmem:[#allocation8 + $0x50] sm:$0xff] }
 0x322   : > { %4851 = vst.msk [vmem:[#allocation8 + $0xe8] sm:$0xff] %vm4821_vm4, %v4814_v55  ;;  %v4813_v33 = vmax.f32 %v4777_v60, 0.0  ;;  %v4780_v2 = vadd.f32 %v16856_v57, %v4737_v27  ;;  %v4736_v10 = vadd.f32 %v4677_v34, %v4306_v19  ;;  %v17081_v19 = vld [vmem:[#allocation8 + $0x72] sm:$0xff]  ;;  %v5012_v55 = vmax.f32 %v4876_v11, %v4910_v26 }
 0x323   : > { %v13894_v13 = vpop.f32.mrf.mxu0  ;;  %v5045_v60 = vmax.f32 %v4943_v3, %v4977_v38  ;;  %v4905_v62 = vld [vmem:[#allocation8 + $0x51] sm:$0xff]  ;;  %v4973_v3 = vld [vmem:[#allocation8 + $0x63] sm:$0xff] }
 0x324   : > { %4850 = vst.msk [vmem:[#allocation8 + $0xe0] sm:$0xff] %vm4821_vm4, %v4813_v33  ;;  %v4816_v31 = vmax.f32 %v4780_v2, 0.0  ;;  %v4779_v47 = vadd.f32 %v16856_v57, %v4736_v10  ;;  %v4739_v29 = vadd.f32 %v13894_v13, %v4309_v39  ;;  %v4874_v33 = vld [vmem:[#allocation8 + $0x68] sm:$0xff]  ;;  %v4873_v10 = vld [vmem:[#allocation8 + $0x60] sm:$0xff]  ;;  %v5080_v13 = vmax.f32 %v5012_v55, %v5046_v50 }
 0x325   : > { %v4687_v63 = vpop.f32.mrf.mxu0 }
 0x326   : > { %4853 = vst.msk [vmem:[#allocation8 + $0xf8] sm:$0xff] %vm4821_vm4, %v4816_v31  ;;  %v4815_v5 = vmax.f32 %v4779_v47, 0.0  ;;  %v4782_v49 = vadd.f32 %v16856_v57, %v4739_v29  ;;  %v4738_v54 = vadd.f32 %v4687_v63, %v4308_v24  ;;  %v5011_v24 = vmax.f32 %v4875_v44, %v4909_v40  ;;  %v4904_v40 = vld [vmem:[#allocation8 + $0x49] sm:$0xff] }
 0x327   : > { %v13897_v9 = vpop.f32.mrf.mxu0  ;;  %v5044_v31 = vmax.f32 %v4942_v59, %v4976_v0  ;;  %v4887_v26 = vld [vmem:[#allocation8 + $0xd0] sm:$0xff] }
 0x328   : > { %4852 = vst.msk [vmem:[#allocation8 + $0xf0] sm:$0xff] %vm4821_vm4, %v4815_v5  ;;  %v4818_v7 = vmax.f32 %v4782_v49, 0.0  ;;  %v4781_v58 = vadd.f32 %v16856_v57, %v4738_v54  ;;  %v4741_v56 = vadd.f32 %v13897_v9, %v4311_v32  ;;  %v4906_v5 = vld [vmem:[#allocation8 + $0x59] sm:$0xff]  ;;  %v4940_v49 = vld [vmem:[#allocation8 + $0x6a] sm:$0xff]  ;;  %v17083_v9 = vld [vmem:[#allocation8 + $0x62] sm:$0xff] }
 0x329   : > { %v4697_v52 = vpop.f32.mrf.mxu0  ;;  %v4890_v34 = vld [vmem:[#allocation8 + $0xe8] sm:$0xff] }
 0x32a   : > { %4855 = vst.msk [vmem:[#allocation8 + $0x108] sm:$0xff] %vm4821_vm4, %v4818_v7  ;;  %v4817_v35 = vmax.f32 %v4781_v58, 0.0  ;;  %v4784_v45 = vadd.f32 %v16856_v57, %v4741_v56  ;;  %v4740_v51 = vadd.f32 %v4697_v52, %v4310_v21  ;;  %v4974_v54 = vld [vmem:[#allocation8 + $0x6b] sm:$0xff]  ;;  %v5079_v21 = vmax.f32 %v5011_v24, %v5045_v60  ;;  %v4902_v24 = vld [vmem:[#allocation8 + $0x39] sm:$0xff] }
 0x32b   : > { %v4889_v2 = vld [vmem:[#allocation8 + $0xe0] sm:$0xff]  ;;  %v5010_v7 = vmax.f32 %v4874_v33, %v4908_v30  ;;  %v5043_v58 = vmax.f32 %v17081_v19, %v4975_v48  ;;  %v4987_v30 = vld [vmem:[#allocation8 + $0xd3] sm:$0xff]  ;;  %v4886_v19 = vld [vmem:[#allocation8 + $0xc8] sm:$0xff] }
 0x32c   : > { %4854 = vst.msk [vmem:[#allocation8 + $0x100] sm:$0xff] %vm4821_vm4, %v4817_v35  ;;  %v4820_v18 = vmax.f32 %v4784_v45, 0.0  ;;  %v4783_v36 = vadd.f32 %v16856_v57, %v4740_v51  ;;  %v4923_v47 = vld [vmem:[#allocation8 + $0xe1] sm:$0xff]  ;;  %v4922_v56 = vld [vmem:[#allocation8 + $0xd9] sm:$0xff] }
 0x32d   : > { %v4892_v8 = vld [vmem:[#allocation8 + $0xf8] sm:$0xff]  ;;  %v4955_v52 = vld [vmem:[#allocation8 + $0xe2] sm:$0xff]  ;;  %v5025_v51 = vmax.f32 %v4889_v2, %v4923_v47  ;;  %v5078_v38 = vmax.f32 %v5010_v7, %v5044_v31  ;;  %v4952_v2 = vld [vmem:[#allocation8 + $0xca] sm:$0xff] }
 0x32e   : > { %4858 = vst.msk [vmem:[#allocation8 + $0x118] sm:$0x3f] %vm4857_vm5, %v4820_v18  ;;  %v4819_v28 = vmax.f32 %v4783_v36, 0.0  ;;  %v4989_v35 = vld [vmem:[#allocation8 + $0xe3] sm:$0xff]  ;;  %v4888_v18 = vld [vmem:[#allocation8 + $0xd8] sm:$0xff]  ;;  %v4970_v47 = vld [vmem:[#allocation8 + $0x4b] sm:$0xff] }
 0x32f   : > { %v4891_v20 = vld [vmem:[#allocation8 + $0xf0] sm:$0xff]  ;;  %v4988_v11 = vld [vmem:[#allocation8 + $0xdb] sm:$0xff]  ;;  %v5057_v44 = vmax.f32 %v4955_v52, %v4989_v35  ;;  %v4870_v60 = vld [vmem:[#allocation8 + $0x48] sm:$0xff] }
 0x330   : > { %4856 = vst.msk [vmem:[#allocation8 + $0x110] sm:$0xff] %vm4821_vm4, %v4819_v28  ;;  %v4925_v41 = vld [vmem:[#allocation8 + $0xf1] sm:$0xff]  ;;  %v4924_v27 = vld [vmem:[#allocation8 + $0xe9] sm:$0xff]  ;;  %v4919_v33 = vld [vmem:[#allocation8 + $0xc1] sm:$0xff] }
 0x331   : > { %v4957_v12 = vld [vmem:[#allocation8 + $0xf2] sm:$0xff]  ;;  %v5027_v25 = vmax.f32 %v4891_v20, %v4925_v41  ;;  %v4956_v29 = vld [vmem:[#allocation8 + $0xea] sm:$0xff]  ;;  %v5026_v63 = vmax.f32 %v4890_v34, %v4924_v27  ;;  %v5024_v41 = vmax.f32 %v4888_v18, %v4922_v56  ;;  %v4885_v27 = vld [vmem:[#allocation8 + $0xc0] sm:$0xff]  ;;  %v5007_v34 = vmax.f32 %v4871_v42, %v4905_v62 }
 0x332   : > { %v4991_v53 = vld [vmem:[#allocation8 + $0xf3] sm:$0xff]  ;;  %v4990_v17 = vld [vmem:[#allocation8 + $0xeb] sm:$0xff]  ;;  %v4984_v42 = vld [vmem:[#allocation8 + $0xbb] sm:$0xff] }
 0x333   : > { %v4926_v46 = vld [vmem:[#allocation8 + $0xf9] sm:$0xff]  ;;  %v4959_v61 = vld [vmem:[#allocation8 + $0x102] sm:$0xff]  ;;  %v5059_v32 = vmax.f32 %v4957_v12, %v4991_v53  ;;  %v5058_v36 = vmax.f32 %v4956_v29, %v4990_v17  ;;  %v4936_v31 = vld [vmem:[#allocation8 + $0x4a] sm:$0xff] }
 0x334   : > { %v4993_v4 = vld [vmem:[#allocation8 + $0x103] sm:$0xff]  ;;  %v4958_v1 = vld [vmem:[#allocation8 + $0xfa] sm:$0xff]  ;;  %v5028_v15 = vmax.f32 %v4892_v8, %v4926_v46  ;;  %v5009_v8 = vmax.f32 %v4873_v10, %v4907_v37  ;;  %v5042_v46 = vmax.f32 %v4940_v49, %v4974_v54  ;;  %v4986_v10 = vld [vmem:[#allocation8 + $0xcb] sm:$0xff] }
 0x335   : > { %v4992_v16 = vld [vmem:[#allocation8 + $0xfb] sm:$0xff]  ;;  %v5061_v6 = vmax.f32 %v4959_v61, %v4993_v4  ;;  %v4921_v61 = vld [vmem:[#allocation8 + $0xd1] sm:$0xff]  ;;  %v5093_v20 = vmax.f32 %v5025_v51, %v5059_v32  ;;  %v5092_v59 = vmax.f32 %v5024_v41, %v5058_v36  ;;  %v4985_v49 = vld [vmem:[#allocation8 + $0xc3] sm:$0xff]  ;;  %v5054_v7 = vmax.f32 %v4952_v2, %v4986_v10 }
 0x336   : > { %v5060_v39 = vmax.f32 %v4958_v1, %v4992_v16  ;;  %v4872_v28 = vld [vmem:[#allocation8 + $0x58] sm:$0xff]  ;;  %v5077_v50 = vmax.f32 %v5009_v8, %v5043_v58  ;;  %v5023_v0 = vmax.f32 %v4887_v26, %v4921_v61  ;;  %v4869_v12 = vld [vmem:[#allocation8 + $0x40] sm:$0xff]  ;;  %v4883_v56 = vld [vmem:[#allocation8 + $0xb0] sm:$0xff]  ;;  %v5038_v36 = vmax.f32 %v4936_v31, %v4970_v47 }
 0x337   : > { %v4960_v57 = vld [vmem:[#allocation8 + $0x10a] sm:$0xff]  ;;  %v5095_v43 = vmax.f32 %v5027_v25, %v5061_v6  ;;  %v4954_v4 = vld [vmem:[#allocation8 + $0xda] sm:$0xff]  ;;  %v5008_v16 = vmax.f32 %v4872_v28, %v4906_v5  ;;  %v4953_v6 = vld [vmem:[#allocation8 + $0xd2] sm:$0xff] }
 0x338   : > { %v4994_v23 = vld [vmem:[#allocation8 + $0x10b] sm:$0xff]  ;;  %v5094_v45 = vmax.f32 %v5026_v63, %v5060_v39  ;;  %v4938_v1 = vld [vmem:[#allocation8 + $0x5a] sm:$0xff]  ;;  %v5056_v55 = vmax.f32 %v4954_v4, %v4988_v11  ;;  %v5091_v37 = vmax.f32 %v5023_v0, %v5057_v44  ;;  %v17089_v29 = vld [vmem:[#allocation8 + $0x42] sm:$0xff] }
 0x339   : > { %v5062_v14 = vmax.f32 %v4960_v57, %v4994_v23  ;;  %v4972_v57 = vld [vmem:[#allocation8 + $0x5b] sm:$0xff]  ;;  %v17086_v23 = vld [vmem:[#allocation8 + $0x52] sm:$0xff]  ;;  %v5076_v25 = vmax.f32 %v5008_v16, %v5042_v46  ;;  %v4900_v8 = vld [vmem:[#allocation8 + $0x29] sm:$0xff] }
 0x33a   : > { %v4903_v53 = vld [vmem:[#allocation8 + $0x41] sm:$0xff]  ;;  %v5040_v39 = vmax.f32 %v4938_v1, %v4972_v57  ;;  %v4918_v32 = vld [vmem:[#allocation8 + $0xb9] sm:$0xff]  ;;  %v4867_v52 = vld [vmem:[#allocation8 + $0x30] sm:$0xff] }
 0x33b   : > { %v5096_v22 = vmax.f32 %v5028_v15, %v5062_v14  ;;  %v5041_v15 = vmax.f32 %v17083_v9, %v4973_v3  ;;  %v4920_v14 = vld [vmem:[#allocation8 + $0xc9] sm:$0xff]  ;;  %v5021_v9 = vmax.f32 %v4885_v27, %v4919_v33  ;;  %v4868_v58 = vld [vmem:[#allocation8 + $0x38] sm:$0xff]  ;;  %v5005_v18 = vmax.f32 %v4869_v12, %v4903_v53 }
 0x33c   : > { %v5022_v48 = vmax.f32 %v4886_v19, %v4920_v14  ;;  %v4951_v5 = vld [vmem:[#allocation8 + $0xc2] sm:$0xff]  ;;  %v4901_v35 = vld [vmem:[#allocation8 + $0x31] sm:$0xff]  ;;  %v4950_v26 = vld [vmem:[#allocation8 + $0xba] sm:$0xff] }
 0x33d   : > { %12913 = vmatprep.subr.mxu1 %v5096_v22  ;;  %v4971_v22 = vld [vmem:[#allocation8 + $0x53] sm:$0xff]  ;;  %v5075_v17 = vmax.f32 %v5007_v34, %v5041_v15  ;;  %v4968_v61 = vld [vmem:[#allocation8 + $0x3b] sm:$0xff]  ;;  %v4916_v44 = vld [vmem:[#allocation8 + $0xa9] sm:$0xff]  ;;  %v5052_v16 = vmax.f32 %v4950_v26, %v4984_v42  ;;  %v5003_v19 = vmax.f32 %v4867_v52, %v4901_v35 }
 0x33e   : > { %12914 = vmatpush3.msra.mxu1 %v5080_v13  ;;  %v5055_v13 = vmax.f32 %v4953_v6, %v4987_v30  ;;  %v5039_v63 = vmax.f32 %v17086_v23, %v4971_v22  ;;  %v5090_v54 = vmax.f32 %v5022_v48, %v5056_v55  ;;  %v4917_v28 = vld [vmem:[#allocation8 + $0xb1] sm:$0xff]  ;;  %v4934_v46 = vld [vmem:[#allocation8 + $0x3a] sm:$0xff]  ;;  %v4866_v15 = vld [vmem:[#allocation8 + $0x28] sm:$0xff] }
 0x33f   : > { %12915 = vmatprep.subr.mxu1 %v5095_v43  ;;  %v5006_v43 = vmax.f32 %v4870_v60, %v4904_v40  ;;  %v17092_v4 = vld [vmem:[#allocation8 + $0x32] sm:$0xff]  ;;  %v5019_v23 = vmax.f32 %v4883_v56, %v4917_v28  ;;  %v4881_v14 = vld [vmem:[#allocation8 + $0xa0] sm:$0xff]  ;;  %v5036_v55 = vmax.f32 %v4934_v46, %v4968_v61  ;;  %v4948_v27 = vld [vmem:[#allocation8 + $0xaa] sm:$0xff] }
 0x340   : > { %12916 = vmatpush3.msra.mxu1 %v5079_v21  ;;  %v4884_v21 = vld [vmem:[#allocation8 + $0xb8] sm:$0xff]  ;;  %v5089_v62 = vmax.f32 %v5021_v9, %v5055_v13  ;;  %v5073_v11 = vmax.f32 %v5005_v18, %v5039_v63  ;;  %v4865_v6 = vld [vmem:[#allocation8 + $0x20] sm:$0xff]  ;;  %v4982_v12 = vld [vmem:[#allocation8 + $0xab] sm:$0xff] }
 0x341   : > { %12917 = vmatprep.subr.mxu1 %v5094_v45  ;;  %v4969_v45 = vld [vmem:[#allocation8 + $0x43] sm:$0xff]  ;;  %v5074_v51 = vmax.f32 %v5006_v43, %v5040_v39  ;;  %v5020_v3 = vmax.f32 %v4884_v21, %v4918_v32  ;;  %v4949_v40 = vld [vmem:[#allocation8 + $0xb2] sm:$0xff]  ;;  %v5050_v43 = vmax.f32 %v4948_v27, %v4982_v12  ;;  %v4980_v56 = vld [vmem:[#allocation8 + $0x9b] sm:$0xff] }
 0x342   : > { %12918 = vmatpush3.msra.mxu1 %v5078_v38  ;;  %v5053_v38 = vmax.f32 %v4951_v5, %v4985_v49  ;;  %v5037_v41 = vmax.f32 %v17089_v29, %v4969_v45  ;;  %v4983_v1 = vld [vmem:[#allocation8 + $0xb3] sm:$0xff]  ;;  %v4899_v30 = vld [vmem:[#allocation8 + $0x21] sm:$0xff]  ;;  %v4932_v39 = vld [vmem:[#allocation8 + $0x2a] sm:$0xff] }
 0x343   : > { %12919 = vmatprep.subr.mxu1 %v5093_v20  ;;  %v5004_v20 = vmax.f32 %v4868_v58, %v4902_v24  ;;  %v5088_v57 = vmax.f32 %v5020_v3, %v5054_v7  ;;  %v4915_v60 = vld [vmem:[#allocation8 + $0xa1] sm:$0xff]  ;;  %v4898_v34 = vld [vmem:[#allocation8 + $0x19] sm:$0xff]  ;;  %v4966_v33 = vld [vmem:[#allocation8 + $0x2b] sm:$0xff]  ;;  %v5001_v9 = vmax.f32 %v4865_v6, %v4899_v30 }
 0x344   : > { %12920 = vmatpush3.msra.mxu1 %v5077_v50  ;;  %v4882_v50 = vld [vmem:[#allocation8 + $0xa8] sm:$0xff]  ;;  %v5087_v53 = vmax.f32 %v5019_v23, %v5053_v38  ;;  %v5071_v10 = vmax.f32 %v5003_v19, %v5037_v41  ;;  %v4914_v13 = vld [vmem:[#allocation8 + $0x99] sm:$0xff]  ;;  %v5017_v29 = vmax.f32 %v4881_v14, %v4915_v60  ;;  %v4879_v32 = vld [vmem:[#allocation8 + $0x90] sm:$0xff]  ;;  %v5034_v21 = vmax.f32 %v4932_v39, %v4966_v33 }
 0x345   : > { %12921 = vmatprep.subr.mxu1 %v5092_v59  ;;  %v4967_v59 = vld [vmem:[#allocation8 + $0x33] sm:$0xff]  ;;  %v5072_v0 = vmax.f32 %v5004_v20, %v5038_v36  ;;  %v5018_v22 = vmax.f32 %v4882_v50, %v4916_v44  ;;  %v17095_v2 = vld [vmem:[#allocation8 + $0x22] sm:$0xff] }
 0x346   : > { %12922 = vmatpush3.msra.mxu1 %v5076_v25  ;;  %v5051_v25 = vmax.f32 %v4949_v40, %v4983_v1  ;;  %v5035_v48 = vmax.f32 %v17092_v4, %v4967_v59  ;;  %v4947_v24 = vld [vmem:[#allocation8 + $0xa2] sm:$0xff]  ;;  %v4864_v63 = vld [vmem:[#allocation8 + $0x18] sm:$0xff]  ;;  %v4863_v5 = vld [vmem:[#allocation8 + $0x10] sm:$0xff] }
 0x347   : > { %12923 = vmatprep.subr.mxu1 %v5091_v37  ;;  %v5002_v37 = vmax.f32 %v4866_v15, %v4900_v8  ;;  %v4981_v31 = vld [vmem:[#allocation8 + $0xa3] sm:$0xff]  ;;  %v5086_v47 = vmax.f32 %v5018_v22, %v5052_v16  ;;  %v4913_v7 = vld [vmem:[#allocation8 + $0x91] sm:$0xff]  ;;  %v4946_v58 = vld [vmem:[#allocation8 + $0x9a] sm:$0xff]  ;;  %v5000_v26 = vmax.f32 %v4864_v63, %v4898_v34 }
 0x348   : > { %12924 = vmatpush3.msra.mxu1 %v5075_v17  ;;  %v4880_v17 = vld [vmem:[#allocation8 + $0x98] sm:$0xff]  ;;  %v4965_v49 = vld [vmem:[#allocation8 + $0x23] sm:$0xff]  ;;  %v5085_v52 = vmax.f32 %v5017_v29, %v5051_v25  ;;  %v5049_v45 = vmax.f32 %v4947_v24, %v4981_v31  ;;  %v5069_v28 = vmax.f32 %v5001_v9, %v5035_v48  ;;  %v5015_v46 = vmax.f32 %v4879_v32, %v4913_v7  ;;  %v5099_v24 = vld [vmem:[%s19004_s15] sm:$0xff] }
 0x349   : > { %12925 = vmatprep.subr.mxu1 %v5090_v54  ;;  %v5070_v54 = vmax.f32 %v5002_v37, %v5036_v55  ;;  %v5016_v35 = vmax.f32 %v4880_v17, %v4914_v13  ;;  %v4930_v18 = vld [vmem:[#allocation8 + $0x1a] sm:$0xff]  ;;  %v5033_v42 = vmax.f32 %v17095_v2, %v4965_v49  ;;  %v4945_v3 = vld [vmem:[#allocation8 + $0x92] sm:$0xff]  ;;  %v5048_v61 = vmax.f32 %v4946_v58, %v4980_v56  ;;  %v4862_v4 = vld [vmem:[#allocation8 + $0x8] sm:$0xff] }
 0x34a   : > { %12926 = vmatpush3.msra.mxu1 %v5074_v51  ;;  %v4897_v51 = vld [vmem:[#allocation8 + $0x11] sm:$0xff]  ;;  %v4964_v36 = vld [vmem:[#allocation8 + $0x1b] sm:$0xff]  ;;  %v5068_v40 = vmax.f32 %v5000_v26, %v5034_v21  ;;  %v5083_v15 = vmax.f32 %v5015_v46, %v5049_v45  ;;  %v4894_v27 = vld [vmem:[#allocation8 + $0x108] sm:$0xf] }
 0x34b   : > { %12927 = vmatprep.subr.mxu1 %v5089_v62  ;;  %v4912_v62 = vld [vmem:[#allocation8 + $0x89] sm:$0xff]  ;;  %v4979_v38 = vld [vmem:[#allocation8 + $0x93] sm:$0xff]  ;;  %v5084_v8 = vmax.f32 %v5016_v35, %v5050_v43  ;;  %v4861_v20 = vld [vmem:[#allocation8] sm:$0xff]  ;;  %v4999_v1 = vmax.f32 %v4863_v5, %v4897_v51  ;;  %v5032_v23 = vmax.f32 %v4930_v18, %v4964_v36 }
 0x34c   : > { %12928 = vmatpush3.msra.mxu1 %v5073_v11  ;;  %v4896_v11 = vld [vmem:[#allocation8 + $0x9] sm:$0xff]  ;;  %v4929_v41 = vld [vmem:[#allocation8 + $0x12] sm:$0xff]  ;;  %v4877_v50 = vld [vmem:[#allocation8 + $0x80] sm:$0xff]  ;;  %v5047_v6 = vmax.f32 %v4945_v3, %v4979_v38 }
 0x34d   : > { %12929 = vmatprep.subr.mxu1 %v5088_v57  ;;  %v4963_v44 = vld [vmem:[#allocation8 + $0x13] sm:$0xff]  ;;  %v4878_v57 = vld [vmem:[#allocation8 + $0x88] sm:$0xff]  ;;  %v5067_v19 = vmax.f32 %v4999_v1, %v5033_v42  ;;  %v4998_v55 = vmax.f32 %v4862_v4, %v4896_v11  ;;  %v4893_v37 = vld [vmem:[#allocation8 + $0x100] sm:$0xff] }
 0x34e   : > { %12930 = vmatpush3.msra.mxu1 %v5072_v0  ;;  %v4911_v16 = vld [vmem:[#allocation8 + $0x81] sm:$0xff]  ;;  %v5014_v14 = vmax.f32 %v4878_v57, %v4912_v62  ;;  %v4962_v59 = vld [vmem:[#allocation8 + $0x11a] sm:$0xf]  ;;  %v5031_v60 = vmax.f32 %v4929_v41, %v4963_v44  ;;  %v4928_v22 = vld [vmem:[#allocation8 + $0x109] sm:$0xf] }
 0x34f   : > { %12931 = vmatprep.subr.mxu1 %v5087_v53  ;;  %v4895_v30 = vld [vmem:[#allocation8 + $0x1] sm:$0xff]  ;;  %v4996_v0 = vld [vmem:[#allocation8 + $0x11b] sm:$0xf]  ;;  %v5013_v53 = vmax.f32 %v4877_v50, %v4911_v16  ;;  %v4961_v25 = vld [vmem:[#allocation8 + $0x112] sm:$0xff]  ;;  %v5066_v39 = vmax.f32 %v4998_v55, %v5032_v23  ;;  %v5030_v31 = vmax.f32 %v4894_v27, %v4928_v22 }
 0x350   : > { %12932 = vmatpush3.msra.mxu1 %v5071_v10  ;;  %v5082_v12 = vmax.f32 %v5014_v14, %v5048_v61  ;;  %v4995_v34 = vld [vmem:[#allocation8 + $0x113] sm:$0xff]  ;;  %v4997_v33 = vmax.f32 %v4861_v20, %v4895_v30  ;;  %v5064_v2 = vmax.f32 %v4962_v59, %v4996_v0  ;;  %v4927_v48 = vld [vmem:[#allocation8 + $0x101] sm:$0xff] }
 0x351   : > { %12933 = vmatprep.subr.mxu1 %v5086_v47  ;;  %v5081_v10 = vmax.f32 %v5013_v53, %v5047_v6  ;;  %v5063_v47 = vmax.f32 %v4961_v25, %v4995_v34  ;;  %v5103_v29 = vld [vmem:[%s19004_s15 + $0x20] sm:$0xff]  ;;  %v5029_v43 = vmax.f32 %v4893_v37, %v4927_v48  ;;  %v17105_v63 = vld [vmem:[#allocation5] sm:$0xff]  ;;  %v5109_v9 = vld [vmem:[%s19004_s15 + $0x50] sm:$0xff] }
 0x352   : > { %12934 = vmatpush3.msra.mxu1 %v5070_v54  ;;  %v5065_v13 = vmax.f32 %v4997_v33, %v5031_v60  ;;  %v5098_v17 = vmax.f32 %v5030_v31, %v5064_v2  ;;  %v5102_v5 = vld [vmem:[%s19004_s15 + $0x18] sm:$0xff]  ;;  %v5105_v54 = vld [vmem:[%s19004_s15 + $0x30] sm:$0xff]  ;;  %v5108_v21 = vld [vmem:[%s19004_s15 + $0x48] sm:$0xff]  ;;  %6986 = vst.msk [vmem:[#allocation9 + $0x4e] sm:$0x3] %vm6985_vm9, %v17105_v63 }
 0x353   : > { %12935 = vmatprep.subr.mxu1 %v5085_v52  ;;  %v5097_v32 = vmax.f32 %v5029_v43, %v5063_v47  ;;  %v5106_v49 = vld [vmem:[%s19004_s15 + $0x38] sm:$0xff]  ;;  %v5112_v7 = vld [vmem:[%s19004_s15 + $0x68] sm:$0xff]  ;;  %v5111_v58 = vld [vmem:[%s19004_s15 + $0x60] sm:$0xff] }
 0x354   : > { %12936 = vmatpush3.msra.mxu1 %v5069_v28  ;;  %v5115_v56 = vld [vmem:[%s19004_s15 + $0x80] sm:$0xff]  ;;  %v5114_v52 = vld [vmem:[%s19004_s15 + $0x78] sm:$0xff]  ;;  %v5117_v45 = vld [vmem:[%s19004_s15 + $0x90] sm:$0xff] }
 0x355   : > { %12937 = vmatprep.subr.mxu1 %v5084_v8  ;;  %v5118_v35 = vld [vmem:[%s19004_s15 + $0x98] sm:$0xff]  ;;  %v5121_v51 = vld [vmem:[%s19004_s15 + $0xb0] sm:$0xff]  ;;  %v5120_v18 = vld [vmem:[%s19004_s15 + $0xa8] sm:$0xff] }
 0x356   : > { %12938 = vmatpush3.msra.mxu1 %v5068_v40  ;;  %v5124_v36 = vld [vmem:[%s19004_s15 + $0xc8] sm:$0xff]  ;;  %v5123_v28 = vld [vmem:[%s19004_s15 + $0xc0] sm:$0xff]  ;;  %v5126_v42 = vld [vmem:[%s19004_s15 + $0xd8] sm:$0xff] }
 0x357   : > { %12939 = vmatprep.subr.mxu1 %v5083_v15  ;;  %v5127_v26 = vld [vmem:[%s19004_s15 + $0xe0] sm:$0xff]  ;;  %v5130_v62 = vld [vmem:[%s19004_s15 + $0xf8] sm:$0xff]  ;;  %v5129_v3 = vld [vmem:[%s19004_s15 + $0xf0] sm:$0xff] }
 0x358   : > { %12940 = vmatpush3.msra.mxu1 %v5067_v19  ;;  %v5133_v38 = vld [vmem:[%s19004_s15 + $0x110] sm:$0xff]  ;;  %v5132_v8 = vld [vmem:[%s19004_s15 + $0x108] sm:$0xff]  ;;  %v5135_v61 = vld [vmem:[%s19004_s15 + $0x120] sm:$0xf] }
 0x359   : > { %12941 = vmatprep.subr.mxu1 %v5082_v12  ;;  %v5136_v46 = vld [vmem:[%s19004_s15 + $0x128] sm:$0xf]  ;;  %v5101_v4 = vld [vmem:[%s19004_s15 + $0x10] sm:$0xff]  ;;  %v5107_v20 = vld [vmem:[%s19004_s15 + $0x40] sm:$0xff] }
 0x35a   : > { %12942 = vmatpush3.msra.mxu1 %v5066_v39  ;;  %v5104_v11 = vld [vmem:[%s19004_s15 + $0x28] sm:$0xff]  ;;  %v5110_v41 = vld [vmem:[%s19004_s15 + $0x58] sm:$0xff]  ;;  %v5113_v44 = vld [vmem:[%s19004_s15 + $0x70] sm:$0xff] }
 0x35b   : > { %12943 = vmatprep.subr.mxu1 %v5081_v10  ;;  %v5116_v40 = vld [vmem:[%s19004_s15 + $0x88] sm:$0xff]  ;;  %v5119_v1 = vld [vmem:[%s19004_s15 + $0xa0] sm:$0xff]  ;;  %v5122_v57 = vld [vmem:[%s19004_s15 + $0xb8] sm:$0xff] }
 0x35c   : > { %12944 = vmatpush3.msra.mxu1 %v5065_v13  ;;  %v5125_v23 = vld [vmem:[%s19004_s15 + $0xd0] sm:$0xff]  ;;  %v5128_v50 = vld [vmem:[%s19004_s15 + $0xe8] sm:$0xff]  ;;  %v5131_v16 = vld [vmem:[%s19004_s15 + $0x100] sm:$0xff] }
 0x35d   : > { %5246 = vmatmul.mubr.f32.vlgmr.msra.gmra.mxu1 %v5099_v24  ;;  %13898 = vmatprep.subr.mxu1 %v17105_v63  ;;  %v5134_v15 = vld [vmem:[%s19004_s15 + $0x118] sm:$0xff]  ;;  %v5137_v14 = vld [vmem:[%s19004_s15 + $0x130] sm:$0xf]  ;;  %v5782_v30 = vld [vmem:[#allocation16 + $0x28] sm:$0xff] }
 0x35e   : > { %13899 = vmatpush3.msk.msra.mxu1 %vm1127_vm1, %v5098_v17  ;;  %5250 = vmatprep.mubr.f32.mxu1 %v5103_v29  ;;  %v5479_v6 = vld [vmem:[#allocation16 + $0x18] sm:$0xff]  ;;  %v5478_v59 = vld [vmem:[#allocation16 + $0x10] sm:$0xff]  ;;  %v5781_v0 = vld [vmem:[#allocation16 + $0x20] sm:$0xff] }
 0x35f   : > { %13900 = vmatprep.subr.mxu1 %v17105_v63  ;;  %13941 = vmatprep.subr.mxu0 %v5479_v6  ;;  %v17257_v19 = vld [vmem:[#allocation16 + $0x8] sm:$0xff] }
 0x360   : > { %13901 = vmatpush3.msra.mxu1 %v5097_v32  ;;  %13942 = vmatpush3.msra.mxu0 %v5479_v6  ;;  %v17259_v55 = vld [vmem:[#allocation16 + $0x48] sm:$0xff] }
 0x361   : > { %5251 = vmatmul.mubr.f32.gmra.mxu1 %v5102_v5  ;;  %13979 = vmatprep.subr.mxu1 %v5782_v30 }
 0x362   : > { %5255 = vmatprep.mubr.f32.mxu1 %v5106_v49  ;;  %13943 = vmatprep.subr.mxu0 %v5478_v59 }
 0x363   : > { %13944 = vmatpush3.msra.mxu0 %v5478_v59 }
 0x364   : > { %13960 = vmatprep.subr.mxu0 %v17257_v19 }
 0x365   : > { %5256 = vmatmul.mubr.f32.gmra.mxu1 %v5105_v54 }
 0x366   : > { %5260 = vmatprep.mubr.f32.mxu1 %v5109_v9 }
 0x369   : > { %5261 = vmatmul.mubr.f32.gmra.mxu1 %v5108_v21 }
 0x36a   : > { %5265 = vmatprep.mubr.f32.mxu1 %v5112_v7 }
 0x36d   : > { %5266 = vmatmul.mubr.f32.gmra.mxu1 %v5111_v58 }
 0x36e   : > { %5270 = vmatprep.mubr.f32.mxu1 %v5115_v56 }
 0x371   : > { %5271 = vmatmul.mubr.f32.gmra.mxu1 %v5114_v52 }
 0x372   : > { %5275 = vmatprep.mubr.f32.mxu1 %v5118_v35 }
 0x375   : > { %5276 = vmatmul.mubr.f32.gmra.mxu1 %v5117_v45 }
 0x376   : > { %5280 = vmatprep.mubr.f32.mxu1 %v5121_v51 }
 0x379   : > { %5281 = vmatmul.mubr.f32.gmra.mxu1 %v5120_v18 }
 0x37a   : > { %5285 = vmatprep.mubr.f32.mxu1 %v5124_v36 }
 0x37d   : > { %5286 = vmatmul.mubr.f32.gmra.mxu1 %v5123_v28 }
 0x37e   : > { %5290 = vmatprep.mubr.f32.mxu1 %v5127_v26 }
 0x381   : > { %5291 = vmatmul.mubr.f32.gmra.mxu1 %v5126_v42 }
 0x382   : > { %5295 = vmatprep.mubr.f32.mxu1 %v5130_v62 }
 0x385   : > { %5296 = vmatmul.mubr.f32.gmra.mxu1 %v5129_v3 }
 0x386   : > { %5300 = vmatprep.mubr.f32.mxu1 %v5133_v38 }
 0x389   : > { %5301 = vmatmul.mubr.f32.gmra.mxu1 %v5132_v8 }
 0x38a   : > { %5305 = vmatprep.mubr.f32.mxu1 %v5136_v46 }
 0x38d   : > { %5306 = vmatmul.mubr.f32.gmra.mxu1 %v5135_v61 }
 0x38e   : > { %13902 = vmatprep.mubr.msk.f32.mxu1 %vm15351_vm6, %v17105_v63 }
 0x391   : > { %13903 = vmatmul.mubr.msk.f32.vlgmr.msra.gmra.mxu1 %vm5138_vm7, %v5101_v4 }
 0x392   : > { %13905 = vmatprep.mubr.msk.f32.mxu1 %vm15351_vm6, %v17105_v63  ;;  %13980 = vmatpush3.msra.mxu1 %v5782_v30 }
 0x393   : > { %13981 = vmatprep.subr.mxu1 %v5781_v0 }
 0x394   : > { %13982 = vmatpush3.msra.mxu1 %v5781_v0 }
 0x395   : > { %13906 = vmatmul.mubr.msk.f32.gmra.mxu1 %vm5138_vm7, %v5104_v11  ;;  %14017 = vmatprep.subr.mxu1 %v17259_v55 }
 0x396   : > { %13908 = vmatprep.mubr.msk.f32.mxu1 %vm15351_vm6, %v17105_v63 }
 0x399   : > { %13909 = vmatmul.mubr.msk.f32.gmra.mxu1 %vm5138_vm7, %v5107_v20 }
 0x39a   : > { %13911 = vmatprep.mubr.msk.f32.mxu1 %vm15351_vm6, %v17105_v63 }
 0x39d   : > { %13912 = vmatmul.mubr.msk.f32.gmra.mxu1 %vm5138_vm7, %v5110_v41  ;;  %v5465_v41 = vld [vmem:[#allocation16] sm:$0xff] }
 0x39e   : > { %13914 = vmatprep.mubr.msk.f32.mxu1 %vm15351_vm6, %v17105_v63 }
 0x3a1   : > { %13915 = vmatmul.mubr.msk.f32.gmra.mxu1 %vm5138_vm7, %v5113_v44 }
 0x3a2   : > { %13917 = vmatprep.mubr.msk.f32.mxu1 %vm15351_vm6, %v17105_v63 }
 0x3a5   : > { %13918 = vmatmul.mubr.msk.f32.gmra.mxu1 %vm5138_vm7, %v5116_v40 }
 0x3a6   : > { %13920 = vmatprep.mubr.msk.f32.mxu1 %vm15351_vm6, %v17105_v63 }
 0x3a9   : > { %13921 = vmatmul.mubr.msk.f32.gmra.mxu1 %vm5138_vm7, %v5119_v1 }
 0x3aa   : > { %13923 = vmatprep.mubr.msk.f32.mxu1 %vm15351_vm6, %v17105_v63 }
 0x3ad   : > { %13924 = vmatmul.mubr.msk.f32.gmra.mxu1 %vm5138_vm7, %v5122_v57  ;;  %v6117_v57 = vld [vmem:[#allocation16 + $0x40] sm:$0xff] }
 0x3ae   : > { %13926 = vmatprep.mubr.msk.f32.mxu1 %vm15351_vm6, %v17105_v63 }
 0x3b1   : > { %13927 = vmatmul.mubr.msk.f32.gmra.mxu1 %vm5138_vm7, %v5125_v23 }
 0x3b2   : > { %13929 = vmatprep.mubr.msk.f32.mxu1 %vm15351_vm6, %v17105_v63 }
 0x3b5   : > { %13930 = vmatmul.mubr.msk.f32.gmra.mxu1 %vm5138_vm7, %v5128_v50 }
 0x3b6   : > { %13932 = vmatprep.mubr.msk.f32.mxu1 %vm15351_vm6, %v17105_v63 }
 0x3b9   : > { %13933 = vmatmul.mubr.msk.f32.gmra.mxu1 %vm5138_vm7, %v5131_v16 }
 0x3ba   : > { %13935 = vmatprep.mubr.msk.f32.mxu1 %vm15351_vm6, %v17105_v63 }
 0x3bd   : > { %13936 = vmatmul.mubr.msk.f32.gmra.mxu1 %vm5138_vm7, %v5134_v15  ;;  %v17303_v15 = vld [vmem:[#allocation16 + $0x38] sm:$0xff] }
 0x3be   : > { %13938 = vmatprep.mubr.msk.f32.mxu1 %vm15351_vm6, %v17105_v63 }
 0x3c1   : > { %13939 = vmatmul.mubr.msk.f32.gmra.mxu1 %vm5138_vm7, %v5137_v14  ;;  %v17305_v14 = vld [vmem:[#allocation16 + $0x68] sm:$0xff] }
 0x41d   : > { %v12945_v60 = vpop.f32.mrf.mxu1 }
 0x41f   : > { %v12946_v27 = vpop.f32.mrf.mxu1 }
 0x420   : > { %v12947_v7 = vadd.f32 %v12946_v27, %v12945_v60 }
 0x421   : > { %v12948_v12 = vpop.f32.mrf.mxu1 }
 0x423   : > { %v12949_v53 = vpop.f32.mrf.mxu1 }
 0x424   : > { %v12950_v35 = vadd.f32 %v12949_v53, %v12948_v12 }
 0x425   : > { %v12951_v22 = vpop.f32.mrf.mxu1 }
 0x427   : > { %v12952_v25 = vpop.f32.mrf.mxu1 }
 0x428   : > { %v12953_v36 = vadd.f32 %v12952_v25, %v12951_v22 }
 0x429   : > { %v12954_v34 = vpop.f32.mrf.mxu1 }
 0x42b   : > { %v12955_v39 = vpop.f32.mrf.mxu1 }
 0x42c   : > { %v12956_v62 = vadd.f32 %v12955_v39, %v12954_v34 }
 0x42d   : > { %v12957_v33 = vpop.f32.mrf.mxu1 }
 0x42f   : > { %v12958_v2 = vpop.f32.mrf.mxu1 }
 0x430   : > { %v12959_v4 = vadd.f32 %v12958_v2, %v12957_v33 }
 0x431   : > { %v12960_v10 = vpop.f32.mrf.mxu1 }
 0x433   : > { %v12961_v37 = vpop.f32.mrf.mxu1 }
 0x434   : > { %v12962_v23 = vadd.f32 %v12961_v37, %v12960_v10 }
 0x435   : > { %v17263_v48 = vpop.f32.mrf.mxu1 }
 0x437   : > { %v12964_v13 = vpop.f32.mrf.mxu1 }
 0x438   : > { %v12965_v0 = vadd.f32 %v12964_v13, %v17263_v48 }
 0x439   : > { %v17265_v24 = vpop.f32.mrf.mxu1 }
 0x43b   : > { %v17267_v31 = vpop.f32.mrf.mxu1 }
 0x43c   : > { %v12968_v53 = vadd.f32 %v17267_v31, %v17265_v24 }
 0x43d   : > { %v17269_v47 = vpop.f32.mrf.mxu1 }
 0x43f   : > { %v17271_v29 = vpop.f32.mrf.mxu1 }
 0x440   : > { %v12971_v2 = vadd.f32 %v17271_v29, %v17269_v47 }
 0x441   : > { %v17273_v17 = vpop.f32.mrf.mxu1 }
 0x443   : > { %v17275_v43 = vpop.f32.mrf.mxu1 }
 0x444   : > { %v12974_v31 = vadd.f32 %v17275_v43, %v17273_v17 }
 0x445   : > { %v17277_v32 = vpop.f32.mrf.mxu1 }
 0x447   : > { %v17279_v5 = vpop.f32.mrf.mxu1 }
 0x449   : > { %v17281_v49 = vpop.f32.mrf.mxu1 }
 0x44b   : > { %v17283_v54 = vpop.f32.mrf.mxu1 }
 0x44d   : > { %v17285_v9 = vpop.f32.mrf.mxu1 }
 0x44f   : > { %v17287_v21 = vpop.f32.mrf.mxu1 }
 0x451   : > { %v5377_v58 = vpop.f32.mrf.mxu1 }
 0x452   : > { %v5378_v56 = vadd.f32 %v12947_v7, %v5377_v58 }
 0x453   : > { %v13904_v52 = vpop.f32.mrf.mxu1 }
 0x454   : > { %5441 = vst.msk [vmem:[#allocation3] sm:$0xff] %vm4821_vm4, %v5378_v56  ;;  %v12977_v52 = vadd.f32 %v17279_v5, %v17277_v32 }
 0x455   : > { %v5382_v45 = vpop.f32.mrf.mxu1 }
 0x456   : > { %v5383_v51 = vadd.f32 %v12950_v35, %v5382_v45 }
 0x457   : > { %v13907_v18 = vpop.f32.mrf.mxu1 }
 0x458   : > { %5442 = vst.msk [vmem:[#allocation3 + $0x8] sm:$0xff] %vm4821_vm4, %v5383_v51  ;;  %v12980_v18 = vadd.f32 %v17283_v54, %v17281_v49 }
 0x459   : > { %v5387_v28 = vpop.f32.mrf.mxu1 }
 0x45a   : > { %v5388_v26 = vadd.f32 %v12953_v36, %v5387_v28 }
 0x45b   : > { %v13910_v42 = vpop.f32.mrf.mxu1 }
 0x45c   : > { %5443 = vst.msk [vmem:[#allocation3 + $0x10] sm:$0xff] %vm4821_vm4, %v5388_v26 }
 0x45d   : > { %v5392_v3 = vpop.f32.mrf.mxu1 }
 0x45e   : > { %v5393_v38 = vadd.f32 %v12956_v62, %v5392_v3  ;;  %v12983_v62 = vadd.f32 %v17287_v21, %v17285_v9  ;;  %v5455_v3 = vld [vmem:[#allocation3] sm:$0xff] }
 0x45f   : > { %v13913_v8 = vpop.f32.mrf.mxu1  ;;  %v5467_v46 = vld [vmem:[#allocation3 + $0x1] sm:$0xff] }
 0x460   : > { %v5770_v61 = vld [vmem:[#allocation3 + $0x2] sm:$0xff]  ;;  %5444 = vst.msk [vmem:[#allocation3 + $0x18] sm:$0xff] %vm4821_vm4, %v5393_v38  ;;  %13945 = vmatprep.mubr.msk.f32.mxu0 %vm4821_vm4, %v5467_v46 }
 0x461   : > { %13983 = vmatprep.mubr.msk.f32.mxu1 %vm4821_vm4, %v5770_v61  ;;  %v5397_v11 = vpop.f32.mrf.mxu1  ;;  %v5456_v21 = vld [vmem:[#allocation3 + $0x8] sm:$0xff] }
 0x462   : > { %v5398_v20 = vadd.f32 %v12959_v4, %v5397_v11  ;;  %v5949_v61 = vld [vmem:[#allocation16 + $0x30] sm:$0xff] }
 0x463   : > { %v13916_v44 = vpop.f32.mrf.mxu1  ;;  %v5468_v40 = vld [vmem:[#allocation3 + $0x9] sm:$0xff] }
 0x464   : > { %v17295_v1 = vld [vmem:[#allocation3 + $0xa] sm:$0xff]  ;;  %5445 = vst.msk [vmem:[#allocation3 + $0x20] sm:$0xff] %vm4821_vm4, %v5398_v20  ;;  %13946 = vmatmul.mubr.msk.f32.vlgmr.msra.gmra.mxu0 %vm4821_vm4, %v5468_v40  ;;  %v6453_v20 = vld [vmem:[#allocation16 + $0x60] sm:$0xff] }
 0x465   : > { %13984 = vmatmul.mubr.msk.f32.vlgmr.msra.gmra.mxu1 %vm4821_vm4, %v17295_v1  ;;  %v5402_v50 = vpop.f32.mrf.mxu1  ;;  %13961 = vmatpush3.msra.mxu0 %v17257_v19  ;;  %v6106_v38 = vld [vmem:[#allocation3 + $0xb] sm:$0xff] }
 0x466   : > { %14018 = vmatpush3.msra.mxu1 %v17259_v55  ;;  %v5403_v16 = vadd.f32 %v12962_v23, %v5402_v50  ;;  %13962 = vmatprep.subr.mxu0 %v5465_v41  ;;  %v5457_v4 = vld [vmem:[#allocation3 + $0x10] sm:$0xff]  ;;  %v6790_v50 = vld [vmem:[#allocation16 + $0x88] sm:$0xff] }
 0x467   : > { %14019 = vmatprep.subr.mxu1 %v6117_v57  ;;  %v13919_v6 = vpop.f32.mrf.mxu1  ;;  %v5469_v30 = vld [vmem:[#allocation3 + $0x11] sm:$0xff]  ;;  %13963 = vmatpush3.msra.mxu0 %v5465_v41 }
 0x468   : > { %v17307_v59 = vld [vmem:[#allocation3 + $0x12] sm:$0xff]  ;;  %14020 = vmatpush3.msra.mxu1 %v6117_v57  ;;  %5446 = vst.msk [vmem:[#allocation3 + $0x28] sm:$0xff] %vm4821_vm4, %v5403_v16  ;;  %13948 = vmatprep.mubr.msk.f32.mxu0 %vm4821_vm4, %v5469_v30 }
 0x469   : > { %13986 = vmatprep.mubr.msk.f32.mxu1 %vm4821_vm4, %v17307_v59  ;;  %v5407_v19 = vpop.f32.mrf.mxu1  ;;  %13998 = vmatprep.subr.mxu0 %v17303_v15  ;;  %v6107_v46 = vld [vmem:[#allocation3 + $0x13] sm:$0xff] }
 0x46a   : > { %14055 = vmatprep.subr.mxu1 %v17305_v14  ;;  %v5408_v55 = vadd.f32 %v12965_v0, %v5407_v19  ;;  %v5458_v41 = vld [vmem:[#allocation3 + $0x18] sm:$0xff]  ;;  %v6286_v40 = vld [vmem:[#allocation16 + $0x58] sm:$0xff] }
 0x46b   : > { %v13922_v60 = vpop.f32.mrf.mxu1  ;;  %v5470_v27 = vld [vmem:[#allocation3 + $0x19] sm:$0xff] }
 0x46c   : > { %v17316_v12 = vld [vmem:[#allocation3 + $0x1a] sm:$0xff]  ;;  %5447 = vst.msk [vmem:[#allocation3 + $0x30] sm:$0xff] %vm4821_vm4, %v5408_v55  ;;  %13949 = vmatmul.mubr.msk.f32.gmra.mxu0 %vm4821_vm4, %v5470_v27 }
 0x46d   : > { %13987 = vmatmul.mubr.msk.f32.gmra.mxu1 %vm4821_vm4, %v17316_v12  ;;  %v5412_v22 = vpop.f32.mrf.mxu1  ;;  %v6108_v11 = vld [vmem:[#allocation3 + $0x1b] sm:$0xff] }
 0x46e   : > { %v5413_v25 = vadd.f32 %v12968_v53, %v5412_v22  ;;  %v5459_v57 = vld [vmem:[#allocation3 + $0x20] sm:$0xff]  ;;  %v6442_v53 = vld [vmem:[#allocation3 + $0x14] sm:$0xff] }
 0x46f   : > { %v13925_v34 = vpop.f32.mrf.mxu1  ;;  %v5471_v39 = vld [vmem:[#allocation3 + $0x21] sm:$0xff] }
 0x470   : > { %v17324_v33 = vld [vmem:[#allocation3 + $0x22] sm:$0xff]  ;;  %5448 = vst.msk [vmem:[#allocation3 + $0x38] sm:$0xff] %vm4821_vm4, %v5413_v25  ;;  %13951 = vmatprep.mubr.msk.f32.mxu0 %vm4821_vm4, %v5471_v39  ;;  %v6789_v39 = vld [vmem:[#allocation16 + $0x80] sm:$0xff] }
 0x471   : > { %13989 = vmatprep.mubr.msk.f32.mxu1 %vm4821_vm4, %v17324_v33  ;;  %v5417_v10 = vpop.f32.mrf.mxu1  ;;  %v6109_v44 = vld [vmem:[#allocation3 + $0x23] sm:$0xff] }
 0x472   : > { %v5418_v37 = vadd.f32 %v12971_v2, %v5417_v10  ;;  %v5460_v16 = vld [vmem:[#allocation3 + $0x28] sm:$0xff]  ;;  %v6443_v22 = vld [vmem:[#allocation3 + $0x1c] sm:$0xff] }
 0x473   : > { %v13928_v48 = vpop.f32.mrf.mxu1  ;;  %v5472_v13 = vld [vmem:[#allocation3 + $0x29] sm:$0xff] }
 0x474   : > { %v17332_v24 = vld [vmem:[#allocation3 + $0x2a] sm:$0xff]  ;;  %5449 = vst.msk [vmem:[#allocation3 + $0x40] sm:$0xff] %vm4821_vm4, %v5418_v37  ;;  %13952 = vmatmul.mubr.msk.f32.gmra.mxu0 %vm4821_vm4, %v5472_v13 }
 0x475   : > { %13990 = vmatmul.mubr.msk.f32.gmra.mxu1 %vm4821_vm4, %v17332_v24  ;;  %v5422_v47 = vpop.f32.mrf.mxu1  ;;  %v6110_v23 = vld [vmem:[#allocation3 + $0x2b] sm:$0xff] }
 0x476   : > { %v5423_v29 = vadd.f32 %v12974_v31, %v5422_v47  ;;  %v6444_v25 = vld [vmem:[#allocation3 + $0x24] sm:$0xff]  ;;  %v6445_v2 = vld [vmem:[#allocation3 + $0x2c] sm:$0xff]  ;;  %v6778_v47 = vld [vmem:[#allocation3 + $0x16] sm:$0xff] }
 0x477   : > { %v13931_v7 = vpop.f32.mrf.mxu1  ;;  %v5473_v58 = vld [vmem:[#allocation3 + $0x31] sm:$0xff]  ;;  %v6285_v34 = vld [vmem:[#allocation16 + $0x50] sm:$0xff] }
 0x478   : > { %v17340_v56 = vld [vmem:[#allocation3 + $0x32] sm:$0xff]  ;;  %5450 = vst.msk [vmem:[#allocation3 + $0x48] sm:$0xff] %vm4821_vm4, %v5423_v29  ;;  %13954 = vmatprep.mubr.msk.f32.mxu0 %vm4821_vm4, %v5473_v58  ;;  %v6779_v29 = vld [vmem:[#allocation3 + $0x1e] sm:$0xff]  ;;  %v6780_v7 = vld [vmem:[#allocation3 + $0x26] sm:$0xff] }
 0x479   : > { %13992 = vmatprep.mubr.msk.f32.mxu1 %vm4821_vm4, %v17340_v56  ;;  %v5427_v17 = vpop.f32.mrf.mxu1  ;;  %v5462_v30 = vld [vmem:[#allocation3 + $0x38] sm:$0xff]  ;;  %v6274_v31 = vld [vmem:[#allocation3 + $0xc] sm:$0xff] }
 0x47a   : > { %v5428_v43 = vadd.f32 %v12977_v52, %v5427_v17  ;;  %v6621_v58 = vld [vmem:[#allocation16 + $0x70] sm:$0xff]  ;;  %v6782_v52 = vld [vmem:[#allocation3 + $0x36] sm:$0xff] }
 0x47b   : > { %v13934_v35 = vpop.f32.mrf.mxu1  ;;  %v5474_v45 = vld [vmem:[#allocation3 + $0x39] sm:$0xff] }
 0x47c   : > { %v17348_v51 = vld [vmem:[#allocation3 + $0x3a] sm:$0xff]  ;;  %5451 = vst.msk [vmem:[#allocation3 + $0x50] sm:$0xff] %vm4821_vm4, %v5428_v43  ;;  %13955 = vmatmul.mubr.msk.f32.gmra.mxu0 %vm4821_vm4, %v5474_v45 }
 0x47d   : > { %13993 = vmatmul.mubr.msk.f32.gmra.mxu1 %vm4821_vm4, %v17348_v51  ;;  %v5432_v32 = vpop.f32.mrf.mxu1  ;;  %v6112_v6 = vld [vmem:[#allocation3 + $0x3b] sm:$0xff] }
 0x47e   : > { %v5433_v5 = vadd.f32 %v12980_v18, %v5432_v32  ;;  %v5463_v19 = vld [vmem:[#allocation3 + $0x40] sm:$0xff]  ;;  %v6610_v32 = vld [vmem:[#allocation3 + $0x15] sm:$0xff] }
 0x47f   : > { %v13937_v36 = vpop.f32.mrf.mxu1  ;;  %v5475_v28 = vld [vmem:[#allocation3 + $0x41] sm:$0xff]  ;;  %v5476_v42 = vld [vmem:[#allocation3 + $0x49] sm:$0x3f] }
 0x480   : > { %v17356_v26 = vld [vmem:[#allocation3 + $0x42] sm:$0xff]  ;;  %5452 = vst.msk [vmem:[#allocation3 + $0x58] sm:$0xff] %vm4821_vm4, %v5433_v5  ;;  %13957 = vmatprep.mubr.msk.f32.mxu0 %vm4821_vm4, %v5475_v28  ;;  %v5779_v49 = vld [vmem:[#allocation3 + $0x4a] sm:$0x3f] }
 0x481   : > { %13995 = vmatprep.mubr.msk.f32.mxu1 %vm4821_vm4, %v17356_v26  ;;  %v5437_v54 = vpop.f32.mrf.mxu1  ;;  %13958 = vmatmul.mubr.msk.f32.gmra.mxu0 %vm4821_vm4, %v5476_v42  ;;  %v6113_v0 = vld [vmem:[#allocation3 + $0x43] sm:$0xff]  ;;  %v6613_v28 = vld [vmem:[#allocation3 + $0x2d] sm:$0xff] }
 0x482   : > { %13996 = vmatmul.mubr.msk.f32.gmra.mxu1 %vm4821_vm4, %v5779_v49  ;;  %v5438_v8 = vadd.f32 %v12983_v62, %v5437_v54  ;;  %13964 = vmatprep.mubr.msk.f32.mxu0 %vm4821_vm4, %v5455_v3  ;;  %v5464_v60 = vld [vmem:[#allocation3 + $0x48] sm:$0x3f]  ;;  %v6783_v17 = vld [vmem:[#allocation3 + $0x3e] sm:$0xff] }
 0x483   : > { %14021 = vmatprep.mubr.msk.f32.mxu1 %vm4821_vm4, %v6106_v38  ;;  %v13940_v9 = vpop.f32.mrf.mxu1  ;;  %v6114_v55 = vld [vmem:[#allocation3 + $0x4b] sm:$0xff]  ;;  %v6611_v5 = vld [vmem:[#allocation3 + $0x1d] sm:$0xff] }
 0x484   : > { %5454 = vst.msk [vmem:[#allocation3 + $0x60] sm:$0xf] %vm5453_vm8, %v5438_v8  ;;  %v6449_v10 = vld [vmem:[#allocation3 + $0x4c] sm:$0xff]  ;;  %v6615_v42 = vld [vmem:[#allocation3 + $0x3d] sm:$0xff] }
 0x485   : > { %13965 = vmatmul.mubr.msk.f32.vlgmr.msra.gmra.mxu0 %vm4821_vm4, %v5456_v21  ;;  %v5946_v37 = vld [vmem:[#allocation3 + $0x4a] sm:$0xff]  ;;  %v5947_v13 = vld [vmem:[#allocation3 + $0x52] sm:$0x3f] }
 0x486   : > { %14022 = vmatmul.mubr.msk.f32.vlgmr.msra.gmra.mxu1 %vm4821_vm4, %v6107_v46  ;;  %13967 = vmatprep.mubr.msk.f32.mxu0 %vm4821_vm4, %v5457_v4  ;;  %v6784_v43 = vld [vmem:[#allocation3 + $0x46] sm:$0xff]  ;;  %v6785_v35 = vld [vmem:[#allocation3 + $0x4e] sm:$0xff] }
 0x487   : > { %14024 = vmatprep.mubr.msk.f32.mxu1 %vm4821_vm4, %v6108_v11  ;;  %13999 = vmatpush3.msra.mxu0 %v17303_v15  ;;  %v6111_v15 = vld [vmem:[#allocation3 + $0x33] sm:$0xff]  ;;  %v6612_v36 = vld [vmem:[#allocation3 + $0x25] sm:$0xff] }
 0x488   : > { %14056 = vmatpush3.msra.mxu1 %v17305_v14  ;;  %14000 = vmatprep.subr.mxu0 %v5949_v61  ;;  %v5461_v14 = vld [vmem:[#allocation3 + $0x30] sm:$0xff]  ;;  %v6616_v62 = vld [vmem:[#allocation3 + $0x45] sm:$0xff] }
 0x489   : > { %14057 = vmatprep.subr.mxu1 %v6453_v20  ;;  %13968 = vmatmul.mubr.msk.f32.gmra.mxu0 %vm4821_vm4, %v5458_v41  ;;  %v6115_v27 = vld [vmem:[#allocation3 + $0x53] sm:$0x3f] }
 0x48a   : > { %14025 = vmatmul.mubr.msk.f32.gmra.mxu1 %vm4821_vm4, %v6109_v44  ;;  %13970 = vmatprep.mubr.msk.f32.mxu0 %vm4821_vm4, %v5459_v57  ;;  %v6450_v48 = vld [vmem:[#allocation3 + $0x54] sm:$0xff] }
 0x48b   : > { %14027 = vmatprep.mubr.msk.f32.mxu1 %vm4821_vm4, %v6110_v23  ;;  %14001 = vmatpush3.msra.mxu0 %v5949_v61  ;;  %v6786_v45 = vld [vmem:[#allocation3 + $0x56] sm:$0xff]  ;;  %v6787_v18 = vld [vmem:[#allocation3 + $0x5e] sm:$0x3f]  ;;  %v6617_v49 = vld [vmem:[#allocation3 + $0x4d] sm:$0xff] }
 0x48c   : > { %14058 = vmatpush3.msra.mxu1 %v6453_v20  ;;  %14036 = vmatprep.subr.mxu0 %v6286_v40  ;;  %v6618_v54 = vld [vmem:[#allocation3 + $0x55] sm:$0xff]  ;;  %v6619_v3 = vld [vmem:[#allocation3 + $0x5d] sm:$0x3f] }
 0x48d   : > { %14093 = vmatprep.subr.mxu1 %v6790_v50  ;;  %13971 = vmatmul.mubr.msk.f32.gmra.mxu0 %vm4821_vm4, %v5460_v16 }
 0x48e   : > { %14028 = vmatmul.mubr.msk.f32.gmra.mxu1 %vm4821_vm4, %v6111_v15  ;;  %13973 = vmatprep.mubr.msk.f32.mxu0 %vm4821_vm4, %v5461_v14 }
 0x48f   : > { %14030 = vmatprep.mubr.msk.f32.mxu1 %vm4821_vm4, %v6112_v6 }
 0x491   : > { %13974 = vmatmul.mubr.msk.f32.gmra.mxu0 %vm4821_vm4, %v5462_v30 }
 0x492   : > { %14031 = vmatmul.mubr.msk.f32.gmra.mxu1 %vm4821_vm4, %v6113_v0  ;;  %13976 = vmatprep.mubr.msk.f32.mxu0 %vm4821_vm4, %v5463_v19 }
 0x493   : > { %14033 = vmatprep.mubr.msk.f32.mxu1 %vm4821_vm4, %v6114_v55 }
 0x495   : > { %13977 = vmatmul.mubr.msk.f32.gmra.mxu0 %vm4821_vm4, %v5464_v60 }
 0x496   : > { %14034 = vmatmul.mubr.msk.f32.gmra.mxu1 %vm4821_vm4, %v6115_v27  ;;  %14002 = vmatprep.mubr.msk.f32.mxu0 %vm4821_vm4, %v17295_v1  ;;  %v6446_v1 = vld [vmem:[#allocation3 + $0x34] sm:$0xff] }
 0x497   : > { %14059 = vmatprep.mubr.msk.f32.mxu1 %vm4821_vm4, %v6442_v53 }
 0x499   : > { %14003 = vmatmul.mubr.msk.f32.vlgmr.msra.gmra.mxu0 %vm4821_vm4, %v17307_v59  ;;  %v6622_v59 = vld [vmem:[#allocation16 + $0x78] sm:$0xff] }
 0x49a   : > { %14060 = vmatmul.mubr.msk.f32.vlgmr.msra.gmra.mxu1 %vm4821_vm4, %v6443_v22  ;;  %14005 = vmatprep.mubr.msk.f32.mxu0 %vm4821_vm4, %v17316_v12  ;;  %v6447_v12 = vld [vmem:[#allocation3 + $0x3c] sm:$0xff] }
 0x49b   : > { %14062 = vmatprep.mubr.msk.f32.mxu1 %vm4821_vm4, %v6444_v25  ;;  %14037 = vmatpush3.msra.mxu0 %v6286_v40 }
 0x49c   : > { %14094 = vmatpush3.msra.mxu1 %v6790_v50  ;;  %14038 = vmatprep.subr.mxu0 %v6285_v34 }
 0x49d   : > { %14095 = vmatprep.subr.mxu1 %v6789_v39  ;;  %14006 = vmatmul.mubr.msk.f32.gmra.mxu0 %vm4821_vm4, %v17324_v33  ;;  %v6448_v33 = vld [vmem:[#allocation3 + $0x44] sm:$0xff] }
 0x49e   : > { %14063 = vmatmul.mubr.msk.f32.gmra.mxu1 %vm4821_vm4, %v6445_v2  ;;  %14008 = vmatprep.mubr.msk.f32.mxu0 %vm4821_vm4, %v17332_v24  ;;  %v6451_v24 = vld [vmem:[#allocation3 + $0x5c] sm:$0x3f] }
 0x49f   : > { %14065 = vmatprep.mubr.msk.f32.mxu1 %vm4821_vm4, %v6446_v1  ;;  %14039 = vmatpush3.msra.mxu0 %v6285_v34 }
 0x4a0   : > { %14096 = vmatpush3.msra.mxu1 %v6789_v39  ;;  %14074 = vmatprep.subr.mxu0 %v6622_v59 }
 0x4a1   : > { %14145 = vmatprep.subr.mxu1 %v17105_v63  ;;  %14009 = vmatmul.mubr.msk.f32.gmra.mxu0 %vm4821_vm4, %v17340_v56  ;;  %v6781_v56 = vld [vmem:[#allocation3 + $0x2e] sm:$0xff] }
 0x4a2   : > { %14066 = vmatmul.mubr.msk.f32.gmra.mxu1 %vm4821_vm4, %v6447_v12  ;;  %14011 = vmatprep.mubr.msk.f32.mxu0 %vm4821_vm4, %v17348_v51  ;;  %v6283_v51 = vld [vmem:[#allocation3 + $0x54] sm:$0x3f] }
 0x4a3   : > { %14068 = vmatprep.mubr.msk.f32.mxu1 %vm4821_vm4, %v6448_v33 }
 0x4a5   : > { %14012 = vmatmul.mubr.msk.f32.gmra.mxu0 %vm4821_vm4, %v17356_v26  ;;  %v6614_v26 = vld [vmem:[#allocation3 + $0x35] sm:$0xff] }
 0x4a6   : > { %14069 = vmatmul.mubr.msk.f32.gmra.mxu1 %vm4821_vm4, %v6449_v10  ;;  %14014 = vmatprep.mubr.msk.f32.mxu0 %vm4821_vm4, %v5946_v37 }
 0x4a7   : > { %14071 = vmatprep.mubr.msk.f32.mxu1 %vm4821_vm4, %v6450_v48 }
 0x4a9   : > { %14015 = vmatmul.mubr.msk.f32.gmra.mxu0 %vm4821_vm4, %v5947_v13 }
 0x4aa   : > { %14072 = vmatmul.mubr.msk.f32.gmra.mxu1 %vm4821_vm4, %v6451_v24  ;;  %14040 = vmatprep.mubr.msk.f32.mxu0 %vm4821_vm4, %v6274_v31 }
 0x4ab   : > { %14097 = vmatprep.mubr.msk.f32.mxu1 %vm4821_vm4, %v6778_v47 }
 0x4ad   : > { %14041 = vmatmul.mubr.msk.f32.vlgmr.msra.gmra.mxu0 %vm4821_vm4, %v6442_v53 }
 0x4ae   : > { %14098 = vmatmul.mubr.msk.f32.vlgmr.msra.gmra.mxu1 %vm4821_vm4, %v6779_v29  ;;  %14043 = vmatprep.mubr.msk.f32.mxu0 %vm4821_vm4, %v6443_v22 }
 0x4af   : > { %14100 = vmatprep.mubr.msk.f32.mxu1 %vm4821_vm4, %v6780_v7  ;;  %14075 = vmatpush3.msra.mxu0 %v6622_v59 }
 0x4b0   : > { %14076 = vmatprep.subr.mxu0 %v6621_v58 }
 0x4b1   : > { %14044 = vmatmul.mubr.msk.f32.gmra.mxu0 %vm4821_vm4, %v6444_v25 }
 0x4b2   : > { %14101 = vmatmul.mubr.msk.f32.gmra.mxu1 %vm4821_vm4, %v6781_v56  ;;  %14046 = vmatprep.mubr.msk.f32.mxu0 %vm4821_vm4, %v6445_v2 }
 0x4b3   : > { %14103 = vmatprep.mubr.msk.f32.mxu1 %vm4821_vm4, %v6782_v52  ;;  %14077 = vmatpush3.msra.mxu0 %v6621_v58 }
 0x4b4   : > { %14112 = vmatprep.subr.mxu0 %v17105_v63 }
 0x4b5   : > { %14047 = vmatmul.mubr.msk.f32.gmra.mxu0 %vm4821_vm4, %v6446_v1 }
 0x4b6   : > { %14104 = vmatmul.mubr.msk.f32.gmra.mxu1 %vm4821_vm4, %v6783_v17  ;;  %14049 = vmatprep.mubr.msk.f32.mxu0 %vm4821_vm4, %v6447_v12 }
 0x4b7   : > { %14106 = vmatprep.mubr.msk.f32.mxu1 %vm4821_vm4, %v6784_v43 }
 0x4b9   : > { %14050 = vmatmul.mubr.msk.f32.gmra.mxu0 %vm4821_vm4, %v6448_v33 }
 0x4ba   : > { %14107 = vmatmul.mubr.msk.f32.gmra.mxu1 %vm4821_vm4, %v6785_v35  ;;  %14052 = vmatprep.mubr.msk.f32.mxu0 %vm4821_vm4, %v6449_v10 }
 0x4bb   : > { %14109 = vmatprep.mubr.msk.f32.mxu1 %vm4821_vm4, %v6786_v45 }
 0x4bd   : > { %14053 = vmatmul.mubr.msk.f32.gmra.mxu0 %vm4821_vm4, %v6283_v51 }
 0x4be   : > { %14110 = vmatmul.mubr.msk.f32.gmra.mxu1 %vm4821_vm4, %v6787_v18  ;;  %14078 = vmatprep.mubr.msk.f32.mxu0 %vm4821_vm4, %v6610_v32 }
 0x4bf   : > { %14153 = vmatprep.mubr.msk.f32.mxu1 %vm15351_vm6, %v17105_v63 }
 0x4c1   : > { %14079 = vmatmul.mubr.msk.f32.vlgmr.msra.gmra.mxu0 %vm4821_vm4, %v6611_v5 }
 0x4c2   : > { %14081 = vmatprep.mubr.msk.f32.mxu0 %vm4821_vm4, %v6612_v36 }
 0x4c5   : > { %14082 = vmatmul.mubr.msk.f32.gmra.mxu0 %vm4821_vm4, %v6613_v28 }
 0x4c6   : > { %14084 = vmatprep.mubr.msk.f32.mxu0 %vm4821_vm4, %v6614_v26 }
 0x4c9   : > { %14085 = vmatmul.mubr.msk.f32.gmra.mxu0 %vm4821_vm4, %v6615_v42 }
 0x4ca   : > { %14087 = vmatprep.mubr.msk.f32.mxu0 %vm4821_vm4, %v6616_v62 }
 0x4cd   : > { %14088 = vmatmul.mubr.msk.f32.gmra.mxu0 %vm4821_vm4, %v6617_v49 }
 0x4ce   : > { %14090 = vmatprep.mubr.msk.f32.mxu0 %vm4821_vm4, %v6618_v54 }
 0x4d1   : > { %14091 = vmatmul.mubr.msk.f32.gmra.mxu0 %vm4821_vm4, %v6619_v3 }
 0x4d2   : > { %14130 = vmatprep.mubr.msk.f32.mxu0 %vm15351_vm6, %v17105_v63 }
 0x524   : > { %v13947_v38 = vpop.f32.mrf.mxu0 }
 0x525   : > { %v17453_v8 = vpop.f32.mrf.mxu1 }
 0x526   : > { %v17455_v9 = vpop.f32.mrf.mxu0 }
 0x527   : > { %v17457_v21 = vpop.f32.mrf.mxu1 }
 0x52c   : > { %v17459_v46 = vpop.f32.mrf.mxu0 }
 0x52d   : > { %v17461_v61 = vpop.f32.mrf.mxu1 }
 0x52e   : > { %v17463_v4 = vpop.f32.mrf.mxu0 }
 0x52f   : > { %v17465_v11 = vpop.f32.mrf.mxu1 }
 0x534   : > { %v17467_v20 = vpop.f32.mrf.mxu0 }
 0x535   : > { %v17469_v41 = vpop.f32.mrf.mxu1 }
 0x536   : > { %v17471_v63 = vpop.f32.mrf.mxu0 }
 0x537   : > { %v17473_v44 = vpop.f32.mrf.mxu1 }
 0x53c   : > { %v17475_v40 = vpop.f32.mrf.mxu0 }
 0x53d   : > { %v17477_v57 = vpop.f32.mrf.mxu1 }
 0x53e   : > { %v17479_v23 = vpop.f32.mrf.mxu0 }
 0x53f   : > { %v17481_v50 = vpop.f32.mrf.mxu1 }
 0x541   : > { %v17483_v16 = vpop.f32.mrf.mxu0 }
 0x542   : > { %v17485_v15 = vpop.f32.mrf.mxu1 }
 0x543   : > { %v17487_v14 = vpop.f32.mrf.mxu0 }
 0x544   : > { %v17489_v6 = vpop.f32.mrf.mxu1 }
 0x545   : > { %19206 = vst [vmem:[#allocation81_spill] sm:$0xff] %v17489_v6  ;;  %v13966_v30 = vpop.f32.mrf.mxu0 }
 0x546   : > { %v14023_v0 = vpop.f32.mrf.mxu1  ;;  %v5727_v54 = vadd.f32 %v13966_v30, %v13947_v38 }
 0x547   : > { %v5721_v19 = vpop.f32.mrf.mxu0 }
 0x548   : > { %v17491_v55 = vpop.f32.mrf.mxu1 }
 0x549   : > { %v13969_v60 = vpop.f32.mrf.mxu0 }
 0x54a   : > { %v17493_v27 = vpop.f32.mrf.mxu1 }
 0x54b   : > { %v5731_v53 = vpop.f32.mrf.mxu0 }
 0x54c   : > { %v17495_v22 = vpop.f32.mrf.mxu1 }
 0x54d   : > { %v13972_v25 = vpop.f32.mrf.mxu0 }
 0x54e   : > { %v17497_v34 = vpop.f32.mrf.mxu1 }
 0x54f   : > { %v5741_v39 = vpop.f32.mrf.mxu0 }
 0x550   : > { %v17499_v2 = vpop.f32.mrf.mxu1 }
 0x551   : > { %v13975_v1 = vpop.f32.mrf.mxu0 }
 0x552   : > { %v17501_v59 = vpop.f32.mrf.mxu1 }
 0x553   : > { %19207 = vst [vmem:[#allocation76_spill] sm:$0xff] %v17501_v59  ;;  %v5751_v12 = vpop.f32.mrf.mxu0 }
 0x554   : > { %v17503_v33 = vpop.f32.mrf.mxu1 }
 0x555   : > { %19208 = vst [vmem:[#allocation102_spill] sm:$0xff] %v17503_v33  ;;  %v13978_v10 = vpop.f32.mrf.mxu0 }
 0x556   : > { %v17505_v37 = vpop.f32.mrf.mxu1 }
 0x557   : > { %19209 = vst [vmem:[#allocation101_spill] sm:$0xff] %v17505_v37  ;;  %v17507_v48 = vpop.f32.mrf.mxu0 }
 0x558   : > { %v17509_v13 = vpop.f32.mrf.mxu1 }
 0x559   : > { %19210 = vst [vmem:[#allocation111_spill] sm:$0xff] %v17509_v13  ;;  %v14004_v24 = vpop.f32.mrf.mxu0 }
 0x55a   : > { %v14061_v31 = vpop.f32.mrf.mxu1 }
 0x55b   : > { %v6047_v47 = vpop.f32.mrf.mxu0 }
 0x55c   : > { %v17511_v29 = vpop.f32.mrf.mxu1 }
 0x55d   : > { %v14007_v7 = vpop.f32.mrf.mxu0 }
 0x55e   : > { %v17513_v58 = vpop.f32.mrf.mxu1 }
 0x55f   : > { %v6057_v56 = vpop.f32.mrf.mxu0 }
 0x560   : > { %v17515_v52 = vpop.f32.mrf.mxu1 }
 0x561   : > { %19211 = vst [vmem:[#allocation54_spill] sm:$0xff] %v17515_v52  ;;  %v14010_v17 = vpop.f32.mrf.mxu0 }
 0x562   : > { %v17517_v43 = vpop.f32.mrf.mxu1 }
 0x563   : > { %19212 = vst [vmem:[#allocation59_spill] sm:$0xff] %v17517_v43  ;;  %v6067_v35 = vpop.f32.mrf.mxu0 }
 0x564   : > { %v17519_v45 = vpop.f32.mrf.mxu1 }
 0x565   : > { %19213 = vst [vmem:[#allocation83_spill] sm:$0xff] %v17519_v45  ;;  %v14013_v51 = vpop.f32.mrf.mxu0  ;;  %v5722_v45 = vadd.f32 %v5721_v19, %v17455_v9  ;;  %v5742_v9 = vadd.f32 %v5741_v39, %v17471_v63 }
 0x566   : > { %v17521_v18 = vpop.f32.mrf.mxu1 }
 0x567   : > { %19214 = vst [vmem:[#allocation77_spill] sm:$0xff] %v17521_v18  ;;  %v6077_v32 = vpop.f32.mrf.mxu0  ;;  %v5737_v18 = vadd.f32 %v13969_v60, %v17459_v46  ;;  %v5932_v63 = vadd.f32 %v17473_v44, %v5742_v9  ;;  %v19223_v9 = vld [vmem:[#allocation102_spill] sm:$0xff] }
 0x568   : > { %v17523_v5 = vpop.f32.mrf.mxu1 }
 0x569   : > { %19215 = vst [vmem:[#allocation104_spill] sm:$0xff] %v17523_v5  ;;  %v17525_v36 = vpop.f32.mrf.mxu0  ;;  %v5929_v5 = vadd.f32 %v17453_v8, %v5727_v54  ;;  %v5931_v30 = vadd.f32 %v17461_v61, %v5737_v18  ;;  %v5757_v54 = vadd.f32 %v13975_v1, %v17475_v40  ;;  %v6100_v40 = vadd.f32 %v6067_v35, %v5932_v63 }
 0x56a   : > { %v17527_v28 = vpop.f32.mrf.mxu1 }
 0x56b   : > { %19216 = vst [vmem:[#allocation103_spill] sm:$0xff] %v17527_v28  ;;  %v17529_v26 = vpop.f32.mrf.mxu0  ;;  %v5732_v28 = vadd.f32 %v5731_v53, %v17463_v4  ;;  %v6097_v52 = vadd.f32 %v14004_v24, %v5929_v5  ;;  %v6099_v46 = vadd.f32 %v14007_v7, %v5931_v30 }
 0x56c   : > { %19217 = vst [vmem:[#allocation55_spill] sm:$0xff] %v17529_v26  ;;  %v17531_v42 = vpop.f32.mrf.mxu1  ;;  %v5928_v26 = vadd.f32 %v17457_v21, %v5722_v45 }
 0x56d   : > { %19218 = vst [vmem:[#allocation61_spill] sm:$0xff] %v17531_v42  ;;  %v14042_v62 = vpop.f32.mrf.mxu0  ;;  %v5747_v42 = vadd.f32 %v13972_v25, %v17467_v20  ;;  %v5930_v8 = vadd.f32 %v17465_v11, %v5732_v28  ;;  %v6265_v60 = vadd.f32 %v14023_v0, %v6097_v52  ;;  %v5752_v25 = vadd.f32 %v5751_v12, %v17479_v23 }
 0x56e   : > { %v14099_v3 = vpop.f32.mrf.mxu1  ;;  %v6096_v38 = vadd.f32 %v6047_v47, %v5928_v26  ;;  %v6267_v11 = vadd.f32 %v17493_v27, %v6099_v46  ;;  %v5767_v0 = vadd.f32 %v13978_v10, %v17483_v16  ;;  %v5762_v23 = vadd.f32 %v17507_v48, %v17487_v14 }
 0x56f   : > { %v6383_v49 = vpop.f32.mrf.mxu0  ;;  %v5933_v4 = vadd.f32 %v17469_v41, %v5747_v42  ;;  %v6098_v21 = vadd.f32 %v6057_v56, %v5930_v8  ;;  %v6433_v24 = vadd.f32 %v14042_v62, %v6265_v60  ;;  %v5935_v41 = vadd.f32 %v17477_v57, %v5757_v54  ;;  %v19221_v62 = vld [vmem:[#allocation54_spill] sm:$0xff] }
 0x570   : > { %v6887_v43 = vpop.f32.mrf.mxu1  ;;  %v6264_v20 = vadd.f32 %v17491_v55, %v6096_v38  ;;  %v5934_v44 = vadd.f32 %v17481_v50, %v5752_v25 }
 0x571   : > { %v14045_v13 = vpop.f32.mrf.mxu0  ;;  %v6101_v61 = vadd.f32 %v14010_v17, %v5933_v4  ;;  %v6266_v52 = vadd.f32 %v17495_v22, %v6098_v21  ;;  %v6601_v55 = vadd.f32 %v14061_v31, %v6433_v24  ;;  %v6103_v12 = vadd.f32 %v14013_v51, %v5935_v41  ;;  %v17558_v31 = vld [vmem:[#allocation17] ss:$0 sm:$0xff]  ;;  %v19227_v41 = vld [vmem:[#allocation111_spill] sm:$0xff] }
 0x572   : > { %v14102_v19 = vpop.f32.mrf.mxu1  ;;  %v6432_v7 = vadd.f32 %v6383_v49, %v6264_v20  ;;  %v6435_v56 = vadd.f32 %v14045_v13, %v6267_v11  ;;  %v6102_v57 = vadd.f32 %v6077_v32, %v5934_v44  ;;  %v5937_v13 = vadd.f32 %v17485_v15, %v5767_v0  ;;  %v19220_v32 = vld [vmem:[#allocation76_spill] sm:$0xff]  ;;  %v19225_v20 = vld [vmem:[#allocation101_spill] sm:$0xff] }
 0x573   : > { %v6393_v37 = vpop.f32.mrf.mxu0  ;;  %v6269_v17 = vadd.f32 %v17497_v34, %v6101_v61  ;;  %v6268_v22 = vadd.f32 %v17499_v2, %v6100_v40  ;;  %v6271_v26 = vadd.f32 %v19220_v32, %v6103_v12  ;;  %v19226_v61 = vld [vmem:[#allocation83_spill] sm:$0xff] }
 0x574   : > { %v6897_v39 = vpop.f32.mrf.mxu1  ;;  %v6434_v18 = vadd.f32 %v6393_v37, %v6266_v52  ;;  %v6600_v10 = vadd.f32 %v17511_v29, %v6432_v7  ;;  %v6603_v34 = vadd.f32 %v17513_v58, %v6435_v56  ;;  %v6105_v51 = vadd.f32 %v17525_v36, %v5937_v13  ;;  %v19219_v37 = vld [vmem:[#allocation81_spill] sm:$0xff]  ;;  %v19224_v36 = vld [vmem:[#allocation59_spill] sm:$0xff] }
 0x575   : > { %v14048_v33 = vpop.f32.mrf.mxu0  ;;  %v5936_v5 = vadd.f32 %v19219_v37, %v5762_v23  ;;  %v6270_v58 = vadd.f32 %v19223_v9, %v6102_v57  ;;  %v19231_v37 = vld [vmem:[#allocation61_spill] sm:$0xff] }
 0x576   : > { %v14105_v45 = vpop.f32.mrf.mxu1  ;;  %v6437_v35 = vadd.f32 %v14048_v33, %v6269_v17  ;;  %v6602_v49 = vadd.f32 %v19221_v62, %v6434_v18 }
 0x577   : > { %v6403_v59 = vpop.f32.mrf.mxu0 }
 0x578   : > { %v6436_v28 = vadd.f32 %v6403_v59, %v6268_v22  ;;  %v6907_v29 = vpop.f32.mrf.mxu1  ;;  %v6605_v8 = vadd.f32 %v19224_v36, %v6437_v35  ;;  %v19230_v22 = vld [vmem:[#allocation103_spill] sm:$0xff] }
 0x579   : > { %v14051_v6 = vpop.f32.mrf.mxu0 }
 0x57a   : > { %v6439_v30 = vadd.f32 %v14051_v6, %v6271_v26  ;;  %v14108_v21 = vpop.f32.mrf.mxu1  ;;  %v6604_v63 = vadd.f32 %v19226_v61, %v6436_v28 }
 0x57b   : > { %v6413_v53 = vpop.f32.mrf.mxu0 }
 0x57c   : > { %v6438_v24 = vadd.f32 %v6413_v53, %v6270_v58  ;;  %v6917_v17 = vpop.f32.mrf.mxu1 }
 0x57d   : > { %v14054_v47 = vpop.f32.mrf.mxu0 }
 0x57f   : > { %v6423_v1 = vpop.f32.mrf.mxu0 }
 0x581   : > { %v14080_v27 = vpop.f32.mrf.mxu0 }
 0x582   : > { %v6769_v16 = vadd.f32 %v14080_v27, %v6601_v55 }
 0x583   : > { %v6719_v14 = vpop.f32.mrf.mxu0 }
 0x584   : > { %v6937_v48 = vadd.f32 %v14099_v3, %v6769_v16  ;;  %v6768_v50 = vadd.f32 %v6719_v14, %v6600_v10  ;;  %v19222_v3 = vld [vmem:[#allocation55_spill] sm:$0xff]  ;;  %v19229_v16 = vld [vmem:[#allocation104_spill] sm:$0xff] }
 0x585   : > { %v14083_v15 = vpop.f32.mrf.mxu0  ;;  %v6104_v38 = vadd.f32 %v19222_v3, %v5936_v5  ;;  %v6606_v10 = vadd.f32 %v19229_v16, %v6438_v24 }
 0x586   : > { %v6954_v33 = vadd.f32 %v17558_v31, %v6937_v48  ;;  %v6936_v2 = vadd.f32 %v6887_v43, %v6768_v50  ;;  %v6771_v42 = vadd.f32 %v14083_v15, %v6603_v34  ;;  %v6273_v43 = vadd.f32 %v19225_v20, %v6105_v51  ;;  %v14111_v34 = vpop.f32.mrf.mxu1 }
 0x587   : > { %v6729_v46 = vpop.f32.mrf.mxu0  ;;  %v6272_v56 = vadd.f32 %v19227_v41, %v6104_v38 }
 0x588   : > { %v6964_v60 = vmax.f32 %v6954_v33, 0.0  ;;  %v6953_v59 = vadd.f32 %v17558_v31, %v6936_v2  ;;  %v6939_v54 = vadd.f32 %v14102_v19, %v6771_v42  ;;  %v6770_v4 = vadd.f32 %v6729_v46, %v6602_v49  ;;  %v19228_v19 = vld [vmem:[#allocation77_spill] sm:$0xff]  ;;  %v6927_v49 = vpop.f32.mrf.mxu1 }
 0x589   : > { %v14086_v25 = vpop.f32.mrf.mxu0  ;;  %v6441_v40 = vadd.f32 %v14054_v47, %v6273_v43  ;;  %v6607_v55 = vadd.f32 %v19228_v19, %v6439_v30  ;;  %v6440_v27 = vadd.f32 %v6423_v1, %v6272_v56 }
 0x58a   : > { %6975 = vst.msk [vmem:[#allocation9 + $0x8] sm:$0xff] %vm6973_vm10, %v6964_v60  ;;  %v6963_v6 = vmax.f32 %v6953_v59, 0.0  ;;  %v6956_v7 = vadd.f32 %v17558_v31, %v6939_v54  ;;  %v6938_v11 = vadd.f32 %v6897_v39, %v6770_v4  ;;  %v6773_v0 = vadd.f32 %v14086_v25, %v6605_v8 }
 0x58b   : > { %v6739_v52 = vpop.f32.mrf.mxu0  ;;  %v6609_v14 = vadd.f32 %v19230_v22, %v6441_v40  ;;  %v6608_v5 = vadd.f32 %v19231_v37, %v6440_v27 }
 0x58c   : > { %6974 = vst.msk [vmem:[#allocation9] sm:$0xff] %vm6973_vm10, %v6963_v6  ;;  %v6966_v53 = vmax.f32 %v6956_v7, 0.0  ;;  %v6955_v23 = vadd.f32 %v17558_v31, %v6938_v11  ;;  %v6941_v12 = vadd.f32 %v14105_v45, %v6773_v0  ;;  %v6772_v44 = vadd.f32 %v6739_v52, %v6604_v63 }
 0x58d   : > { %v14089_v18 = vpop.f32.mrf.mxu0 }
 0x58e   : > { %6977 = vst.msk [vmem:[#allocation9 + $0x18] sm:$0xff] %vm6973_vm10, %v6966_v53  ;;  %v6965_v39 = vmax.f32 %v6955_v23, 0.0  ;;  %v6958_v47 = vadd.f32 %v17558_v31, %v6941_v12  ;;  %v6940_v57 = vadd.f32 %v6907_v29, %v6772_v44  ;;  %v6775_v13 = vadd.f32 %v14089_v18, %v6607_v55  ;;  %v17595_v18 = vld [vmem:[#allocation5] sm:$0xff] }
 0x58f   : > { %v6749_v35 = vpop.f32.mrf.mxu0 }
 0x590   : > { %6976 = vst.msk [vmem:[#allocation9 + $0x10] sm:$0xff] %vm6973_vm10, %v6965_v39  ;;  %v6968_v48 = vmax.f32 %v6958_v47, 0.0  ;;  %v6957_v45 = vadd.f32 %v17558_v31, %v6940_v57  ;;  %v6943_v50 = vadd.f32 %v14108_v21, %v6775_v13  ;;  %v6774_v1 = vadd.f32 %v6749_v35, %v6606_v10 }
 0x591   : > { %v14092_v51 = vpop.f32.mrf.mxu0 }
 0x592   : > { %6979 = vst.msk [vmem:[#allocation9 + $0x28] sm:$0xff] %vm6973_vm10, %v6968_v48  ;;  %v6967_v28 = vmax.f32 %v6957_v45, 0.0  ;;  %v6960_v29 = vadd.f32 %v17558_v31, %v6943_v50  ;;  %v6942_v32 = vadd.f32 %v6917_v17, %v6774_v1  ;;  %v6777_v26 = vadd.f32 %v14092_v51, %v6609_v14 }
 0x593   : > { %v6759_v15 = vpop.f32.mrf.mxu0 }
 0x594   : > { %6978 = vst.msk [vmem:[#allocation9 + $0x20] sm:$0xff] %vm6973_vm10, %v6967_v28  ;;  %v6970_v33 = vmax.f32 %v6960_v29, 0.0  ;;  %v6959_v2 = vadd.f32 %v17558_v31, %v6942_v32  ;;  %v6945_v42 = vadd.f32 %v14111_v34, %v6777_v26  ;;  %v6776_v62 = vadd.f32 %v6759_v15, %v6608_v5  ;;  %v6988_v32 = vld [vmem:[#allocation9 + $0x8] sm:$0xff] }
 0x595   : > { %v6990_v13 = vld [vmem:[#allocation9 + $0x18] sm:$0xff] }
 0x596   : > { %6981 = vst.msk [vmem:[#allocation9 + $0x38] sm:$0xff] %vm6973_vm10, %v6970_v33  ;;  %v6969_v3 = vmax.f32 %v6959_v2, 0.0  ;;  %v6962_v38 = vadd.f32 %v17558_v31, %v6945_v42  ;;  %v6944_v30 = vadd.f32 %v6927_v49, %v6776_v62  ;;  %v6987_v49 = vld [vmem:[#allocation9] sm:$0xff] }
 0x597   : > { %v6989_v1 = vld [vmem:[#allocation9 + $0x10] sm:$0xff] }
 0x598   : > { %6980 = vst.msk [vmem:[#allocation9 + $0x30] sm:$0xff] %vm6973_vm10, %v6969_v3  ;;  %v6972_v9 = vmax.f32 %v6962_v38, 0.0  ;;  %v6961_v58 = vadd.f32 %v17558_v31, %v6944_v30  ;;  %v6998_v34 = vld [vmem:[#allocation9 + $0x11] sm:$0xff]  ;;  %v6997_v51 = vld [vmem:[#allocation9 + $0x9] sm:$0xff]  ;;  %v6996_v3 = vld [vmem:[#allocation9 + $0x1] sm:$0xff] }
 0x599   : > { %v6992_v52 = vld [vmem:[#allocation9 + $0x28] sm:$0xff]  ;;  %v7006_v37 = vld [vmem:[#allocation9 + $0x12] sm:$0xff]  ;;  %v7025_v2 = vmax.f32 %v6989_v1, %v6998_v34  ;;  %v7024_v42 = vmax.f32 %v6988_v32, %v6997_v51 }
 0x59a   : > { %6984 = vst.msk [vmem:[#allocation9 + $0x48] sm:$0x3f] %vm6983_vm11, %v6972_v9  ;;  %v6971_v46 = vmax.f32 %v6961_v58, 0.0  ;;  %v7015_v5 = vld [vmem:[#allocation9 + $0x13] sm:$0xff]  ;;  %v7005_v26 = vld [vmem:[#allocation9 + $0xa] sm:$0xff]  ;;  %v7023_v58 = vmax.f32 %v6987_v49, %v6996_v3 }
 0x59b   : > { %v6991_v17 = vld [vmem:[#allocation9 + $0x20] sm:$0xff]  ;;  %v7014_v15 = vld [vmem:[#allocation9 + $0xb] sm:$0xff]  ;;  %v7033_v62 = vmax.f32 %v7006_v37, %v7015_v5  ;;  %v7570_v1 = vld [vmem:[#allocation19 + $0x98] sm:$0xff] }
 0x59c   : > { %6982 = vst.msk [vmem:[#allocation9 + $0x40] sm:$0xff] %vm6973_vm10, %v6971_v46  ;;  %v7000_v27 = vld [vmem:[#allocation9 + $0x21] sm:$0xff]  ;;  %v6999_v16 = vld [vmem:[#allocation9 + $0x19] sm:$0xff]  ;;  %v7032_v30 = vmax.f32 %v7005_v26, %v7014_v15  ;;  %v7569_v5 = vld [vmem:[#allocation19 + $0x90] sm:$0xff] }
 0x59d   : > { %v6994_v60 = vld [vmem:[#allocation9 + $0x38] sm:$0xff]  ;;  %v7008_v10 = vld [vmem:[#allocation9 + $0x22] sm:$0xff]  ;;  %v7027_v48 = vmax.f32 %v6991_v17, %v7000_v27  ;;  %v7026_v45 = vmax.f32 %v6990_v13, %v6999_v16  ;;  %v7042_v9 = vmax.f32 %v7024_v42, %v7033_v62  ;;  %v7369_v17 = vld [vmem:[#allocation19 + $0x50] sm:$0xff] }
 0x59e   : > { %v7017_v39 = vld [vmem:[#allocation9 + $0x23] sm:$0xff]  ;;  %v7007_v35 = vld [vmem:[#allocation9 + $0x1a] sm:$0xff]  ;;  %v7041_v46 = vmax.f32 %v7023_v58, %v7032_v30  ;;  %v7869_v42 = vld [vmem:[#allocation19 + $0xf0] sm:$0xff] }
 0x59f   : > { %v6993_v21 = vld [vmem:[#allocation9 + $0x30] sm:$0xff]  ;;  %v7016_v22 = vld [vmem:[#allocation9 + $0x1b] sm:$0xff]  ;;  %v7035_v50 = vmax.f32 %v7008_v10, %v7017_v39  ;;  %v7668_v37 = vld [vmem:[#allocation19 + $0xa8] sm:$0xff] }
 0x5a0   : > { %v7002_v24 = vld [vmem:[#allocation9 + $0x31] sm:$0xff]  ;;  %v7001_v20 = vld [vmem:[#allocation9 + $0x29] sm:$0xff]  ;;  %v7034_v29 = vmax.f32 %v7007_v35, %v7016_v22  ;;  %v7467_v10 = vld [vmem:[#allocation19 + $0x60] sm:$0xff] }
 0x5a1   : > { %v7013_v36 = vld [vmem:[#allocation9 + $0x4a] sm:$0xf]  ;;  %v7010_v0 = vld [vmem:[#allocation9 + $0x32] sm:$0xff]  ;;  %v7029_v23 = vmax.f32 %v6993_v21, %v7002_v24  ;;  %v7028_v12 = vmax.f32 %v6992_v52, %v7001_v20  ;;  %v7044_v33 = vmax.f32 %v7026_v45, %v7035_v50  ;;  %v7367_v22 = vld [vmem:[#allocation19 + $0x40] sm:$0xff] }
 0x5a2   : > { %v7022_v8 = vld [vmem:[#allocation9 + $0x4b] sm:$0xf]  ;;  %v7019_v40 = vld [vmem:[#allocation9 + $0x33] sm:$0xff]  ;;  %v7043_v38 = vmax.f32 %v7025_v2, %v7034_v29  ;;  %v7567_v26 = vld [vmem:[#allocation19 + $0x80] sm:$0xff] }
 0x5a3   : > { %v6995_v59 = vld [vmem:[#allocation9 + $0x40] sm:$0xf]  ;;  %v7040_v25 = vmax.f32 %v7013_v36, %v7022_v8  ;;  %v7009_v19 = vld [vmem:[#allocation9 + $0x2a] sm:$0xff]  ;;  %v7037_v44 = vmax.f32 %v7010_v0, %v7019_v40  ;;  %v7051_v8 = vld [vmem:[#allocation31 + $0x8] sm:$0xff] }
 0x5a4   : > { %v7004_v54 = vld [vmem:[#allocation9 + $0x41] sm:$0xf]  ;;  %v7003_v4 = vld [vmem:[#allocation9 + $0x39] sm:$0xff]  ;;  %v7018_v55 = vld [vmem:[#allocation9 + $0x2b] sm:$0xff] }
 0x5a5   : > { %v7031_v43 = vmax.f32 %v6995_v59, %v7004_v54  ;;  %v7012_v61 = vld [vmem:[#allocation9 + $0x42] sm:$0xff]  ;;  %v7030_v6 = vmax.f32 %v6994_v60, %v7003_v4  ;;  %v7011_v7 = vld [vmem:[#allocation9 + $0x3a] sm:$0xff]  ;;  %v7036_v57 = vmax.f32 %v7009_v19, %v7018_v55  ;;  %v7046_v14 = vmax.f32 %v7028_v12, %v7037_v44  ;;  %v7050_v36 = vld [vmem:[#allocation31] sm:$0xff] }
 0x5a6   : > { %v7021_v63 = vld [vmem:[#allocation9 + $0x43] sm:$0xff]  ;;  %v7020_v11 = vld [vmem:[#allocation9 + $0x3b] sm:$0xff]  ;;  %v7175_v21 = vld [vmem:[#allocation19 + $0x10] sm:$0xff] }
 0x5a7   : > { %v7039_v31 = vmax.f32 %v7012_v61, %v7021_v63  ;;  %v7049_v41 = vmax.f32 %v7031_v43, %v7040_v25  ;;  %v7038_v56 = vmax.f32 %v7011_v7, %v7020_v11  ;;  %v7045_v28 = vmax.f32 %v7027_v48, %v7036_v57  ;;  %v7052_v60 = vld [vmem:[#allocation31 + $0x10] sm:$0xff]  ;;  %v7053_v59 = vld [vmem:[#allocation31 + $0x18] sm:$0xff]  ;;  %v7054_v54 = vld [vmem:[#allocation31 + $0x20] sm:$0xf] }
 0x5a8   : > { %v7176_v4 = vld [vmem:[#allocation19 + $0x18] sm:$0xff]  ;;  %v7174_v20 = vld [vmem:[#allocation19 + $0x8] sm:$0xff]  ;;  %v7183_v43 = vld [vmem:[#allocation19 + $0x30] sm:$0xff] }
 0x5a9   : > { %14113 = vmatpush3.msk.msra.mxu0 %vm1127_vm1, %v7049_v41  ;;  %v7048_v53 = vmax.f32 %v7030_v6, %v7039_v31  ;;  %v7047_v47 = vmax.f32 %v7029_v23, %v7038_v56  ;;  %v7184_v24 = vld [vmem:[#allocation19 + $0x38] sm:$0xff]  ;;  %v7173_v25 = vld [vmem:[#allocation19] sm:$0xff]  ;;  %v7182_v61 = vld [vmem:[#allocation19 + $0x28] sm:$0xff] }
 0x5aa   : > { %14114 = vmatprep.subr.mxu0 %v17595_v18  ;;  %14146 = vmatpush3.msra.mxu1 %v7184_v24  ;;  %v7181_v63 = vld [vmem:[#allocation19 + $0x20] sm:$0xff]  ;;  %v7470_v0 = vld [vmem:[#allocation19 + $0x78] sm:$0xff]  ;;  %v7469_v56 = vld [vmem:[#allocation19 + $0x70] sm:$0xff] }
 0x5ab   : > { %14115 = vmatpush3.msra.mxu0 %v7048_v53  ;;  %14147 = vmatprep.subr.mxu1 %v17595_v18  ;;  %v7370_v53 = vld [vmem:[#allocation19 + $0x58] sm:$0xff]  ;;  %v7468_v12 = vld [vmem:[#allocation19 + $0x68] sm:$0xff]  ;;  %v7669_v50 = vld [vmem:[#allocation19 + $0xb0] sm:$0xff] }
 0x5ac   : > { %14116 = vmatprep.subr.mxu0 %v17595_v18  ;;  %14148 = vmatpush3.msra.mxu1 %v7183_v43  ;;  %v7368_v57 = vld [vmem:[#allocation19 + $0x48] sm:$0xff]  ;;  %v7870_v15 = vld [vmem:[#allocation19 + $0xf8] sm:$0xff]  ;;  %v7769_v30 = vld [vmem:[#allocation19 + $0xd0] sm:$0xff] }
 0x5ad   : > { %14117 = vmatpush3.msra.mxu0 %v7047_v47  ;;  %14149 = vmatprep.subr.mxu1 %v17595_v18  ;;  %v7568_v32 = vld [vmem:[#allocation19 + $0x88] sm:$0xff]  ;;  %v7770_v49 = vld [vmem:[#allocation19 + $0xd8] sm:$0xff]  ;;  %v7967_v43 = vld [vmem:[#allocation19 + $0x100] sm:$0xff] }
 0x5ae   : > { %14118 = vmatprep.subr.mxu0 %v17595_v18  ;;  %14150 = vmatpush3.msra.mxu1 %v7182_v61 }
 0x5af   : > { %14119 = vmatpush3.msra.mxu0 %v7046_v14  ;;  %14151 = vmatprep.subr.mxu1 %v17595_v18  ;;  %v7670_v14 = vld [vmem:[#allocation19 + $0xb8] sm:$0xff] }
 0x5b0   : > { %14120 = vmatprep.subr.mxu0 %v17595_v18  ;;  %14152 = vmatpush3.msra.mxu1 %v7181_v63 }
 0x5b1   : > { %14121 = vmatpush3.msra.mxu0 %v7045_v28  ;;  %14179 = vmatprep.subr.mxu1 %v17595_v18  ;;  %v7667_v28 = vld [vmem:[#allocation19 + $0xa0] sm:$0xff] }
 0x5b2   : > { %14122 = vmatprep.subr.mxu0 %v17595_v18 }
 0x5b3   : > { %14123 = vmatpush3.msra.mxu0 %v7044_v33 }
 0x5b4   : > { %14124 = vmatprep.subr.mxu0 %v17595_v18 }
 0x5b5   : > { %14125 = vmatpush3.msra.mxu0 %v7043_v38  ;;  %v7868_v38 = vld [vmem:[#allocation19 + $0xe8] sm:$0xff] }
 0x5b6   : > { %14126 = vmatprep.subr.mxu0 %v17595_v18 }
 0x5b7   : > { %14127 = vmatpush3.msra.mxu0 %v7042_v9  ;;  %v7867_v9 = vld [vmem:[#allocation19 + $0xe0] sm:$0xff] }
 0x5b8   : > { %14128 = vmatprep.subr.mxu0 %v17595_v18 }
 0x5b9   : > { %14129 = vmatpush3.msra.mxu0 %v7041_v46  ;;  %v7768_v46 = vld [vmem:[#allocation19 + $0xc8] sm:$0xff] }
 0x5ba   : > { %14131 = vmatmul.mubr.msk.f32.vlgmr.msra.gmra.mxu0 %vm7055_vm12, %v7050_v36  ;;  %14162 = vmatprep.subr.mxu0 %v17595_v18 }
 0x5bb   : > { %14133 = vmatprep.mubr.msk.f32.mxu0 %vm15351_vm6, %v17595_v18  ;;  %14163 = vmatpush3.msra.mxu0 %v7176_v4  ;;  %v7969_v4 = vld [vmem:[#allocation19 + $0x110] sm:$0xff] }
 0x5bc   : > { %14164 = vmatprep.subr.mxu0 %v17595_v18 }
 0x5bd   : > { %14165 = vmatpush3.msra.mxu0 %v7175_v21 }
 0x5be   : > { %14134 = vmatmul.mubr.msk.f32.gmra.mxu0 %vm7055_vm12, %v7051_v8  ;;  %14166 = vmatprep.subr.mxu0 %v17595_v18  ;;  %v7767_v8 = vld [vmem:[#allocation19 + $0xc0] sm:$0xff] }
 0x5bf   : > { %14136 = vmatprep.mubr.msk.f32.mxu0 %vm15351_vm6, %v17595_v18  ;;  %14167 = vmatpush3.msra.mxu0 %v7174_v20  ;;  %v7968_v20 = vld [vmem:[#allocation19 + $0x108] sm:$0xff] }
 0x5c0   : > { %14168 = vmatprep.subr.mxu0 %v17595_v18 }
 0x5c1   : > { %14169 = vmatpush3.msra.mxu0 %v7173_v25 }
 0x5c2   : > { %14137 = vmatmul.mubr.msk.f32.gmra.mxu0 %vm7055_vm12, %v7052_v60  ;;  %14196 = vmatprep.subr.mxu0 %v17595_v18 }
 0x5c3   : > { %14139 = vmatprep.mubr.msk.f32.mxu0 %vm15351_vm6, %v17595_v18 }
 0x5c6   : > { %14140 = vmatmul.mubr.msk.f32.gmra.mxu0 %vm7055_vm12, %v7053_v59 }
 0x5c7   : > { %14142 = vmatprep.mubr.msk.f32.mxu0 %vm15351_vm6, %v17595_v18 }
 0x5ca   : > { %14143 = vmatmul.mubr.msk.f32.gmra.mxu0 %vm7055_vm12, %v7054_v54  ;;  %v7970_v54 = vld [vmem:[#allocation19 + $0x118] sm:$0xff] }
 0x5cb   : > { %14170 = vmatprep.mubr.msk.f32.mxu0 %vm15351_vm6, %v17595_v18 }
 0x67a   : > { %v7140_v6 = vpop.f32.mrf.mxu0 }
 0x67b   : > { %7164 = vst.msk [vmem:[#allocation4] sm:$0xff] %vm6973_vm10, %v7140_v6  ;;  %v8125_v6 = vld [vmem:[#allocation22 + $0xf8] sm:$0xff] }
 0x67c   : > { %v14132_v7 = vpop.f32.mrf.mxu0 }
 0x67d   : > { %v8105_v7 = vld [vmem:[#allocation22 + $0x78] sm:$0xff] }
 0x67e   : > { %v7145_v31 = vpop.f32.mrf.mxu0 }
 0x67f   : > { %7165 = vst.msk [vmem:[#allocation4 + $0x8] sm:$0xff] %vm6973_vm10, %v7145_v31  ;;  %v8124_v31 = vld [vmem:[#allocation22 + $0xf0] sm:$0xff] }
 0x680   : > { %v14135_v11 = vpop.f32.mrf.mxu0 }
 0x681   : > { %v8104_v11 = vld [vmem:[#allocation22 + $0x70] sm:$0xff] }
 0x682   : > { %v7150_v40 = vpop.f32.mrf.mxu0  ;;  %v7170_v41 = vld [vmem:[#allocation4] sm:$0xff] }
 0x683   : > { %7166 = vst.msk [vmem:[#allocation4 + $0x10] sm:$0xff] %vm6973_vm10, %v7150_v40  ;;  %14171 = vmatmul.mubr.msk.f32.vlgmr.msra.gmra.mxu0 %vm6973_vm10, %v7170_v41  ;;  %v8103_v40 = vld [vmem:[#allocation22 + $0x68] sm:$0xff]  ;;  %v8122_v41 = vld [vmem:[#allocation22 + $0xe0] sm:$0xff] }
 0x684   : > { %14173 = vmatprep.mubr.msk.f32.mxu0 %vm15351_vm6, %v17595_v18  ;;  %14197 = vmatpush3.msra.mxu0 %v7470_v0  ;;  %v14138_v52 = vpop.f32.mrf.mxu0  ;;  %v8123_v0 = vld [vmem:[#allocation22 + $0xe8] sm:$0xff] }
 0x685   : > { %14198 = vmatprep.subr.mxu0 %v17595_v18  ;;  %v8121_v52 = vld [vmem:[#allocation22 + $0xd8] sm:$0xff] }
 0x686   : > { %v7177_v19 = vld [vmem:[#allocation4 + $0x1] sm:$0xff]  ;;  %14199 = vmatpush3.msra.mxu0 %v7469_v56  ;;  %v7155_v23 = vpop.f32.mrf.mxu0 }
 0x687   : > { %v17636_v55 = vld [vmem:[#allocation4 + $0x8] sm:$0xff]  ;;  %14154 = vmatmul.mubr.msk.f32.vlgmr.msra.gmra.mxu1 %vm6973_vm10, %v7177_v19  ;;  %7167 = vst.msk [vmem:[#allocation4 + $0x18] sm:$0xff] %vm6973_vm10, %v7155_v23  ;;  %14200 = vmatprep.subr.mxu0 %v17595_v18  ;;  %v8101_v19 = vld [vmem:[#allocation22 + $0x58] sm:$0xff] }
 0x688   : > { %14174 = vmatmul.mubr.msk.f32.gmra.mxu0 %vm6973_vm10, %v17636_v55  ;;  %14156 = vmatprep.mubr.msk.f32.mxu1 %vm15351_vm6, %v17595_v18  ;;  %v14141_v44 = vpop.f32.mrf.mxu0  ;;  %v7463_v35 = vld [vmem:[#allocation4 + $0x6] sm:$0xff] }
 0x689   : > { %14176 = vmatprep.mubr.msk.f32.mxu0 %vm15351_vm6, %v17595_v18  ;;  %14180 = vmatpush3.msra.mxu1 %v7370_v53  ;;  %v7363_v48 = vld [vmem:[#allocation4 + $0x2] sm:$0xff]  ;;  %v8100_v53 = vld [vmem:[#allocation22 + $0x50] sm:$0xff]  ;;  %v8119_v23 = vld [vmem:[#allocation22 + $0xc8] sm:$0xff] }
 0x68a   : > { %v7178_v27 = vld [vmem:[#allocation4 + $0x9] sm:$0xff]  ;;  %14201 = vmatpush3.msra.mxu0 %v7468_v12  ;;  %14181 = vmatprep.subr.mxu1 %v17595_v18  ;;  %v7160_v39 = vpop.f32.mrf.mxu0  ;;  %v7179_v13 = vld [vmem:[#allocation4 + $0x11] sm:$0x3f] }
 0x68b   : > { %v7172_v16 = vld [vmem:[#allocation4 + $0x10] sm:$0x3f]  ;;  %14157 = vmatmul.mubr.msk.f32.gmra.mxu1 %vm6973_vm10, %v7178_v27  ;;  %7169 = vst.msk [vmem:[#allocation4 + $0x20] sm:$0xf] %vm7168_vm13, %v7160_v39  ;;  %14202 = vmatprep.subr.mxu0 %v17595_v18  ;;  %v7563_v33 = vld [vmem:[#allocation4 + $0x7] sm:$0xff]  ;;  %v8117_v27 = vld [vmem:[#allocation22 + $0xb8] sm:$0xff] }
 0x68c   : > { %14177 = vmatmul.mubr.msk.f32.gmra.mxu0 %vm6973_vm10, %v7172_v16  ;;  %14159 = vmatprep.mubr.msk.f32.mxu1 %vm15351_vm6, %v17595_v18  ;;  %v14144_v47 = vpop.f32.mrf.mxu0  ;;  %v17663_v45 = vld [vmem:[#allocation4 + $0xe] sm:$0xff]  ;;  %v8102_v56 = vld [vmem:[#allocation22 + $0x60] sm:$0xff]  ;;  %v8097_v16 = vld [vmem:[#allocation22 + $0x38] sm:$0xff] }
 0x68d   : > { %14182 = vmatpush3.msra.mxu1 %v7369_v17  ;;  %14203 = vmatpush3.msra.mxu0 %v7467_v10  ;;  %v7364_v34 = vld [vmem:[#allocation4 + $0xa] sm:$0xff]  ;;  %v7365_v29 = vld [vmem:[#allocation4 + $0x12] sm:$0x3f]  ;;  %v8118_v44 = vld [vmem:[#allocation22 + $0xc0] sm:$0xff] }
 0x68e   : > { %14204 = vmatprep.mubr.msk.f32.mxu0 %vm15351_vm6, %v17595_v18  ;;  %14183 = vmatprep.subr.mxu1 %v17595_v18  ;;  %v7465_v51 = vld [vmem:[#allocation4 + $0x16] sm:$0x3f]  ;;  %v7863_v36 = vld [vmem:[#allocation4 + $0xd] sm:$0xff]  ;;  %v8098_v17 = vld [vmem:[#allocation22 + $0x40] sm:$0xff] }
 0x68f   : > { %14160 = vmatmul.mubr.msk.f32.gmra.mxu1 %vm6973_vm10, %v7179_v13  ;;  %14230 = vmatprep.subr.mxu0 %v17595_v18  ;;  %v7664_v2 = vld [vmem:[#allocation4 + $0x10] sm:$0xff]  ;;  %v7665_v62 = vld [vmem:[#allocation4 + $0x18] sm:$0x3f]  ;;  %v8114_v13 = vld [vmem:[#allocation22 + $0xa0] sm:$0xff] }
 0x690   : > { %14205 = vmatmul.mubr.msk.f32.vlgmr.msra.gmra.mxu0 %vm6973_vm10, %v7463_v35  ;;  %14184 = vmatpush3.msra.mxu1 %v7368_v57  ;;  %v7564_v3 = vld [vmem:[#allocation4 + $0xf] sm:$0xff]  ;;  %v7565_v58 = vld [vmem:[#allocation4 + $0x17] sm:$0x3f]  ;;  %v8094_v35 = vld [vmem:[#allocation22 + $0x20] sm:$0xff] }
 0x691   : > { %14187 = vmatprep.mubr.msk.f32.mxu1 %vm15351_vm6, %v17595_v18  ;;  %14185 = vmatprep.subr.mxu1 %v17595_v18  ;;  %v7763_v60 = vld [vmem:[#allocation4 + $0xc] sm:$0xff]  ;;  %v7864_v59 = vld [vmem:[#allocation4 + $0x15] sm:$0xff] }
 0x692   : > { %14207 = vmatprep.mubr.msk.f32.mxu0 %vm15351_vm6, %v17595_v18  ;;  %14186 = vmatpush3.msra.mxu1 %v7367_v22  ;;  %v7764_v21 = vld [vmem:[#allocation4 + $0x14] sm:$0xff]  ;;  %v7865_v24 = vld [vmem:[#allocation4 + $0x1d] sm:$0x3f]  ;;  %v8099_v12 = vld [vmem:[#allocation22 + $0x48] sm:$0xff] }
 0x693   : > { %14188 = vmatmul.mubr.msk.f32.vlgmr.msra.gmra.mxu1 %vm6973_vm10, %v7363_v48  ;;  %14231 = vmatpush3.msra.mxu0 %v7670_v14  ;;  %v7765_v25 = vld [vmem:[#allocation4 + $0x1c] sm:$0x3f]  ;;  %v8116_v10 = vld [vmem:[#allocation22 + $0xb0] sm:$0xff]  ;;  %v8115_v47 = vld [vmem:[#allocation22 + $0xa8] sm:$0xff] }
 0x694   : > { %14208 = vmatmul.mubr.msk.f32.gmra.mxu0 %vm6973_vm10, %v17663_v45  ;;  %14190 = vmatprep.mubr.msk.f32.mxu1 %vm15351_vm6, %v17595_v18  ;;  %v7964_v61 = vld [vmem:[#allocation4 + $0x16] sm:$0xff]  ;;  %v7965_v63 = vld [vmem:[#allocation4 + $0x1e] sm:$0x3f]  ;;  %v8095_v57 = vld [vmem:[#allocation22 + $0x28] sm:$0xff] }
 0x695   : > { %14232 = vmatprep.subr.mxu0 %v17595_v18  ;;  %14210 = vmatprep.mubr.msk.f32.mxu0 %vm15351_vm6, %v17595_v18  ;;  %v8096_v39 = vld [vmem:[#allocation22 + $0x30] sm:$0xff]  ;;  %v8113_v22 = vld [vmem:[#allocation22 + $0x98] sm:$0xff] }
 0x696   : > { %14233 = vmatpush3.msra.mxu0 %v7669_v50  ;;  %14213 = vmatprep.subr.mxu1 %v17595_v18  ;;  %v8093_v14 = vld [vmem:[#allocation22 + $0x18] sm:$0xff]  ;;  %v8112_v48 = vld [vmem:[#allocation22 + $0x90] sm:$0xff]  ;;  %v8111_v50 = vld [vmem:[#allocation22 + $0x88] sm:$0xff] }
 0x697   : > { %14191 = vmatmul.mubr.msk.f32.gmra.mxu1 %vm6973_vm10, %v7364_v34  ;;  %14234 = vmatprep.subr.mxu0 %v17595_v18  ;;  %v8110_v34 = vld [vmem:[#allocation22 + $0x80] sm:$0xff] }
 0x698   : > { %14211 = vmatmul.mubr.msk.f32.gmra.mxu0 %vm6973_vm10, %v7465_v51  ;;  %14214 = vmatpush3.msra.mxu1 %v7570_v1  ;;  %v8091_v1 = vld [vmem:[#allocation22 + $0x8] sm:$0xff]  ;;  %v8090_v51 = vld [vmem:[#allocation22] sm:$0xff] }
 0x699   : > { %14235 = vmatpush3.msra.mxu0 %v7668_v37  ;;  %14215 = vmatprep.subr.mxu1 %v17595_v18 }
 0x69a   : > { %14236 = vmatprep.subr.mxu0 %v17595_v18  ;;  %14193 = vmatprep.mubr.msk.f32.mxu1 %vm15351_vm6, %v17595_v18 }
 0x69b   : > { %14216 = vmatpush3.msra.mxu1 %v7569_v5  ;;  %14237 = vmatpush3.msra.mxu0 %v7667_v28 }
 0x69c   : > { %14238 = vmatprep.mubr.msk.f32.mxu0 %vm15351_vm6, %v17595_v18  ;;  %14194 = vmatmul.mubr.msk.f32.gmra.mxu1 %vm6973_vm10, %v7365_v29 }
 0x69d   : > { %14217 = vmatprep.subr.mxu1 %v17595_v18  ;;  %14239 = vmatmul.mubr.msk.f32.vlgmr.msra.gmra.mxu0 %vm6973_vm10, %v17636_v55  ;;  %v8120_v55 = vld [vmem:[#allocation22 + $0xd0] sm:$0xff] }
 0x69e   : > { %14218 = vmatpush3.msra.mxu1 %v7568_v32  ;;  %14221 = vmatprep.mubr.msk.f32.mxu1 %vm15351_vm6, %v17595_v18 }
 0x69f   : > { %14219 = vmatprep.subr.mxu1 %v17595_v18  ;;  %14241 = vmatprep.mubr.msk.f32.mxu0 %vm15351_vm6, %v17595_v18 }
 0x6a0   : > { %14220 = vmatpush3.msra.mxu1 %v7567_v26  ;;  %14264 = vmatprep.subr.mxu0 %v17595_v18 }
 0x6a1   : > { %14222 = vmatmul.mubr.msk.f32.vlgmr.msra.gmra.mxu1 %vm6973_vm10, %v7563_v33  ;;  %14242 = vmatmul.mubr.msk.f32.gmra.mxu0 %vm6973_vm10, %v7664_v2 }
 0x6a2   : > { %14265 = vmatpush3.msra.mxu0 %v7870_v15  ;;  %14224 = vmatprep.mubr.msk.f32.mxu1 %vm15351_vm6, %v17595_v18 }
 0x6a3   : > { %14266 = vmatprep.subr.mxu0 %v17595_v18  ;;  %14244 = vmatprep.mubr.msk.f32.mxu0 %vm15351_vm6, %v17595_v18 }
 0x6a4   : > { %14267 = vmatpush3.msra.mxu0 %v7869_v42  ;;  %14247 = vmatprep.subr.mxu1 %v17595_v18 }
 0x6a5   : > { %14225 = vmatmul.mubr.msk.f32.gmra.mxu1 %vm6973_vm10, %v7564_v3  ;;  %14245 = vmatmul.mubr.msk.f32.gmra.mxu0 %vm6973_vm10, %v7665_v62 }
 0x6a6   : > { %14268 = vmatprep.subr.mxu0 %v17595_v18  ;;  %14248 = vmatpush3.msra.mxu1 %v7770_v49 }
 0x6a7   : > { %14269 = vmatpush3.msra.mxu0 %v7868_v38  ;;  %14249 = vmatprep.subr.mxu1 %v17595_v18 }
 0x6a8   : > { %14270 = vmatprep.subr.mxu0 %v17595_v18  ;;  %14227 = vmatprep.mubr.msk.f32.mxu1 %vm15351_vm6, %v17595_v18 }
 0x6a9   : > { %14250 = vmatpush3.msra.mxu1 %v7769_v30  ;;  %14271 = vmatpush3.msra.mxu0 %v7867_v9 }
 0x6aa   : > { %14272 = vmatprep.mubr.msk.f32.mxu0 %vm15351_vm6, %v17595_v18  ;;  %14228 = vmatmul.mubr.msk.f32.gmra.mxu1 %vm6973_vm10, %v7565_v58 }
 0x6ab   : > { %14251 = vmatprep.subr.mxu1 %v17595_v18  ;;  %14273 = vmatmul.mubr.msk.f32.vlgmr.msra.gmra.mxu0 %vm6973_vm10, %v7863_v36 }
 0x6ac   : > { %14252 = vmatpush3.msra.mxu1 %v7768_v46  ;;  %14255 = vmatprep.mubr.msk.f32.mxu1 %vm15351_vm6, %v17595_v18 }
 0x6ad   : > { %14253 = vmatprep.subr.mxu1 %v17595_v18  ;;  %14275 = vmatprep.mubr.msk.f32.mxu0 %vm15351_vm6, %v17595_v18 }
 0x6ae   : > { %14254 = vmatpush3.msra.mxu1 %v7767_v8  ;;  %14298 = vmatprep.subr.mxu0 %v17595_v18 }
 0x6af   : > { %14256 = vmatmul.mubr.msk.f32.vlgmr.msra.gmra.mxu1 %vm6973_vm10, %v7763_v60  ;;  %14276 = vmatmul.mubr.msk.f32.gmra.mxu0 %vm6973_vm10, %v7864_v59 }
 0x6b0   : > { %14258 = vmatprep.mubr.msk.f32.mxu1 %vm15351_vm6, %v17595_v18  ;;  %14281 = vmatprep.subr.mxu1 %v17595_v18 }
 0x6b1   : > { %14282 = vmatpush3.msra.mxu1 %v7970_v54  ;;  %14278 = vmatprep.mubr.msk.f32.mxu0 %vm15351_vm6, %v17595_v18 }
 0x6b2   : > { %14283 = vmatprep.subr.mxu1 %v17595_v18  ;;  %14299 = vmatpush3.msra.mxu0 %v8125_v6 }
 0x6b3   : > { %14259 = vmatmul.mubr.msk.f32.gmra.mxu1 %vm6973_vm10, %v7764_v21  ;;  %14279 = vmatmul.mubr.msk.f32.gmra.mxu0 %vm6973_vm10, %v7865_v24 }
 0x6b4   : > { %14261 = vmatprep.mubr.msk.f32.mxu1 %vm15351_vm6, %v17595_v18  ;;  %14284 = vmatpush3.msra.mxu1 %v7969_v4 }
 0x6b5   : > { %14285 = vmatprep.subr.mxu1 %v17595_v18  ;;  %14330 = vmatprep.mubr.msk.f32.mxu0 %vm15351_vm6, %v17595_v18 }
 0x6b6   : > { %14286 = vmatpush3.msra.mxu1 %v7968_v20  ;;  %14300 = vmatprep.subr.mxu0 %v17595_v18 }
 0x6b7   : > { %14262 = vmatmul.mubr.msk.f32.gmra.mxu1 %vm6973_vm10, %v7765_v25  ;;  %14287 = vmatprep.subr.mxu1 %v17595_v18 }
 0x6b8   : > { %14288 = vmatpush3.msra.mxu1 %v7967_v43  ;;  %14289 = vmatprep.mubr.msk.f32.mxu1 %vm15351_vm6, %v17595_v18 }
 0x6b9   : > { %14339 = vmatprep.subr.mxu1 %v17595_v18  ;;  %14301 = vmatpush3.msra.mxu0 %v8124_v31 }
 0x6ba   : > { %14302 = vmatprep.subr.mxu0 %v17595_v18 }
 0x6bb   : > { %14290 = vmatmul.mubr.msk.f32.vlgmr.msra.gmra.mxu1 %vm6973_vm10, %v17663_v45  ;;  %14303 = vmatpush3.msra.mxu0 %v8123_v0  ;;  %v8092_v45 = vld [vmem:[#allocation22 + $0x10] sm:$0xff] }
 0x6bc   : > { %14292 = vmatprep.mubr.msk.f32.mxu1 %vm15351_vm6, %v17595_v18  ;;  %14340 = vmatpush3.msra.mxu1 %v8105_v7 }
 0x6bd   : > { %14341 = vmatprep.subr.mxu1 %v17595_v18  ;;  %14304 = vmatprep.subr.mxu0 %v17595_v18 }
 0x6be   : > { %14342 = vmatpush3.msra.mxu1 %v8104_v11  ;;  %14305 = vmatpush3.msra.mxu0 %v8122_v41 }
 0x6bf   : > { %14293 = vmatmul.mubr.msk.f32.gmra.mxu1 %vm6973_vm10, %v7964_v61  ;;  %14343 = vmatprep.subr.mxu1 %v17595_v18 }
 0x6c0   : > { %14295 = vmatprep.mubr.msk.f32.mxu1 %vm15351_vm6, %v17595_v18  ;;  %14344 = vmatpush3.msra.mxu1 %v8103_v40 }
 0x6c1   : > { %14345 = vmatprep.subr.mxu1 %v17595_v18  ;;  %14306 = vmatprep.subr.mxu0 %v17595_v18 }
 0x6c2   : > { %14346 = vmatpush3.msra.mxu1 %v8102_v56  ;;  %14307 = vmatpush3.msra.mxu0 %v8121_v52 }
 0x6c3   : > { %14296 = vmatmul.mubr.msk.f32.gmra.mxu1 %vm6973_vm10, %v7965_v63  ;;  %14347 = vmatprep.subr.mxu1 %v17595_v18 }
 0x6c4   : > { %14371 = vmatprep.mubr.msk.f32.mxu1 %vm15351_vm6, %v17595_v18  ;;  %14348 = vmatpush3.msra.mxu1 %v8101_v19 }
 0x6c5   : > { %14308 = vmatprep.subr.mxu0 %v17595_v18  ;;  %14349 = vmatprep.subr.mxu1 %v17595_v18 }
 0x6c6   : > { %14309 = vmatpush3.msra.mxu0 %v8120_v55  ;;  %14350 = vmatpush3.msra.mxu1 %v8100_v53 }
 0x6c7   : > { %14310 = vmatprep.subr.mxu0 %v17595_v18  ;;  %14351 = vmatprep.subr.mxu1 %v17595_v18 }
 0x6c8   : > { %14311 = vmatpush3.msra.mxu0 %v8119_v23  ;;  %14352 = vmatpush3.msra.mxu1 %v8099_v12 }
 0x6c9   : > { %14312 = vmatprep.subr.mxu0 %v17595_v18  ;;  %14353 = vmatprep.subr.mxu1 %v17595_v18 }
 0x6ca   : > { %14313 = vmatpush3.msra.mxu0 %v8118_v44  ;;  %14354 = vmatpush3.msra.mxu1 %v8098_v17 }
 0x6cb   : > { %14314 = vmatprep.subr.mxu0 %v17595_v18  ;;  %14355 = vmatprep.subr.mxu1 %v17595_v18 }
 0x6cc   : > { %14315 = vmatpush3.msra.mxu0 %v8117_v27  ;;  %14356 = vmatpush3.msra.mxu1 %v8097_v16 }
 0x6cd   : > { %14316 = vmatprep.subr.mxu0 %v17595_v18  ;;  %14357 = vmatprep.subr.mxu1 %v17595_v18 }
 0x6ce   : > { %14317 = vmatpush3.msra.mxu0 %v8116_v10  ;;  %14358 = vmatpush3.msra.mxu1 %v8096_v39 }
 0x6cf   : > { %14318 = vmatprep.subr.mxu0 %v17595_v18  ;;  %14359 = vmatprep.subr.mxu1 %v17595_v18 }
 0x6d0   : > { %14319 = vmatpush3.msra.mxu0 %v8115_v47  ;;  %14360 = vmatpush3.msra.mxu1 %v8095_v57 }
 0x6d1   : > { %14320 = vmatprep.subr.mxu0 %v17595_v18  ;;  %14361 = vmatprep.subr.mxu1 %v17595_v18 }
 0x6d2   : > { %14321 = vmatpush3.msra.mxu0 %v8114_v13  ;;  %14362 = vmatpush3.msra.mxu1 %v8094_v35 }
 0x6d3   : > { %14322 = vmatprep.subr.mxu0 %v17595_v18  ;;  %14363 = vmatprep.subr.mxu1 %v17595_v18 }
 0x6d4   : > { %14323 = vmatpush3.msra.mxu0 %v8113_v22  ;;  %14364 = vmatpush3.msra.mxu1 %v8093_v14 }
 0x6d5   : > { %14324 = vmatprep.subr.mxu0 %v17595_v18  ;;  %14365 = vmatprep.subr.mxu1 %v17595_v18 }
 0x6d6   : > { %14325 = vmatpush3.msra.mxu0 %v8112_v48  ;;  %14366 = vmatpush3.msra.mxu1 %v8092_v45 }
 0x6d7   : > { %14326 = vmatprep.subr.mxu0 %v17595_v18  ;;  %14367 = vmatprep.subr.mxu1 %v17595_v18 }
 0x6d8   : > { %14327 = vmatpush3.msra.mxu0 %v8111_v50  ;;  %14368 = vmatpush3.msra.mxu1 %v8091_v1 }
 0x6d9   : > { %14328 = vmatprep.subr.mxu0 %v17595_v18  ;;  %14369 = vmatprep.subr.mxu1 %v17595_v18 }
 0x6da   : > { %14329 = vmatpush3.msra.mxu0 %v8110_v34  ;;  %14370 = vmatpush3.msra.mxu1 %v8090_v51 }
 0x6db   : > { %14380 = vmatprep.subr.mxu0 %v17595_v18  ;;  %14421 = vmatprep.subr.mxu1 %v17595_v18 }
 0x743   : > { %v7349_v37 = vpop.f32.mrf.mxu0 }
 0x745   : > { %v14172_v5 = vpop.f32.mrf.mxu0 }
 0x747   : > { %v7260_v28 = vpop.f32.mrf.mxu1 }
 0x748   : > { %v7354_v29 = vpop.f32.mrf.mxu0  ;;  %v7350_v11 = vadd.f32 %v7349_v37, %v7260_v28 }
 0x749   : > { %v14155_v32 = vpop.f32.mrf.mxu1 }
 0x74a   : > { %v14175_v26 = vpop.f32.mrf.mxu0 }
 0x74b   : > { %v7265_v15 = vpop.f32.mrf.mxu1 }
 0x74c   : > { %v7359_v33 = vpop.f32.mrf.mxu0  ;;  %v7355_v56 = vadd.f32 %v7354_v29, %v7265_v15  ;;  %v12316_v29 = vld [vmem:[#allocation20] ss:$0 sm:$0xff] }
 0x74d   : > { %v14158_v2 = vpop.f32.mrf.mxu1 }
 0x74e   : > { %v14178_v42 = vpop.f32.mrf.mxu0 }
 0x74f   : > { %v7270_v62 = vpop.f32.mrf.mxu1 }
 0x750   : > { %v7546_v49 = vpop.f32.mrf.mxu0  ;;  %v7360_v44 = vadd.f32 %v7359_v33, %v7270_v62 }
 0x751   : > { %v14161_v3 = vpop.f32.mrf.mxu1 }
 0x752   : > { %v14206_v38 = vpop.f32.mrf.mxu0 }
 0x753   : > { %v7446_v30 = vpop.f32.mrf.mxu1 }
 0x754   : > { %v7551_v9 = vpop.f32.mrf.mxu0  ;;  %v7460_v0 = vadd.f32 %v7446_v30, %v7350_v11  ;;  %v8301_v11 = vld [vmem:[#allocation22 + $0x158] sm:$0xff] }
 0x755   : > { %v14189_v58 = vpop.f32.mrf.mxu1 }
 0x756   : > { %v14209_v46 = vpop.f32.mrf.mxu0  ;;  %v7560_v53 = vadd.f32 %v7546_v49, %v7460_v0  ;;  %v8404_v0 = vld [vmem:[#allocation22 + $0x1d8] sm:$0xff] }
 0x757   : > { %v7451_v36 = vpop.f32.mrf.mxu1 }
 0x758   : > { %v7556_v8 = vpop.f32.mrf.mxu0  ;;  %v7461_v55 = vadd.f32 %v7451_v36, %v7355_v56  ;;  %v8300_v56 = vld [vmem:[#allocation22 + $0x150] sm:$0xff] }
 0x759   : > { %v14192_v60 = vpop.f32.mrf.mxu1 }
 0x75a   : > { %v14212_v59 = vpop.f32.mrf.mxu0  ;;  %v7561_v39 = vadd.f32 %v7551_v9, %v7461_v55  ;;  %v8402_v55 = vld [vmem:[#allocation22 + $0x1c8] sm:$0xff] }
 0x75c   : > { %v7456_v54 = vpop.f32.mrf.mxu1 }
 0x75d   : > { %v7746_v4 = vpop.f32.mrf.mxu0  ;;  %v7462_v10 = vadd.f32 %v7456_v54, %v7360_v44  ;;  %v8305_v54 = vld [vmem:[#allocation22 + $0x178] sm:$0xff] }
 0x75e   : > { %v14195_v21 = vpop.f32.mrf.mxu1  ;;  %v8297_v44 = vld [vmem:[#allocation22 + $0x138] sm:$0xff] }
 0x75f   : > { %v14240_v24 = vpop.f32.mrf.mxu0  ;;  %v7562_v48 = vadd.f32 %v7556_v8, %v7462_v10  ;;  %v8398_v10 = vld [vmem:[#allocation22 + $0x1a8] sm:$0xff] }
 0x761   : > { %v7646_v20 = vpop.f32.mrf.mxu1  ;;  %v7751_v43 = vpop.f32.mrf.mxu0 }
 0x762   : > { %v7660_v17 = vadd.f32 %v7646_v20, %v7560_v53  ;;  %v8304_v20 = vld [vmem:[#allocation22 + $0x170] sm:$0xff]  ;;  %v8298_v53 = vld [vmem:[#allocation22 + $0x140] sm:$0xff] }
 0x763   : > { %v14223_v25 = vpop.f32.mrf.mxu1  ;;  %v14243_v61 = vpop.f32.mrf.mxu0 }
 0x764   : > { %v7760_v35 = vadd.f32 %v7746_v4, %v7660_v17  ;;  %v8408_v4 = vld [vmem:[#allocation22 + $0x1f8] sm:$0xff] }
 0x765   : > { %v7651_v63 = vpop.f32.mrf.mxu1  ;;  %v7756_v6 = vpop.f32.mrf.mxu0  ;;  %v8400_v17 = vld [vmem:[#allocation22 + $0x1b8] sm:$0xff] }
 0x766   : > { %v7661_v13 = vadd.f32 %v7651_v63, %v7561_v39  ;;  %v8303_v63 = vld [vmem:[#allocation22 + $0x168] sm:$0xff]  ;;  %v8294_v39 = vld [vmem:[#allocation22 + $0x120] sm:$0xff] }
 0x767   : > { %v14226_v7 = vpop.f32.mrf.mxu1  ;;  %v14246_v31 = vpop.f32.mrf.mxu0 }
 0x768   : > { %v7761_v34 = vadd.f32 %v7751_v43, %v7661_v13  ;;  %v8407_v43 = vld [vmem:[#allocation22 + $0x1f0] sm:$0xff]  ;;  %v8302_v7 = vld [vmem:[#allocation22 + $0x160] sm:$0xff]  ;;  %v8396_v13 = vld [vmem:[#allocation22 + $0x198] sm:$0xff] }
 0x769   : > { %v8405_v31 = vld [vmem:[#allocation22 + $0x1e0] sm:$0xff] }
 0x76a   : > { %v7656_v40 = vpop.f32.mrf.mxu1 }
 0x76b   : > { %v7946_v41 = vpop.f32.mrf.mxu0  ;;  %v7662_v1 = vadd.f32 %v7656_v40, %v7562_v48  ;;  %v8394_v48 = vld [vmem:[#allocation22 + $0x188] sm:$0xff] }
 0x76c   : > { %v14229_v52 = vpop.f32.mrf.mxu1 }
 0x76d   : > { %v14274_v19 = vpop.f32.mrf.mxu0  ;;  %v7762_v32 = vadd.f32 %v7756_v6, %v7662_v1  ;;  %v8406_v6 = vld [vmem:[#allocation22 + $0x1e8] sm:$0xff]  ;;  %v8403_v52 = vld [vmem:[#allocation22 + $0x1d0] sm:$0xff]  ;;  %v8511_v1 = vld [vmem:[#allocation22 + $0x278] sm:$0xff] }
 0x76e   : > { %v8299_v19 = vld [vmem:[#allocation22 + $0x148] sm:$0xff] }
 0x76f   : > { %v7846_v23 = vpop.f32.mrf.mxu1  ;;  %v7951_v12 = vpop.f32.mrf.mxu0 }
 0x770   : > { %v7860_v45 = vadd.f32 %v7846_v23, %v7760_v35  ;;  %v8401_v23 = vld [vmem:[#allocation22 + $0x1c0] sm:$0xff]  ;;  %v8292_v35 = vld [vmem:[#allocation22 + $0x110] sm:$0xff] }
 0x771   : > { %v14257_v27 = vpop.f32.mrf.mxu1  ;;  %v14277_v16 = vpop.f32.mrf.mxu0 }
 0x772   : > { %v7960_v5 = vadd.f32 %v7946_v41, %v7860_v45  ;;  %v8296_v27 = vld [vmem:[#allocation22 + $0x130] sm:$0xff]  ;;  %v8295_v16 = vld [vmem:[#allocation22 + $0x128] sm:$0xff]  ;;  %v8290_v45 = vld [vmem:[#allocation22 + $0x100] sm:$0xff] }
 0x773   : > { %v7851_v47 = vpop.f32.mrf.mxu1  ;;  %v7956_v57 = vpop.f32.mrf.mxu0 }
 0x774   : > { %v7861_v37 = vadd.f32 %v7851_v47, %v7761_v34  ;;  %v8397_v47 = vld [vmem:[#allocation22 + $0x1a0] sm:$0xff] }
 0x775   : > { %v14260_v22 = vpop.f32.mrf.mxu1  ;;  %v14280_v14 = vpop.f32.mrf.mxu0 }
 0x776   : > { %v7961_v42 = vadd.f32 %v7951_v12, %v7861_v37  ;;  %v17808_v12 = vld [vmem:[#allocation7 + $0x10] sm:$0xff]  ;;  %v8614_v37 = vld [vmem:[#allocation22 + $0x2f8] sm:$0xff] }
 0x777   : > { %v7856_v50 = vpop.f32.mrf.mxu1  ;;  %v8395_v22 = vld [vmem:[#allocation22 + $0x190] sm:$0xff]  ;;  %v8291_v14 = vld [vmem:[#allocation22 + $0x108] sm:$0xff] }
 0x778   : > { %v7862_v33 = vadd.f32 %v7856_v50, %v7762_v32  ;;  %v8393_v50 = vld [vmem:[#allocation22 + $0x180] sm:$0xff] }
 0x779   : > { %v14263_v51 = vpop.f32.mrf.mxu1 }
 0x77a   : > { %v7962_v30 = vadd.f32 %v7956_v57, %v7862_v33  ;;  %v8293_v57 = vld [vmem:[#allocation22 + $0x118] sm:$0xff]  ;;  %v8508_v33 = vld [vmem:[#allocation22 + $0x260] sm:$0xff] }
 0x77b   : > { %v8046_v28 = vpop.f32.mrf.mxu1 }
 0x77c   : > { %v8060_v26 = vadd.f32 %v8046_v28, %v7960_v5  ;;  %v8510_v5 = vld [vmem:[#allocation22 + $0x270] sm:$0xff] }
 0x77d   : > { %v14291_v15 = vpop.f32.mrf.mxu1  ;;  %v8613_v28 = vld [vmem:[#allocation22 + $0x2f0] sm:$0xff] }
 0x77e   : > { %v8070_v2 = vadd.f32 %v12316_v29, %v8060_v26  ;;  %v8612_v15 = vld [vmem:[#allocation22 + $0x2e8] sm:$0xff] }
 0x77f   : > { %v8051_v62 = vpop.f32.mrf.mxu1 }
 0x780   : > { %v8073_v49 = vmax.f32 %v8070_v2, 0.0  ;;  %v8061_v3 = vadd.f32 %v8051_v62, %v7961_v42  ;;  %v8611_v2 = vld [vmem:[#allocation22 + $0x2e0] sm:$0xff]  ;;  %v8507_v42 = vld [vmem:[#allocation22 + $0x258] sm:$0xff] }
 0x781   : > { %v14294_v38 = vpop.f32.mrf.mxu1 }
 0x782   : > { %8081 = vst [vmem:[#allocation5 + $0x7] sm:$0xff] %v8073_v49  ;;  %v8071_v9 = vadd.f32 %v12316_v29, %v8061_v3  ;;  %v8610_v3 = vld [vmem:[#allocation22 + $0x2d8] sm:$0xff]  ;;  %v8506_v38 = vld [vmem:[#allocation22 + $0x250] sm:$0xff] }
 0x783   : > { %8084 = vst [vmem:[#allocation5 + $0xb] sm:$0x3] %v17595_v18  ;;  %v8056_v58 = vpop.f32.mrf.mxu1 }
 0x784   : > { %v8074_v46 = vmax.f32 %v8071_v9, 0.0  ;;  %v8062_v36 = vadd.f32 %v8056_v58, %v7962_v30  ;;  %v8609_v30 = vld [vmem:[#allocation22 + $0x2d0] sm:$0xff]  ;;  %v8505_v9 = vld [vmem:[#allocation22 + $0x248] sm:$0xff] }
 0x785   : > { %v14297_v8 = vpop.f32.mrf.mxu1  ;;  %v8608_v58 = vld [vmem:[#allocation22 + $0x2c8] sm:$0xff] }
 0x786   : > { %8082 = vst [vmem:[#allocation5 + $0xf] sm:$0xff] %v8074_v46  ;;  %v8072_v60 = vadd.f32 %v12316_v29, %v8062_v36  ;;  %v8509_v29 = vld [vmem:[#allocation22 + $0x268] sm:$0xff]  ;;  %v8504_v46 = vld [vmem:[#allocation22 + $0x240] sm:$0xff]  ;;  %v8503_v8 = vld [vmem:[#allocation22 + $0x238] sm:$0xff] }
 0x787   : > { %8085 = vst [vmem:[#allocation5 + $0x11] sm:$0x3] %v17595_v18  ;;  %v8607_v36 = vld [vmem:[#allocation22 + $0x2c0] sm:$0xff] }
 0x788   : > { %v8075_v59 = vmax.f32 %v8072_v60, 0.0  ;;  %v8606_v60 = vld [vmem:[#allocation22 + $0x2b8] sm:$0xff] }
 0x789   : > { %v8106_v21 = vld [vmem:[#allocation5 + $0x1] sm:$0xff] }
 0x78a   : > { %v8087_v24 = vld [vmem:[#allocation5] sm:$0xff]  ;;  %8083 = vst [vmem:[#allocation5 + $0x17] sm:$0x3f] %v8075_v59  ;;  %14331 = vmatmul.mubr.f32.vlgmr.msra.gmra.mxu0 %v8106_v21  ;;  %v8502_v59 = vld [vmem:[#allocation22 + $0x230] sm:$0xff] }
 0x78b   : > { %14372 = vmatmul.mubr.f32.vlgmr.msra.gmra.mxu1 %v8087_v24  ;;  %8086 = vst [vmem:[#allocation5 + $0x17] sm:$0x3] %v17595_v18  ;;  %14381 = vmatpush3.msra.mxu0 %v8305_v54  ;;  %v8286_v34 = vld [vmem:[#allocation5 + $0x2] sm:$0xff]  ;;  %v8605_v54 = vld [vmem:[#allocation22 + $0x2b0] sm:$0xff]  ;;  %v8500_v24 = vld [vmem:[#allocation22 + $0x220] sm:$0xff] }
 0x78c   : > { %14422 = vmatpush3.msra.mxu1 %v8408_v4  ;;  %14382 = vmatprep.subr.mxu0 %v17595_v18  ;;  %v8389_v51 = vld [vmem:[#allocation5 + $0x6] sm:$0xff] }
 0x78d   : > { %14423 = vmatprep.subr.mxu1 %v17595_v18  ;;  %14383 = vmatpush3.msra.mxu0 %v8304_v20  ;;  %v8107_v25 = vld [vmem:[#allocation5 + $0x9] sm:$0xff]  ;;  %v8603_v20 = vld [vmem:[#allocation22 + $0x2a0] sm:$0xff] }
 0x78e   : > { %14424 = vmatpush3.msra.mxu1 %v8407_v43  ;;  %v17787_v61 = vld [vmem:[#allocation5 + $0x8] sm:$0xff]  ;;  %14333 = vmatprep.mubr.msk.f32.mxu0 %vm15351_vm6, %v17595_v18  ;;  %v8108_v40 = vld [vmem:[#allocation5 + $0x11] sm:$0x3f] }
 0x78f   : > { %14374 = vmatprep.mubr.msk.f32.mxu1 %vm15351_vm6, %v17595_v18  ;;  %14384 = vmatprep.subr.mxu0 %v17595_v18  ;;  %v8089_v41 = vld [vmem:[#allocation5 + $0x10] sm:$0x3f]  ;;  %v8501_v4 = vld [vmem:[#allocation22 + $0x228] sm:$0xff] }
 0x790   : > { %14425 = vmatprep.subr.mxu1 %v17595_v18  ;;  %14334 = vmatmul.mubr.f32.gmra.mxu0 %v8107_v25  ;;  %v8287_v32 = vld [vmem:[#allocation5 + $0xa] sm:$0xff]  ;;  %v8604_v21 = vld [vmem:[#allocation22 + $0x2a8] sm:$0xff]  ;;  %v8499_v43 = vld [vmem:[#allocation22 + $0x218] sm:$0xff] }
 0x791   : > { %14375 = vmatmul.mubr.f32.gmra.mxu1 %v17787_v61  ;;  %14385 = vmatpush3.msra.mxu0 %v8303_v63  ;;  %v17840_v26 = vld [vmem:[#allocation5 + $0xe] sm:$0xff] }
 0x792   : > { %14426 = vmatpush3.msra.mxu1 %v8406_v6  ;;  %14386 = vmatprep.subr.mxu0 %v17595_v18  ;;  %v8288_v62 = vld [vmem:[#allocation5 + $0x12] sm:$0x3f]  ;;  %v8498_v63 = vld [vmem:[#allocation22 + $0x210] sm:$0xff] }
 0x793   : > { %14427 = vmatprep.subr.mxu1 %v17595_v18  ;;  %14387 = vmatpush3.msra.mxu0 %v8302_v7  ;;  %v8391_v49 = vld [vmem:[#allocation5 + $0x16] sm:$0x3f]  ;;  %v8601_v6 = vld [vmem:[#allocation22 + $0x290] sm:$0xff]  ;;  %v8497_v7 = vld [vmem:[#allocation22 + $0x208] sm:$0xff] }
 0x794   : > { %14428 = vmatpush3.msra.mxu1 %v8405_v31  ;;  %14336 = vmatprep.mubr.msk.f32.mxu0 %vm15351_vm6, %v17595_v18  ;;  %v8602_v25 = vld [vmem:[#allocation22 + $0x298] sm:$0xff]  ;;  %v8600_v31 = vld [vmem:[#allocation22 + $0x288] sm:$0xff] }
 0x795   : > { %14377 = vmatprep.mubr.msk.f32.mxu1 %vm15351_vm6, %v17595_v18  ;;  %14388 = vmatprep.subr.mxu0 %v17595_v18 }
 0x796   : > { %14429 = vmatprep.subr.mxu1 %v17595_v18  ;;  %14337 = vmatmul.mubr.f32.gmra.mxu0 %v8108_v40  ;;  %v8492_v40 = vld [vmem:[#allocation5 + $0x7] sm:$0xff] }
 0x797   : > { %14378 = vmatmul.mubr.f32.gmra.mxu1 %v8089_v41  ;;  %14389 = vmatpush3.msra.mxu0 %v8301_v11  ;;  %v8496_v11 = vld [vmem:[#allocation22 + $0x200] sm:$0xff]  ;;  %v8717_v41 = vld [vmem:[#allocation22 + $0x378] sm:$0xff] }
 0x798   : > { %14430 = vmatpush3.msra.mxu1 %v8404_v0  ;;  %14390 = vmatprep.subr.mxu0 %v17595_v18  ;;  %v8599_v0 = vld [vmem:[#allocation22 + $0x280] sm:$0xff] }
 0x799   : > { %14431 = vmatprep.subr.mxu1 %v17595_v18  ;;  %14391 = vmatpush3.msra.mxu0 %v8300_v56  ;;  %v8820_v56 = vld [vmem:[#allocation22 + $0x3f8] sm:$0xff] }
 0x79a   : > { %14432 = vmatpush3.msra.mxu1 %v8403_v52  ;;  %14392 = vmatprep.subr.mxu0 %v17595_v18  ;;  %v8716_v52 = vld [vmem:[#allocation22 + $0x370] sm:$0xff] }
 0x79b   : > { %14433 = vmatprep.subr.mxu1 %v17595_v18  ;;  %14393 = vmatpush3.msra.mxu0 %v8299_v19  ;;  %v8399_v18 = vld [vmem:[#allocation22 + $0x1b0] sm:$0xff] }
 0x79c   : > { %14434 = vmatpush3.msra.mxu1 %v8402_v55  ;;  %14394 = vmatprep.subr.mxu0 %v17808_v12  ;;  %v8819_v19 = vld [vmem:[#allocation22 + $0x3f0] sm:$0xff]  ;;  %v8715_v55 = vld [vmem:[#allocation22 + $0x368] sm:$0xff] }
 0x79d   : > { %14435 = vmatprep.subr.mxu1 %v17808_v12  ;;  %14395 = vmatpush3.msra.mxu0 %v8298_v53  ;;  %v8596_v53 = vld [vmem:[#allocation5 + $0x10] sm:$0xff] }
 0x79e   : > { %14436 = vmatpush3.msra.mxu1 %v8401_v23  ;;  %14396 = vmatprep.subr.mxu0 %v17808_v12  ;;  %v8818_v23 = vld [vmem:[#allocation22 + $0x3e8] sm:$0xff] }
 0x79f   : > { %14437 = vmatprep.subr.mxu1 %v17808_v12  ;;  %14397 = vmatpush3.msra.mxu0 %v8297_v44  ;;  %v8714_v44 = vld [vmem:[#allocation22 + $0x360] sm:$0xff] }
 0x7a0   : > { %14438 = vmatpush3.msra.mxu1 %v8400_v17  ;;  %14398 = vmatprep.subr.mxu0 %v17808_v12  ;;  %v8817_v17 = vld [vmem:[#allocation22 + $0x3e0] sm:$0xff] }
 0x7a1   : > { %14439 = vmatprep.subr.mxu1 %v17808_v12  ;;  %14399 = vmatpush3.msra.mxu0 %v8296_v27  ;;  %v8713_v27 = vld [vmem:[#allocation22 + $0x358] sm:$0xff] }
 0x7a2   : > { %14440 = vmatpush3.msra.mxu1 %v8399_v18  ;;  %14400 = vmatprep.subr.mxu0 %v17808_v12  ;;  %v8494_v18 = vld [vmem:[#allocation5 + $0x17] sm:$0x3f] }
 0x7a3   : > { %14441 = vmatprep.subr.mxu1 %v17808_v12  ;;  %14401 = vmatpush3.msra.mxu0 %v8295_v16  ;;  %v8597_v16 = vld [vmem:[#allocation5 + $0x18] sm:$0x3f] }
 0x7a4   : > { %14442 = vmatpush3.msra.mxu1 %v8398_v10  ;;  %14402 = vmatprep.subr.mxu0 %v17808_v12  ;;  %v8816_v10 = vld [vmem:[#allocation22 + $0x3d8] sm:$0xff] }
 0x7a5   : > { %14443 = vmatprep.subr.mxu1 %v17808_v12  ;;  %14403 = vmatpush3.msra.mxu0 %v8294_v39  ;;  %v8712_v39 = vld [vmem:[#allocation22 + $0x350] sm:$0xff] }
 0x7a6   : > { %14444 = vmatpush3.msra.mxu1 %v8397_v47  ;;  %14404 = vmatprep.subr.mxu0 %v17808_v12  ;;  %v8815_v47 = vld [vmem:[#allocation22 + $0x3d0] sm:$0xff] }
 0x7a7   : > { %14445 = vmatprep.subr.mxu1 %v17808_v12  ;;  %14405 = vmatpush3.msra.mxu0 %v8293_v57  ;;  %v8711_v57 = vld [vmem:[#allocation22 + $0x348] sm:$0xff] }
 0x7a8   : > { %14446 = vmatpush3.msra.mxu1 %v8396_v13  ;;  %14406 = vmatprep.subr.mxu0 %v17808_v12  ;;  %v8814_v13 = vld [vmem:[#allocation22 + $0x3c8] sm:$0xff] }
 0x7a9   : > { %14447 = vmatprep.subr.mxu1 %v17808_v12  ;;  %14407 = vmatpush3.msra.mxu0 %v8292_v35  ;;  %v8710_v35 = vld [vmem:[#allocation22 + $0x340] sm:$0xff] }
 0x7aa   : > { %14448 = vmatpush3.msra.mxu1 %v8395_v22  ;;  %14408 = vmatprep.subr.mxu0 %v17808_v12  ;;  %v8813_v22 = vld [vmem:[#allocation22 + $0x3c0] sm:$0xff] }
 0x7ab   : > { %14449 = vmatprep.subr.mxu1 %v17808_v12  ;;  %14409 = vmatpush3.msra.mxu0 %v8291_v14  ;;  %v8709_v14 = vld [vmem:[#allocation22 + $0x338] sm:$0xff] }
 0x7ac   : > { %14450 = vmatpush3.msra.mxu1 %v8394_v48  ;;  %14410 = vmatprep.subr.mxu0 %v17808_v12  ;;  %v8812_v48 = vld [vmem:[#allocation22 + $0x3b8] sm:$0xff] }
 0x7ad   : > { %14451 = vmatprep.subr.mxu1 %v17808_v12  ;;  %14411 = vmatpush3.msra.mxu0 %v8290_v45  ;;  %v8708_v45 = vld [vmem:[#allocation22 + $0x330] sm:$0xff] }
 0x7ae   : > { %14412 = vmatprep.mubr.msk.f32.mxu0 %vm15351_vm6, %v17808_v12  ;;  %14452 = vmatpush3.msra.mxu1 %v8393_v50  ;;  %v8811_v50 = vld [vmem:[#allocation22 + $0x3b0] sm:$0xff] }
 0x7af   : > { %14453 = vmatprep.mubr.msk.f32.mxu1 %vm15351_vm6, %v17808_v12  ;;  %14413 = vmatmul.mubr.f32.vlgmr.msra.gmra.mxu0 %v8286_v34  ;;  %v8810_v34 = vld [vmem:[#allocation22 + $0x3a8] sm:$0xff] }
 0x7b0   : > { %14454 = vmatmul.mubr.f32.vlgmr.msra.gmra.mxu1 %v8389_v51  ;;  %14462 = vmatprep.subr.mxu0 %v17808_v12  ;;  %v8706_v51 = vld [vmem:[#allocation22 + $0x320] sm:$0xff] }
 0x7b1   : > { %14503 = vmatprep.subr.mxu1 %v17808_v12  ;;  %14463 = vmatpush3.msra.mxu0 %v8511_v1  ;;  %v8707_v1 = vld [vmem:[#allocation22 + $0x328] sm:$0xff] }
 0x7b2   : > { %14504 = vmatpush3.msra.mxu1 %v8614_v37  ;;  %14464 = vmatprep.subr.mxu0 %v17808_v12  ;;  %v8809_v37 = vld [vmem:[#allocation22 + $0x3a0] sm:$0xff] }
 0x7b3   : > { %14505 = vmatprep.subr.mxu1 %v17808_v12  ;;  %14415 = vmatprep.mubr.msk.f32.mxu0 %vm15351_vm6, %v17808_v12 }
 0x7b4   : > { %14456 = vmatprep.mubr.msk.f32.mxu1 %vm15351_vm6, %v17808_v12  ;;  %14465 = vmatpush3.msra.mxu0 %v8510_v5  ;;  %v8705_v5 = vld [vmem:[#allocation22 + $0x318] sm:$0xff] }
 0x7b5   : > { %14506 = vmatpush3.msra.mxu1 %v8613_v28  ;;  %14416 = vmatmul.mubr.f32.gmra.mxu0 %v8287_v32  ;;  %v8808_v28 = vld [vmem:[#allocation22 + $0x398] sm:$0xff]  ;;  %v8807_v32 = vld [vmem:[#allocation22 + $0x390] sm:$0xff] }
 0x7b6   : > { %14457 = vmatmul.mubr.f32.gmra.mxu1 %v17840_v26  ;;  %14466 = vmatprep.subr.mxu0 %v17808_v12 }
 0x7b7   : > { %14507 = vmatprep.subr.mxu1 %v17808_v12  ;;  %14467 = vmatpush3.msra.mxu0 %v8509_v29  ;;  %v8704_v29 = vld [vmem:[#allocation22 + $0x310] sm:$0xff] }
 0x7b8   : > { %14508 = vmatpush3.msra.mxu1 %v8612_v15  ;;  %14468 = vmatprep.subr.mxu0 %v17808_v12  ;;  %v8703_v15 = vld [vmem:[#allocation22 + $0x308] sm:$0xff] }
 0x7b9   : > { %14509 = vmatprep.subr.mxu1 %v17808_v12  ;;  %14418 = vmatprep.mubr.msk.f32.mxu0 %vm15351_vm6, %v17808_v12 }
 0x7ba   : > { %14459 = vmatprep.mubr.msk.f32.mxu1 %vm15351_vm6, %v17808_v12  ;;  %14469 = vmatpush3.msra.mxu0 %v8508_v33  ;;  %v8806_v33 = vld [vmem:[#allocation22 + $0x388] sm:$0xff] }
 0x7bb   : > { %14510 = vmatpush3.msra.mxu1 %v8611_v2  ;;  %14419 = vmatmul.mubr.f32.gmra.mxu0 %v8288_v62  ;;  %v8702_v2 = vld [vmem:[#allocation22 + $0x300] sm:$0xff]  ;;  %v8698_v62 = vld [vmem:[#allocation5 + $0xc] sm:$0xff] }
 0x7bc   : > { %14460 = vmatmul.mubr.f32.gmra.mxu1 %v8391_v49  ;;  %14470 = vmatprep.subr.mxu0 %v17808_v12  ;;  %v8801_v49 = vld [vmem:[#allocation5 + $0xd] sm:$0xff] }
 0x7bd   : > { %14511 = vmatprep.subr.mxu1 %v17808_v12  ;;  %14471 = vmatpush3.msra.mxu0 %v8507_v42  ;;  %v8805_v42 = vld [vmem:[#allocation22 + $0x380] sm:$0xff] }
 0x7be   : > { %14512 = vmatpush3.msra.mxu1 %v8610_v3  ;;  %14472 = vmatprep.subr.mxu0 %v17808_v12  ;;  %v8923_v3 = vld [vmem:[#allocation22 + $0x478] sm:$0xff] }
 0x7bf   : > { %14513 = vmatprep.subr.mxu1 %v17808_v12  ;;  %14473 = vmatpush3.msra.mxu0 %v8506_v38  ;;  %v8922_v38 = vld [vmem:[#allocation22 + $0x470] sm:$0xff] }
 0x7c0   : > { %14514 = vmatpush3.msra.mxu1 %v8609_v30  ;;  %14474 = vmatprep.subr.mxu0 %v17808_v12  ;;  %v8802_v30 = vld [vmem:[#allocation5 + $0x15] sm:$0xff] }
 0x7c1   : > { %14515 = vmatprep.subr.mxu1 %v17808_v12  ;;  %14475 = vmatpush3.msra.mxu0 %v8505_v9  ;;  %v8921_v9 = vld [vmem:[#allocation22 + $0x468] sm:$0xff] }
 0x7c2   : > { %14516 = vmatpush3.msra.mxu1 %v8608_v58  ;;  %14476 = vmatprep.subr.mxu0 %v17808_v12  ;;  %v8699_v58 = vld [vmem:[#allocation5 + $0x14] sm:$0xff] }
 0x7c3   : > { %14517 = vmatprep.subr.mxu1 %v17808_v12  ;;  %14477 = vmatpush3.msra.mxu0 %v8504_v46  ;;  %v8920_v46 = vld [vmem:[#allocation22 + $0x460] sm:$0xff] }
 0x7c4   : > { %14518 = vmatpush3.msra.mxu1 %v8607_v36  ;;  %14478 = vmatprep.subr.mxu0 %v17808_v12  ;;  %v8803_v36 = vld [vmem:[#allocation5 + $0x1d] sm:$0x3f] }
 0x7c5   : > { %14519 = vmatprep.subr.mxu1 %v17808_v12  ;;  %14479 = vmatpush3.msra.mxu0 %v8503_v8  ;;  %v8919_v8 = vld [vmem:[#allocation22 + $0x458] sm:$0xff] }
 0x7c6   : > { %14520 = vmatpush3.msra.mxu1 %v8606_v60  ;;  %14480 = vmatprep.subr.mxu0 %v17808_v12  ;;  %v8700_v60 = vld [vmem:[#allocation5 + $0x1c] sm:$0x3f] }
 0x7c7   : > { %14521 = vmatprep.subr.mxu1 %v17808_v12  ;;  %14481 = vmatpush3.msra.mxu0 %v8502_v59  ;;  %v8918_v59 = vld [vmem:[#allocation22 + $0x450] sm:$0xff] }
 0x7c8   : > { %14522 = vmatpush3.msra.mxu1 %v8605_v54  ;;  %14482 = vmatprep.subr.mxu0 %v17808_v12  ;;  %v8917_v54 = vld [vmem:[#allocation22 + $0x448] sm:$0xff] }
 0x7c9   : > { %14523 = vmatprep.subr.mxu1 %v17808_v12  ;;  %14483 = vmatpush3.msra.mxu0 %v8501_v4  ;;  %v8916_v4 = vld [vmem:[#allocation22 + $0x440] sm:$0xff] }
 0x7ca   : > { %14524 = vmatpush3.msra.mxu1 %v8604_v21  ;;  %14484 = vmatprep.subr.mxu0 %v17808_v12  ;;  %v8915_v21 = vld [vmem:[#allocation22 + $0x438] sm:$0xff] }
 0x7cb   : > { %14525 = vmatprep.subr.mxu1 %v17808_v12  ;;  %14485 = vmatpush3.msra.mxu0 %v8500_v24  ;;  %v8914_v24 = vld [vmem:[#allocation22 + $0x430] sm:$0xff] }
 0x7cc   : > { %14526 = vmatpush3.msra.mxu1 %v8603_v20  ;;  %14486 = vmatprep.subr.mxu0 %v17808_v12  ;;  %v8913_v20 = vld [vmem:[#allocation22 + $0x428] sm:$0xff] }
 0x7cd   : > { %14527 = vmatprep.subr.mxu1 %v17808_v12  ;;  %14487 = vmatpush3.msra.mxu0 %v8499_v43  ;;  %v8912_v43 = vld [vmem:[#allocation22 + $0x420] sm:$0xff] }
 0x7ce   : > { %14528 = vmatpush3.msra.mxu1 %v8602_v25  ;;  %14488 = vmatprep.subr.mxu0 %v17808_v12  ;;  %v8911_v25 = vld [vmem:[#allocation22 + $0x418] sm:$0xff] }
 0x7cf   : > { %14529 = vmatprep.subr.mxu1 %v17808_v12  ;;  %14489 = vmatpush3.msra.mxu0 %v8498_v63  ;;  %v8910_v63 = vld [vmem:[#allocation22 + $0x410] sm:$0xff] }
 0x7d0   : > { %14530 = vmatpush3.msra.mxu1 %v8601_v6  ;;  %14490 = vmatprep.subr.mxu0 %v17808_v12  ;;  %v8909_v6 = vld [vmem:[#allocation22 + $0x408] sm:$0xff] }
 0x7d1   : > { %14531 = vmatprep.subr.mxu1 %v17808_v12  ;;  %14491 = vmatpush3.msra.mxu0 %v8497_v7  ;;  %v8908_v7 = vld [vmem:[#allocation22 + $0x400] sm:$0xff] }
 0x7d2   : > { %14532 = vmatpush3.msra.mxu1 %v8600_v31  ;;  %14492 = vmatprep.subr.mxu0 %v17808_v12  ;;  %v8905_v31 = vld [vmem:[#allocation5 + $0x16] sm:$0xff] }
 0x7d3   : > { %14533 = vmatprep.subr.mxu1 %v17808_v12  ;;  %14493 = vmatpush3.msra.mxu0 %v8496_v11  ;;  %v8906_v11 = vld [vmem:[#allocation5 + $0x1e] sm:$0x3f] }
 0x7d4   : > { %14494 = vmatprep.mubr.msk.f32.mxu0 %vm15351_vm6, %v17808_v12  ;;  %14534 = vmatpush3.msra.mxu1 %v8599_v0 }
 0x7d5   : > { %14535 = vmatprep.mubr.msk.f32.mxu1 %vm15351_vm6, %v17808_v12  ;;  %14495 = vmatmul.mubr.f32.vlgmr.msra.gmra.mxu0 %v8492_v40 }
 0x7d6   : > { %14536 = vmatmul.mubr.f32.vlgmr.msra.gmra.mxu1 %v17787_v61  ;;  %14544 = vmatprep.subr.mxu0 %v17808_v12  ;;  %v8493_v61 = vld [vmem:[#allocation5 + $0xf] sm:$0xff] }
 0x7d7   : > { %14585 = vmatprep.subr.mxu1 %v17808_v12  ;;  %14545 = vmatpush3.msra.mxu0 %v8717_v41 }
 0x7d8   : > { %14586 = vmatpush3.msra.mxu1 %v8820_v56  ;;  %14546 = vmatprep.subr.mxu0 %v17808_v12 }
 0x7d9   : > { %14587 = vmatprep.subr.mxu1 %v17808_v12  ;;  %14497 = vmatprep.mubr.msk.f32.mxu0 %vm15351_vm6, %v17808_v12 }
 0x7da   : > { %14538 = vmatprep.mubr.msk.f32.mxu1 %vm15351_vm6, %v17808_v12  ;;  %14547 = vmatpush3.msra.mxu0 %v8716_v52 }
 0x7db   : > { %14588 = vmatpush3.msra.mxu1 %v8819_v19  ;;  %14498 = vmatmul.mubr.f32.gmra.mxu0 %v8493_v61 }
 0x7dc   : > { %14539 = vmatmul.mubr.f32.gmra.mxu1 %v8596_v53  ;;  %14548 = vmatprep.subr.mxu0 %v17808_v12 }
 0x7dd   : > { %14589 = vmatprep.subr.mxu1 %v17808_v12  ;;  %14549 = vmatpush3.msra.mxu0 %v8715_v55 }
 0x7de   : > { %14590 = vmatpush3.msra.mxu1 %v8818_v23  ;;  %14550 = vmatprep.subr.mxu0 %v17808_v12 }
 0x7df   : > { %14591 = vmatprep.subr.mxu1 %v17808_v12  ;;  %14500 = vmatprep.mubr.msk.f32.mxu0 %vm15351_vm6, %v17808_v12 }
 0x7e0   : > { %14541 = vmatprep.mubr.msk.f32.mxu1 %vm15351_vm6, %v17808_v12  ;;  %14551 = vmatpush3.msra.mxu0 %v8714_v44 }
 0x7e1   : > { %14592 = vmatpush3.msra.mxu1 %v8817_v17  ;;  %14501 = vmatmul.mubr.f32.gmra.mxu0 %v8494_v18 }
 0x7e2   : > { %14542 = vmatmul.mubr.f32.gmra.mxu1 %v8597_v16  ;;  %14552 = vmatprep.subr.mxu0 %v17808_v12 }
 0x7e3   : > { %14593 = vmatprep.subr.mxu1 %v17808_v12  ;;  %14553 = vmatpush3.msra.mxu0 %v8713_v27 }
 0x7e4   : > { %14594 = vmatpush3.msra.mxu1 %v8816_v10  ;;  %14554 = vmatprep.subr.mxu0 %v17808_v12 }
 0x7e5   : > { %14595 = vmatprep.subr.mxu1 %v17808_v12  ;;  %14555 = vmatpush3.msra.mxu0 %v8712_v39 }
 0x7e6   : > { %14596 = vmatpush3.msra.mxu1 %v8815_v47  ;;  %14556 = vmatprep.subr.mxu0 %v17808_v12 }
 0x7e7   : > { %14597 = vmatprep.subr.mxu1 %v17808_v12  ;;  %14557 = vmatpush3.msra.mxu0 %v8711_v57 }
 0x7e8   : > { %14598 = vmatpush3.msra.mxu1 %v8814_v13  ;;  %14558 = vmatprep.subr.mxu0 %v17808_v12 }
 0x7e9   : > { %14599 = vmatprep.subr.mxu1 %v17808_v12  ;;  %14559 = vmatpush3.msra.mxu0 %v8710_v35 }
 0x7ea   : > { %14600 = vmatpush3.msra.mxu1 %v8813_v22  ;;  %14560 = vmatprep.subr.mxu0 %v17808_v12 }
 0x7eb   : > { %14601 = vmatprep.subr.mxu1 %v17808_v12  ;;  %14561 = vmatpush3.msra.mxu0 %v8709_v14 }
 0x7ec   : > { %14602 = vmatpush3.msra.mxu1 %v8812_v48  ;;  %14562 = vmatprep.subr.mxu0 %v17808_v12 }
 0x7ed   : > { %14603 = vmatprep.subr.mxu1 %v17808_v12  ;;  %14563 = vmatpush3.msra.mxu0 %v8708_v45 }
 0x7ee   : > { %14604 = vmatpush3.msra.mxu1 %v8811_v50  ;;  %14564 = vmatprep.subr.mxu0 %v17808_v12  ;;  %v9038_v50 = vld [vmem:[#allocation32] sm:$0xff] }
 0x7ef   : > { %14605 = vmatprep.subr.mxu1 %v17808_v12  ;;  %14565 = vmatpush3.msra.mxu0 %v8707_v1 }
 0x7f0   : > { %14606 = vmatpush3.msra.mxu1 %v8810_v34  ;;  %14566 = vmatprep.subr.mxu0 %v17808_v12 }
 0x7f1   : > { %14607 = vmatprep.subr.mxu1 %v17808_v12  ;;  %14567 = vmatpush3.msra.mxu0 %v8706_v51  ;;  %v9155_v51 = vld [vmem:[%s18998_s9 + $0xf8] sm:$0xff] }
 0x7f2   : > { %14608 = vmatpush3.msra.mxu1 %v8809_v37  ;;  %14568 = vmatprep.subr.mxu0 %v17808_v12 }
 0x7f3   : > { %14609 = vmatprep.subr.mxu1 %v17808_v12  ;;  %14569 = vmatpush3.msra.mxu0 %v8705_v5  ;;  %v9154_v5 = vld [vmem:[%s18998_s9 + $0xf0] sm:$0xff] }
 0x7f4   : > { %14610 = vmatpush3.msra.mxu1 %v8808_v28  ;;  %14570 = vmatprep.subr.mxu0 %v17808_v12 }
 0x7f5   : > { %14611 = vmatprep.subr.mxu1 %v17808_v12  ;;  %14571 = vmatpush3.msra.mxu0 %v8704_v29 }
 0x7f6   : > { %14612 = vmatpush3.msra.mxu1 %v8807_v32  ;;  %14572 = vmatprep.subr.mxu0 %v17808_v12  ;;  %v9153_v32 = vld [vmem:[%s18998_s9 + $0xe8] sm:$0xff] }
 0x7f7   : > { %14613 = vmatprep.subr.mxu1 %v17808_v12  ;;  %14573 = vmatpush3.msra.mxu0 %v8703_v15 }
 0x7f8   : > { %14614 = vmatpush3.msra.mxu1 %v8806_v33  ;;  %14574 = vmatprep.subr.mxu0 %v17808_v12  ;;  %v9152_v33 = vld [vmem:[%s18998_s9 + $0xe0] sm:$0xff] }
 0x7f9   : > { %14615 = vmatprep.subr.mxu1 %v17808_v12  ;;  %14575 = vmatpush3.msra.mxu0 %v8702_v2  ;;  %v9151_v2 = vld [vmem:[%s18998_s9 + $0xd8] sm:$0xff] }
 0x7fa   : > { %14576 = vmatprep.mubr.msk.f32.mxu0 %vm15351_vm6, %v17808_v12  ;;  %14616 = vmatpush3.msra.mxu1 %v8805_v42  ;;  %v9150_v42 = vld [vmem:[%s18998_s9 + $0xd0] sm:$0xff] }
 0x7fb   : > { %14617 = vmatprep.mubr.msk.f32.mxu1 %vm15351_vm6, %v17808_v12  ;;  %14577 = vmatmul.mubr.f32.vlgmr.msra.gmra.mxu0 %v8698_v62  ;;  %v9149_v62 = vld [vmem:[%s18998_s9 + $0xc8] sm:$0xff] }
 0x7fc   : > { %14618 = vmatmul.mubr.f32.vlgmr.msra.gmra.mxu1 %v8801_v49  ;;  %14626 = vmatprep.subr.mxu0 %v17808_v12  ;;  %v9148_v49 = vld [vmem:[%s18998_s9 + $0xc0] sm:$0xff] }
 0x7fd   : > { %14579 = vmatprep.mubr.msk.f32.mxu0 %vm15351_vm6, %v17808_v12  ;;  %14627 = vmatpush3.msra.mxu0 %v8923_v3  ;;  %v9147_v3 = vld [vmem:[%s18998_s9 + $0xb8] sm:$0xff] }
 0x7fe   : > { %14620 = vmatprep.mubr.msk.f32.mxu1 %vm15351_vm6, %v17808_v12  ;;  %14628 = vmatprep.subr.mxu0 %v17808_v12 }
 0x7ff   : > { %14629 = vmatpush3.msra.mxu0 %v8922_v38  ;;  %v9146_v38 = vld [vmem:[%s18998_s9 + $0xb0] sm:$0xff] }
 0x800   : > { %14621 = vmatmul.mubr.f32.gmra.mxu1 %v8802_v30  ;;  %14580 = vmatmul.mubr.f32.gmra.mxu0 %v8699_v58  ;;  %v9145_v30 = vld [vmem:[%s18998_s9 + $0xa8] sm:$0xff]  ;;  %v9143_v58 = vld [vmem:[%s18998_s9 + $0x98] sm:$0xff] }
 0x801   : > { %14630 = vmatprep.subr.mxu0 %v17808_v12  ;;  %14582 = vmatprep.mubr.msk.f32.mxu0 %vm15351_vm6, %v17808_v12 }
 0x802   : > { %14631 = vmatpush3.msra.mxu0 %v8921_v9  ;;  %14623 = vmatprep.mubr.msk.f32.mxu1 %vm15351_vm6, %v17808_v12  ;;  %v9144_v9 = vld [vmem:[%s18998_s9 + $0xa0] sm:$0xff] }
 0x803   : > { %14632 = vmatprep.subr.mxu0 %v17808_v12 }
 0x804   : > { %14633 = vmatpush3.msra.mxu0 %v8920_v46  ;;  %14624 = vmatmul.mubr.f32.gmra.mxu1 %v8803_v36  ;;  %v9142_v46 = vld [vmem:[%s18998_s9 + $0x90] sm:$0xff]  ;;  %v9141_v36 = vld [vmem:[%s18998_s9 + $0x88] sm:$0xff] }
 0x805   : > { %14583 = vmatmul.mubr.f32.gmra.mxu0 %v8700_v60  ;;  %14634 = vmatprep.subr.mxu0 %v17808_v12  ;;  %v9139_v60 = vld [vmem:[%s18998_s9 + $0x78] sm:$0xff] }
 0x806   : > { %14635 = vmatpush3.msra.mxu0 %v8919_v8  ;;  %14658 = vmatprep.mubr.msk.f32.mxu0 %vm15351_vm6, %v17808_v12  ;;  %v9140_v8 = vld [vmem:[%s18998_s9 + $0x80] sm:$0xff] }
 0x807   : > { %14636 = vmatprep.subr.mxu0 %v17808_v12  ;;  %14671 = vmatprep.mubr.msk.f32.mxu1 %vm4821_vm4, %v9038_v50 }
 0x808   : > { %14637 = vmatpush3.msra.mxu0 %v8918_v59  ;;  %v9138_v59 = vld [vmem:[%s18998_s9 + $0x70] sm:$0xff] }
 0x809   : > { %14638 = vmatprep.subr.mxu0 %v17808_v12 }
 0x80a   : > { %14639 = vmatpush3.msra.mxu0 %v8917_v54  ;;  %v9137_v54 = vld [vmem:[%s18998_s9 + $0x68] sm:$0xff] }
 0x80b   : > { %14640 = vmatprep.subr.mxu0 %v17808_v12 }
 0x80c   : > { %14641 = vmatpush3.msra.mxu0 %v8916_v4  ;;  %v9136_v4 = vld [vmem:[%s18998_s9 + $0x60] sm:$0xff] }
 0x80d   : > { %14642 = vmatprep.subr.mxu0 %v17808_v12 }
 0x80e   : > { %14643 = vmatpush3.msra.mxu0 %v8915_v21  ;;  %v9135_v21 = vld [vmem:[%s18998_s9 + $0x58] sm:$0xff] }
 0x80f   : > { %14644 = vmatprep.subr.mxu0 %v17808_v12 }
 0x810   : > { %14645 = vmatpush3.msra.mxu0 %v8914_v24  ;;  %v9134_v24 = vld [vmem:[%s18998_s9 + $0x50] sm:$0xff] }
 0x811   : > { %14646 = vmatprep.subr.mxu0 %v17808_v12 }
 0x812   : > { %14647 = vmatpush3.msra.mxu0 %v8913_v20 }
 0x813   : > { %14648 = vmatprep.subr.mxu0 %v17808_v12 }
 0x814   : > { %14649 = vmatpush3.msra.mxu0 %v8912_v43 }
 0x815   : > { %14650 = vmatprep.subr.mxu0 %v17808_v12 }
 0x816   : > { %14651 = vmatpush3.msra.mxu0 %v8911_v25 }
 0x817   : > { %14652 = vmatprep.subr.mxu0 %v17808_v12 }
 0x818   : > { %14653 = vmatpush3.msra.mxu0 %v8910_v63 }
 0x819   : > { %14654 = vmatprep.subr.mxu0 %v17808_v12 }
 0x81a   : > { %14655 = vmatpush3.msra.mxu0 %v8909_v6 }
 0x81b   : > { %14656 = vmatprep.subr.mxu0 %v17808_v12 }
 0x81c   : > { %14657 = vmatpush3.msra.mxu0 %v8908_v7 }
 0x81d   : > { %14659 = vmatmul.mubr.f32.vlgmr.msra.gmra.mxu0 %v17840_v26  ;;  %9261 = vmatprep.subr.mxu0 %v9155_v51 }
 0x81e   : > { %14661 = vmatprep.mubr.msk.f32.mxu0 %vm15351_vm6, %v17808_v12  ;;  %9262 = vmatpush1.msra.mxu0 %v9154_v5 }
 0x81f   : > { %9263 = vmatprep.subr.mxu0 %v9153_v32 }
 0x820   : > { %9264 = vmatpush1.msra.mxu0 %v9152_v33 }
 0x821   : > { %14662 = vmatmul.mubr.f32.gmra.mxu0 %v8905_v31  ;;  %9265 = vmatprep.subr.mxu0 %v9151_v2 }
 0x822   : > { %14664 = vmatprep.mubr.msk.f32.mxu0 %vm15351_vm6, %v17808_v12  ;;  %9266 = vmatpush1.msra.mxu0 %v9150_v42 }
 0x823   : > { %9267 = vmatprep.subr.mxu0 %v9149_v62 }
 0x824   : > { %9268 = vmatpush1.msra.mxu0 %v9148_v49 }
 0x825   : > { %14665 = vmatmul.mubr.f32.gmra.mxu0 %v8906_v11  ;;  %9269 = vmatprep.subr.mxu0 %v9147_v3 }
 0x826   : > { %9325 = vmatprep.mubr.f32.mxu0 %v17808_v12  ;;  %9270 = vmatpush1.msra.mxu0 %v9146_v38 }
 0x827   : > { %9271 = vmatprep.subr.mxu0 %v9145_v30 }
 0x828   : > { %9272 = vmatpush1.msra.mxu0 %v9144_v9 }
 0x829   : > { %9273 = vmatprep.subr.mxu0 %v9143_v58 }
 0x82a   : > { %9274 = vmatpush1.msra.mxu0 %v9142_v46 }
 0x82b   : > { %9275 = vmatprep.subr.mxu0 %v9141_v36 }
 0x82c   : > { %9276 = vmatpush1.msra.mxu0 %v9140_v8 }
 0x82d   : > { %9277 = vmatprep.subr.mxu0 %v9139_v60 }
 0x82e   : > { %9278 = vmatpush1.msra.mxu0 %v9138_v59 }
 0x82f   : > { %9279 = vmatprep.subr.mxu0 %v9137_v54 }
 0x830   : > { %9280 = vmatpush1.msra.mxu0 %v9136_v4 }
 0x831   : > { %9281 = vmatprep.subr.mxu0 %v9135_v21 }
 0x832   : > { %9282 = vmatpush1.msra.mxu0 %v9134_v24 }
 0x84a   : > { %v8192_v0 = vpop.f32.mrf.mxu0 }
 0x84b   : > { %v8272_v40 = vpop.f32.mrf.mxu1 }
 0x84c   : > { %v8273_v41 = vadd.f32 %v8272_v40, %v8192_v0  ;;  %v14332_v56 = vpop.f32.mrf.mxu0 }
 0x84d   : > { %v14373_v52 = vpop.f32.mrf.mxu1 }
 0x850   : > { %v8197_v19 = vpop.f32.mrf.mxu0 }
 0x851   : > { %v8277_v55 = vpop.f32.mrf.mxu1 }
 0x852   : > { %v8278_v26 = vadd.f32 %v8277_v55, %v8197_v19  ;;  %v14335_v61 = vpop.f32.mrf.mxu0 }
 0x853   : > { %v14376_v53 = vpop.f32.mrf.mxu1 }
 0x856   : > { %v8202_v23 = vpop.f32.mrf.mxu0 }
 0x857   : > { %v8282_v44 = vpop.f32.mrf.mxu1 }
 0x858   : > { %v8283_v17 = vadd.f32 %v8282_v44, %v8202_v23  ;;  %v14338_v27 = vpop.f32.mrf.mxu0 }
 0x859   : > { %v14379_v18 = vpop.f32.mrf.mxu1 }
 0x86f   : > { %v8372_v16 = vpop.f32.mrf.mxu0 }
 0x870   : > { %v8475_v10 = vpop.f32.mrf.mxu1  ;;  %v8386_v39 = vadd.f32 %v8372_v16, %v8273_v41 }
 0x871   : > { %v14414_v47 = vpop.f32.mrf.mxu0 }
 0x872   : > { %v14455_v12 = vpop.f32.mrf.mxu1  ;;  %v8489_v57 = vadd.f32 %v8475_v10, %v8386_v39 }
 0x875   : > { %v8377_v13 = vpop.f32.mrf.mxu0 }
 0x876   : > { %v8480_v35 = vpop.f32.mrf.mxu1  ;;  %v8387_v22 = vadd.f32 %v8377_v13, %v8278_v26 }
 0x877   : > { %v14417_v14 = vpop.f32.mrf.mxu0 }
 0x878   : > { %v14458_v48 = vpop.f32.mrf.mxu1  ;;  %v17956_v45 = vadd.f32 %v8480_v35, %v8387_v22 }
 0x879   : > { %v12317_v48 = vld [vmem:[#allocation23] ss:$0 sm:$0xff] }
 0x87b   : > { %v8382_v1 = vpop.f32.mrf.mxu0 }
 0x87c   : > { %v8485_v34 = vpop.f32.mrf.mxu1  ;;  %v8388_v37 = vadd.f32 %v8382_v1, %v8283_v17 }
 0x87d   : > { %v14420_v28 = vpop.f32.mrf.mxu0 }
 0x87e   : > { %v14461_v29 = vpop.f32.mrf.mxu1  ;;  %v17968_v15 = vadd.f32 %v8485_v34, %v8388_v37 }
 0x895   : > { %v8578_v20 = vpop.f32.mrf.mxu0 }
 0x896   : > { %v8681_v43 = vpop.f32.mrf.mxu1  ;;  %v8592_v25 = vadd.f32 %v8578_v20, %v8489_v57  ;;  %v9039_v20 = vld [vmem:[#allocation32 + $0x8] sm:$0xff] }
 0x897   : > { %v14496_v63 = vpop.f32.mrf.mxu0 }
 0x898   : > { %v14537_v6 = vpop.f32.mrf.mxu1  ;;  %v8695_v7 = vadd.f32 %v8681_v43, %v8592_v25  ;;  %v12351_v43 = vld [vmem:[%s18998_s9 + $0x1f8] sm:$0xff]  ;;  %v12350_v25 = vld [vmem:[%s18998_s9 + $0x1f0] sm:$0xff]  ;;  %v12349_v63 = vld [vmem:[%s18998_s9 + $0x1e8] sm:$0xff] }
 0x899   : > { %v12348_v6 = vld [vmem:[%s18998_s9 + $0x1e0] sm:$0xff] }
 0x89b   : > { %v8583_v31 = vpop.f32.mrf.mxu0 }
 0x89c   : > { %v8686_v11 = vpop.f32.mrf.mxu1  ;;  %v8593_v47 = vadd.f32 %v8583_v31, %v17956_v45  ;;  %v18045_v31 = vld [vmem:[#allocation7 + $0x10] sm:$0xff] }
 0x89d   : > { %v14499_v0 = vpop.f32.mrf.mxu0 }
 0x89e   : > { %v14540_v40 = vpop.f32.mrf.mxu1  ;;  %v8696_v57 = vadd.f32 %v8686_v11, %v8593_v47  ;;  %v12346_v11 = vld [vmem:[%s18998_s9 + $0x1d0] sm:$0xff]  ;;  %v12345_v0 = vld [vmem:[%s18998_s9 + $0x1c8] sm:$0xff]  ;;  %v12328_v47 = vld [vmem:[%s18998_s9 + $0x140] sm:$0xff] }
 0x89f   : > { %v12344_v40 = vld [vmem:[%s18998_s9 + $0x1c0] sm:$0xff] }
 0x8a1   : > { %v8588_v41 = vpop.f32.mrf.mxu0 }
 0x8a2   : > { %v8691_v56 = vpop.f32.mrf.mxu1  ;;  %v8594_v13 = vadd.f32 %v8588_v41, %v17968_v15  ;;  %v12343_v41 = vld [vmem:[%s18998_s9 + $0x1b8] sm:$0xff] }
 0x8a3   : > { %v14502_v52 = vpop.f32.mrf.mxu0 }
 0x8a4   : > { %v14543_v19 = vpop.f32.mrf.mxu1  ;;  %v8697_v50 = vadd.f32 %v8691_v56, %v8594_v13  ;;  %v12342_v56 = vld [vmem:[%s18998_s9 + $0x1b0] sm:$0xff]  ;;  %v12341_v52 = vld [vmem:[%s18998_s9 + $0x1a8] sm:$0xff]  ;;  %v9131_v13 = vld [vmem:[%s18998_s9 + $0x38] sm:$0xff] }
 0x8a5   : > { %v12340_v19 = vld [vmem:[%s18998_s9 + $0x1a0] sm:$0xff] }
 0x8bb   : > { %v8784_v55 = vpop.f32.mrf.mxu0 }
 0x8bc   : > { %v8887_v26 = vpop.f32.mrf.mxu1  ;;  %v8798_v12 = vadd.f32 %v8784_v55, %v8695_v7  ;;  %v12347_v7 = vld [vmem:[%s18998_s9 + $0x1d8] sm:$0xff] }
 0x8bd   : > { %v14578_v61 = vpop.f32.mrf.mxu0  ;;  %v12339_v55 = vld [vmem:[%s18998_s9 + $0x198] sm:$0xff] }
 0x8be   : > { %v14619_v53 = vpop.f32.mrf.mxu1  ;;  %v8901_v35 = vadd.f32 %v8887_v26, %v8798_v12  ;;  %v12338_v26 = vld [vmem:[%s18998_s9 + $0x190] sm:$0xff]  ;;  %v12337_v61 = vld [vmem:[%s18998_s9 + $0x188] sm:$0xff]  ;;  %v9132_v12 = vld [vmem:[%s18998_s9 + $0x40] sm:$0xff] }
 0x8bf   : > { %v12336_v53 = vld [vmem:[%s18998_s9 + $0x180] sm:$0xff] }
 0x8c0   : > { %v8892_v23 = vpop.f32.mrf.mxu1  ;;  %v8789_v44 = vpop.f32.mrf.mxu0 }
 0x8c1   : > { %v8799_v22 = vadd.f32 %v8789_v44, %v8696_v57  ;;  %v12334_v44 = vld [vmem:[%s18998_s9 + $0x170] sm:$0xff]  ;;  %v12327_v57 = vld [vmem:[%s18998_s9 + $0x138] sm:$0xff] }
 0x8c2   : > { %v14622_v17 = vpop.f32.mrf.mxu1  ;;  %v14581_v27 = vpop.f32.mrf.mxu0 }
 0x8c3   : > { %v8902_v51 = vadd.f32 %v8892_v23, %v8799_v22  ;;  %v12335_v23 = vld [vmem:[%s18998_s9 + $0x178] sm:$0xff]  ;;  %v12333_v17 = vld [vmem:[%s18998_s9 + $0x168] sm:$0xff]  ;;  %v12332_v27 = vld [vmem:[%s18998_s9 + $0x160] sm:$0xff] }
 0x8c4   : > { %v8897_v18 = vpop.f32.mrf.mxu1  ;;  %v9130_v22 = vld [vmem:[%s18998_s9 + $0x30] sm:$0xff] }
 0x8c5   : > { %v8794_v16 = vpop.f32.mrf.mxu0 }
 0x8c6   : > { %v14625_v10 = vpop.f32.mrf.mxu1  ;;  %v8800_v37 = vadd.f32 %v8794_v16, %v8697_v50  ;;  %v12330_v16 = vld [vmem:[%s18998_s9 + $0x150] sm:$0xff]  ;;  %v12324_v50 = vld [vmem:[%s18998_s9 + $0x120] sm:$0xff] }
 0x8c7   : > { %v14584_v39 = vpop.f32.mrf.mxu0  ;;  %v12329_v10 = vld [vmem:[%s18998_s9 + $0x148] sm:$0xff] }
 0x8c8   : > { %v8903_v2 = vadd.f32 %v8897_v18, %v8800_v37  ;;  %v12331_v18 = vld [vmem:[%s18998_s9 + $0x158] sm:$0xff]  ;;  %v9133_v39 = vld [vmem:[%s18998_s9 + $0x48] sm:$0xff]  ;;  %v12322_v37 = vld [vmem:[%s18998_s9 + $0x110] sm:$0xff] }
 0x8c9   : > { %9283 = vmatprep.subr.mxu0 %v9133_v39  ;;  %v12363_v39 = vld [vmem:[%s18998_s9 + $0x258] sm:$0xff] }
 0x8ca   : > { %9284 = vmatpush1.msra.mxu0 %v9132_v12  ;;  %v12362_v12 = vld [vmem:[%s18998_s9 + $0x250] sm:$0xff] }
 0x8cb   : > { %9285 = vmatprep.subr.mxu0 %v9131_v13  ;;  %v12361_v13 = vld [vmem:[%s18998_s9 + $0x248] sm:$0xff] }
 0x8cc   : > { %9286 = vmatpush1.msra.mxu0 %v9130_v22  ;;  %v12360_v22 = vld [vmem:[%s18998_s9 + $0x240] sm:$0xff] }
 0x8dd   : > { %v8990_v14 = vpop.f32.mrf.mxu0 }
 0x8de   : > { %v9004_v1 = vadd.f32 %v8990_v14, %v8901_v35  ;;  %v12326_v35 = vld [vmem:[%s18998_s9 + $0x130] sm:$0xff]  ;;  %v12325_v14 = vld [vmem:[%s18998_s9 + $0x128] sm:$0xff] }
 0x8df   : > { %v14660_v34 = vpop.f32.mrf.mxu0 }
 0x8e0   : > { %v9014_v5 = vadd.f32 %v12317_v48, %v9004_v1  ;;  %v9128_v1 = vld [vmem:[%s18998_s9 + $0x20] sm:$0xff]  ;;  %v12323_v34 = vld [vmem:[%s18998_s9 + $0x118] sm:$0xff] }
 0x8e1   : > { %v8995_v28 = vpop.f32.mrf.mxu0 }
 0x8e2   : > { %v9017_v29 = vmax.f32 %v9014_v5, 0.0  ;;  %v9005_v32 = vadd.f32 %v8995_v28, %v8902_v51  ;;  %v9127_v51 = vld [vmem:[%s18998_s9 + $0x18] sm:$0xff]  ;;  %v9126_v5 = vld [vmem:[%s18998_s9 + $0x10] sm:$0xff]  ;;  %v12321_v28 = vld [vmem:[%s18998_s9 + $0x108] sm:$0xff] }
 0x8e3   : > { %v14663_v33 = vpop.f32.mrf.mxu0 }
 0x8e4   : > { %9020 = vst [vmem:[#allocation10] sm:$0xff] %v9017_v29  ;;  %v9015_v45 = vadd.f32 %v12317_v48, %v9005_v32  ;;  %v12320_v32 = vld [vmem:[%s18998_s9 + $0x100] sm:$0xff] }
 0x8e5   : > { %v9000_v42 = vpop.f32.mrf.mxu0  ;;  %v9124_v33 = vld [vmem:[%s18998_s9] sm:$0xff] }
 0x8e6   : > { %v9018_v62 = vmax.f32 %v9015_v45, 0.0  ;;  %v9006_v15 = vadd.f32 %v9000_v42, %v8903_v2  ;;  %v12383_v2 = vld [vmem:[%s18998_s9 + $0x2f8] sm:$0xff] }
 0x8e7   : > { %v14666_v49 = vpop.f32.mrf.mxu0  ;;  %v12415_v45 = vld [vmem:[%s18998_s9 + $0x3f8] sm:$0xff] }
 0x8e8   : > { %9021 = vst [vmem:[#allocation10 + $0x8] sm:$0xff] %v9018_v62  ;;  %v9016_v3 = vadd.f32 %v12317_v48, %v9006_v15  ;;  %v9129_v48 = vld [vmem:[%s18998_s9 + $0x28] sm:$0xff]  ;;  %v12382_v15 = vld [vmem:[%s18998_s9 + $0x2f0] sm:$0xff] }
 0x8e9   : > { %9287 = vmatprep.subr.mxu0 %v9129_v48  ;;  %v12414_v49 = vld [vmem:[%s18998_s9 + $0x3f0] sm:$0xff]  ;;  %v12359_v48 = vld [vmem:[%s18998_s9 + $0x238] sm:$0xff] }
 0x8ea   : > { %v9019_v38 = vmax.f32 %v9016_v3, 0.0  ;;  %9288 = vmatpush1.msra.mxu0 %v9128_v1  ;;  %v12381_v3 = vld [vmem:[%s18998_s9 + $0x2e8] sm:$0xff]  ;;  %v12358_v1 = vld [vmem:[%s18998_s9 + $0x230] sm:$0xff] }
 0x8eb   : > { %9289 = vmatprep.subr.mxu0 %v9127_v51  ;;  %v12357_v51 = vld [vmem:[%s18998_s9 + $0x228] sm:$0xff] }
 0x8ec   : > { %9022 = vst [vmem:[#allocation10 + $0x10] sm:$0x3f] %v9019_v38  ;;  %9290 = vmatpush1.msra.mxu0 %v9126_v5  ;;  %v12356_v5 = vld [vmem:[%s18998_s9 + $0x220] sm:$0xff] }
 0x8ef   : > { %v9026_v30 = vld [vmem:[#allocation10 + $0x1] sm:$0xff] }
 0x8f0   : > { %v9028_v9 = vld [vmem:[#allocation10 + $0x6] sm:$0xff]  ;;  %v9032_v54 = vmax.f32 %v9017_v29, %v9026_v30 }
 0x8f1   : > { %v9030_v58 = vld [vmem:[#allocation10 + $0x7] sm:$0xff] }
 0x8f2   : > { %v9034_v4 = vmax.f32 %v9028_v9, %v9030_v58  ;;  %v9125_v29 = vld [vmem:[%s18998_s9 + $0x8] sm:$0xff]  ;;  %v12380_v58 = vld [vmem:[%s18998_s9 + $0x2e0] sm:$0xff] }
 0x8f3   : > { %v9027_v46 = vld [vmem:[#allocation10 + $0x9] sm:$0xff]  ;;  %9291 = vmatprep.subr.mxu0 %v9125_v29  ;;  %v12355_v29 = vld [vmem:[%s18998_s9 + $0x218] sm:$0xff] }
 0x8f4   : > { %v9029_v36 = vld [vmem:[#allocation10 + $0xe] sm:$0xff]  ;;  %v9033_v60 = vmax.f32 %v9018_v62, %v9027_v46  ;;  %v9036_v24 = vmax.f32 %v9032_v54, %v9034_v4  ;;  %9292 = vmatpush1.msra.mxu0 %v9124_v33  ;;  %v12412_v46 = vld [vmem:[%s18998_s9 + $0x3e0] sm:$0xff] }
 0x8f5   : > { %v9031_v8 = vld [vmem:[#allocation10 + $0xf] sm:$0xff]  ;;  %9473 = vmatprep.subr.mxu0 %v12415_v45 }
 0x8f6   : > { %v9035_v59 = vmax.f32 %v9029_v36, %v9031_v8  ;;  %v12413_v9 = vld [vmem:[%s18998_s9 + $0x3e8] sm:$0xff]  ;;  %v12379_v36 = vld [vmem:[%s18998_s9 + $0x2d8] sm:$0xff]  ;;  %v12354_v33 = vld [vmem:[%s18998_s9 + $0x210] sm:$0xff] }
 0x8f7   : > { %v12411_v8 = vld [vmem:[%s18998_s9 + $0x3d8] sm:$0xff]  ;;  %v12377_v54 = vld [vmem:[%s18998_s9 + $0x2c8] sm:$0xff] }
 0x8f8   : > { %v9037_v21 = vmax.f32 %v9033_v60, %v9035_v59  ;;  %v12378_v60 = vld [vmem:[%s18998_s9 + $0x2d0] sm:$0xff]  ;;  %v12409_v4 = vld [vmem:[%s18998_s9 + $0x3c8] sm:$0xff] }
 0x8f9   : > { %v12410_v59 = vld [vmem:[%s18998_s9 + $0x3d0] sm:$0xff]  ;;  %v12353_v45 = vld [vmem:[%s18998_s9 + $0x208] sm:$0xff] }
 0x8fa   : > { %14667 = vmatprep.subr.mxu1 %v9037_v21 }
 0x8fb   : > { %14668 = vmatpush3.msra.mxu1 %v9037_v21  ;;  %v12376_v21 = vld [vmem:[%s18998_s9 + $0x2c0] sm:$0xff] }
 0x8fc   : > { %14669 = vmatprep.subr.mxu1 %v9036_v24 }
 0x8fd   : > { %14670 = vmatpush3.msra.mxu1 %v9036_v24  ;;  %v12408_v24 = vld [vmem:[%s18998_s9 + $0x3c0] sm:$0xff] }
 0x8fe   : > { %14672 = vmatmul.mubr.msk.f32.vlgmr.msra.gmra.mxu1 %vm4821_vm4, %v9039_v20  ;;  %9190 = vmatprep.subr.mxu1 %v12351_v43  ;;  %v12375_v20 = vld [vmem:[%s18998_s9 + $0x2b8] sm:$0xff] }
 0x8ff   : > { %9191 = vmatpush1.msra.mxu1 %v12350_v25  ;;  %9254 = vmatprep.mubr.f32.mxu1 %v18045_v31  ;;  %v12407_v43 = vld [vmem:[%s18998_s9 + $0x3b8] sm:$0xff]  ;;  %v12374_v25 = vld [vmem:[%s18998_s9 + $0x2b0] sm:$0xff] }
 0x900   : > { %9192 = vmatprep.subr.mxu1 %v12349_v63  ;;  %v12406_v63 = vld [vmem:[%s18998_s9 + $0x3b0] sm:$0xff] }
 0x901   : > { %9193 = vmatpush1.msra.mxu1 %v12348_v6  ;;  %v12373_v6 = vld [vmem:[%s18998_s9 + $0x2a8] sm:$0xff] }
 0x902   : > { %9194 = vmatprep.subr.mxu1 %v12347_v7  ;;  %v12405_v7 = vld [vmem:[%s18998_s9 + $0x3a8] sm:$0xff] }
 0x903   : > { %9195 = vmatpush1.msra.mxu1 %v12346_v11  ;;  %v12372_v11 = vld [vmem:[%s18998_s9 + $0x2a0] sm:$0xff] }
 0x904   : > { %9196 = vmatprep.subr.mxu1 %v12345_v0  ;;  %v12404_v0 = vld [vmem:[%s18998_s9 + $0x3a0] sm:$0xff] }
 0x905   : > { %9197 = vmatpush1.msra.mxu1 %v12344_v40  ;;  %v12371_v40 = vld [vmem:[%s18998_s9 + $0x298] sm:$0xff] }
 0x906   : > { %9198 = vmatprep.subr.mxu1 %v12343_v41  ;;  %v12403_v41 = vld [vmem:[%s18998_s9 + $0x398] sm:$0xff] }
 0x907   : > { %9199 = vmatpush1.msra.mxu1 %v12342_v56  ;;  %v12370_v56 = vld [vmem:[%s18998_s9 + $0x290] sm:$0xff] }
 0x908   : > { %9200 = vmatprep.subr.mxu1 %v12341_v52  ;;  %v12402_v52 = vld [vmem:[%s18998_s9 + $0x390] sm:$0xff] }
 0x909   : > { %9201 = vmatpush1.msra.mxu1 %v12340_v19  ;;  %v12369_v19 = vld [vmem:[%s18998_s9 + $0x288] sm:$0xff] }
 0x90a   : > { %9202 = vmatprep.subr.mxu1 %v12339_v55  ;;  %v12401_v55 = vld [vmem:[%s18998_s9 + $0x388] sm:$0xff] }
 0x90b   : > { %9203 = vmatpush1.msra.mxu1 %v12338_v26  ;;  %v12368_v26 = vld [vmem:[%s18998_s9 + $0x280] sm:$0xff] }
 0x90c   : > { %9204 = vmatprep.subr.mxu1 %v12337_v61  ;;  %v12400_v61 = vld [vmem:[%s18998_s9 + $0x380] sm:$0xff] }
 0x90d   : > { %9205 = vmatpush1.msra.mxu1 %v12336_v53  ;;  %v12367_v53 = vld [vmem:[%s18998_s9 + $0x278] sm:$0xff] }
 0x90e   : > { %9206 = vmatprep.subr.mxu1 %v12335_v23  ;;  %v12399_v23 = vld [vmem:[%s18998_s9 + $0x378] sm:$0xff] }
 0x90f   : > { %9207 = vmatpush1.msra.mxu1 %v12334_v44  ;;  %v12366_v44 = vld [vmem:[%s18998_s9 + $0x270] sm:$0xff] }
 0x910   : > { %9208 = vmatprep.subr.mxu1 %v12333_v17  ;;  %v12398_v17 = vld [vmem:[%s18998_s9 + $0x370] sm:$0xff] }
 0x911   : > { %9209 = vmatpush1.msra.mxu1 %v12332_v27  ;;  %v12365_v27 = vld [vmem:[%s18998_s9 + $0x268] sm:$0xff] }
 0x912   : > { %9210 = vmatprep.subr.mxu1 %v12331_v18  ;;  %v12397_v18 = vld [vmem:[%s18998_s9 + $0x368] sm:$0xff] }
 0x913   : > { %9211 = vmatpush1.msra.mxu1 %v12330_v16  ;;  %v12364_v16 = vld [vmem:[%s18998_s9 + $0x260] sm:$0xff] }
 0x914   : > { %9212 = vmatprep.subr.mxu1 %v12329_v10  ;;  %v12396_v10 = vld [vmem:[%s18998_s9 + $0x360] sm:$0xff] }
 0x915   : > { %9213 = vmatpush1.msra.mxu1 %v12328_v47  ;;  %v12395_v47 = vld [vmem:[%s18998_s9 + $0x358] sm:$0xff] }
 0x916   : > { %9214 = vmatprep.subr.mxu1 %v12327_v57  ;;  %v12394_v57 = vld [vmem:[%s18998_s9 + $0x350] sm:$0xff] }
 0x917   : > { %9215 = vmatpush1.msra.mxu1 %v12326_v35  ;;  %v12393_v35 = vld [vmem:[%s18998_s9 + $0x348] sm:$0xff] }
 0x918   : > { %9216 = vmatprep.subr.mxu1 %v12325_v14  ;;  %v12392_v14 = vld [vmem:[%s18998_s9 + $0x340] sm:$0xff] }
 0x919   : > { %9217 = vmatpush1.msra.mxu1 %v12324_v50  ;;  %v12391_v50 = vld [vmem:[%s18998_s9 + $0x338] sm:$0xff] }
 0x91a   : > { %9218 = vmatprep.subr.mxu1 %v12323_v34  ;;  %v12390_v34 = vld [vmem:[%s18998_s9 + $0x330] sm:$0xff] }
 0x91b   : > { %9219 = vmatpush1.msra.mxu1 %v12322_v37  ;;  %v12389_v37 = vld [vmem:[%s18998_s9 + $0x328] sm:$0xff] }
 0x91c   : > { %9220 = vmatprep.subr.mxu1 %v12321_v28  ;;  %v12388_v28 = vld [vmem:[%s18998_s9 + $0x320] sm:$0xff] }
 0x91d   : > { %9221 = vmatpush1.msra.mxu1 %v12320_v32  ;;  %v12387_v32 = vld [vmem:[%s18998_s9 + $0x318] sm:$0xff] }
 0x91e   : > { %9366 = vmatprep.subr.mxu1 %v12383_v2  ;;  %v12386_v2 = vld [vmem:[%s18998_s9 + $0x310] sm:$0xff] }
 0x9be   : > { %v14673_v42 = vpop.f32.mrf.mxu1 }
 0x9bf   : > { %9122 = vst [vmem:[#allocation6 + $0x8] sm:$0xff] %v14673_v42  ;;  %v12385_v42 = vld [vmem:[%s18998_s9 + $0x308] sm:$0xff] }
 0x9c0   : > { %v9112_v62 = vpop.f32.mrf.mxu1 }
 0x9c1   : > { %9121 = vst [vmem:[#allocation6] sm:$0xff] %v9112_v62  ;;  %v12352_v62 = vld [vmem:[%s18998_s9 + $0x200] sm:$0xff] }
 0x9c8   : > { %v9156_v38 = vld [vmem:[#allocation6 + $0x1] sm:$0x3f] }
 0x9c9   : > { %v9123_v30 = vld [vmem:[#allocation6] sm:$0x3f]  ;;  %9255 = vmatmul.mubr.f32.vlgmr.msra.gmra.mxu1 %v9156_v38  ;;  %v12446_v38 = vld [vmem:[%s18998_s9 + $0x4f0] sm:$0xff] }
 0x9ca   : > { %9326 = vmatmul.mubr.f32.vlgmr.msra.gmra.mxu0 %v9123_v30  ;;  %9367 = vmatpush1.msra.mxu1 %v12382_v15  ;;  %v12384_v15 = vld [vmem:[%s18998_s9 + $0x300] sm:$0xff]  ;;  %v12478_v30 = vld [vmem:[%s18998_s9 + $0x5f0] sm:$0xff] }
 0x9cb   : > { %9474 = vmatpush1.msra.mxu0 %v12414_v49  ;;  %9368 = vmatprep.subr.mxu1 %v12381_v3  ;;  %v12447_v49 = vld [vmem:[%s18998_s9 + $0x4f8] sm:$0xff] }
 0x9cc   : > { %9475 = vmatprep.subr.mxu0 %v12413_v9  ;;  %9369 = vmatpush1.msra.mxu1 %v12380_v58  ;;  %v12479_v3 = vld [vmem:[%s18998_s9 + $0x5f8] sm:$0xff]  ;;  %v12445_v9 = vld [vmem:[%s18998_s9 + $0x4e8] sm:$0xff]  ;;  %v9332_v58 = vld [vmem:[#allocation6 + $0x2] sm:$0x3f] }
 0x9cd   : > { %9476 = vmatpush1.msra.mxu0 %v12412_v46  ;;  %9370 = vmatprep.subr.mxu1 %v12379_v36  ;;  %v9439_v46 = vld [vmem:[#allocation6 + $0x4] sm:$0x3f] }
 0x9ce   : > { %9477 = vmatprep.subr.mxu0 %v12411_v8  ;;  %9371 = vmatpush1.msra.mxu1 %v12378_v60  ;;  %v12477_v36 = vld [vmem:[%s18998_s9 + $0x5e8] sm:$0xff]  ;;  %v12444_v8 = vld [vmem:[%s18998_s9 + $0x4e0] sm:$0xff] }
 0x9cf   : > { %9478 = vmatpush1.msra.mxu0 %v12410_v59  ;;  %9372 = vmatprep.subr.mxu1 %v12377_v54  ;;  %v12476_v60 = vld [vmem:[%s18998_s9 + $0x5e0] sm:$0xff]  ;;  %v12443_v59 = vld [vmem:[%s18998_s9 + $0x4d8] sm:$0xff] }
 0x9d0   : > { %9479 = vmatprep.subr.mxu0 %v12409_v4  ;;  %9373 = vmatpush1.msra.mxu1 %v12376_v21  ;;  %v12475_v54 = vld [vmem:[%s18998_s9 + $0x5d8] sm:$0xff]  ;;  %v12442_v4 = vld [vmem:[%s18998_s9 + $0x4d0] sm:$0xff] }
 0x9d1   : > { %9480 = vmatpush1.msra.mxu0 %v12408_v24  ;;  %9374 = vmatprep.subr.mxu1 %v12375_v20  ;;  %v12474_v21 = vld [vmem:[%s18998_s9 + $0x5d0] sm:$0xff]  ;;  %v12441_v24 = vld [vmem:[%s18998_s9 + $0x4c8] sm:$0xff] }
 0x9d2   : > { %9481 = vmatprep.subr.mxu0 %v12407_v43  ;;  %9375 = vmatpush1.msra.mxu1 %v12374_v25  ;;  %v12473_v20 = vld [vmem:[%s18998_s9 + $0x5c8] sm:$0xff]  ;;  %v12440_v43 = vld [vmem:[%s18998_s9 + $0x4c0] sm:$0xff] }
 0x9d3   : > { %9482 = vmatpush1.msra.mxu0 %v12406_v63  ;;  %9376 = vmatprep.subr.mxu1 %v12373_v6  ;;  %v12472_v25 = vld [vmem:[%s18998_s9 + $0x5c0] sm:$0xff]  ;;  %v12439_v63 = vld [vmem:[%s18998_s9 + $0x4b8] sm:$0xff] }
 0x9d4   : > { %9483 = vmatprep.subr.mxu0 %v12405_v7  ;;  %9377 = vmatpush1.msra.mxu1 %v12372_v11  ;;  %v12471_v6 = vld [vmem:[%s18998_s9 + $0x5b8] sm:$0xff]  ;;  %v12438_v7 = vld [vmem:[%s18998_s9 + $0x4b0] sm:$0xff] }
 0x9d5   : > { %9484 = vmatpush1.msra.mxu0 %v12404_v0  ;;  %9378 = vmatprep.subr.mxu1 %v12371_v40  ;;  %v12470_v11 = vld [vmem:[%s18998_s9 + $0x5b0] sm:$0xff]  ;;  %v12437_v0 = vld [vmem:[%s18998_s9 + $0x4a8] sm:$0xff] }
 0x9d6   : > { %9485 = vmatprep.subr.mxu0 %v12403_v41  ;;  %9379 = vmatpush1.msra.mxu1 %v12370_v56  ;;  %v12469_v40 = vld [vmem:[%s18998_s9 + $0x5a8] sm:$0xff]  ;;  %v12436_v41 = vld [vmem:[%s18998_s9 + $0x4a0] sm:$0xff] }
 0x9d7   : > { %9486 = vmatpush1.msra.mxu0 %v12402_v52  ;;  %9380 = vmatprep.subr.mxu1 %v12369_v19  ;;  %v12468_v56 = vld [vmem:[%s18998_s9 + $0x5a0] sm:$0xff]  ;;  %v12435_v52 = vld [vmem:[%s18998_s9 + $0x498] sm:$0xff] }
 0x9d8   : > { %9487 = vmatprep.subr.mxu0 %v12401_v55  ;;  %9381 = vmatpush1.msra.mxu1 %v12368_v26  ;;  %v12467_v19 = vld [vmem:[%s18998_s9 + $0x598] sm:$0xff]  ;;  %v12434_v55 = vld [vmem:[%s18998_s9 + $0x490] sm:$0xff] }
 0x9d9   : > { %9488 = vmatpush1.msra.mxu0 %v12400_v61  ;;  %9382 = vmatprep.subr.mxu1 %v12367_v53  ;;  %v12466_v26 = vld [vmem:[%s18998_s9 + $0x590] sm:$0xff]  ;;  %v12433_v61 = vld [vmem:[%s18998_s9 + $0x488] sm:$0xff] }
 0x9da   : > { %9489 = vmatprep.subr.mxu0 %v12399_v23  ;;  %9383 = vmatpush1.msra.mxu1 %v12366_v44  ;;  %v12465_v53 = vld [vmem:[%s18998_s9 + $0x588] sm:$0xff]  ;;  %v12432_v23 = vld [vmem:[%s18998_s9 + $0x480] sm:$0xff] }
 0x9db   : > { %9490 = vmatpush1.msra.mxu0 %v12398_v17  ;;  %9384 = vmatprep.subr.mxu1 %v12365_v27  ;;  %v12464_v44 = vld [vmem:[%s18998_s9 + $0x580] sm:$0xff]  ;;  %v12431_v17 = vld [vmem:[%s18998_s9 + $0x478] sm:$0xff] }
 0x9dc   : > { %9491 = vmatprep.subr.mxu0 %v12397_v18  ;;  %9385 = vmatpush1.msra.mxu1 %v12364_v16  ;;  %v12463_v27 = vld [vmem:[%s18998_s9 + $0x578] sm:$0xff]  ;;  %v12430_v18 = vld [vmem:[%s18998_s9 + $0x470] sm:$0xff] }
 0x9dd   : > { %9492 = vmatpush1.msra.mxu0 %v12396_v10  ;;  %9386 = vmatprep.subr.mxu1 %v12363_v39  ;;  %v12462_v16 = vld [vmem:[%s18998_s9 + $0x570] sm:$0xff]  ;;  %v12429_v10 = vld [vmem:[%s18998_s9 + $0x468] sm:$0xff] }
 0x9de   : > { %9493 = vmatprep.subr.mxu0 %v12395_v47  ;;  %9387 = vmatpush1.msra.mxu1 %v12362_v12  ;;  %v12461_v39 = vld [vmem:[%s18998_s9 + $0x568] sm:$0xff]  ;;  %v12428_v47 = vld [vmem:[%s18998_s9 + $0x460] sm:$0xff] }
 0x9df   : > { %9494 = vmatpush1.msra.mxu0 %v12394_v57  ;;  %9388 = vmatprep.subr.mxu1 %v12361_v13  ;;  %v12460_v12 = vld [vmem:[%s18998_s9 + $0x560] sm:$0xff]  ;;  %v12427_v57 = vld [vmem:[%s18998_s9 + $0x458] sm:$0xff] }
 0x9e0   : > { %9495 = vmatprep.subr.mxu0 %v12393_v35  ;;  %9389 = vmatpush1.msra.mxu1 %v12360_v22  ;;  %v12459_v13 = vld [vmem:[%s18998_s9 + $0x558] sm:$0xff]  ;;  %v12426_v35 = vld [vmem:[%s18998_s9 + $0x450] sm:$0xff] }
 0x9e1   : > { %9496 = vmatpush1.msra.mxu0 %v12392_v14  ;;  %9390 = vmatprep.subr.mxu1 %v12359_v48  ;;  %v12458_v22 = vld [vmem:[%s18998_s9 + $0x550] sm:$0xff]  ;;  %v12425_v14 = vld [vmem:[%s18998_s9 + $0x448] sm:$0xff] }
 0x9e2   : > { %9497 = vmatprep.subr.mxu0 %v12391_v50  ;;  %9391 = vmatpush1.msra.mxu1 %v12358_v1  ;;  %v12457_v48 = vld [vmem:[%s18998_s9 + $0x548] sm:$0xff]  ;;  %v12424_v50 = vld [vmem:[%s18998_s9 + $0x440] sm:$0xff] }
 0x9e3   : > { %9498 = vmatpush1.msra.mxu0 %v12390_v34  ;;  %9392 = vmatprep.subr.mxu1 %v12357_v51  ;;  %v12456_v1 = vld [vmem:[%s18998_s9 + $0x540] sm:$0xff]  ;;  %v12423_v34 = vld [vmem:[%s18998_s9 + $0x438] sm:$0xff] }
 0x9e4   : > { %9499 = vmatprep.subr.mxu0 %v12389_v37  ;;  %9393 = vmatpush1.msra.mxu1 %v12356_v5  ;;  %v12455_v51 = vld [vmem:[%s18998_s9 + $0x538] sm:$0xff]  ;;  %v12422_v37 = vld [vmem:[%s18998_s9 + $0x430] sm:$0xff] }
 0x9e5   : > { %9500 = vmatpush1.msra.mxu0 %v12388_v28  ;;  %9394 = vmatprep.subr.mxu1 %v12355_v29  ;;  %v12454_v5 = vld [vmem:[%s18998_s9 + $0x530] sm:$0xff]  ;;  %v12421_v28 = vld [vmem:[%s18998_s9 + $0x428] sm:$0xff] }
 0x9e6   : > { %9501 = vmatprep.subr.mxu0 %v12387_v32  ;;  %9395 = vmatpush1.msra.mxu1 %v12354_v33  ;;  %v12453_v29 = vld [vmem:[%s18998_s9 + $0x528] sm:$0xff]  ;;  %v12420_v32 = vld [vmem:[%s18998_s9 + $0x420] sm:$0xff] }
 0x9e7   : > { %9502 = vmatpush1.msra.mxu0 %v12386_v2  ;;  %9396 = vmatprep.subr.mxu1 %v12353_v45  ;;  %v12452_v33 = vld [vmem:[%s18998_s9 + $0x520] sm:$0xff]  ;;  %v12419_v2 = vld [vmem:[%s18998_s9 + $0x418] sm:$0xff] }
 0x9e8   : > { %9503 = vmatprep.subr.mxu0 %v12385_v42  ;;  %9397 = vmatpush1.msra.mxu1 %v12352_v62  ;;  %v12451_v45 = vld [vmem:[%s18998_s9 + $0x518] sm:$0xff]  ;;  %v12418_v42 = vld [vmem:[%s18998_s9 + $0x410] sm:$0xff] }
 0x9e9   : > { %9504 = vmatpush1.msra.mxu0 %v12384_v15  ;;  %9430 = vmatprep.mubr.f32.mxu1 %v18045_v31  ;;  %v12450_v62 = vld [vmem:[%s18998_s9 + $0x510] sm:$0xff]  ;;  %v12417_v15 = vld [vmem:[%s18998_s9 + $0x408] sm:$0xff] }
 0x9ea   : > { %9537 = vmatprep.mubr.f32.mxu0 %v18045_v31  ;;  %9580 = vmatprep.subr.mxu1 %v12447_v49  ;;  %v12449_v49 = vld [vmem:[%s18998_s9 + $0x508] sm:$0xff] }
 0x9eb   : > { %9687 = vmatprep.subr.mxu0 %v12479_v3  ;;  %9431 = vmatmul.mubr.f32.vlgmr.msra.gmra.mxu1 %v9332_v58  ;;  %v12416_v3 = vld [vmem:[%s18998_s9 + $0x400] sm:$0xff]  ;;  %v12510_v58 = vld [vmem:[%s18998_s9 + $0x6f0] sm:$0xff] }
 0x9ec   : > { %9538 = vmatmul.mubr.f32.vlgmr.msra.gmra.mxu0 %v9439_v46  ;;  %9581 = vmatpush1.msra.mxu1 %v12446_v38  ;;  %v12448_v38 = vld [vmem:[%s18998_s9 + $0x500] sm:$0xff] }
 0x9ed   : > { %9688 = vmatpush1.msra.mxu0 %v12478_v30  ;;  %9582 = vmatprep.subr.mxu1 %v12445_v9  ;;  %v12511_v30 = vld [vmem:[%s18998_s9 + $0x6f8] sm:$0xff]  ;;  %v9546_v46 = vld [vmem:[#allocation6 + $0x5] sm:$0x3f] }
 0x9ee   : > { %9689 = vmatprep.subr.mxu0 %v12477_v36  ;;  %9583 = vmatpush1.msra.mxu1 %v12444_v8  ;;  %v12543_v9 = vld [vmem:[%s18998_s9 + $0x7f8] sm:$0xff]  ;;  %v9653_v36 = vld [vmem:[#allocation6 + $0x6] sm:$0x3f]  ;;  %v12542_v8 = vld [vmem:[%s18998_s9 + $0x7f0] sm:$0xff] }
 0x9ef   : > { %9690 = vmatpush1.msra.mxu0 %v12476_v60  ;;  %9584 = vmatprep.subr.mxu1 %v12443_v59  ;;  %v12509_v60 = vld [vmem:[%s18998_s9 + $0x6e8] sm:$0xff] }
 0x9f0   : > { %9691 = vmatprep.subr.mxu0 %v12475_v54  ;;  %9585 = vmatpush1.msra.mxu1 %v12442_v4  ;;  %v12541_v59 = vld [vmem:[%s18998_s9 + $0x7e8] sm:$0xff]  ;;  %v12508_v54 = vld [vmem:[%s18998_s9 + $0x6e0] sm:$0xff] }
 0x9f1   : > { %9692 = vmatpush1.msra.mxu0 %v12474_v21  ;;  %9586 = vmatprep.subr.mxu1 %v12441_v24  ;;  %v12540_v4 = vld [vmem:[%s18998_s9 + $0x7e0] sm:$0xff]  ;;  %v12507_v21 = vld [vmem:[%s18998_s9 + $0x6d8] sm:$0xff] }
 0x9f2   : > { %9693 = vmatprep.subr.mxu0 %v12473_v20  ;;  %9587 = vmatpush1.msra.mxu1 %v12440_v43  ;;  %v12539_v24 = vld [vmem:[%s18998_s9 + $0x7d8] sm:$0xff]  ;;  %v12506_v20 = vld [vmem:[%s18998_s9 + $0x6d0] sm:$0xff] }
 0x9f3   : > { %9694 = vmatpush1.msra.mxu0 %v12472_v25  ;;  %9588 = vmatprep.subr.mxu1 %v12439_v63  ;;  %v12538_v43 = vld [vmem:[%s18998_s9 + $0x7d0] sm:$0xff]  ;;  %v12505_v25 = vld [vmem:[%s18998_s9 + $0x6c8] sm:$0xff] }
 0x9f4   : > { %9695 = vmatprep.subr.mxu0 %v12471_v6  ;;  %9589 = vmatpush1.msra.mxu1 %v12438_v7  ;;  %v12537_v63 = vld [vmem:[%s18998_s9 + $0x7c8] sm:$0xff]  ;;  %v12504_v6 = vld [vmem:[%s18998_s9 + $0x6c0] sm:$0xff] }
 0x9f5   : > { %9696 = vmatpush1.msra.mxu0 %v12470_v11  ;;  %9590 = vmatprep.subr.mxu1 %v12437_v0  ;;  %v12536_v7 = vld [vmem:[%s18998_s9 + $0x7c0] sm:$0xff]  ;;  %v12503_v11 = vld [vmem:[%s18998_s9 + $0x6b8] sm:$0xff] }
 0x9f6   : > { %9697 = vmatprep.subr.mxu0 %v12469_v40  ;;  %9591 = vmatpush1.msra.mxu1 %v12436_v41  ;;  %v12535_v0 = vld [vmem:[%s18998_s9 + $0x7b8] sm:$0xff]  ;;  %v12502_v40 = vld [vmem:[%s18998_s9 + $0x6b0] sm:$0xff] }
 0x9f7   : > { %9698 = vmatpush1.msra.mxu0 %v12468_v56  ;;  %9592 = vmatprep.subr.mxu1 %v12435_v52  ;;  %v12534_v41 = vld [vmem:[%s18998_s9 + $0x7b0] sm:$0xff]  ;;  %v12501_v56 = vld [vmem:[%s18998_s9 + $0x6a8] sm:$0xff] }
 0x9f8   : > { %9699 = vmatprep.subr.mxu0 %v12467_v19  ;;  %9593 = vmatpush1.msra.mxu1 %v12434_v55  ;;  %v12533_v52 = vld [vmem:[%s18998_s9 + $0x7a8] sm:$0xff]  ;;  %v12500_v19 = vld [vmem:[%s18998_s9 + $0x6a0] sm:$0xff] }
 0x9f9   : > { %9700 = vmatpush1.msra.mxu0 %v12466_v26  ;;  %9594 = vmatprep.subr.mxu1 %v12433_v61  ;;  %v12532_v55 = vld [vmem:[%s18998_s9 + $0x7a0] sm:$0xff]  ;;  %v12499_v26 = vld [vmem:[%s18998_s9 + $0x698] sm:$0xff] }
 0x9fa   : > { %9701 = vmatprep.subr.mxu0 %v12465_v53  ;;  %9595 = vmatpush1.msra.mxu1 %v12432_v23  ;;  %v12531_v61 = vld [vmem:[%s18998_s9 + $0x798] sm:$0xff]  ;;  %v12498_v53 = vld [vmem:[%s18998_s9 + $0x690] sm:$0xff] }
 0x9fb   : > { %9702 = vmatpush1.msra.mxu0 %v12464_v44  ;;  %9596 = vmatprep.subr.mxu1 %v12431_v17  ;;  %v12530_v23 = vld [vmem:[%s18998_s9 + $0x790] sm:$0xff]  ;;  %v12497_v44 = vld [vmem:[%s18998_s9 + $0x688] sm:$0xff] }
 0x9fc   : > { %9703 = vmatprep.subr.mxu0 %v12463_v27  ;;  %9597 = vmatpush1.msra.mxu1 %v12430_v18  ;;  %v12529_v17 = vld [vmem:[%s18998_s9 + $0x788] sm:$0xff]  ;;  %v12496_v27 = vld [vmem:[%s18998_s9 + $0x680] sm:$0xff] }
 0x9fd   : > { %9704 = vmatpush1.msra.mxu0 %v12462_v16  ;;  %9598 = vmatprep.subr.mxu1 %v12429_v10  ;;  %v12528_v18 = vld [vmem:[%s18998_s9 + $0x780] sm:$0xff]  ;;  %v12495_v16 = vld [vmem:[%s18998_s9 + $0x678] sm:$0xff] }
 0x9fe   : > { %9705 = vmatprep.subr.mxu0 %v12461_v39  ;;  %9599 = vmatpush1.msra.mxu1 %v12428_v47  ;;  %v12527_v10 = vld [vmem:[%s18998_s9 + $0x778] sm:$0xff]  ;;  %v12494_v39 = vld [vmem:[%s18998_s9 + $0x670] sm:$0xff] }
 0x9ff   : > { %9706 = vmatpush1.msra.mxu0 %v12460_v12  ;;  %9600 = vmatprep.subr.mxu1 %v12427_v57  ;;  %v12526_v47 = vld [vmem:[%s18998_s9 + $0x770] sm:$0xff]  ;;  %v12493_v12 = vld [vmem:[%s18998_s9 + $0x668] sm:$0xff] }
 0xa00   : > { %9707 = vmatprep.subr.mxu0 %v12459_v13  ;;  %9601 = vmatpush1.msra.mxu1 %v12426_v35  ;;  %v12525_v57 = vld [vmem:[%s18998_s9 + $0x768] sm:$0xff]  ;;  %v12492_v13 = vld [vmem:[%s18998_s9 + $0x660] sm:$0xff] }
 0xa01   : > { %9708 = vmatpush1.msra.mxu0 %v12458_v22  ;;  %9602 = vmatprep.subr.mxu1 %v12425_v14  ;;  %v12524_v35 = vld [vmem:[%s18998_s9 + $0x760] sm:$0xff]  ;;  %v12491_v22 = vld [vmem:[%s18998_s9 + $0x658] sm:$0xff] }
 0xa02   : > { %9709 = vmatprep.subr.mxu0 %v12457_v48  ;;  %9603 = vmatpush1.msra.mxu1 %v12424_v50  ;;  %v12523_v14 = vld [vmem:[%s18998_s9 + $0x758] sm:$0xff]  ;;  %v12490_v48 = vld [vmem:[%s18998_s9 + $0x650] sm:$0xff] }
 0xa03   : > { %9710 = vmatpush1.msra.mxu0 %v12456_v1  ;;  %9604 = vmatprep.subr.mxu1 %v12423_v34  ;;  %v12522_v50 = vld [vmem:[%s18998_s9 + $0x750] sm:$0xff]  ;;  %v12489_v1 = vld [vmem:[%s18998_s9 + $0x648] sm:$0xff] }
 0xa04   : > { %9711 = vmatprep.subr.mxu0 %v12455_v51  ;;  %9605 = vmatpush1.msra.mxu1 %v12422_v37  ;;  %v12521_v34 = vld [vmem:[%s18998_s9 + $0x748] sm:$0xff]  ;;  %v12488_v51 = vld [vmem:[%s18998_s9 + $0x640] sm:$0xff] }
 0xa05   : > { %9712 = vmatpush1.msra.mxu0 %v12454_v5  ;;  %9606 = vmatprep.subr.mxu1 %v12421_v28  ;;  %v12520_v37 = vld [vmem:[%s18998_s9 + $0x740] sm:$0xff]  ;;  %v12487_v5 = vld [vmem:[%s18998_s9 + $0x638] sm:$0xff] }
 0xa06   : > { %9713 = vmatprep.subr.mxu0 %v12453_v29  ;;  %9607 = vmatpush1.msra.mxu1 %v12420_v32  ;;  %v12519_v28 = vld [vmem:[%s18998_s9 + $0x738] sm:$0xff]  ;;  %v12486_v29 = vld [vmem:[%s18998_s9 + $0x630] sm:$0xff] }
 0xa07   : > { %9714 = vmatpush1.msra.mxu0 %v12452_v33  ;;  %9608 = vmatprep.subr.mxu1 %v12419_v2  ;;  %v12518_v32 = vld [vmem:[%s18998_s9 + $0x730] sm:$0xff]  ;;  %v12485_v33 = vld [vmem:[%s18998_s9 + $0x628] sm:$0xff] }
 0xa08   : > { %9715 = vmatprep.subr.mxu0 %v12451_v45  ;;  %9609 = vmatpush1.msra.mxu1 %v12418_v42  ;;  %v12517_v2 = vld [vmem:[%s18998_s9 + $0x728] sm:$0xff]  ;;  %v12484_v45 = vld [vmem:[%s18998_s9 + $0x620] sm:$0xff] }
 0xa09   : > { %9716 = vmatpush1.msra.mxu0 %v12450_v62  ;;  %9610 = vmatprep.subr.mxu1 %v12417_v15  ;;  %v12516_v42 = vld [vmem:[%s18998_s9 + $0x720] sm:$0xff]  ;;  %v12483_v62 = vld [vmem:[%s18998_s9 + $0x618] sm:$0xff] }
 0xa0a   : > { %9717 = vmatprep.subr.mxu0 %v12449_v49  ;;  %9611 = vmatpush1.msra.mxu1 %v12416_v3  ;;  %v12515_v15 = vld [vmem:[%s18998_s9 + $0x718] sm:$0xff]  ;;  %v12482_v49 = vld [vmem:[%s18998_s9 + $0x610] sm:$0xff] }
 0xa0b   : > { %9644 = vmatprep.mubr.f32.mxu1 %v18045_v31  ;;  %9718 = vmatpush1.msra.mxu0 %v12448_v38  ;;  %v12514_v3 = vld [vmem:[%s18998_s9 + $0x710] sm:$0xff]  ;;  %v12481_v38 = vld [vmem:[%s18998_s9 + $0x608] sm:$0xff] }
 0xa0c   : > { %9751 = vmatprep.mubr.f32.mxu0 %v18045_v31  ;;  %9645 = vmatmul.mubr.f32.vlgmr.msra.gmra.mxu1 %v9546_v46  ;;  %v12575_v46 = vld [vmem:[%s18998_s9 + $0x8f8] sm:$0xff] }
 0xa0d   : > { %9752 = vmatmul.mubr.f32.vlgmr.msra.gmra.mxu0 %v9653_v36  ;;  %9794 = vmatprep.subr.mxu1 %v12511_v30  ;;  %v12513_v30 = vld [vmem:[%s18998_s9 + $0x708] sm:$0xff] }
 0xa0e   : > { %9901 = vmatprep.subr.mxu0 %v12543_v9  ;;  %9795 = vmatpush1.msra.mxu1 %v12510_v58  ;;  %v12480_v9 = vld [vmem:[%s18998_s9 + $0x600] sm:$0xff]  ;;  %v9760_v36 = vld [vmem:[#allocation6 + $0x8] sm:$0x3f] }
 0xa0f   : > { %9902 = vmatpush1.msra.mxu0 %v12542_v8  ;;  %9796 = vmatprep.subr.mxu1 %v12509_v60  ;;  %v12512_v58 = vld [vmem:[%s18998_s9 + $0x700] sm:$0xff]  ;;  %v9867_v8 = vld [vmem:[#allocation6 + $0x9] sm:$0x3f]  ;;  %v12574_v60 = vld [vmem:[%s18998_s9 + $0x8f0] sm:$0xff] }
 0xa10   : > { %9903 = vmatprep.subr.mxu0 %v12541_v59  ;;  %9797 = vmatpush1.msra.mxu1 %v12508_v54  ;;  %v12573_v59 = vld [vmem:[%s18998_s9 + $0x8e8] sm:$0xff]  ;;  %v12572_v54 = vld [vmem:[%s18998_s9 + $0x8e0] sm:$0xff] }
 0xa11   : > { %9904 = vmatpush1.msra.mxu0 %v12540_v4  ;;  %9798 = vmatprep.subr.mxu1 %v12507_v21  ;;  %v12571_v4 = vld [vmem:[%s18998_s9 + $0x8d8] sm:$0xff]  ;;  %v12570_v21 = vld [vmem:[%s18998_s9 + $0x8d0] sm:$0xff] }
 0xa12   : > { %9905 = vmatprep.subr.mxu0 %v12539_v24  ;;  %9799 = vmatpush1.msra.mxu1 %v12506_v20  ;;  %v12569_v24 = vld [vmem:[%s18998_s9 + $0x8c8] sm:$0xff]  ;;  %v12567_v20 = vld [vmem:[%s18998_s9 + $0x8b8] sm:$0xff] }
 0xa13   : > { %9906 = vmatpush1.msra.mxu0 %v12538_v43  ;;  %9800 = vmatprep.subr.mxu1 %v12505_v25  ;;  %v12566_v43 = vld [vmem:[%s18998_s9 + $0x8b0] sm:$0xff]  ;;  %v12565_v25 = vld [vmem:[%s18998_s9 + $0x8a8] sm:$0xff] }
 0xa14   : > { %9907 = vmatprep.subr.mxu0 %v12537_v63  ;;  %9801 = vmatpush1.msra.mxu1 %v12504_v6  ;;  %v12564_v63 = vld [vmem:[%s18998_s9 + $0x8a0] sm:$0xff]  ;;  %v12563_v6 = vld [vmem:[%s18998_s9 + $0x898] sm:$0xff] }
 0xa15   : > { %9908 = vmatpush1.msra.mxu0 %v12536_v7  ;;  %9802 = vmatprep.subr.mxu1 %v12503_v11  ;;  %v12562_v7 = vld [vmem:[%s18998_s9 + $0x890] sm:$0xff]  ;;  %v12561_v11 = vld [vmem:[%s18998_s9 + $0x888] sm:$0xff] }
 0xa16   : > { %9909 = vmatprep.subr.mxu0 %v12535_v0  ;;  %9803 = vmatpush1.msra.mxu1 %v12502_v40  ;;  %v12560_v0 = vld [vmem:[%s18998_s9 + $0x880] sm:$0xff]  ;;  %v12559_v40 = vld [vmem:[%s18998_s9 + $0x878] sm:$0xff] }
 0xa17   : > { %9910 = vmatpush1.msra.mxu0 %v12534_v41  ;;  %9804 = vmatprep.subr.mxu1 %v12501_v56  ;;  %v12558_v41 = vld [vmem:[%s18998_s9 + $0x870] sm:$0xff]  ;;  %v12557_v56 = vld [vmem:[%s18998_s9 + $0x868] sm:$0xff] }
 0xa18   : > { %9911 = vmatprep.subr.mxu0 %v12533_v52  ;;  %9805 = vmatpush1.msra.mxu1 %v12500_v19  ;;  %v12556_v52 = vld [vmem:[%s18998_s9 + $0x860] sm:$0xff]  ;;  %v12555_v19 = vld [vmem:[%s18998_s9 + $0x858] sm:$0xff] }
 0xa19   : > { %9912 = vmatpush1.msra.mxu0 %v12532_v55  ;;  %9806 = vmatprep.subr.mxu1 %v12499_v26  ;;  %v12554_v55 = vld [vmem:[%s18998_s9 + $0x850] sm:$0xff]  ;;  %v12553_v26 = vld [vmem:[%s18998_s9 + $0x848] sm:$0xff] }
 0xa1a   : > { %9913 = vmatprep.subr.mxu0 %v12531_v61  ;;  %9807 = vmatpush1.msra.mxu1 %v12498_v53  ;;  %v12552_v61 = vld [vmem:[%s18998_s9 + $0x840] sm:$0xff]  ;;  %v12551_v53 = vld [vmem:[%s18998_s9 + $0x838] sm:$0xff] }
 0xa1b   : > { %9914 = vmatpush1.msra.mxu0 %v12530_v23  ;;  %9808 = vmatprep.subr.mxu1 %v12497_v44  ;;  %v12550_v23 = vld [vmem:[%s18998_s9 + $0x830] sm:$0xff]  ;;  %v12549_v44 = vld [vmem:[%s18998_s9 + $0x828] sm:$0xff] }
 0xa1c   : > { %9915 = vmatprep.subr.mxu0 %v12529_v17  ;;  %9809 = vmatpush1.msra.mxu1 %v12496_v27  ;;  %v12548_v17 = vld [vmem:[%s18998_s9 + $0x820] sm:$0xff]  ;;  %v12547_v27 = vld [vmem:[%s18998_s9 + $0x818] sm:$0xff] }
 0xa1d   : > { %9916 = vmatpush1.msra.mxu0 %v12528_v18  ;;  %9810 = vmatprep.subr.mxu1 %v12495_v16  ;;  %v12546_v18 = vld [vmem:[%s18998_s9 + $0x810] sm:$0xff]  ;;  %v12545_v16 = vld [vmem:[%s18998_s9 + $0x808] sm:$0xff] }
 0xa1e   : > { %9917 = vmatprep.subr.mxu0 %v12527_v10  ;;  %9811 = vmatpush1.msra.mxu1 %v12494_v39  ;;  %v12544_v10 = vld [vmem:[%s18998_s9 + $0x800] sm:$0xff]  ;;  %v9974_v39 = vld [vmem:[#allocation6 + $0xa] sm:$0x3f] }
 0xa1f   : > { %9918 = vmatpush1.msra.mxu0 %v12526_v47  ;;  %9812 = vmatprep.subr.mxu1 %v12493_v12  ;;  %v10148_v47 = vld [vmem:[#allocation26 + $0xf8] sm:$0xff]  ;;  %v10147_v12 = vld [vmem:[#allocation26 + $0xf0] sm:$0xff] }
 0xa20   : > { %9919 = vmatprep.subr.mxu0 %v12525_v57  ;;  %9813 = vmatpush1.msra.mxu1 %v12492_v13  ;;  %v10215_v57 = vld [vmem:[#allocation26 + $0x2f8] sm:$0xff]  ;;  %v10146_v13 = vld [vmem:[#allocation26 + $0xe8] sm:$0xff] }
 0xa21   : > { %9920 = vmatpush1.msra.mxu0 %v12524_v35  ;;  %9814 = vmatprep.subr.mxu1 %v12491_v22  ;;  %v10214_v35 = vld [vmem:[#allocation26 + $0x2f0] sm:$0xff]  ;;  %v10145_v22 = vld [vmem:[#allocation26 + $0xe0] sm:$0xff] }
 0xa22   : > { %9921 = vmatprep.subr.mxu0 %v12523_v14  ;;  %9815 = vmatpush1.msra.mxu1 %v12490_v48  ;;  %v10213_v14 = vld [vmem:[#allocation26 + $0x2e8] sm:$0xff]  ;;  %v10144_v48 = vld [vmem:[#allocation26 + $0xd8] sm:$0xff] }
 0xa23   : > { %9922 = vmatpush1.msra.mxu0 %v12522_v50  ;;  %9816 = vmatprep.subr.mxu1 %v12489_v1  ;;  %v10212_v50 = vld [vmem:[#allocation26 + $0x2e0] sm:$0xff]  ;;  %v10143_v1 = vld [vmem:[#allocation26 + $0xd0] sm:$0xff] }
 0xa24   : > { %9923 = vmatprep.subr.mxu0 %v12521_v34  ;;  %9817 = vmatpush1.msra.mxu1 %v12488_v51  ;;  %v10211_v34 = vld [vmem:[#allocation26 + $0x2d8] sm:$0xff]  ;;  %v10142_v51 = vld [vmem:[#allocation26 + $0xc8] sm:$0xff] }
 0xa25   : > { %9924 = vmatpush1.msra.mxu0 %v12520_v37  ;;  %9818 = vmatprep.subr.mxu1 %v12487_v5  ;;  %v10210_v37 = vld [vmem:[#allocation26 + $0x2d0] sm:$0xff]  ;;  %v10209_v5 = vld [vmem:[#allocation26 + $0x2c8] sm:$0xff] }
 0xa26   : > { %9925 = vmatprep.subr.mxu0 %v12519_v28  ;;  %9819 = vmatpush1.msra.mxu1 %v12486_v29  ;;  %v10141_v28 = vld [vmem:[#allocation26 + $0xc0] sm:$0xff] }
 0xa27   : > { %9926 = vmatpush1.msra.mxu0 %v12518_v32  ;;  %9820 = vmatprep.subr.mxu1 %v12485_v33  ;;  %v10208_v29 = vld [vmem:[#allocation26 + $0x2c0] sm:$0xff]  ;;  %v10140_v32 = vld [vmem:[#allocation26 + $0xb8] sm:$0xff] }
 0xa28   : > { %9927 = vmatprep.subr.mxu0 %v12517_v2  ;;  %9821 = vmatpush1.msra.mxu1 %v12484_v45  ;;  %v10207_v33 = vld [vmem:[#allocation26 + $0x2b8] sm:$0xff]  ;;  %v10139_v2 = vld [vmem:[#allocation26 + $0xb0] sm:$0xff] }
 0xa29   : > { %9928 = vmatpush1.msra.mxu0 %v12516_v42  ;;  %9822 = vmatprep.subr.mxu1 %v12483_v62  ;;  %v10206_v45 = vld [vmem:[#allocation26 + $0x2b0] sm:$0xff]  ;;  %v10138_v42 = vld [vmem:[#allocation26 + $0xa8] sm:$0xff] }
 0xa2a   : > { %9929 = vmatprep.subr.mxu0 %v12515_v15  ;;  %9823 = vmatpush1.msra.mxu1 %v12482_v49  ;;  %v10205_v62 = vld [vmem:[#allocation26 + $0x2a8] sm:$0xff]  ;;  %v10137_v15 = vld [vmem:[#allocation26 + $0xa0] sm:$0xff]  ;;  %v10136_v49 = vld [vmem:[#allocation26 + $0x98] sm:$0xff] }
 0xa2b   : > { %9930 = vmatpush1.msra.mxu0 %v12514_v3  ;;  %9824 = vmatprep.subr.mxu1 %v12481_v38  ;;  %v10204_v3 = vld [vmem:[#allocation26 + $0x2a0] sm:$0xff]  ;;  %v10135_v38 = vld [vmem:[#allocation26 + $0x90] sm:$0xff] }
 0xa2c   : > { %9931 = vmatprep.subr.mxu0 %v12513_v30  ;;  %9825 = vmatpush1.msra.mxu1 %v12480_v9  ;;  %v10203_v30 = vld [vmem:[#allocation26 + $0x298] sm:$0xff]  ;;  %v10134_v9 = vld [vmem:[#allocation26 + $0x88] sm:$0xff] }
 0xa2d   : > { %9858 = vmatprep.mubr.f32.mxu1 %v18045_v31  ;;  %9932 = vmatpush1.msra.mxu0 %v12512_v58  ;;  %v10202_v58 = vld [vmem:[#allocation26 + $0x290] sm:$0xff] }
 0xa2e   : > { %9965 = vmatprep.mubr.f32.mxu0 %v18045_v31  ;;  %9859 = vmatmul.mubr.f32.vlgmr.msra.gmra.mxu1 %v9760_v36  ;;  %v10201_v36 = vld [vmem:[#allocation26 + $0x288] sm:$0xff] }
 0xa2f   : > { %9966 = vmatmul.mubr.f32.vlgmr.msra.gmra.mxu0 %v9867_v8  ;;  %10008 = vmatprep.subr.mxu1 %v12575_v46  ;;  %v10133_v46 = vld [vmem:[#allocation26 + $0x80] sm:$0xff]  ;;  %v10132_v8 = vld [vmem:[#allocation26 + $0x78] sm:$0xff] }
 0xa30   : > { %10072 = vmatprep.mubr.f32.mxu1 %v18045_v31  ;;  %10009 = vmatpush1.msra.mxu1 %v12574_v60  ;;  %v12568_v31 = vld [vmem:[%s18998_s9 + $0x8c0] sm:$0xff]  ;;  %v10200_v60 = vld [vmem:[#allocation26 + $0x280] sm:$0xff] }
 0xa31   : > { %10010 = vmatprep.subr.mxu1 %v12573_v59  ;;  %10254 = vmatprep.subr.mxu0 %v10215_v57  ;;  %v10131_v59 = vld [vmem:[#allocation26 + $0x70] sm:$0xff]  ;;  %v10247_v57 = vld [vmem:[#allocation26 + $0x3f8] sm:$0xff] }
 0xa32   : > { %10011 = vmatpush1.msra.mxu1 %v12572_v54  ;;  %10255 = vmatpush1.msra.mxu0 %v10214_v35  ;;  %v10199_v54 = vld [vmem:[#allocation26 + $0x278] sm:$0xff]  ;;  %v10246_v35 = vld [vmem:[#allocation26 + $0x3f0] sm:$0xff] }
 0xa33   : > { %10012 = vmatprep.subr.mxu1 %v12571_v4  ;;  %10256 = vmatprep.subr.mxu0 %v10213_v14  ;;  %v10130_v4 = vld [vmem:[#allocation26 + $0x68] sm:$0xff] }
 0xa34   : > { %10013 = vmatpush1.msra.mxu1 %v12570_v21  ;;  %10257 = vmatpush1.msra.mxu0 %v10212_v50  ;;  %v10198_v21 = vld [vmem:[#allocation26 + $0x270] sm:$0xff]  ;;  %v10245_v14 = vld [vmem:[#allocation26 + $0x3e8] sm:$0xff]  ;;  %v10244_v50 = vld [vmem:[#allocation26 + $0x3e0] sm:$0xff] }
 0xa35   : > { %10014 = vmatprep.subr.mxu1 %v12569_v24  ;;  %10258 = vmatprep.subr.mxu0 %v10211_v34  ;;  %v10129_v24 = vld [vmem:[#allocation26 + $0x60] sm:$0xff]  ;;  %v10243_v34 = vld [vmem:[#allocation26 + $0x3d8] sm:$0xff] }
 0xa36   : > { %10015 = vmatpush1.msra.mxu1 %v12568_v31  ;;  %10259 = vmatpush1.msra.mxu0 %v10210_v37  ;;  %v10197_v31 = vld [vmem:[#allocation26 + $0x268] sm:$0xff]  ;;  %v10242_v37 = vld [vmem:[#allocation26 + $0x3d0] sm:$0xff] }
 0xa37   : > { %10016 = vmatprep.subr.mxu1 %v12567_v20  ;;  %10260 = vmatprep.subr.mxu0 %v10209_v5  ;;  %v10128_v20 = vld [vmem:[#allocation26 + $0x58] sm:$0xff]  ;;  %v10173_v5 = vld [vmem:[#allocation26 + $0x1c0] sm:$0xff] }
 0xa38   : > { %10017 = vmatpush1.msra.mxu1 %v12566_v43  ;;  %10261 = vmatpush1.msra.mxu0 %v10208_v29  ;;  %v10196_v43 = vld [vmem:[#allocation26 + $0x260] sm:$0xff]  ;;  %v10172_v29 = vld [vmem:[#allocation26 + $0x1b8] sm:$0xff] }
 0xa39   : > { %10018 = vmatprep.subr.mxu1 %v12565_v25  ;;  %10262 = vmatprep.subr.mxu0 %v10207_v33  ;;  %v10127_v25 = vld [vmem:[#allocation26 + $0x50] sm:$0xff] }
 0xa3a   : > { %10019 = vmatpush1.msra.mxu1 %v12564_v63  ;;  %10263 = vmatpush1.msra.mxu0 %v10206_v45  ;;  %v10195_v63 = vld [vmem:[#allocation26 + $0x258] sm:$0xff]  ;;  %v10171_v33 = vld [vmem:[#allocation26 + $0x1b0] sm:$0xff]  ;;  %v10170_v45 = vld [vmem:[#allocation26 + $0x1a8] sm:$0xff] }
 0xa3b   : > { %10020 = vmatprep.subr.mxu1 %v12563_v6  ;;  %10264 = vmatprep.subr.mxu0 %v10205_v62  ;;  %v10126_v6 = vld [vmem:[#allocation26 + $0x48] sm:$0xff]  ;;  %v10169_v62 = vld [vmem:[#allocation26 + $0x1a0] sm:$0xff] }
 0xa3c   : > { %10021 = vmatpush1.msra.mxu1 %v12562_v7  ;;  %10265 = vmatpush1.msra.mxu0 %v10204_v3  ;;  %v10194_v7 = vld [vmem:[#allocation26 + $0x250] sm:$0xff]  ;;  %v10236_v3 = vld [vmem:[#allocation26 + $0x3a0] sm:$0xff] }
 0xa3d   : > { %10022 = vmatprep.subr.mxu1 %v12561_v11  ;;  %10266 = vmatprep.subr.mxu0 %v10203_v30  ;;  %v10125_v11 = vld [vmem:[#allocation26 + $0x40] sm:$0xff]  ;;  %v10235_v30 = vld [vmem:[#allocation26 + $0x398] sm:$0xff] }
 0xa3e   : > { %10023 = vmatpush1.msra.mxu1 %v12560_v0  ;;  %10267 = vmatpush1.msra.mxu0 %v10202_v58  ;;  %v10193_v0 = vld [vmem:[#allocation26 + $0x248] sm:$0xff]  ;;  %v10234_v58 = vld [vmem:[#allocation26 + $0x390] sm:$0xff] }
 0xa3f   : > { %10024 = vmatprep.subr.mxu1 %v12559_v40  ;;  %10268 = vmatprep.subr.mxu0 %v10201_v36  ;;  %v10124_v40 = vld [vmem:[#allocation26 + $0x38] sm:$0xff]  ;;  %v10233_v36 = vld [vmem:[#allocation26 + $0x388] sm:$0xff] }
 0xa40   : > { %10025 = vmatpush1.msra.mxu1 %v12558_v41  ;;  %10269 = vmatpush1.msra.mxu0 %v10200_v60  ;;  %v10192_v41 = vld [vmem:[#allocation26 + $0x240] sm:$0xff] }
 0xa41   : > { %10026 = vmatprep.subr.mxu1 %v12557_v56  ;;  %10270 = vmatprep.subr.mxu0 %v10199_v54  ;;  %v10123_v56 = vld [vmem:[#allocation26 + $0x30] sm:$0xff]  ;;  %v10232_v60 = vld [vmem:[#allocation26 + $0x380] sm:$0xff]  ;;  %v10231_v54 = vld [vmem:[#allocation26 + $0x378] sm:$0xff] }
 0xa42   : > { %10027 = vmatpush1.msra.mxu1 %v12556_v52  ;;  %10271 = vmatpush1.msra.mxu0 %v10198_v21  ;;  %v10191_v52 = vld [vmem:[#allocation26 + $0x238] sm:$0xff]  ;;  %v10230_v21 = vld [vmem:[#allocation26 + $0x370] sm:$0xff] }
 0xa43   : > { %10028 = vmatprep.subr.mxu1 %v12555_v19  ;;  %10272 = vmatprep.subr.mxu0 %v10197_v31  ;;  %v10122_v19 = vld [vmem:[#allocation26 + $0x28] sm:$0xff] }
 0xa44   : > { %10029 = vmatpush1.msra.mxu1 %v12554_v55  ;;  %10273 = vmatpush1.msra.mxu0 %v10196_v43  ;;  %v10190_v55 = vld [vmem:[#allocation26 + $0x230] sm:$0xff]  ;;  %v10229_v31 = vld [vmem:[#allocation26 + $0x368] sm:$0xff]  ;;  %v10228_v43 = vld [vmem:[#allocation26 + $0x360] sm:$0xff] }
 0xa45   : > { %10030 = vmatprep.subr.mxu1 %v12553_v26  ;;  %10274 = vmatprep.subr.mxu0 %v10195_v63  ;;  %v10121_v26 = vld [vmem:[#allocation26 + $0x20] sm:$0xff]  ;;  %v10227_v63 = vld [vmem:[#allocation26 + $0x358] sm:$0xff] }
 0xa46   : > { %10031 = vmatpush1.msra.mxu1 %v12552_v61  ;;  %10275 = vmatpush1.msra.mxu0 %v10194_v7  ;;  %v10189_v61 = vld [vmem:[#allocation26 + $0x228] sm:$0xff]  ;;  %v10226_v7 = vld [vmem:[#allocation26 + $0x350] sm:$0xff] }
 0xa47   : > { %10032 = vmatprep.subr.mxu1 %v12551_v53  ;;  %10276 = vmatprep.subr.mxu0 %v10193_v0  ;;  %v10120_v53 = vld [vmem:[#allocation26 + $0x18] sm:$0xff]  ;;  %v10225_v0 = vld [vmem:[#allocation26 + $0x348] sm:$0xff] }
 0xa48   : > { %10033 = vmatpush1.msra.mxu1 %v12550_v23  ;;  %10277 = vmatpush1.msra.mxu0 %v10192_v41  ;;  %v10188_v23 = vld [vmem:[#allocation26 + $0x220] sm:$0xff] }
 0xa49   : > { %10034 = vmatprep.subr.mxu1 %v12549_v44  ;;  %10278 = vmatprep.subr.mxu0 %v10191_v52  ;;  %v10119_v44 = vld [vmem:[#allocation26 + $0x10] sm:$0xff]  ;;  %v10224_v41 = vld [vmem:[#allocation26 + $0x340] sm:$0xff]  ;;  %v10223_v52 = vld [vmem:[#allocation26 + $0x338] sm:$0xff] }
 0xa4a   : > { %10035 = vmatpush1.msra.mxu1 %v12548_v17  ;;  %10279 = vmatpush1.msra.mxu0 %v10190_v55  ;;  %v10187_v17 = vld [vmem:[#allocation26 + $0x218] sm:$0xff]  ;;  %v10222_v55 = vld [vmem:[#allocation26 + $0x330] sm:$0xff] }
 0xa4b   : > { %10036 = vmatprep.subr.mxu1 %v12547_v27  ;;  %v10118_v27 = vld [vmem:[#allocation26 + $0x8] sm:$0xff]  ;;  %10280 = vmatprep.subr.mxu0 %v10189_v61 }
 0xa4c   : > { %10037 = vmatpush1.msra.mxu1 %v12546_v18  ;;  %v10186_v18 = vld [vmem:[#allocation26 + $0x210] sm:$0xff]  ;;  %10281 = vmatpush1.msra.mxu0 %v10188_v23  ;;  %v10221_v61 = vld [vmem:[#allocation26 + $0x328] sm:$0xff]  ;;  %v10220_v23 = vld [vmem:[#allocation26 + $0x320] sm:$0xff] }
 0xa4d   : > { %10038 = vmatprep.subr.mxu1 %v12545_v16  ;;  %v10117_v16 = vld [vmem:[#allocation26] sm:$0xff]  ;;  %10282 = vmatprep.subr.mxu0 %v10187_v17  ;;  %v10219_v17 = vld [vmem:[#allocation26 + $0x318] sm:$0xff] }
 0xa4e   : > { %10039 = vmatpush1.msra.mxu1 %v12544_v10  ;;  %v10185_v10 = vld [vmem:[#allocation26 + $0x208] sm:$0xff]  ;;  %10283 = vmatpush1.msra.mxu0 %v10186_v18  ;;  %v10218_v18 = vld [vmem:[#allocation26 + $0x310] sm:$0xff] }
 0xa4f   : > { %10073 = vmatmul.mubr.f32.vlgmr.msra.gmra.mxu1 %v9974_v39  ;;  %10325 = vmatprep.subr.mxu1 %v10148_v47  ;;  %v10180_v39 = vld [vmem:[#allocation26 + $0x1f8] sm:$0xff]  ;;  %v10184_v47 = vld [vmem:[#allocation26 + $0x200] sm:$0xff] }
 0xa50   : > { %10326 = vmatpush1.msra.mxu1 %v10147_v12  ;;  %v10179_v12 = vld [vmem:[#allocation26 + $0x1f0] sm:$0xff]  ;;  %10284 = vmatprep.subr.mxu0 %v10185_v10  ;;  %v10217_v10 = vld [vmem:[#allocation26 + $0x308] sm:$0xff] }
 0xa51   : > { %10327 = vmatprep.subr.mxu1 %v10146_v13  ;;  %v10178_v13 = vld [vmem:[#allocation26 + $0x1e8] sm:$0xff]  ;;  %10285 = vmatpush1.msra.mxu0 %v10184_v47  ;;  %v10216_v47 = vld [vmem:[#allocation26 + $0x300] sm:$0xff] }
 0xa52   : > { %10328 = vmatpush1.msra.mxu1 %v10145_v22  ;;  %v10177_v22 = vld [vmem:[#allocation26 + $0x1e0] sm:$0xff]  ;;  %10286 = vmatprep.subr.mxu0 %v10247_v57 }
 0xa53   : > { %10329 = vmatprep.subr.mxu1 %v10144_v48  ;;  %v10176_v48 = vld [vmem:[#allocation26 + $0x1d8] sm:$0xff]  ;;  %10287 = vmatpush2.msra.mxu0 %v10246_v35 }
 0xa54   : > { %10330 = vmatpush1.msra.mxu1 %v10143_v1  ;;  %v10175_v1 = vld [vmem:[#allocation26 + $0x1d0] sm:$0xff]  ;;  %10288 = vmatprep.subr.mxu0 %v10245_v14 }
 0xa55   : > { %10331 = vmatprep.subr.mxu1 %v10142_v51  ;;  %v10174_v51 = vld [vmem:[#allocation26 + $0x1c8] sm:$0xff]  ;;  %10289 = vmatpush2.msra.mxu0 %v10244_v50 }
 0xa56   : > { %10332 = vmatpush1.msra.mxu1 %v10141_v28  ;;  %v10241_v28 = vld [vmem:[#allocation26 + $0x3c8] sm:$0xff]  ;;  %10290 = vmatprep.subr.mxu0 %v10243_v34 }
 0xa57   : > { %10333 = vmatprep.subr.mxu1 %v10140_v32  ;;  %v10240_v32 = vld [vmem:[#allocation26 + $0x3c0] sm:$0xff]  ;;  %10291 = vmatpush2.msra.mxu0 %v10242_v37 }
 0xa58   : > { %10334 = vmatpush1.msra.mxu1 %v10139_v2  ;;  %v10239_v2 = vld [vmem:[#allocation26 + $0x3b8] sm:$0xff]  ;;  %10292 = vmatprep.subr.mxu0 %v10241_v28 }
 0xa59   : > { %10335 = vmatprep.subr.mxu1 %v10138_v42  ;;  %v10238_v42 = vld [vmem:[#allocation26 + $0x3b0] sm:$0xff]  ;;  %10293 = vmatpush2.msra.mxu0 %v10240_v32 }
 0xa5a   : > { %10336 = vmatpush1.msra.mxu1 %v10137_v15  ;;  %v10237_v15 = vld [vmem:[#allocation26 + $0x3a8] sm:$0xff]  ;;  %10294 = vmatprep.subr.mxu0 %v10239_v2 }
 0xa5b   : > { %10337 = vmatprep.subr.mxu1 %v10136_v49  ;;  %v10168_v49 = vld [vmem:[#allocation26 + $0x198] sm:$0xff]  ;;  %10295 = vmatpush2.msra.mxu0 %v10238_v42 }
 0xa5c   : > { %10338 = vmatpush1.msra.mxu1 %v10135_v38  ;;  %10296 = vmatprep.subr.mxu0 %v10237_v15  ;;  %v10167_v38 = vld [vmem:[#allocation26 + $0x190] sm:$0xff] }
 0xa5d   : > { %10339 = vmatprep.subr.mxu1 %v10134_v9  ;;  %10297 = vmatpush2.msra.mxu0 %v10236_v3  ;;  %v10166_v9 = vld [vmem:[#allocation26 + $0x188] sm:$0xff] }
 0xa5e   : > { %10340 = vmatpush1.msra.mxu1 %v10133_v46  ;;  %10298 = vmatprep.subr.mxu0 %v10235_v30  ;;  %v10165_v46 = vld [vmem:[#allocation26 + $0x180] sm:$0xff] }
 0xa5f   : > { %10341 = vmatprep.subr.mxu1 %v10132_v8  ;;  %10299 = vmatpush2.msra.mxu0 %v10234_v58  ;;  %v10164_v8 = vld [vmem:[#allocation26 + $0x178] sm:$0xff] }
 0xa60   : > { %10342 = vmatpush1.msra.mxu1 %v10131_v59  ;;  %10300 = vmatprep.subr.mxu0 %v10233_v36  ;;  %v10163_v59 = vld [vmem:[#allocation26 + $0x170] sm:$0xff] }
 0xa61   : > { %10343 = vmatprep.subr.mxu1 %v10130_v4  ;;  %10301 = vmatpush2.msra.mxu0 %v10232_v60  ;;  %v10162_v4 = vld [vmem:[#allocation26 + $0x168] sm:$0xff] }
 0xa62   : > { %10344 = vmatpush1.msra.mxu1 %v10129_v24  ;;  %10302 = vmatprep.subr.mxu0 %v10231_v54  ;;  %v10161_v24 = vld [vmem:[#allocation26 + $0x160] sm:$0xff] }
 0xa63   : > { %10345 = vmatprep.subr.mxu1 %v10128_v20  ;;  %10303 = vmatpush2.msra.mxu0 %v10230_v21  ;;  %v10160_v20 = vld [vmem:[#allocation26 + $0x158] sm:$0xff] }
 0xa64   : > { %10346 = vmatpush1.msra.mxu1 %v10127_v25  ;;  %10304 = vmatprep.subr.mxu0 %v10229_v31  ;;  %v10159_v25 = vld [vmem:[#allocation26 + $0x150] sm:$0xff] }
 0xa65   : > { %10347 = vmatprep.subr.mxu1 %v10126_v6  ;;  %10305 = vmatpush2.msra.mxu0 %v10228_v43  ;;  %v10158_v6 = vld [vmem:[#allocation26 + $0x148] sm:$0xff] }
 0xa66   : > { %10348 = vmatpush1.msra.mxu1 %v10125_v11  ;;  %10306 = vmatprep.subr.mxu0 %v10227_v63  ;;  %v10157_v11 = vld [vmem:[#allocation26 + $0x140] sm:$0xff] }
 0xa67   : > { %10349 = vmatprep.subr.mxu1 %v10124_v40  ;;  %10307 = vmatpush2.msra.mxu0 %v10226_v7  ;;  %v10156_v40 = vld [vmem:[#allocation26 + $0x138] sm:$0xff] }
 0xa68   : > { %10350 = vmatpush1.msra.mxu1 %v10123_v56  ;;  %10308 = vmatprep.subr.mxu0 %v10225_v0  ;;  %v10155_v56 = vld [vmem:[#allocation26 + $0x130] sm:$0xff] }
 0xa69   : > { %10351 = vmatprep.subr.mxu1 %v10122_v19  ;;  %10309 = vmatpush2.msra.mxu0 %v10224_v41  ;;  %v10154_v19 = vld [vmem:[#allocation26 + $0x128] sm:$0xff] }
 0xa6a   : > { %10352 = vmatpush1.msra.mxu1 %v10121_v26  ;;  %10310 = vmatprep.subr.mxu0 %v10223_v52  ;;  %v10153_v26 = vld [vmem:[#allocation26 + $0x120] sm:$0xff]  ;;  %v10577_v52 = vld [vmem:[#allocation26 + $0x6f0] sm:$0xff] }
 0xa6b   : > { %10353 = vmatprep.subr.mxu1 %v10120_v53  ;;  %v10152_v53 = vld [vmem:[#allocation26 + $0x118] sm:$0xff]  ;;  %10311 = vmatpush2.msra.mxu0 %v10222_v55 }
 0xa6c   : > { %10354 = vmatpush1.msra.mxu1 %v10119_v44  ;;  %v10151_v44 = vld [vmem:[#allocation26 + $0x110] sm:$0xff]  ;;  %10312 = vmatprep.subr.mxu0 %v10221_v61 }
 0xa6d   : > { %10355 = vmatprep.subr.mxu1 %v10118_v27  ;;  %v10150_v27 = vld [vmem:[#allocation26 + $0x108] sm:$0xff]  ;;  %10313 = vmatpush2.msra.mxu0 %v10220_v23 }
 0xa6e   : > { %10356 = vmatpush1.msra.mxu1 %v10117_v16  ;;  %v10149_v16 = vld [vmem:[#allocation26 + $0x100] sm:$0xff]  ;;  %10314 = vmatprep.subr.mxu0 %v10219_v17 }
 0xa6f   : > { %10357 = vmatprep.subr.mxu1 %v10180_v39  ;;  %10315 = vmatpush2.msra.mxu0 %v10218_v18  ;;  %v10578_v39 = vld [vmem:[#allocation26 + $0x6f8] sm:$0xff] }
 0xa70   : > { %10358 = vmatpush2.msra.mxu1 %v10179_v12  ;;  %10316 = vmatprep.subr.mxu0 %v10217_v10  ;;  %v10430_v12 = vld [vmem:[#allocation26 + $0x4f8] sm:$0xff] }
 0xa71   : > { %10359 = vmatprep.subr.mxu1 %v10178_v13  ;;  %10317 = vmatpush2.msra.mxu0 %v10216_v47 }
 0xa72   : > { %10360 = vmatpush2.msra.mxu1 %v10177_v22  ;;  %10469 = vmatprep.subr.mxu0 %v10430_v12  ;;  %v10428_v12 = vld [vmem:[#allocation26 + $0x4e8] sm:$0xff] }
 0xa73   : > { %10361 = vmatprep.subr.mxu1 %v10176_v48 }
 0xa74   : > { %10362 = vmatpush2.msra.mxu1 %v10175_v1 }
 0xa75   : > { %10363 = vmatprep.subr.mxu1 %v10174_v51 }
 0xa76   : > { %10364 = vmatpush2.msra.mxu1 %v10173_v5 }
 0xa77   : > { %10365 = vmatprep.subr.mxu1 %v10172_v29  ;;  %v10083_v29 = vlaneseq }
 0xa78   : > { %10366 = vmatpush2.msra.mxu1 %v10171_v33 }
 0xa79   : > { %10367 = vmatprep.subr.mxu1 %v10170_v45 }
 0xa7a   : > { %10368 = vmatpush2.msra.mxu1 %v10169_v62 }
 0xa7b   : > { %10369 = vmatprep.subr.mxu1 %v10168_v49  ;;  %v18838_v49 = vshrl.u32 %v10083_v29, 7  ;;  %v10422_v29 = vld [vmem:[#allocation26 + $0x4b8] sm:$0xff] }
 0xa7c   : > { %10370 = vmatpush2.msra.mxu1 %v10167_v38 }
 0xa7d   : > { %10371 = vmatprep.subr.mxu1 %v10166_v9 }
 0xa7e   : > { %10372 = vmatpush2.msra.mxu1 %v10165_v46  ;;  %v10085_v46 = vsub.s32 0, %v18838_v49 }
 0xa7f   : > { %10373 = vmatprep.subr.mxu1 %v10164_v8  ;;  %v10081_v8 = vld [vmem:[#allocation25] sm:$0x3] }
 0xa80   : > { %10374 = vmatpush2.msra.mxu1 %v10163_v59  ;;  %v10089_v59 = vsub.s32 1, %v18838_v49 }
 0xa81   : > { %10375 = vmatprep.subr.mxu1 %v10162_v4  ;;  %v10086_v4 = vrot.slane %v10081_v8, %v10085_v46 }
 0xa82   : > { %10376 = vmatpush2.msra.mxu1 %v10161_v24  ;;  %v10090_v43 = vrot.slane %v10081_v8, %v10089_v59  ;;  %v10415_v8 = vld [vmem:[#allocation26 + $0x480] sm:$0xff] }
 0xa83   : > { %10377 = vmatprep.subr.mxu1 %v10160_v20 }
 0xa84   : > { %10378 = vmatpush2.msra.mxu1 %v10159_v25 }
 0xa85   : > { %10379 = vmatprep.subr.mxu1 %v10158_v6 }
 0xa86   : > { %10380 = vmatpush2.msra.mxu1 %v10157_v11 }
 0xa87   : > { %10381 = vmatprep.subr.mxu1 %v10156_v40 }
 0xa88   : > { %10382 = vmatpush2.msra.mxu1 %v10155_v56  ;;  %v14871_v56 = vld [vmem:[#allocation7] sm:$0xff] }
 0xa89   : > { %10383 = vmatprep.subr.mxu1 %v10154_v19  ;;  %v9256_v57 = vpop.f32.mrf.mxu1  ;;  %v10576_v19 = vld [vmem:[#allocation26 + $0x6e8] sm:$0xff] }
 0xa8a   : > { %10384 = vmatpush2.msra.mxu1 %v10153_v26  ;;  %v9327_v35 = vpop.f32.mrf.mxu0 }
 0xa8b   : > { %10385 = vmatprep.subr.mxu1 %v10152_v53  ;;  %v9258_v13 = vpop.f32.mrf.mxu1  ;;  %v9328_v48 = vadd.f32 %v9327_v35, %v9256_v57 }
 0xa8c   : > { %10386 = vmatpush2.msra.mxu1 %v10151_v44  ;;  %v9329_v14 = vpop.f32.mrf.mxu0  ;;  %v10429_v44 = vld [vmem:[#allocation26 + $0x4f0] sm:$0xff] }
 0xa8d   : > { %10387 = vmatprep.subr.mxu1 %v10150_v27  ;;  %v9330_v1 = vadd.f32 %v9329_v14, %v9258_v13  ;;  %v10574_v13 = vld [vmem:[#allocation26 + $0x6d8] sm:$0xff]  ;;  %v10573_v14 = vld [vmem:[#allocation26 + $0x6d0] sm:$0xff] }
 0xa8e   : > { %10388 = vmatpush2.msra.mxu1 %v10149_v16  ;;  %v10575_v16 = vld [vmem:[#allocation26 + $0x6e0] sm:$0xff] }
 0xa8f   : > { %10623 = vmatprep.subr.mxu1 %v10578_v39 }
 0xaab   : > { %v9432_v22 = vpop.f32.mrf.mxu1 }
 0xaac   : > { %v9437_v34 = vadd.f32 %v9432_v22, %v9328_v48  ;;  %v9539_v51 = vpop.f32.mrf.mxu0  ;;  %v10427_v22 = vld [vmem:[#allocation26 + $0x4e0] sm:$0xff]  ;;  %v10426_v48 = vld [vmem:[#allocation26 + $0x4d8] sm:$0xff] }
 0xaad   : > { %v9434_v50 = vpop.f32.mrf.mxu1 }
 0xaae   : > { %v9438_v5 = vadd.f32 %v9434_v50, %v9330_v1  ;;  %v9544_v28 = vadd.f32 %v9539_v51, %v9437_v34  ;;  %v9541_v32 = vpop.f32.mrf.mxu0  ;;  %v10572_v50 = vld [vmem:[#allocation26 + $0x6c8] sm:$0xff]  ;;  %v10425_v1 = vld [vmem:[#allocation26 + $0x4d0] sm:$0xff]  ;;  %v10571_v34 = vld [vmem:[#allocation26 + $0x6c0] sm:$0xff] }
 0xaaf   : > { %v10424_v51 = vld [vmem:[#allocation26 + $0x4c8] sm:$0xff] }
 0xab0   : > { %v9545_v2 = vadd.f32 %v9541_v32, %v9438_v5  ;;  %v10423_v5 = vld [vmem:[#allocation26 + $0x4c0] sm:$0xff]  ;;  %v10568_v32 = vld [vmem:[#allocation26 + $0x6a8] sm:$0xff] }
 0xacc   : > { %v9646_v37 = vpop.f32.mrf.mxu1 }
 0xacd   : > { %v9651_v45 = vadd.f32 %v9646_v37, %v9544_v28  ;;  %v9753_v42 = vpop.f32.mrf.mxu0  ;;  %v10570_v37 = vld [vmem:[#allocation26 + $0x6b8] sm:$0xff]  ;;  %v10569_v28 = vld [vmem:[#allocation26 + $0x6b0] sm:$0xff] }
 0xace   : > { %v9648_v33 = vpop.f32.mrf.mxu1 }
 0xacf   : > { %v9652_v15 = vadd.f32 %v9648_v33, %v9545_v2  ;;  %v9758_v3 = vadd.f32 %v9753_v42, %v9651_v45  ;;  %v9755_v38 = vpop.f32.mrf.mxu0  ;;  %v10421_v33 = vld [vmem:[#allocation26 + $0x4b0] sm:$0xff]  ;;  %v10567_v2 = vld [vmem:[#allocation26 + $0x6a0] sm:$0xff]  ;;  %v10420_v45 = vld [vmem:[#allocation26 + $0x4a8] sm:$0xff] }
 0xad0   : > { %v10566_v42 = vld [vmem:[#allocation26 + $0x698] sm:$0xff] }
 0xad1   : > { %v9759_v9 = vadd.f32 %v9755_v38, %v9652_v15  ;;  %v10565_v15 = vld [vmem:[#allocation26 + $0x690] sm:$0xff]  ;;  %v10564_v38 = vld [vmem:[#allocation26 + $0x688] sm:$0xff] }
 0xaee   : > { %v9860_v62 = vpop.f32.mrf.mxu1 }
 0xaef   : > { %v9865_v58 = vadd.f32 %v9860_v62, %v9758_v3  ;;  %v9967_v36 = vpop.f32.mrf.mxu0  ;;  %v10419_v62 = vld [vmem:[#allocation26 + $0x4a0] sm:$0xff]  ;;  %v10418_v3 = vld [vmem:[#allocation26 + $0x498] sm:$0xff] }
 0xaf0   : > { %v9862_v30 = vpop.f32.mrf.mxu1 }
 0xaf1   : > { %v9866_v60 = vadd.f32 %v9862_v30, %v9759_v9  ;;  %v9972_v54 = vadd.f32 %v9967_v36, %v9865_v58  ;;  %v9969_v21 = vpop.f32.mrf.mxu0  ;;  %v10417_v30 = vld [vmem:[#allocation26 + $0x490] sm:$0xff]  ;;  %v10563_v9 = vld [vmem:[#allocation26 + $0x680] sm:$0xff]  ;;  %v10416_v58 = vld [vmem:[#allocation26 + $0x488] sm:$0xff] }
 0xaf2   : > { %v10562_v36 = vld [vmem:[#allocation26 + $0x678] sm:$0xff] }
 0xaf3   : > { %v9973_v31 = vadd.f32 %v9969_v21, %v9866_v60  ;;  %v10561_v60 = vld [vmem:[#allocation26 + $0x670] sm:$0xff] }
 0xaf4   : > { %v10413_v21 = vld [vmem:[#allocation26 + $0x470] sm:$0xff] }
 0xb0f   : > { %v10074_v24 = vpop.f32.mrf.mxu1 }
 0xb10   : > { %v10079_v20 = vadd.f32 %v10074_v24, %v9972_v54  ;;  %v10414_v54 = vld [vmem:[#allocation26 + $0x478] sm:$0xff]  ;;  %v10559_v24 = vld [vmem:[#allocation26 + $0x660] sm:$0xff] }
 0xb11   : > { %v10076_v25 = vpop.f32.mrf.mxu1 }
 0xb12   : > { %v10093_v63 = vadd.f32 %v10086_v4, %v10079_v20  ;;  %v10080_v6 = vadd.f32 %v10076_v25, %v9973_v31  ;;  %v10560_v4 = vld [vmem:[#allocation26 + $0x668] sm:$0xff]  ;;  %v10558_v20 = vld [vmem:[#allocation26 + $0x658] sm:$0xff]  ;;  %v10557_v25 = vld [vmem:[#allocation26 + $0x650] sm:$0xff] }
 0xb13   : > { %v10412_v31 = vld [vmem:[#allocation26 + $0x468] sm:$0xff] }
 0xb14   : > { %v10095_v7 = vmax.f32 %v10093_v63, 0.0  ;;  %v10094_v11 = vadd.f32 %v10090_v43, %v10080_v6  ;;  %v10411_v43 = vld [vmem:[#allocation26 + $0x460] sm:$0xff]  ;;  %v10410_v63 = vld [vmem:[#allocation26 + $0x458] sm:$0xff]  ;;  %v10556_v6 = vld [vmem:[#allocation26 + $0x648] sm:$0xff] }
 0xb16   : > { %v10103_v0 = vrot.slane %v10095_v7, 3  ;;  %v10096_v40 = vmax.f32 %v10094_v11, 0.0  ;;  %v10409_v7 = vld [vmem:[#allocation26 + $0x450] sm:$0xff]  ;;  %v10555_v11 = vld [vmem:[#allocation26 + $0x640] sm:$0xff] }
 0xb18   : > { %10107 = vst [vmem:[#allocation7 + $0x18] ss:$-4 sps:$4 sm:$0xe7] %v10103_v0   ;;  %v10104_v41 = vrot.slane %v10096_v40, 3  ;;  %v10408_v0 = vld [vmem:[#allocation26 + $0x448] sm:$0xff]  ;;  %v10554_v40 = vld [vmem:[#allocation26 + $0x638] sm:$0xff] }
 0xb19   : > { %10111 = vst [vmem:[#allocation7 + $0x10] sm:$0x80] %v14871_v56  ;;  %10113 = vst [vmem:[#allocation7 + $0x18] sm:$0x1] %v14871_v56 }
 0xb1a   : > { %10108 = vst [vmem:[#allocation7 + $0x8] ss:$-4 sps:$4 sm:$0xe7] %v10104_v41   ;;  %v10407_v41 = vld [vmem:[#allocation26 + $0x440] sm:$0xff] }
 0xb1b   : > { %10112 = vst [vmem:[#allocation7] sm:$0x80] %v14871_v56  ;;  %10114 = vst [vmem:[#allocation7 + $0x8] sm:$0x1] %v14871_v56  ;;  %v10553_v56 = vld [vmem:[#allocation26 + $0x630] sm:$0xff] }
 0xb1f   : > { %v10181_v55 = vld [vmem:[#allocation7 + $0x10] sm:$0x7e] }
 0xb20   : > { %v10115_v61 = vld [vmem:[#allocation7 + $0x10] sm:$0x3f]  ;;  %v10250_v18 = vrot.slane %v10181_v55, 1  ;;  %v10405_v55 = vld [vmem:[#allocation26 + $0x430] sm:$0xff] }
 0xb21   : > { %v10116_v26 = vld [vmem:[#allocation7] sm:$0x3f] }
 0xb22   : > { %v10182_v53 = vld [vmem:[#allocation7] sm:$0x7e]  ;;  %10389 = vmatprep.mubr.f32.mxu1 %v10116_v26  ;;  %v10545_v39 = vld [vmem:[#allocation7 + $0x8] sm:$0x3] }
 0xb23   : > { %v10251_v23 = vrot.slane %v10182_v53, 1  ;;  %v10397_v17 = vld [vmem:[#allocation7] sm:$0xfc]  ;;  %10390 = vmatmul.mubr.f32.vlgmr.msra.gmra.mxu1 %v10115_v61  ;;  %v10619_v57 = vrot.slane %v10545_v39, 4  ;;  %v10404_v61 = vld [vmem:[#allocation26 + $0x428] sm:$0xff] }
 0xb24   : > { %v10543_v27 = vld [vmem:[#allocation7] sm:$0xf0]  ;;  %v10466_v10 = vrot.slane %v10397_v17, 2  ;;  %10624 = vmatpush1.msra.mxu1 %v10577_v52 }
 0xb25   : > { %v10618_v47 = vrot.slane %v10543_v27, 4  ;;  %10318 = vmatprep.mubr.f32.mxu0 %v10251_v23  ;;  %10625 = vmatprep.subr.mxu1 %v10576_v19  ;;  %v10406_v52 = vld [vmem:[#allocation26 + $0x438] sm:$0xff]  ;;  %v10552_v19 = vld [vmem:[#allocation26 + $0x628] sm:$0xff]  ;;  %v10551_v26 = vld [vmem:[#allocation26 + $0x620] sm:$0xff] }
 0xb26   : > { %10319 = vmatmul.mubr.f32.vlgmr.msra.gmra.mxu0 %v10250_v18  ;;  %10626 = vmatpush1.msra.mxu1 %v10575_v16  ;;  %v10550_v53 = vld [vmem:[#allocation26 + $0x618] sm:$0xff]  ;;  %v10403_v23 = vld [vmem:[#allocation26 + $0x420] sm:$0xff]  ;;  %v10548_v27 = vld [vmem:[#allocation26 + $0x608] sm:$0xff] }
 0xb27   : > { %10470 = vmatpush1.msra.mxu0 %v10429_v44  ;;  %v10620_v35 = vsel %vm1127_vm1, %v10618_v47, %v10619_v57  ;;  %10533 = vmatprep.mubr.f32.mxu0 %v10466_v10  ;;  %v10549_v44 = vld [vmem:[#allocation26 + $0x610] sm:$0xff]  ;;  %v10402_v17 = vld [vmem:[#allocation26 + $0x418] sm:$0xff]  ;;  %v10547_v16 = vld [vmem:[#allocation26 + $0x600] sm:$0xff] }
 0xb28   : > { %10471 = vmatprep.subr.mxu0 %v10428_v12  ;;  %10627 = vmatprep.subr.mxu1 %v10574_v13  ;;  %v10401_v18 = vld [vmem:[#allocation26 + $0x410] sm:$0xff]  ;;  %v10400_v10 = vld [vmem:[#allocation26 + $0x408] sm:$0xff]  ;;  %v10610_v39 = vld [vmem:[#allocation26 + $0x7f8] sm:$0xff] }
 0xb29   : > { %10687 = vmatprep.mubr.f32.mxu1 %v10620_v35  ;;  %10472 = vmatpush1.msra.mxu0 %v10427_v22  ;;  %v10399_v47 = vld [vmem:[#allocation26 + $0x400] sm:$0xff]  ;;  %v10609_v12 = vld [vmem:[#allocation26 + $0x7f0] sm:$0xff]  ;;  %v10462_v57 = vld [vmem:[#allocation26 + $0x5f8] sm:$0xff] }
 0xb2a   : > { %10628 = vmatpush1.msra.mxu1 %v10573_v14  ;;  %10473 = vmatprep.subr.mxu0 %v10426_v48  ;;  %v10608_v13 = vld [vmem:[#allocation26 + $0x7e8] sm:$0xff]  ;;  %v10461_v35 = vld [vmem:[#allocation26 + $0x5f0] sm:$0xff]  ;;  %v10607_v22 = vld [vmem:[#allocation26 + $0x7e0] sm:$0xff] }
 0xb2b   : > { %10629 = vmatprep.subr.mxu1 %v10572_v50  ;;  %10474 = vmatpush1.msra.mxu0 %v10425_v1  ;;  %v10460_v14 = vld [vmem:[#allocation26 + $0x5e8] sm:$0xff]  ;;  %v10606_v48 = vld [vmem:[#allocation26 + $0x7d8] sm:$0xff]  ;;  %v10459_v50 = vld [vmem:[#allocation26 + $0x5e0] sm:$0xff] }
 0xb2c   : > { %10630 = vmatpush1.msra.mxu1 %v10571_v34  ;;  %10475 = vmatprep.subr.mxu0 %v10424_v51  ;;  %v10605_v1 = vld [vmem:[#allocation26 + $0x7d0] sm:$0xff]  ;;  %v10458_v34 = vld [vmem:[#allocation26 + $0x5d8] sm:$0xff]  ;;  %v10604_v51 = vld [vmem:[#allocation26 + $0x7c8] sm:$0xff] }
 0xb2d   : > { %10631 = vmatprep.subr.mxu1 %v10570_v37  ;;  %10476 = vmatpush1.msra.mxu0 %v10423_v5  ;;  %v10457_v37 = vld [vmem:[#allocation26 + $0x5d0] sm:$0xff]  ;;  %v10603_v5 = vld [vmem:[#allocation26 + $0x7c0] sm:$0xff] }
 0xb2e   : > { %10632 = vmatpush1.msra.mxu1 %v10569_v28  ;;  %10477 = vmatprep.subr.mxu0 %v10422_v29  ;;  %v10456_v28 = vld [vmem:[#allocation26 + $0x5c8] sm:$0xff]  ;;  %v10602_v29 = vld [vmem:[#allocation26 + $0x7b8] sm:$0xff] }
 0xb2f   : > { %10633 = vmatprep.subr.mxu1 %v10568_v32  ;;  %10478 = vmatpush1.msra.mxu0 %v10421_v33  ;;  %v10455_v32 = vld [vmem:[#allocation26 + $0x5c0] sm:$0xff]  ;;  %v10601_v33 = vld [vmem:[#allocation26 + $0x7b0] sm:$0xff] }
 0xb30   : > { %10634 = vmatpush1.msra.mxu1 %v10567_v2  ;;  %10479 = vmatprep.subr.mxu0 %v10420_v45  ;;  %v10454_v2 = vld [vmem:[#allocation26 + $0x5b8] sm:$0xff]  ;;  %v10600_v45 = vld [vmem:[#allocation26 + $0x7a8] sm:$0xff] }
 0xb31   : > { %10635 = vmatprep.subr.mxu1 %v10566_v42  ;;  %10480 = vmatpush1.msra.mxu0 %v10419_v62  ;;  %v10453_v42 = vld [vmem:[#allocation26 + $0x5b0] sm:$0xff]  ;;  %v10599_v62 = vld [vmem:[#allocation26 + $0x7a0] sm:$0xff] }
 0xb32   : > { %10636 = vmatpush1.msra.mxu1 %v10565_v15  ;;  %10481 = vmatprep.subr.mxu0 %v10418_v3  ;;  %v10452_v15 = vld [vmem:[#allocation26 + $0x5a8] sm:$0xff]  ;;  %v10598_v3 = vld [vmem:[#allocation26 + $0x798] sm:$0xff] }
 0xb33   : > { %10637 = vmatprep.subr.mxu1 %v10564_v38  ;;  %10482 = vmatpush1.msra.mxu0 %v10417_v30  ;;  %v10451_v38 = vld [vmem:[#allocation26 + $0x5a0] sm:$0xff]  ;;  %v10597_v30 = vld [vmem:[#allocation26 + $0x790] sm:$0xff] }
 0xb34   : > { %10638 = vmatpush1.msra.mxu1 %v10563_v9  ;;  %10483 = vmatprep.subr.mxu0 %v10416_v58  ;;  %v10450_v9 = vld [vmem:[#allocation26 + $0x598] sm:$0xff]  ;;  %v10596_v58 = vld [vmem:[#allocation26 + $0x788] sm:$0xff] }
 0xb35   : > { %10639 = vmatprep.subr.mxu1 %v10562_v36  ;;  %10484 = vmatpush1.msra.mxu0 %v10415_v8  ;;  %v10449_v36 = vld [vmem:[#allocation26 + $0x590] sm:$0xff]  ;;  %v10595_v8 = vld [vmem:[#allocation26 + $0x780] sm:$0xff] }
 0xb36   : > { %10640 = vmatpush1.msra.mxu1 %v10561_v60  ;;  %10485 = vmatprep.subr.mxu0 %v10414_v54  ;;  %v10448_v60 = vld [vmem:[#allocation26 + $0x588] sm:$0xff]  ;;  %v10594_v54 = vld [vmem:[#allocation26 + $0x778] sm:$0xff] }
 0xb37   : > { %10641 = vmatprep.subr.mxu1 %v10560_v4  ;;  %10486 = vmatpush1.msra.mxu0 %v10413_v21  ;;  %v10447_v4 = vld [vmem:[#allocation26 + $0x580] sm:$0xff]  ;;  %v10593_v21 = vld [vmem:[#allocation26 + $0x770] sm:$0xff] }
 0xb38   : > { %10642 = vmatpush1.msra.mxu1 %v10559_v24  ;;  %10487 = vmatprep.subr.mxu0 %v10412_v31  ;;  %v10446_v24 = vld [vmem:[#allocation26 + $0x578] sm:$0xff]  ;;  %v10592_v31 = vld [vmem:[#allocation26 + $0x768] sm:$0xff] }
 0xb39   : > { %10643 = vmatprep.subr.mxu1 %v10558_v20  ;;  %10488 = vmatpush1.msra.mxu0 %v10411_v43  ;;  %v10445_v20 = vld [vmem:[#allocation26 + $0x570] sm:$0xff]  ;;  %v10591_v43 = vld [vmem:[#allocation26 + $0x760] sm:$0xff] }
 0xb3a   : > { %10644 = vmatpush1.msra.mxu1 %v10557_v25  ;;  %10489 = vmatprep.subr.mxu0 %v10410_v63  ;;  %v10444_v25 = vld [vmem:[#allocation26 + $0x568] sm:$0xff]  ;;  %v10590_v63 = vld [vmem:[#allocation26 + $0x758] sm:$0xff] }
 0xb3b   : > { %10645 = vmatprep.subr.mxu1 %v10556_v6  ;;  %10490 = vmatpush1.msra.mxu0 %v10409_v7  ;;  %v10443_v6 = vld [vmem:[#allocation26 + $0x560] sm:$0xff]  ;;  %v10589_v7 = vld [vmem:[#allocation26 + $0x750] sm:$0xff] }
 0xb3c   : > { %10646 = vmatpush1.msra.mxu1 %v10555_v11  ;;  %10491 = vmatprep.subr.mxu0 %v10408_v0  ;;  %v10442_v11 = vld [vmem:[#allocation26 + $0x558] sm:$0xff]  ;;  %v10588_v0 = vld [vmem:[#allocation26 + $0x748] sm:$0xff] }
 0xb3d   : > { %10647 = vmatprep.subr.mxu1 %v10554_v40  ;;  %10492 = vmatpush1.msra.mxu0 %v10407_v41  ;;  %v10441_v40 = vld [vmem:[#allocation26 + $0x550] sm:$0xff]  ;;  %v10587_v41 = vld [vmem:[#allocation26 + $0x740] sm:$0xff] }
 0xb3e   : > { %10648 = vmatpush1.msra.mxu1 %v10553_v56  ;;  %10493 = vmatprep.subr.mxu0 %v10406_v52  ;;  %v10440_v56 = vld [vmem:[#allocation26 + $0x548] sm:$0xff]  ;;  %v10586_v52 = vld [vmem:[#allocation26 + $0x738] sm:$0xff] }
 0xb3f   : > { %10649 = vmatprep.subr.mxu1 %v10552_v19  ;;  %10494 = vmatpush1.msra.mxu0 %v10405_v55  ;;  %v10439_v19 = vld [vmem:[#allocation26 + $0x540] sm:$0xff]  ;;  %v10585_v55 = vld [vmem:[#allocation26 + $0x730] sm:$0xff] }
 0xb40   : > { %10650 = vmatpush1.msra.mxu1 %v10551_v26  ;;  %10495 = vmatprep.subr.mxu0 %v10404_v61  ;;  %v10438_v26 = vld [vmem:[#allocation26 + $0x538] sm:$0xff]  ;;  %v10584_v61 = vld [vmem:[#allocation26 + $0x728] sm:$0xff] }
 0xb41   : > { %10651 = vmatprep.subr.mxu1 %v10550_v53  ;;  %10496 = vmatpush1.msra.mxu0 %v10403_v23  ;;  %v10437_v53 = vld [vmem:[#allocation26 + $0x530] sm:$0xff]  ;;  %v10583_v23 = vld [vmem:[#allocation26 + $0x720] sm:$0xff] }
 0xb42   : > { %10652 = vmatpush1.msra.mxu1 %v10549_v44  ;;  %10497 = vmatprep.subr.mxu0 %v10402_v17  ;;  %v10542_v44 = vld [vmem:[#allocation7 + $0x10] sm:$0xf0]  ;;  %v10544_v17 = vld [vmem:[#allocation7 + $0x18] sm:$0x3] }
 0xb43   : > { %10653 = vmatprep.subr.mxu1 %v10548_v27  ;;  %10498 = vmatpush1.msra.mxu0 %v10401_v18  ;;  %v10436_v27 = vld [vmem:[#allocation26 + $0x528] sm:$0xff]  ;;  %v10582_v18 = vld [vmem:[#allocation26 + $0x718] sm:$0xff] }
 0xb44   : > { %10654 = vmatpush1.msra.mxu1 %v10547_v16  ;;  %10499 = vmatprep.subr.mxu0 %v10400_v10  ;;  %v10435_v16 = vld [vmem:[#allocation26 + $0x520] sm:$0xff]  ;;  %v10581_v10 = vld [vmem:[#allocation26 + $0x710] sm:$0xff] }
 0xb45   : > { %10655 = vmatprep.subr.mxu1 %v10610_v39  ;;  %10500 = vmatpush1.msra.mxu0 %v10399_v47  ;;  %v10852_v39 = vld [vmem:[#allocation7] sm:$0xc0]  ;;  %v10854_v47 = vld [vmem:[#allocation7 + $0x8] sm:$0xf] }
 0xb46   : > { %10656 = vmatpush2.msra.mxu1 %v10609_v12  ;;  %10501 = vmatprep.subr.mxu0 %v10462_v57  ;;  %v10434_v12 = vld [vmem:[#allocation26 + $0x518] sm:$0xff]  ;;  %v10580_v57 = vld [vmem:[#allocation26 + $0x708] sm:$0xff] }
 0xb47   : > { %10657 = vmatprep.subr.mxu1 %v10608_v13  ;;  %10502 = vmatpush2.msra.mxu0 %v10461_v35  ;;  %v10615_v13 = vrot.slane %v10542_v44, 4  ;;  %v10616_v35 = vrot.slane %v10544_v17, 4  ;;  %v10716_v44 = vld [vmem:[#allocation26 + $0x878] sm:$0xff]  ;;  %v10869_v17 = vld [vmem:[#allocation26 + $0xa68] sm:$0xff] }
 0xb48   : > { %10658 = vmatpush2.msra.mxu1 %v10607_v22  ;;  %10503 = vmatprep.subr.mxu0 %v10460_v14  ;;  %v10433_v22 = vld [vmem:[#allocation26 + $0x510] sm:$0xff]  ;;  %v10579_v14 = vld [vmem:[#allocation26 + $0x700] sm:$0xff] }
 0xb49   : > { %10659 = vmatprep.subr.mxu1 %v10606_v48  ;;  %10504 = vmatpush2.msra.mxu0 %v10459_v50  ;;  %v10432_v48 = vld [vmem:[#allocation26 + $0x508] sm:$0xff]  ;;  %v10928_v50 = vrot.slane %v10852_v39, 6  ;;  %v10713_v39 = vld [vmem:[#allocation26 + $0x860] sm:$0xff] }
 0xb4a   : > { %10660 = vmatpush2.msra.mxu1 %v10605_v1  ;;  %10505 = vmatprep.subr.mxu0 %v10458_v34  ;;  %v10929_v1 = vrot.slane %v10854_v47, 6  ;;  %v10697_v34 = vld [vmem:[#allocation7] sm:$0xe0]  ;;  %v10866_v47 = vld [vmem:[#allocation26 + $0xa50] sm:$0xff] }
 0xb4b   : > { %10661 = vmatprep.subr.mxu1 %v10604_v51  ;;  %10506 = vmatpush2.msra.mxu0 %v10457_v37  ;;  %v10699_v51 = vld [vmem:[#allocation7 + $0x8] sm:$0x7]  ;;  %v10887_v37 = vld [vmem:[#allocation26 + $0xaf8] sm:$0xff] }
 0xb4c   : > { %10662 = vmatpush2.msra.mxu1 %v10603_v5  ;;  %10507 = vmatprep.subr.mxu0 %v10456_v28  ;;  %v10431_v5 = vld [vmem:[#allocation26 + $0x500] sm:$0xff]  ;;  %v10396_v28 = vld [vmem:[#allocation7 + $0x10] sm:$0xfc] }
 0xb4d   : > { %10663 = vmatprep.subr.mxu1 %v10602_v29  ;;  %10508 = vmatpush2.msra.mxu0 %v10455_v32  ;;  %v10617_v29 = vsel %vm1127_vm1, %v10615_v13, %v10616_v35  ;;  %v10886_v32 = vld [vmem:[#allocation26 + $0xaf0] sm:$0xff]  ;;  %v10864_v35 = vld [vmem:[#allocation26 + $0xa40] sm:$0xff]  ;;  %vm11574_vm1 = vcmask 73728  }
 0xb4e   : > { %10664 = vmatpush2.msra.mxu1 %v10601_v33  ;;  %10509 = vmatprep.subr.mxu0 %v10454_v2  ;;  %v10732_v33 = vld [vmem:[#allocation26 + $0x8f8] sm:$0xff]  ;;  %v10773_v2 = vrot.slane %v10697_v34, 5  ;;  %v10711_v13 = vld [vmem:[#allocation26 + $0x850] sm:$0xff]  ;;  %v10861_v34 = vld [vmem:[#allocation26 + $0xa28] sm:$0xff] }
 0xb4f   : > { %10665 = vmatprep.subr.mxu1 %v10600_v45  ;;  %10510 = vmatpush2.msra.mxu0 %v10453_v42  ;;  %v10774_v45 = vrot.slane %v10699_v51, 5  ;;  %v10930_v42 = vsel %vm10924_vm14, %v10928_v50, %v10929_v1  ;;  %v10862_v50 = vld [vmem:[#allocation26 + $0xa30] sm:$0xff]  ;;  %v10708_v1 = vld [vmem:[#allocation26 + $0x838] sm:$0xff] }
 0xb50   : > { %10666 = vmatpush2.msra.mxu1 %v10599_v62  ;;  %10511 = vmatprep.subr.mxu0 %v10452_v15  ;;  %v10465_v62 = vrot.slane %v10396_v28, 2  ;;  %v10885_v15 = vld [vmem:[#allocation26 + $0xae8] sm:$0xff]  ;;  %v10707_v51 = vld [vmem:[#allocation26 + $0x830] sm:$0xff]  ;;  %v10859_v28 = vld [vmem:[#allocation26 + $0xa18] sm:$0xff] }
 0xb51   : > { %10667 = vmatprep.subr.mxu1 %v10598_v3  ;;  %10512 = vmatpush2.msra.mxu0 %v10451_v38  ;;  %v10731_v3 = vld [vmem:[#allocation26 + $0x8f0] sm:$0xff]  ;;  %v10884_v38 = vld [vmem:[#allocation26 + $0xae0] sm:$0xff] }
 0xb52   : > { %10668 = vmatpush2.msra.mxu1 %v10597_v30  ;;  %10513 = vmatprep.subr.mxu0 %v10450_v9  ;;  %v10730_v30 = vld [vmem:[#allocation26 + $0x8e8] sm:$0xff]  ;;  %v10883_v9 = vld [vmem:[#allocation26 + $0xad8] sm:$0xff] }
 0xb53   : > { %10669 = vmatprep.subr.mxu1 %v10596_v58  ;;  %10514 = vmatpush2.msra.mxu0 %v10449_v36  ;;  %v10775_v58 = vsel %vm10769_vm15, %v10773_v2, %v10774_v45  ;;  %v10729_v36 = vld [vmem:[#allocation26 + $0x8e0] sm:$0xff]  ;;  %v10857_v2 = vld [vmem:[#allocation26 + $0xa08] sm:$0xff]  ;;  %v10703_v45 = vld [vmem:[#allocation26 + $0x810] sm:$0xff] }
 0xb54   : > { %10670 = vmatpush2.msra.mxu1 %v10595_v8  ;;  %10515 = vmatprep.subr.mxu0 %v10448_v60  ;;  %v10882_v8 = vld [vmem:[#allocation26 + $0xad0] sm:$0xff]  ;;  %v10728_v60 = vld [vmem:[#allocation26 + $0x8d8] sm:$0xff] }
 0xb55   : > { %10671 = vmatprep.subr.mxu1 %v10594_v54  ;;  %10516 = vmatpush2.msra.mxu0 %v10447_v4  ;;  %v10881_v54 = vld [vmem:[#allocation26 + $0xac8] sm:$0xff]  ;;  %v10727_v4 = vld [vmem:[#allocation26 + $0x8d0] sm:$0xff] }
 0xb56   : > { %10672 = vmatpush2.msra.mxu1 %v10593_v21  ;;  %10517 = vmatprep.subr.mxu0 %v10446_v24  ;;  %v10880_v21 = vld [vmem:[#allocation26 + $0xac0] sm:$0xff]  ;;  %v10726_v24 = vld [vmem:[#allocation26 + $0x8c8] sm:$0xff] }
 0xb57   : > { %10673 = vmatprep.subr.mxu1 %v10592_v31  ;;  %10518 = vmatpush2.msra.mxu0 %v10445_v20  ;;  %v10879_v31 = vld [vmem:[#allocation26 + $0xab8] sm:$0xff]  ;;  %v10725_v20 = vld [vmem:[#allocation26 + $0x8c0] sm:$0xff] }
 0xb58   : > { %10674 = vmatpush2.msra.mxu1 %v10591_v43  ;;  %10519 = vmatprep.subr.mxu0 %v10444_v25  ;;  %v10878_v43 = vld [vmem:[#allocation26 + $0xab0] sm:$0xff]  ;;  %v10724_v25 = vld [vmem:[#allocation26 + $0x8b8] sm:$0xff] }
 0xb59   : > { %10675 = vmatprep.subr.mxu1 %v10590_v63  ;;  %10520 = vmatpush2.msra.mxu0 %v10443_v6  ;;  %v10877_v63 = vld [vmem:[#allocation26 + $0xaa8] sm:$0xff]  ;;  %v10723_v6 = vld [vmem:[#allocation26 + $0x8b0] sm:$0xff] }
 0xb5a   : > { %10676 = vmatpush2.msra.mxu1 %v10589_v7  ;;  %10521 = vmatprep.subr.mxu0 %v10442_v11  ;;  %v10876_v7 = vld [vmem:[#allocation26 + $0xaa0] sm:$0xff]  ;;  %v10722_v11 = vld [vmem:[#allocation26 + $0x8a8] sm:$0xff] }
 0xb5b   : > { %10677 = vmatprep.subr.mxu1 %v10588_v0  ;;  %10522 = vmatpush2.msra.mxu0 %v10441_v40  ;;  %v10875_v0 = vld [vmem:[#allocation26 + $0xa98] sm:$0xff]  ;;  %v10721_v40 = vld [vmem:[#allocation26 + $0x8a0] sm:$0xff] }
 0xb5c   : > { %10678 = vmatpush2.msra.mxu1 %v10587_v41  ;;  %10523 = vmatprep.subr.mxu0 %v10440_v56  ;;  %v10874_v41 = vld [vmem:[#allocation26 + $0xa90] sm:$0xff]  ;;  %v10720_v56 = vld [vmem:[#allocation26 + $0x898] sm:$0xff] }
 0xb5d   : > { %10679 = vmatprep.subr.mxu1 %v10586_v52  ;;  %10524 = vmatpush2.msra.mxu0 %v10439_v19  ;;  %v10873_v52 = vld [vmem:[#allocation26 + $0xa88] sm:$0xff]  ;;  %v10719_v19 = vld [vmem:[#allocation26 + $0x890] sm:$0xff] }
 0xb5e   : > { %10680 = vmatpush2.msra.mxu1 %v10585_v55  ;;  %10525 = vmatprep.subr.mxu0 %v10438_v26  ;;  %v10872_v55 = vld [vmem:[#allocation26 + $0xa80] sm:$0xff]  ;;  %v10718_v26 = vld [vmem:[#allocation26 + $0x888] sm:$0xff] }
 0xb5f   : > { %10681 = vmatprep.subr.mxu1 %v10584_v61  ;;  %10526 = vmatpush2.msra.mxu0 %v10437_v53  ;;  %v10871_v61 = vld [vmem:[#allocation26 + $0xa78] sm:$0xff]  ;;  %v10717_v53 = vld [vmem:[#allocation26 + $0x880] sm:$0xff] }
 0xb60   : > { %10682 = vmatpush2.msra.mxu1 %v10583_v23  ;;  %10527 = vmatprep.subr.mxu0 %v10436_v27  ;;  %v10870_v23 = vld [vmem:[#allocation26 + $0xa70] sm:$0xff] }
 0xb61   : > { %10683 = vmatprep.subr.mxu1 %v10582_v18  ;;  %10528 = vmatpush2.msra.mxu0 %v10435_v16  ;;  %v10715_v27 = vld [vmem:[#allocation26 + $0x870] sm:$0xff]  ;;  %v10868_v18 = vld [vmem:[#allocation26 + $0xa60] sm:$0xff]  ;;  %v10714_v16 = vld [vmem:[#allocation26 + $0x868] sm:$0xff] }
 0xb62   : > { %10684 = vmatpush2.msra.mxu1 %v10581_v10  ;;  %10529 = vmatprep.subr.mxu0 %v10434_v12  ;;  %v10867_v10 = vld [vmem:[#allocation26 + $0xa58] sm:$0xff] }
 0xb63   : > { %10685 = vmatprep.subr.mxu1 %v10580_v57  ;;  %10530 = vmatpush2.msra.mxu0 %v10433_v22  ;;  %v10712_v12 = vld [vmem:[#allocation26 + $0x858] sm:$0xff]  ;;  %v10865_v57 = vld [vmem:[#allocation26 + $0xa48] sm:$0xff] }
 0xb64   : > { %10686 = vmatpush2.msra.mxu1 %v10579_v14  ;;  %10531 = vmatprep.subr.mxu0 %v10432_v48  ;;  %v10710_v22 = vld [vmem:[#allocation26 + $0x848] sm:$0xff]  ;;  %v10863_v14 = vld [vmem:[#allocation26 + $0xa38] sm:$0xff]  ;;  %v10709_v48 = vld [vmem:[#allocation26 + $0x840] sm:$0xff] }
 0xb65   : > { %10688 = vmatmul.mubr.f32.vlgmr.msra.gmra.mxu1 %v10617_v29  ;;  %10933 = vmatprep.subr.mxu1 %v10887_v37  ;;  %v10860_v37 = vld [vmem:[#allocation26 + $0xa20] sm:$0xff] }
 0xb66   : > { %10532 = vmatpush2.msra.mxu0 %v10431_v5  ;;  %10934 = vmatpush1.msra.mxu1 %v10886_v32  ;;  %v10706_v5 = vld [vmem:[#allocation26 + $0x828] sm:$0xff]  ;;  %v10705_v29 = vld [vmem:[#allocation26 + $0x820] sm:$0xff]  ;;  %v10858_v32 = vld [vmem:[#allocation26 + $0xa10] sm:$0xff] }
 0xb67   : > { %10997 = vmatprep.mubr.f32.mxu1 %v10930_v42  ;;  %10534 = vmatmul.mubr.f32.vlgmr.msra.gmra.mxu0 %v10465_v62  ;;  %v10856_v42 = vld [vmem:[#allocation26 + $0xa00] sm:$0xff]  ;;  %v10702_v62 = vld [vmem:[#allocation26 + $0x808] sm:$0xff] }
 0xb68   : > { %10778 = vmatprep.subr.mxu0 %v10732_v33  ;;  %10935 = vmatprep.subr.mxu1 %v10885_v15  ;;  %v10704_v33 = vld [vmem:[#allocation26 + $0x818] sm:$0xff] }
 0xb69   : > { %10779 = vmatpush1.msra.mxu0 %v10731_v3  ;;  %10842 = vmatprep.mubr.f32.mxu0 %v10775_v58  ;;  %v10919_v15 = vld [vmem:[#allocation26 + $0xbf8] sm:$0xff]  ;;  %v10701_v3 = vld [vmem:[#allocation26 + $0x800] sm:$0xff]  ;;  %v10763_v58 = vld [vmem:[#allocation26 + $0x9f0] sm:$0xff] }
 0xb6a   : > { %10936 = vmatpush1.msra.mxu1 %v10884_v38  ;;  %10780 = vmatprep.subr.mxu0 %v10730_v30  ;;  %v10918_v38 = vld [vmem:[#allocation26 + $0xbf0] sm:$0xff]  ;;  %v10764_v30 = vld [vmem:[#allocation26 + $0x9f8] sm:$0xff] }
 0xb6b   : > { %10937 = vmatprep.subr.mxu1 %v10883_v9  ;;  %10781 = vmatpush1.msra.mxu0 %v10729_v36  ;;  %v10917_v9 = vld [vmem:[#allocation26 + $0xbe8] sm:$0xff]  ;;  %v10916_v36 = vld [vmem:[#allocation26 + $0xbe0] sm:$0xff] }
 0xb6c   : > { %10938 = vmatpush1.msra.mxu1 %v10882_v8  ;;  %10782 = vmatprep.subr.mxu0 %v10728_v60  ;;  %v10762_v8 = vld [vmem:[#allocation26 + $0x9e8] sm:$0xff]  ;;  %v10915_v60 = vld [vmem:[#allocation26 + $0xbd8] sm:$0xff] }
 0xb6d   : > { %10939 = vmatprep.subr.mxu1 %v10881_v54  ;;  %10783 = vmatpush1.msra.mxu0 %v10727_v4  ;;  %v10761_v54 = vld [vmem:[#allocation26 + $0x9e0] sm:$0xff]  ;;  %v10914_v4 = vld [vmem:[#allocation26 + $0xbd0] sm:$0xff] }
 0xb6e   : > { %10940 = vmatpush1.msra.mxu1 %v10880_v21  ;;  %10784 = vmatprep.subr.mxu0 %v10726_v24  ;;  %v10760_v21 = vld [vmem:[#allocation26 + $0x9d8] sm:$0xff]  ;;  %v10913_v24 = vld [vmem:[#allocation26 + $0xbc8] sm:$0xff] }
 0xb6f   : > { %10941 = vmatprep.subr.mxu1 %v10879_v31  ;;  %10785 = vmatpush1.msra.mxu0 %v10725_v20  ;;  %v10759_v31 = vld [vmem:[#allocation26 + $0x9d0] sm:$0xff]  ;;  %v10912_v20 = vld [vmem:[#allocation26 + $0xbc0] sm:$0xff] }
 0xb70   : > { %10942 = vmatpush1.msra.mxu1 %v10878_v43  ;;  %10786 = vmatprep.subr.mxu0 %v10724_v25  ;;  %v10758_v43 = vld [vmem:[#allocation26 + $0x9c8] sm:$0xff]  ;;  %v10911_v25 = vld [vmem:[#allocation26 + $0xbb8] sm:$0xff] }
 0xb71   : > { %10943 = vmatprep.subr.mxu1 %v10877_v63  ;;  %10787 = vmatpush1.msra.mxu0 %v10723_v6  ;;  %v10757_v63 = vld [vmem:[#allocation26 + $0x9c0] sm:$0xff]  ;;  %v10910_v6 = vld [vmem:[#allocation26 + $0xbb0] sm:$0xff] }
 0xb72   : > { %10944 = vmatpush1.msra.mxu1 %v10876_v7  ;;  %10788 = vmatprep.subr.mxu0 %v10722_v11  ;;  %v10756_v7 = vld [vmem:[#allocation26 + $0x9b8] sm:$0xff]  ;;  %v10909_v11 = vld [vmem:[#allocation26 + $0xba8] sm:$0xff] }
 0xb73   : > { %10945 = vmatprep.subr.mxu1 %v10875_v0  ;;  %10789 = vmatpush1.msra.mxu0 %v10721_v40  ;;  %v10755_v0 = vld [vmem:[#allocation26 + $0x9b0] sm:$0xff]  ;;  %v10908_v40 = vld [vmem:[#allocation26 + $0xba0] sm:$0xff] }
 0xb74   : > { %10946 = vmatpush1.msra.mxu1 %v10874_v41  ;;  %10790 = vmatprep.subr.mxu0 %v10720_v56  ;;  %v10754_v41 = vld [vmem:[#allocation26 + $0x9a8] sm:$0xff]  ;;  %v10907_v56 = vld [vmem:[#allocation26 + $0xb98] sm:$0xff] }
 0xb75   : > { %10947 = vmatprep.subr.mxu1 %v10873_v52  ;;  %10791 = vmatpush1.msra.mxu0 %v10719_v19  ;;  %v10753_v52 = vld [vmem:[#allocation26 + $0x9a0] sm:$0xff]  ;;  %v10906_v19 = vld [vmem:[#allocation26 + $0xb90] sm:$0xff] }
 0xb76   : > { %10948 = vmatpush1.msra.mxu1 %v10872_v55  ;;  %10792 = vmatprep.subr.mxu0 %v10718_v26  ;;  %v10752_v55 = vld [vmem:[#allocation26 + $0x998] sm:$0xff]  ;;  %v10905_v26 = vld [vmem:[#allocation26 + $0xb88] sm:$0xff] }
 0xb77   : > { %10949 = vmatprep.subr.mxu1 %v10871_v61  ;;  %10793 = vmatpush1.msra.mxu0 %v10717_v53  ;;  %v10751_v61 = vld [vmem:[#allocation26 + $0x990] sm:$0xff]  ;;  %v10904_v53 = vld [vmem:[#allocation26 + $0xb80] sm:$0xff] }
 0xb78   : > { %10950 = vmatpush1.msra.mxu1 %v10870_v23  ;;  %10794 = vmatprep.subr.mxu0 %v10716_v44  ;;  %v10750_v23 = vld [vmem:[#allocation26 + $0x988] sm:$0xff]  ;;  %v10903_v44 = vld [vmem:[#allocation26 + $0xb78] sm:$0xff] }
 0xb79   : > { %10951 = vmatprep.subr.mxu1 %v10869_v17  ;;  %10795 = vmatpush1.msra.mxu0 %v10715_v27  ;;  %v10749_v17 = vld [vmem:[#allocation26 + $0x980] sm:$0xff]  ;;  %v10902_v27 = vld [vmem:[#allocation26 + $0xb70] sm:$0xff] }
 0xb7a   : > { %10952 = vmatpush1.msra.mxu1 %v10868_v18  ;;  %10796 = vmatprep.subr.mxu0 %v10714_v16  ;;  %v10748_v18 = vld [vmem:[#allocation26 + $0x978] sm:$0xff]  ;;  %v10901_v16 = vld [vmem:[#allocation26 + $0xb68] sm:$0xff] }
 0xb7b   : > { %10953 = vmatprep.subr.mxu1 %v10867_v10  ;;  %10797 = vmatpush1.msra.mxu0 %v10713_v39  ;;  %v10747_v10 = vld [vmem:[#allocation26 + $0x970] sm:$0xff]  ;;  %v10900_v39 = vld [vmem:[#allocation26 + $0xb60] sm:$0xff] }
 0xb7c   : > { %10954 = vmatpush1.msra.mxu1 %v10866_v47  ;;  %10798 = vmatprep.subr.mxu0 %v10712_v12  ;;  %v10746_v47 = vld [vmem:[#allocation26 + $0x968] sm:$0xff]  ;;  %v10899_v12 = vld [vmem:[#allocation26 + $0xb58] sm:$0xff] }
 0xb7d   : > { %10955 = vmatprep.subr.mxu1 %v10865_v57  ;;  %10799 = vmatpush1.msra.mxu0 %v10711_v13  ;;  %v10745_v57 = vld [vmem:[#allocation26 + $0x960] sm:$0xff]  ;;  %v10898_v13 = vld [vmem:[#allocation26 + $0xb50] sm:$0xff] }
 0xb7e   : > { %10956 = vmatpush1.msra.mxu1 %v10864_v35  ;;  %10800 = vmatprep.subr.mxu0 %v10710_v22  ;;  %v10744_v35 = vld [vmem:[#allocation26 + $0x958] sm:$0xff]  ;;  %v10897_v22 = vld [vmem:[#allocation26 + $0xb48] sm:$0xff] }
 0xb7f   : > { %10957 = vmatprep.subr.mxu1 %v10863_v14  ;;  %10801 = vmatpush1.msra.mxu0 %v10709_v48  ;;  %v10743_v14 = vld [vmem:[#allocation26 + $0x950] sm:$0xff]  ;;  %v10896_v48 = vld [vmem:[#allocation26 + $0xb40] sm:$0xff] }
 0xb80   : > { %10958 = vmatpush1.msra.mxu1 %v10862_v50  ;;  %10802 = vmatprep.subr.mxu0 %v10708_v1  ;;  %v10742_v50 = vld [vmem:[#allocation26 + $0x948] sm:$0xff]  ;;  %v10895_v1 = vld [vmem:[#allocation26 + $0xb38] sm:$0xff] }
 0xb81   : > { %10959 = vmatprep.subr.mxu1 %v10861_v34  ;;  %10803 = vmatpush1.msra.mxu0 %v10707_v51  ;;  %v10741_v34 = vld [vmem:[#allocation26 + $0x940] sm:$0xff]  ;;  %v10894_v51 = vld [vmem:[#allocation26 + $0xb30] sm:$0xff] }
 0xb82   : > { %10960 = vmatpush1.msra.mxu1 %v10860_v37  ;;  %10804 = vmatprep.subr.mxu0 %v10706_v5  ;;  %v10740_v37 = vld [vmem:[#allocation26 + $0x938] sm:$0xff]  ;;  %v10893_v5 = vld [vmem:[#allocation26 + $0xb28] sm:$0xff] }
 0xb83   : > { %10961 = vmatprep.subr.mxu1 %v10859_v28  ;;  %10805 = vmatpush1.msra.mxu0 %v10705_v29  ;;  %v10739_v28 = vld [vmem:[#allocation26 + $0x930] sm:$0xff]  ;;  %v10892_v29 = vld [vmem:[#allocation26 + $0xb20] sm:$0xff] }
 0xb84   : > { %10962 = vmatpush1.msra.mxu1 %v10858_v32  ;;  %10806 = vmatprep.subr.mxu0 %v10704_v33  ;;  %v10851_v32 = vld [vmem:[#allocation7 + $0x10] sm:$0xc0]  ;;  %v10853_v33 = vld [vmem:[#allocation7 + $0x18] sm:$0xf] }
 0xb85   : > { %10963 = vmatprep.subr.mxu1 %v10857_v2  ;;  %10807 = vmatpush1.msra.mxu0 %v10703_v45  ;;  %v10738_v2 = vld [vmem:[#allocation26 + $0x928] sm:$0xff]  ;;  %v10891_v45 = vld [vmem:[#allocation26 + $0xb18] sm:$0xff] }
 0xb86   : > { %10964 = vmatpush1.msra.mxu1 %v10856_v42  ;;  %10808 = vmatprep.subr.mxu0 %v10702_v62  ;;  %v10737_v42 = vld [vmem:[#allocation26 + $0x920] sm:$0xff]  ;;  %v10890_v62 = vld [vmem:[#allocation26 + $0xb10] sm:$0xff] }
 0xb87   : > { %10965 = vmatprep.subr.mxu1 %v10919_v15  ;;  %10809 = vmatpush1.msra.mxu0 %v10701_v3  ;;  %v10736_v15 = vld [vmem:[#allocation26 + $0x918] sm:$0xff]  ;;  %v10889_v3 = vld [vmem:[#allocation26 + $0xb08] sm:$0xff] }
 0xb88   : > { %10966 = vmatpush2.msra.mxu1 %v10918_v38  ;;  %10810 = vmatprep.subr.mxu0 %v10764_v30  ;;  %v10925_v38 = vrot.slane %v10851_v32, 6  ;;  %v10926_v30 = vrot.slane %v10853_v33, 6  ;;  %v11022_v32 = vld [vmem:[#allocation26 + $0xc68] sm:$0xff]  ;;  %v11160_v33 = vld [vmem:[#allocation26 + $0xe58] sm:$0xff] }
 0xb89   : > { %10967 = vmatprep.subr.mxu1 %v10917_v9  ;;  %10811 = vmatpush2.msra.mxu0 %v10763_v58  ;;  %v10696_v9 = vld [vmem:[#allocation7 + $0x10] sm:$0xe0]  ;;  %v10698_v58 = vld [vmem:[#allocation7 + $0x18] sm:$0x7] }
 0xb8a   : > { %10968 = vmatpush2.msra.mxu1 %v10916_v36  ;;  %10812 = vmatprep.subr.mxu0 %v10762_v8  ;;  %v10735_v36 = vld [vmem:[#allocation26 + $0x910] sm:$0xff]  ;;  %v10888_v8 = vld [vmem:[#allocation26 + $0xb00] sm:$0xff] }
 0xb8b   : > { %10969 = vmatprep.subr.mxu1 %v10915_v60  ;;  %10813 = vmatpush2.msra.mxu0 %v10761_v54  ;;  %v10734_v60 = vld [vmem:[#allocation26 + $0x908] sm:$0xff] }
 0xb8c   : > { %10970 = vmatpush2.msra.mxu1 %v10914_v4  ;;  %10814 = vmatprep.subr.mxu0 %v10760_v21  ;;  %v11147_v54 = vld [vmem:[#allocation7 + $0x8] sm:$0x7e]  ;;  %v11180_v4 = vld [vmem:[#allocation26 + $0xef8] sm:$0xff] }
 0xb8d   : > { %10971 = vmatprep.subr.mxu1 %v10913_v24  ;;  %10815 = vmatpush2.msra.mxu0 %v10759_v31  ;;  %v10733_v21 = vld [vmem:[#allocation26 + $0x900] sm:$0xff]  ;;  %v10770_v24 = vrot.slane %v10696_v9, 5  ;;  %v10771_v31 = vrot.slane %v10698_v58, 5  ;;  %v11155_v58 = vld [vmem:[#allocation26 + $0xe30] sm:$0xff] }
 0xb8e   : > { %10972 = vmatpush2.msra.mxu1 %v10912_v20  ;;  %10816 = vmatprep.subr.mxu0 %v10758_v43  ;;  %v10927_v20 = vsel %vm10924_vm14, %v10925_v38, %v10926_v30  ;;  %v11179_v43 = vld [vmem:[#allocation26 + $0xef0] sm:$0xff]  ;;  %v11018_v38 = vld [vmem:[#allocation26 + $0xc48] sm:$0xff]  ;;  %v11156_v30 = vld [vmem:[#allocation26 + $0xe38] sm:$0xff] }
 0xb8f   : > { %10973 = vmatprep.subr.mxu1 %v10911_v25  ;;  %10817 = vmatpush2.msra.mxu0 %v10757_v63  ;;  %v11216_v25 = vrot.slane %v11147_v54, 1  ;;  %v11040_v63 = vld [vmem:[#allocation26 + $0xcf8] sm:$0xff]  ;;  %v11017_v9 = vld [vmem:[#allocation26 + $0xc40] sm:$0xff] }
 0xb90   : > { %10974 = vmatpush2.msra.mxu1 %v10910_v6  ;;  %10818 = vmatprep.subr.mxu0 %v10756_v7  ;;  %v11178_v6 = vld [vmem:[#allocation26 + $0xee8] sm:$0xff]  ;;  %v11039_v7 = vld [vmem:[#allocation26 + $0xcf0] sm:$0xff]  ;;  %v11153_v54 = vld [vmem:[#allocation26 + $0xe20] sm:$0xff] }
 0xb91   : > { %10975 = vmatprep.subr.mxu1 %v10909_v11  ;;  %10819 = vmatpush2.msra.mxu0 %v10755_v0  ;;  %v10772_v11 = vsel %vm10769_vm15, %v10770_v24, %v10771_v31  ;;  %v11177_v0 = vld [vmem:[#allocation26 + $0xee0] sm:$0xff]  ;;  %v11151_v31 = vld [vmem:[#allocation26 + $0xe10] sm:$0xff] }
 0xb92   : > { %10976 = vmatpush2.msra.mxu1 %v10908_v40  ;;  %10820 = vmatprep.subr.mxu0 %v10754_v41  ;;  %v11038_v40 = vld [vmem:[#allocation26 + $0xce8] sm:$0xff]  ;;  %v11176_v41 = vld [vmem:[#allocation26 + $0xed8] sm:$0xff]  ;;  %v11013_v24 = vld [vmem:[#allocation26 + $0xc20] sm:$0xff] }
 0xb93   : > { %10977 = vmatprep.subr.mxu1 %v10907_v56  ;;  %10821 = vmatpush2.msra.mxu0 %v10753_v52  ;;  %v11007_v56 = vld [vmem:[#allocation7 + $0x8] sm:$0x3f] }
 0xb94   : > { %10978 = vmatpush2.msra.mxu1 %v10906_v19  ;;  %10822 = vmatprep.subr.mxu0 %v10752_v55  ;;  %v11037_v52 = vld [vmem:[#allocation26 + $0xce0] sm:$0xff]  ;;  %v11175_v19 = vld [vmem:[#allocation26 + $0xed0] sm:$0xff]  ;;  %v11036_v55 = vld [vmem:[#allocation26 + $0xcd8] sm:$0xff] }
 0xb95   : > { %10979 = vmatprep.subr.mxu1 %v10905_v26  ;;  %10823 = vmatpush2.msra.mxu0 %v10751_v61  ;;  %v11174_v26 = vld [vmem:[#allocation26 + $0xec8] sm:$0xff]  ;;  %v11035_v61 = vld [vmem:[#allocation26 + $0xcd0] sm:$0xff] }
 0xb96   : > { %10980 = vmatpush2.msra.mxu1 %v10904_v53  ;;  %10824 = vmatprep.subr.mxu0 %v10750_v23  ;;  %v11173_v53 = vld [vmem:[#allocation26 + $0xec0] sm:$0xff]  ;;  %v11034_v23 = vld [vmem:[#allocation26 + $0xcc8] sm:$0xff] }
 0xb97   : > { %10981 = vmatprep.subr.mxu1 %v10903_v44  ;;  %10825 = vmatpush2.msra.mxu0 %v10749_v17  ;;  %v11172_v44 = vld [vmem:[#allocation26 + $0xeb8] sm:$0xff]  ;;  %v11033_v17 = vld [vmem:[#allocation26 + $0xcc0] sm:$0xff] }
 0xb98   : > { %10982 = vmatpush2.msra.mxu1 %v10902_v27  ;;  %10826 = vmatprep.subr.mxu0 %v10748_v18  ;;  %v11171_v27 = vld [vmem:[#allocation26 + $0xeb0] sm:$0xff]  ;;  %v11032_v18 = vld [vmem:[#allocation26 + $0xcb8] sm:$0xff] }
 0xb99   : > { %10983 = vmatprep.subr.mxu1 %v10901_v16  ;;  %10827 = vmatpush2.msra.mxu0 %v10747_v10  ;;  %v11170_v16 = vld [vmem:[#allocation26 + $0xea8] sm:$0xff]  ;;  %v11031_v10 = vld [vmem:[#allocation26 + $0xcb0] sm:$0xff] }
 0xb9a   : > { %10984 = vmatpush2.msra.mxu1 %v10900_v39  ;;  %10828 = vmatprep.subr.mxu0 %v10746_v47  ;;  %v11169_v39 = vld [vmem:[#allocation26 + $0xea0] sm:$0xff]  ;;  %v11030_v47 = vld [vmem:[#allocation26 + $0xca8] sm:$0xff] }
 0xb9b   : > { %10985 = vmatprep.subr.mxu1 %v10899_v12  ;;  %10829 = vmatpush2.msra.mxu0 %v10745_v57  ;;  %v11168_v12 = vld [vmem:[#allocation26 + $0xe98] sm:$0xff]  ;;  %v11029_v57 = vld [vmem:[#allocation26 + $0xca0] sm:$0xff] }
 0xb9c   : > { %10986 = vmatpush2.msra.mxu1 %v10898_v13  ;;  %10830 = vmatprep.subr.mxu0 %v10744_v35  ;;  %v11167_v13 = vld [vmem:[#allocation26 + $0xe90] sm:$0xff]  ;;  %v11028_v35 = vld [vmem:[#allocation26 + $0xc98] sm:$0xff] }
 0xb9d   : > { %10987 = vmatprep.subr.mxu1 %v10897_v22  ;;  %10831 = vmatpush2.msra.mxu0 %v10743_v14  ;;  %v11166_v22 = vld [vmem:[#allocation26 + $0xe88] sm:$0xff]  ;;  %v11027_v14 = vld [vmem:[#allocation26 + $0xc90] sm:$0xff] }
 0xb9e   : > { %10988 = vmatpush2.msra.mxu1 %v10896_v48  ;;  %10832 = vmatprep.subr.mxu0 %v10742_v50  ;;  %v11165_v48 = vld [vmem:[#allocation26 + $0xe80] sm:$0xff]  ;;  %v11026_v50 = vld [vmem:[#allocation26 + $0xc88] sm:$0xff] }
 0xb9f   : > { %10989 = vmatprep.subr.mxu1 %v10895_v1  ;;  %10833 = vmatpush2.msra.mxu0 %v10741_v34  ;;  %v11164_v1 = vld [vmem:[#allocation26 + $0xe78] sm:$0xff]  ;;  %v11025_v34 = vld [vmem:[#allocation26 + $0xc80] sm:$0xff] }
 0xba0   : > { %10990 = vmatpush2.msra.mxu1 %v10894_v51  ;;  %10834 = vmatprep.subr.mxu0 %v10740_v37  ;;  %v11163_v51 = vld [vmem:[#allocation26 + $0xe70] sm:$0xff]  ;;  %v11024_v37 = vld [vmem:[#allocation26 + $0xc78] sm:$0xff] }
 0xba1   : > { %10991 = vmatprep.subr.mxu1 %v10893_v5  ;;  %10835 = vmatpush2.msra.mxu0 %v10739_v28  ;;  %v11162_v5 = vld [vmem:[#allocation26 + $0xe68] sm:$0xff]  ;;  %v11023_v28 = vld [vmem:[#allocation26 + $0xc70] sm:$0xff] }
 0xba2   : > { %10992 = vmatpush2.msra.mxu1 %v10892_v29  ;;  %10836 = vmatprep.subr.mxu0 %v10738_v2  ;;  %v11161_v29 = vld [vmem:[#allocation26 + $0xe60] sm:$0xff] }
 0xba3   : > { %10993 = vmatprep.subr.mxu1 %v10891_v45  ;;  %10837 = vmatpush2.msra.mxu0 %v10737_v42  ;;  %v11021_v2 = vld [vmem:[#allocation26 + $0xc60] sm:$0xff]  ;;  %v11159_v45 = vld [vmem:[#allocation26 + $0xe50] sm:$0xff]  ;;  %v11020_v42 = vld [vmem:[#allocation26 + $0xc58] sm:$0xff] }
 0xba4   : > { %10994 = vmatpush2.msra.mxu1 %v10890_v62  ;;  %10838 = vmatprep.subr.mxu0 %v10736_v15  ;;  %v11158_v62 = vld [vmem:[#allocation26 + $0xe48] sm:$0xff]  ;;  %v11019_v15 = vld [vmem:[#allocation26 + $0xc50] sm:$0xff] }
 0xba5   : > { %10995 = vmatprep.subr.mxu1 %v10889_v3  ;;  %10839 = vmatpush2.msra.mxu0 %v10735_v36  ;;  %v11157_v3 = vld [vmem:[#allocation26 + $0xe40] sm:$0xff]  ;;  %v11016_v36 = vld [vmem:[#allocation26 + $0xc38] sm:$0xff] }
 0xba6   : > { %10996 = vmatpush2.msra.mxu1 %v10888_v8  ;;  %10840 = vmatprep.subr.mxu0 %v10734_v60  ;;  %v11154_v8 = vld [vmem:[#allocation26 + $0xe28] sm:$0xff]  ;;  %v11015_v60 = vld [vmem:[#allocation26 + $0xc30] sm:$0xff] }
 0xba7   : > { %10998 = vmatmul.mubr.f32.vlgmr.msra.gmra.mxu1 %v10927_v20  ;;  %11219 = vmatprep.subr.mxu1 %v11180_v4  ;;  %v11014_v4 = vld [vmem:[#allocation26 + $0xc28] sm:$0xff]  ;;  %v11012_v20 = vld [vmem:[#allocation26 + $0xc18] sm:$0xff] }
 0xba8   : > { %10841 = vmatpush2.msra.mxu0 %v10733_v21  ;;  %11220 = vmatpush1.msra.mxu1 %v11179_v43  ;;  %v11152_v21 = vld [vmem:[#allocation26 + $0xe18] sm:$0xff]  ;;  %v11150_v43 = vld [vmem:[#allocation26 + $0xe08] sm:$0xff] }
 0xba9   : > { %11283 = vmatprep.mubr.f32.mxu1 %v11216_v25  ;;  %10843 = vmatmul.mubr.f32.vlgmr.msra.gmra.mxu0 %v10772_v11  ;;  %v11011_v25 = vld [vmem:[#allocation26 + $0xc10] sm:$0xff]  ;;  %v11009_v11 = vld [vmem:[#allocation26 + $0xc00] sm:$0xff] }
 0xbaa   : > { %11073 = vmatprep.subr.mxu0 %v11040_v63  ;;  %11221 = vmatprep.subr.mxu1 %v11178_v6  ;;  %v11149_v63 = vld [vmem:[#allocation26 + $0xe00] sm:$0xff]  ;;  %v11010_v6 = vld [vmem:[#allocation26 + $0xc08] sm:$0xff] }
 0xbab   : > { %11074 = vmatpush1.msra.mxu0 %v11039_v7  ;;  %11137 = vmatprep.mubr.f32.mxu0 %v11007_v56  ;;  %v11212_v7 = vld [vmem:[#allocation26 + $0xff8] sm:$0xff]  ;;  %v11071_v56 = vld [vmem:[#allocation26 + $0xdf0] sm:$0xff] }
 0xbac   : > { %11222 = vmatpush1.msra.mxu1 %v11177_v0  ;;  %11075 = vmatprep.subr.mxu0 %v11038_v40  ;;  %v11211_v0 = vld [vmem:[#allocation26 + $0xff0] sm:$0xff]  ;;  %v11072_v40 = vld [vmem:[#allocation26 + $0xdf8] sm:$0xff] }
 0xbad   : > { %11223 = vmatprep.subr.mxu1 %v11176_v41  ;;  %11076 = vmatpush1.msra.mxu0 %v11037_v52  ;;  %v11210_v41 = vld [vmem:[#allocation26 + $0xfe8] sm:$0xff]  ;;  %v11209_v52 = vld [vmem:[#allocation26 + $0xfe0] sm:$0xff] }
 0xbae   : > { %11224 = vmatpush1.msra.mxu1 %v11175_v19  ;;  %11077 = vmatprep.subr.mxu0 %v11036_v55  ;;  %v11070_v19 = vld [vmem:[#allocation26 + $0xde8] sm:$0xff]  ;;  %v11208_v55 = vld [vmem:[#allocation26 + $0xfd8] sm:$0xff] }
 0xbaf   : > { %11225 = vmatprep.subr.mxu1 %v11174_v26  ;;  %11078 = vmatpush1.msra.mxu0 %v11035_v61  ;;  %v11069_v26 = vld [vmem:[#allocation26 + $0xde0] sm:$0xff]  ;;  %v11207_v61 = vld [vmem:[#allocation26 + $0xfd0] sm:$0xff] }
 0xbb0   : > { %11226 = vmatpush1.msra.mxu1 %v11173_v53  ;;  %11079 = vmatprep.subr.mxu0 %v11034_v23  ;;  %v11068_v53 = vld [vmem:[#allocation26 + $0xdd8] sm:$0xff]  ;;  %v11206_v23 = vld [vmem:[#allocation26 + $0xfc8] sm:$0xff] }
 0xbb1   : > { %11227 = vmatprep.subr.mxu1 %v11172_v44  ;;  %11080 = vmatpush1.msra.mxu0 %v11033_v17  ;;  %v11067_v44 = vld [vmem:[#allocation26 + $0xdd0] sm:$0xff]  ;;  %v11205_v17 = vld [vmem:[#allocation26 + $0xfc0] sm:$0xff] }
 0xbb2   : > { %11228 = vmatpush1.msra.mxu1 %v11171_v27  ;;  %11081 = vmatprep.subr.mxu0 %v11032_v18  ;;  %v11066_v27 = vld [vmem:[#allocation26 + $0xdc8] sm:$0xff]  ;;  %v11204_v18 = vld [vmem:[#allocation26 + $0xfb8] sm:$0xff] }
 0xbb3   : > { %11229 = vmatprep.subr.mxu1 %v11170_v16  ;;  %11082 = vmatpush1.msra.mxu0 %v11031_v10  ;;  %v11065_v16 = vld [vmem:[#allocation26 + $0xdc0] sm:$0xff]  ;;  %v11203_v10 = vld [vmem:[#allocation26 + $0xfb0] sm:$0xff] }
 0xbb4   : > { %11230 = vmatpush1.msra.mxu1 %v11169_v39  ;;  %11083 = vmatprep.subr.mxu0 %v11030_v47  ;;  %v11064_v39 = vld [vmem:[#allocation26 + $0xdb8] sm:$0xff]  ;;  %v11202_v47 = vld [vmem:[#allocation26 + $0xfa8] sm:$0xff] }
 0xbb5   : > { %11231 = vmatprep.subr.mxu1 %v11168_v12  ;;  %11084 = vmatpush1.msra.mxu0 %v11029_v57  ;;  %v11063_v12 = vld [vmem:[#allocation26 + $0xdb0] sm:$0xff]  ;;  %v11201_v57 = vld [vmem:[#allocation26 + $0xfa0] sm:$0xff] }
 0xbb6   : > { %11232 = vmatpush1.msra.mxu1 %v11167_v13  ;;  %11085 = vmatprep.subr.mxu0 %v11028_v35  ;;  %v11062_v13 = vld [vmem:[#allocation26 + $0xda8] sm:$0xff]  ;;  %v11200_v35 = vld [vmem:[#allocation26 + $0xf98] sm:$0xff] }
 0xbb7   : > { %11233 = vmatprep.subr.mxu1 %v11166_v22  ;;  %11086 = vmatpush1.msra.mxu0 %v11027_v14  ;;  %v11061_v22 = vld [vmem:[#allocation26 + $0xda0] sm:$0xff]  ;;  %v11199_v14 = vld [vmem:[#allocation26 + $0xf90] sm:$0xff] }
 0xbb8   : > { %11234 = vmatpush1.msra.mxu1 %v11165_v48  ;;  %11087 = vmatprep.subr.mxu0 %v11026_v50  ;;  %v11060_v48 = vld [vmem:[#allocation26 + $0xd98] sm:$0xff]  ;;  %v11198_v50 = vld [vmem:[#allocation26 + $0xf88] sm:$0xff] }
 0xbb9   : > { %11235 = vmatprep.subr.mxu1 %v11164_v1  ;;  %11088 = vmatpush1.msra.mxu0 %v11025_v34  ;;  %v11059_v1 = vld [vmem:[#allocation26 + $0xd90] sm:$0xff]  ;;  %v11197_v34 = vld [vmem:[#allocation26 + $0xf80] sm:$0xff] }
 0xbba   : > { %11236 = vmatpush1.msra.mxu1 %v11163_v51  ;;  %11089 = vmatprep.subr.mxu0 %v11024_v37  ;;  %v11058_v51 = vld [vmem:[#allocation26 + $0xd88] sm:$0xff]  ;;  %v11196_v37 = vld [vmem:[#allocation26 + $0xf78] sm:$0xff] }
 0xbbb   : > { %11237 = vmatprep.subr.mxu1 %v11162_v5  ;;  %11090 = vmatpush1.msra.mxu0 %v11023_v28  ;;  %v11057_v5 = vld [vmem:[#allocation26 + $0xd80] sm:$0xff]  ;;  %v11195_v28 = vld [vmem:[#allocation26 + $0xf70] sm:$0xff] }
 0xbbc   : > { %11238 = vmatpush1.msra.mxu1 %v11161_v29  ;;  %11091 = vmatprep.subr.mxu0 %v11022_v32  ;;  %v11056_v29 = vld [vmem:[#allocation26 + $0xd78] sm:$0xff]  ;;  %v11194_v32 = vld [vmem:[#allocation26 + $0xf68] sm:$0xff] }
 0xbbd   : > { %11239 = vmatprep.subr.mxu1 %v11160_v33  ;;  %11092 = vmatpush1.msra.mxu0 %v11021_v2  ;;  %v11055_v33 = vld [vmem:[#allocation26 + $0xd70] sm:$0xff]  ;;  %v11193_v2 = vld [vmem:[#allocation26 + $0xf60] sm:$0xff] }
 0xbbe   : > { %11240 = vmatpush1.msra.mxu1 %v11159_v45  ;;  %11093 = vmatprep.subr.mxu0 %v11020_v42  ;;  %v11054_v45 = vld [vmem:[#allocation26 + $0xd68] sm:$0xff]  ;;  %v11192_v42 = vld [vmem:[#allocation26 + $0xf58] sm:$0xff] }
 0xbbf   : > { %11241 = vmatprep.subr.mxu1 %v11158_v62  ;;  %11094 = vmatpush1.msra.mxu0 %v11019_v15  ;;  %v11053_v62 = vld [vmem:[#allocation26 + $0xd60] sm:$0xff]  ;;  %v11191_v15 = vld [vmem:[#allocation26 + $0xf50] sm:$0xff] }
 0xbc0   : > { %11242 = vmatpush1.msra.mxu1 %v11157_v3  ;;  %11095 = vmatprep.subr.mxu0 %v11018_v38  ;;  %v11052_v3 = vld [vmem:[#allocation26 + $0xd58] sm:$0xff]  ;;  %v11190_v38 = vld [vmem:[#allocation26 + $0xf48] sm:$0xff] }
 0xbc1   : > { %11243 = vmatprep.subr.mxu1 %v11156_v30  ;;  %11096 = vmatpush1.msra.mxu0 %v11017_v9  ;;  %v11051_v30 = vld [vmem:[#allocation26 + $0xd50] sm:$0xff]  ;;  %v11189_v9 = vld [vmem:[#allocation26 + $0xf40] sm:$0xff] }
 0xbc2   : > { %11244 = vmatpush1.msra.mxu1 %v11155_v58  ;;  %11097 = vmatprep.subr.mxu0 %v11016_v36  ;;  %v11050_v58 = vld [vmem:[#allocation26 + $0xd48] sm:$0xff]  ;;  %v11188_v36 = vld [vmem:[#allocation26 + $0xf38] sm:$0xff] }
 0xbc3   : > { %11245 = vmatprep.subr.mxu1 %v11154_v8  ;;  %11098 = vmatpush1.msra.mxu0 %v11015_v60  ;;  %v11049_v8 = vld [vmem:[#allocation26 + $0xd40] sm:$0xff]  ;;  %v11187_v60 = vld [vmem:[#allocation26 + $0xf30] sm:$0xff] }
 0xbc4   : > { %11246 = vmatpush1.msra.mxu1 %v11153_v54  ;;  %11099 = vmatprep.subr.mxu0 %v11014_v4  ;;  %v11048_v54 = vld [vmem:[#allocation26 + $0xd38] sm:$0xff]  ;;  %v11186_v4 = vld [vmem:[#allocation26 + $0xf28] sm:$0xff] }
 0xbc5   : > { %11247 = vmatprep.subr.mxu1 %v11152_v21  ;;  %11100 = vmatpush1.msra.mxu0 %v11013_v24  ;;  %v11047_v21 = vld [vmem:[#allocation26 + $0xd30] sm:$0xff]  ;;  %v11185_v24 = vld [vmem:[#allocation26 + $0xf20] sm:$0xff] }
 0xbc6   : > { %11248 = vmatpush1.msra.mxu1 %v11151_v31  ;;  %11101 = vmatprep.subr.mxu0 %v11012_v20  ;;  %v11046_v31 = vld [vmem:[#allocation26 + $0xd28] sm:$0xff]  ;;  %v11184_v20 = vld [vmem:[#allocation26 + $0xf18] sm:$0xff] }
 0xbc7   : > { %11249 = vmatprep.subr.mxu1 %v11150_v43  ;;  %11102 = vmatpush1.msra.mxu0 %v11011_v25  ;;  %v11045_v43 = vld [vmem:[#allocation26 + $0xd20] sm:$0xff]  ;;  %v11183_v25 = vld [vmem:[#allocation26 + $0xf10] sm:$0xff] }
 0xbc8   : > { %11250 = vmatpush1.msra.mxu1 %v11149_v63  ;;  %11103 = vmatprep.subr.mxu0 %v11010_v6  ;;  %v11044_v63 = vld [vmem:[#allocation26 + $0xd18] sm:$0xff]  ;;  %v11182_v6 = vld [vmem:[#allocation26 + $0xf08] sm:$0xff] }
 0xbc9   : > { %11251 = vmatprep.subr.mxu1 %v11212_v7  ;;  %11104 = vmatpush1.msra.mxu0 %v11009_v11  ;;  %v11146_v7 = vld [vmem:[#allocation7 + $0x18] sm:$0x7e] }
 0xbca   : > { %11252 = vmatpush2.msra.mxu1 %v11211_v0  ;;  %11105 = vmatprep.subr.mxu0 %v11072_v40  ;;  %v11043_v11 = vld [vmem:[#allocation26 + $0xd10] sm:$0xff]  ;;  %v11181_v0 = vld [vmem:[#allocation26 + $0xf00] sm:$0xff]  ;;  %v11042_v40 = vld [vmem:[#allocation26 + $0xd08] sm:$0xff] }
 0xbcb   : > { %11253 = vmatprep.subr.mxu1 %v11210_v41  ;;  %11106 = vmatpush2.msra.mxu0 %v11071_v56  ;;  %v11215_v41 = vrot.slane %v11146_v7, 1  ;;  %v11041_v56 = vld [vmem:[#allocation26 + $0xd00] sm:$0xff]  ;;  %v11340_v7 = vld [vmem:[#allocation26 + $0x1168] sm:$0xff] }
 0xbcc   : > { %11254 = vmatpush2.msra.mxu1 %v11209_v52  ;;  %11107 = vmatprep.subr.mxu0 %v11070_v19  ;;  %v11293_v52 = vld [vmem:[#allocation7 + $0x8] sm:$0xfc]  ;;  %v11326_v19 = vld [vmem:[#allocation26 + $0x10f8] sm:$0xff] }
 0xbcd   : > { %11255 = vmatprep.subr.mxu1 %v11208_v55  ;;  %11108 = vmatpush2.msra.mxu0 %v11069_v26  ;;  %v11325_v55 = vld [vmem:[#allocation26 + $0x10f0] sm:$0xff] }
 0xbce   : > { %11256 = vmatpush2.msra.mxu1 %v11207_v61  ;;  %11109 = vmatprep.subr.mxu0 %v11068_v53  ;;  %v11006_v26 = vld [vmem:[#allocation7 + $0x18] sm:$0x3f]  ;;  %v11362_v61 = vrot.slane %v11293_v52, 2  ;;  %v11324_v53 = vld [vmem:[#allocation26 + $0x10e8] sm:$0xff]  ;;  %v11334_v52 = vld [vmem:[#allocation26 + $0x1138] sm:$0xff] }
 0xbcf   : > { %11257 = vmatprep.subr.mxu1 %v11206_v23  ;;  %11110 = vmatpush2.msra.mxu0 %v11067_v44  ;;  %v11323_v23 = vld [vmem:[#allocation26 + $0x10e0] sm:$0xff]  ;;  %v11322_v44 = vld [vmem:[#allocation26 + $0x10d8] sm:$0xff] }
 0xbd0   : > { %11258 = vmatpush2.msra.mxu1 %v11205_v17  ;;  %11111 = vmatprep.subr.mxu0 %v11066_v27  ;;  %v11321_v17 = vld [vmem:[#allocation26 + $0x10d0] sm:$0xff]  ;;  %v11454_v27 = vld [vmem:[%s19007_s18] sm:$0x3f] }
 0xbd1   : > { %11259 = vmatprep.subr.mxu1 %v11204_v18  ;;  %11112 = vmatpush2.msra.mxu0 %v11065_v16  ;;  %v11320_v18 = vld [vmem:[#allocation26 + $0x10c8] sm:$0xff]  ;;  %v15352_v16 = vmov 0  }
 0xbd2   : > { %11260 = vmatpush2.msra.mxu1 %v11203_v10  ;;  %11113 = vmatprep.subr.mxu0 %v11064_v39  ;;  %v11319_v10 = vld [vmem:[#allocation26 + $0x10c0] sm:$0xff]  ;;  %v11318_v39 = vld [vmem:[#allocation26 + $0x10b8] sm:$0xff] }
 0xbd3   : > { %11261 = vmatprep.subr.mxu1 %v11202_v47  ;;  %11114 = vmatpush2.msra.mxu0 %v11063_v12  ;;  %v11317_v47 = vld [vmem:[#allocation26 + $0x10b0] sm:$0xff]  ;;  %v11316_v12 = vld [vmem:[#allocation26 + $0x10a8] sm:$0xff] }
 0xbd4   : > { %11262 = vmatpush2.msra.mxu1 %v11201_v57  ;;  %11115 = vmatprep.subr.mxu0 %v11062_v13  ;;  %v11315_v57 = vld [vmem:[#allocation26 + $0x10a0] sm:$0xff]  ;;  %v11314_v13 = vld [vmem:[#allocation26 + $0x1098] sm:$0xff] }
 0xbd5   : > { %11263 = vmatprep.subr.mxu1 %v11200_v35  ;;  %11116 = vmatpush2.msra.mxu0 %v11061_v22  ;;  %v11313_v35 = vld [vmem:[#allocation26 + $0x1090] sm:$0xff]  ;;  %v11312_v22 = vld [vmem:[#allocation26 + $0x1088] sm:$0xff] }
 0xbd6   : > { %11264 = vmatpush2.msra.mxu1 %v11199_v14  ;;  %11117 = vmatprep.subr.mxu0 %v11060_v48  ;;  %v11311_v14 = vld [vmem:[#allocation26 + $0x1080] sm:$0xff]  ;;  %v11310_v48 = vld [vmem:[#allocation26 + $0x1078] sm:$0xff] }
 0xbd7   : > { %11265 = vmatprep.subr.mxu1 %v11198_v50  ;;  %11118 = vmatpush2.msra.mxu0 %v11059_v1  ;;  %v11309_v50 = vld [vmem:[#allocation26 + $0x1070] sm:$0xff]  ;;  %v11308_v1 = vld [vmem:[#allocation26 + $0x1068] sm:$0xff] }
 0xbd8   : > { %11266 = vmatpush2.msra.mxu1 %v11197_v34  ;;  %11119 = vmatprep.subr.mxu0 %v11058_v51  ;;  %v11307_v34 = vld [vmem:[#allocation26 + $0x1060] sm:$0xff]  ;;  %v11306_v51 = vld [vmem:[#allocation26 + $0x1058] sm:$0xff] }
 0xbd9   : > { %11267 = vmatprep.subr.mxu1 %v11196_v37  ;;  %11120 = vmatpush2.msra.mxu0 %v11057_v5  ;;  %v11305_v37 = vld [vmem:[#allocation26 + $0x1050] sm:$0xff]  ;;  %v11304_v5 = vld [vmem:[#allocation26 + $0x1048] sm:$0xff] }
 0xbda   : > { %11268 = vmatpush2.msra.mxu1 %v11195_v28  ;;  %11121 = vmatprep.subr.mxu0 %v11056_v29  ;;  %v11303_v28 = vld [vmem:[#allocation26 + $0x1040] sm:$0xff]  ;;  %v11302_v29 = vld [vmem:[#allocation26 + $0x1038] sm:$0xff] }
 0xbdb   : > { %11269 = vmatprep.subr.mxu1 %v11194_v32  ;;  %11122 = vmatpush2.msra.mxu0 %v11055_v33  ;;  %v11301_v32 = vld [vmem:[#allocation26 + $0x1030] sm:$0xff]  ;;  %v11300_v33 = vld [vmem:[#allocation26 + $0x1028] sm:$0xff] }
 0xbdc   : > { %11270 = vmatpush2.msra.mxu1 %v11193_v2  ;;  %11123 = vmatprep.subr.mxu0 %v11054_v45  ;;  %v11299_v2 = vld [vmem:[#allocation26 + $0x1020] sm:$0xff]  ;;  %v11298_v45 = vld [vmem:[#allocation26 + $0x1018] sm:$0xff] }
 0xbdd   : > { %11271 = vmatprep.subr.mxu1 %v11192_v42  ;;  %11124 = vmatpush2.msra.mxu0 %v11053_v62  ;;  %v11297_v42 = vld [vmem:[#allocation26 + $0x1010] sm:$0xff]  ;;  %v11296_v62 = vld [vmem:[#allocation26 + $0x1008] sm:$0xff] }
 0xbde   : > { %11272 = vmatpush2.msra.mxu1 %v11191_v15  ;;  %11125 = vmatprep.subr.mxu0 %v11052_v3  ;;  %v11295_v15 = vld [vmem:[#allocation26 + $0x1000] sm:$0xff]  ;;  %v11358_v3 = vld [vmem:[#allocation26 + $0x11f8] sm:$0xff] }
 0xbdf   : > { %11273 = vmatprep.subr.mxu1 %v11190_v38  ;;  %11126 = vmatpush2.msra.mxu0 %v11051_v30  ;;  %v11357_v38 = vld [vmem:[#allocation26 + $0x11f0] sm:$0xff]  ;;  %v11356_v30 = vld [vmem:[#allocation26 + $0x11e8] sm:$0xff] }
 0xbe0   : > { %11274 = vmatpush2.msra.mxu1 %v11189_v9  ;;  %11127 = vmatprep.subr.mxu0 %v11050_v58  ;;  %v11355_v9 = vld [vmem:[#allocation26 + $0x11e0] sm:$0xff]  ;;  %v11354_v58 = vld [vmem:[#allocation26 + $0x11d8] sm:$0xff] }
 0xbe1   : > { %11275 = vmatprep.subr.mxu1 %v11188_v36  ;;  %11128 = vmatpush2.msra.mxu0 %v11049_v8  ;;  %v11353_v36 = vld [vmem:[#allocation26 + $0x11d0] sm:$0xff]  ;;  %v11352_v8 = vld [vmem:[#allocation26 + $0x11c8] sm:$0xff] }
 0xbe2   : > { %11276 = vmatpush2.msra.mxu1 %v11187_v60  ;;  %11129 = vmatprep.subr.mxu0 %v11048_v54  ;;  %v11351_v60 = vld [vmem:[#allocation26 + $0x11c0] sm:$0xff]  ;;  %v11350_v54 = vld [vmem:[#allocation26 + $0x11b8] sm:$0xff] }
 0xbe3   : > { %11277 = vmatprep.subr.mxu1 %v11186_v4  ;;  %11130 = vmatpush2.msra.mxu0 %v11047_v21  ;;  %v11349_v4 = vld [vmem:[#allocation26 + $0x11b0] sm:$0xff]  ;;  %v11348_v21 = vld [vmem:[#allocation26 + $0x11a8] sm:$0xff] }
 0xbe4   : > { %11278 = vmatpush2.msra.mxu1 %v11185_v24  ;;  %11131 = vmatprep.subr.mxu0 %v11046_v31  ;;  %v11347_v24 = vld [vmem:[#allocation26 + $0x11a0] sm:$0xff]  ;;  %v11346_v31 = vld [vmem:[#allocation26 + $0x1198] sm:$0xff] }
 0xbe5   : > { %11279 = vmatprep.subr.mxu1 %v11184_v20  ;;  %11132 = vmatpush2.msra.mxu0 %v11045_v43  ;;  %v11345_v20 = vld [vmem:[#allocation26 + $0x1190] sm:$0xff]  ;;  %v11344_v43 = vld [vmem:[#allocation26 + $0x1188] sm:$0xff] }
 0xbe6   : > { %11280 = vmatpush2.msra.mxu1 %v11183_v25  ;;  %11133 = vmatprep.subr.mxu0 %v11044_v63  ;;  %v11343_v25 = vld [vmem:[#allocation26 + $0x1180] sm:$0xff]  ;;  %v11342_v63 = vld [vmem:[#allocation26 + $0x1178] sm:$0xff] }
 0xbe7   : > { %11281 = vmatprep.subr.mxu1 %v11182_v6  ;;  %11134 = vmatpush2.msra.mxu0 %v11043_v11  ;;  %v11341_v6 = vld [vmem:[#allocation26 + $0x1170] sm:$0xff]  ;;  %v11339_v11 = vld [vmem:[#allocation26 + $0x1160] sm:$0xff] }
 0xbe8   : > { %11282 = vmatpush2.msra.mxu1 %v11181_v0  ;;  %11135 = vmatprep.subr.mxu0 %v11042_v40  ;;  %v11338_v0 = vld [vmem:[#allocation26 + $0x1158] sm:$0xff]  ;;  %v11337_v40 = vld [vmem:[#allocation26 + $0x1150] sm:$0xff] }
 0xbe9   : > { %11284 = vmatmul.mubr.f32.vlgmr.msra.gmra.mxu1 %v11215_v41  ;;  %11136 = vmatpush2.msra.mxu0 %v11041_v56  ;;  %v11336_v41 = vld [vmem:[#allocation26 + $0x1148] sm:$0xff]  ;;  %v11335_v56 = vld [vmem:[#allocation26 + $0x1140] sm:$0xff] }
 0xbea   : > { %11138 = vmatmul.mubr.f32.vlgmr.msra.gmra.mxu0 %v11006_v26  ;;  %11365 = vmatprep.subr.mxu0 %v11326_v19  ;;  %v11333_v19 = vld [vmem:[#allocation26 + $0x1130] sm:$0xff]  ;;  %v11331_v26 = vld [vmem:[#allocation26 + $0x1120] sm:$0xff] }
 0xbeb   : > { %11366 = vmatpush1.msra.mxu0 %v11325_v55  ;;  %11429 = vmatprep.mubr.f32.mxu0 %v11362_v61  ;;  %v11332_v55 = vld [vmem:[#allocation26 + $0x1128] sm:$0xff]  ;;  %v11330_v61 = vld [vmem:[#allocation26 + $0x1118] sm:$0xff] }
 0xbec   : > { %11367 = vmatprep.subr.mxu0 %v11324_v53  ;;  %14865 = vset.pattern.permute.xlu0 %v15352_v16  ;;  %v11329_v53 = vld [vmem:[#allocation26 + $0x1110] sm:$0xff]  ;;  %v11477_v16 = vld [vmem:[%s19002_s13 + $0x78] sm:$0xff] }
 0xbed   : > { %11368 = vmatpush1.msra.mxu0 %v11323_v23  ;;  %11457 = vperm.xlu0 %14865, %v11454_v27   ;;  %v11328_v23 = vld [vmem:[#allocation26 + $0x1108] sm:$0xff] }
 0xbee   : > { %11369 = vmatprep.subr.mxu0 %v11322_v44  ;;  %v11292_v44 = vld [vmem:[#allocation7 + $0x18] sm:$0xfc] }
 0xbef   : > { %11370 = vmatpush1.msra.mxu0 %v11321_v17  ;;  %v11327_v17 = vld [vmem:[#allocation26 + $0x1100] sm:$0xff]  ;;  %v11361_v27 = vrot.slane %v11292_v44, 2 }
 0xbf0   : > { %11371 = vmatprep.subr.mxu0 %v11320_v18  ;;  %v11493_v18 = vld [vmem:[%s19002_s13 + $0xf8] sm:$0xff]  ;;  %v11438_v44 = vld [vmem:[#allocation28] sm:$0x3] }
 0xbf1   : > { %11372 = vmatpush1.msra.mxu0 %v11319_v10  ;;  %v11492_v10 = vld [vmem:[%s19002_s13 + $0xf0] sm:$0xff]  ;;  %13359 = vmatprep.subr.mxu1 %v11493_v18  ;;  %v11443_v18 = vrot.slane %v11438_v44, %v10085_v46 }
 0xbf2   : > { %11373 = vmatprep.subr.mxu0 %v11318_v39  ;;  %v11476_v39 = vld [vmem:[%s19002_s13 + $0x70] sm:$0xff]  ;;  %13360 = vmatpush3.msra.mxu1 %v11477_v16 }
 0xbf3   : > { %11374 = vmatpush1.msra.mxu0 %v11317_v47  ;;  %v11491_v47 = vld [vmem:[%s19002_s13 + $0xe8] sm:$0xff]  ;;  %13361 = vmatprep.subr.mxu1 %v11492_v10 }
 0xbf4   : > { %11375 = vmatprep.subr.mxu0 %v11316_v12  ;;  %v11475_v12 = vld [vmem:[%s19002_s13 + $0x68] sm:$0xff]  ;;  %13362 = vmatpush3.msra.mxu1 %v11476_v39 }
 0xbf5   : > { %11376 = vmatpush1.msra.mxu0 %v11315_v57  ;;  %v11490_v57 = vld [vmem:[%s19002_s13 + $0xe0] sm:$0xff]  ;;  %13363 = vmatprep.subr.mxu1 %v11491_v47 }
 0xbf6   : > { %11377 = vmatprep.subr.mxu0 %v11314_v13  ;;  %v11474_v13 = vld [vmem:[%s19002_s13 + $0x60] sm:$0xff]  ;;  %13364 = vmatpush3.msra.mxu1 %v11475_v12  ;;  %v11447_v12 = vrot.slane %v11438_v44, %v10089_v59 }
 0xbf7   : > { %11378 = vmatpush1.msra.mxu0 %v11313_v35  ;;  %v11489_v35 = vld [vmem:[%s19002_s13 + $0xd8] sm:$0xff]  ;;  %13365 = vmatprep.subr.mxu1 %v11490_v57 }
 0xbf8   : > { %11379 = vmatprep.subr.mxu0 %v11312_v22  ;;  %v11473_v22 = vld [vmem:[%s19002_s13 + $0x58] sm:$0xff]  ;;  %13366 = vmatpush3.msra.mxu1 %v11474_v13 }
 0xbf9   : > { %11380 = vmatpush1.msra.mxu0 %v11311_v14  ;;  %v11488_v14 = vld [vmem:[%s19002_s13 + $0xd0] sm:$0xff]  ;;  %13367 = vmatprep.subr.mxu1 %v11489_v35 }
 0xbfa   : > { %11381 = vmatprep.subr.mxu0 %v11310_v48  ;;  %v11472_v48 = vld [vmem:[%s19002_s13 + $0x50] sm:$0xff]  ;;  %13368 = vmatpush3.msra.mxu1 %v11473_v22 }
 0xbfb   : > { %11382 = vmatpush1.msra.mxu0 %v11309_v50  ;;  %v11487_v50 = vld [vmem:[%s19002_s13 + $0xc8] sm:$0xff]  ;;  %13369 = vmatprep.subr.mxu1 %v11488_v14 }
 0xbfc   : > { %11383 = vmatprep.subr.mxu0 %v11308_v1  ;;  %v11471_v1 = vld [vmem:[%s19002_s13 + $0x48] sm:$0xff]  ;;  %13370 = vmatpush3.msra.mxu1 %v11472_v48 }
 0xbfd   : > { %11384 = vmatpush1.msra.mxu0 %v11307_v34  ;;  %v11486_v34 = vld [vmem:[%s19002_s13 + $0xc0] sm:$0xff]  ;;  %13371 = vmatprep.subr.mxu1 %v11487_v50 }
 0xbfe   : > { %11385 = vmatprep.subr.mxu0 %v11306_v51  ;;  %v11470_v51 = vld [vmem:[%s19002_s13 + $0x40] sm:$0xff]  ;;  %13372 = vmatpush3.msra.mxu1 %v11471_v1 }
 0xbff   : > { %11386 = vmatpush1.msra.mxu0 %v11305_v37  ;;  %v11485_v37 = vld [vmem:[%s19002_s13 + $0xb8] sm:$0xff]  ;;  %13373 = vmatprep.subr.mxu1 %v11486_v34 }
 0xc00   : > { %11387 = vmatprep.subr.mxu0 %v11304_v5  ;;  %v11469_v5 = vld [vmem:[%s19002_s13 + $0x38] sm:$0xff]  ;;  %13374 = vmatpush3.msra.mxu1 %v11470_v51 }
 0xc01   : > { %11388 = vmatpush1.msra.mxu0 %v11303_v28  ;;  %v11484_v28 = vld [vmem:[%s19002_s13 + $0xb0] sm:$0xff]  ;;  %13375 = vmatprep.subr.mxu1 %v11485_v37 }
 0xc02   : > { %11389 = vmatprep.subr.mxu0 %v11302_v29  ;;  %v11468_v29 = vld [vmem:[%s19002_s13 + $0x30] sm:$0xff]  ;;  %13376 = vmatpush3.msra.mxu1 %v11469_v5 }
 0xc03   : > { %11390 = vmatpush1.msra.mxu0 %v11301_v32  ;;  %13377 = vmatprep.subr.mxu1 %v11484_v28  ;;  %v11483_v32 = vld [vmem:[%s19002_s13 + $0xa8] sm:$0xff] }
 0xc04   : > { %11391 = vmatprep.subr.mxu0 %v11300_v33  ;;  %13378 = vmatpush3.msra.mxu1 %v11468_v29  ;;  %v11467_v33 = vld [vmem:[%s19002_s13 + $0x28] sm:$0xff] }
 0xc05   : > { %11392 = vmatpush1.msra.mxu0 %v11299_v2  ;;  %13379 = vmatprep.subr.mxu1 %v11483_v32  ;;  %v11482_v2 = vld [vmem:[%s19002_s13 + $0xa0] sm:$0xff] }
 0xc06   : > { %11393 = vmatprep.subr.mxu0 %v11298_v45  ;;  %13380 = vmatpush3.msra.mxu1 %v11467_v33  ;;  %v11466_v45 = vld [vmem:[%s19002_s13 + $0x20] sm:$0xff]  ;;  %v11572_v33 = vld [vmem:[#allocation29] sm:$0x1] }
 0xc07   : > { %11394 = vmatpush1.msra.mxu0 %v11297_v42  ;;  %v11481_v42 = vld [vmem:[%s19002_s13 + $0x98] sm:$0xff]  ;;  %13381 = vmatprep.subr.mxu1 %v11482_v2 }
 0xc08   : > { %11395 = vmatprep.subr.mxu0 %v11296_v62  ;;  %v11465_v62 = vld [vmem:[%s19002_s13 + $0x18] sm:$0xff]  ;;  %13382 = vmatpush3.msra.mxu1 %v11466_v45 }
 0xc09   : > { %11396 = vmatpush1.msra.mxu0 %v11295_v15  ;;  %13383 = vmatprep.subr.mxu1 %v11481_v42  ;;  %v11480_v15 = vld [vmem:[%s19002_s13 + $0x90] sm:$0xff] }
 0xc0a   : > { %11397 = vmatprep.subr.mxu0 %v11358_v3  ;;  %13384 = vmatpush3.msra.mxu1 %v11465_v62  ;;  %v11464_v3 = vld [vmem:[%s19002_s13 + $0x10] sm:$0xff] }
 0xc0b   : > { %11398 = vmatpush2.msra.mxu0 %v11357_v38  ;;  %v11479_v38 = vld [vmem:[%s19002_s13 + $0x88] sm:$0xff]  ;;  %13385 = vmatprep.subr.mxu1 %v11480_v15 }
 0xc0c   : > { %11399 = vmatprep.subr.mxu0 %v11356_v30  ;;  %v11463_v30 = vld [vmem:[%s19002_s13 + $0x8] sm:$0xff]  ;;  %13386 = vmatpush3.msra.mxu1 %v11464_v3 }
 0xc0d   : > { %11400 = vmatpush2.msra.mxu0 %v11355_v9  ;;  %v11478_v9 = vld [vmem:[%s19002_s13 + $0x80] sm:$0xff]  ;;  %13387 = vmatprep.subr.mxu1 %v11479_v38 }
 0xc0e   : > { %11401 = vmatprep.subr.mxu0 %v11354_v58  ;;  %v11462_v58 = vld [vmem:[%s19002_s13] sm:$0xff]  ;;  %13388 = vmatpush3.msra.mxu1 %v11463_v30 }
 0xc0f   : > { %11402 = vmatpush2.msra.mxu0 %v11353_v36  ;;  %13389 = vmatprep.subr.mxu1 %v11478_v9  ;;  %v10320_v36 = vpop.f32.mrf.mxu0 }
 0xc10   : > { %11403 = vmatprep.subr.mxu0 %v11352_v8  ;;  %13390 = vmatpush3.msra.mxu1 %v11462_v58 }
 0xc11   : > { %11404 = vmatpush2.msra.mxu0 %v11351_v60  ;;  %v10322_v8 = vpop.f32.mrf.mxu0  ;;  %v10391_v60 = vpop.f32.mrf.mxu1 }
 0xc12   : > { %11405 = vmatprep.subr.mxu0 %v11350_v54 }
 0xc13   : > { %11406 = vmatpush2.msra.mxu0 %v11349_v4  ;;  %v10392_v4 = vadd.f32 %v10391_v60, %v10320_v36 }
 0xc14   : > { %11407 = vmatprep.subr.mxu0 %v11348_v21  ;;  %v10393_v21 = vpop.f32.mrf.mxu1 }
 0xc15   : > { %11408 = vmatpush2.msra.mxu0 %v11347_v24 }
 0xc16   : > { %11409 = vmatprep.subr.mxu0 %v11346_v31  ;;  %v10394_v31 = vadd.f32 %v10393_v21, %v10322_v8 }
 0xc17   : > { %11410 = vmatpush2.msra.mxu0 %v11345_v20 }
 0xc18   : > { %11411 = vmatprep.subr.mxu0 %v11344_v43 }
 0xc19   : > { %11412 = vmatpush2.msra.mxu0 %v11343_v25 }
 0xc1a   : > { %11413 = vmatprep.subr.mxu0 %v11342_v63 }
 0xc1b   : > { %11414 = vmatpush2.msra.mxu0 %v11341_v6 }
 0xc1c   : > { %11415 = vmatprep.subr.mxu0 %v11340_v7 }
 0xc1d   : > { %11416 = vmatpush2.msra.mxu0 %v11339_v11 }
 0xc1e   : > { %11417 = vmatprep.subr.mxu0 %v11338_v0 }
 0xc1f   : > { %11418 = vmatpush2.msra.mxu0 %v11337_v40 }
 0xc20   : > { %11419 = vmatprep.subr.mxu0 %v11336_v41 }
 0xc21   : > { %11420 = vmatpush2.msra.mxu0 %v11335_v56 }
 0xc22   : > { %11421 = vmatprep.subr.mxu0 %v11334_v52 }
 0xc23   : > { %11422 = vmatpush2.msra.mxu0 %v11333_v19 }
 0xc24   : > { %11423 = vmatprep.subr.mxu0 %v11332_v55 }
 0xc25   : > { %11424 = vmatpush2.msra.mxu0 %v11331_v26  ;;  %v10689_v43 = vpop.f32.mrf.mxu1 }
 0xc26   : > { %11425 = vmatprep.subr.mxu0 %v11330_v61 }
 0xc27   : > { %11426 = vmatpush2.msra.mxu0 %v11329_v53  ;;  %v10535_v54 = vpop.f32.mrf.mxu0  ;;  %v10691_v7 = vpop.f32.mrf.mxu1 }
 0xc28   : > { %11427 = vmatprep.subr.mxu0 %v11328_v23  ;;  %v10540_v20 = vadd.f32 %v10535_v54, %v10392_v4 }
 0xc29   : > { %11428 = vmatpush2.msra.mxu0 %v11327_v17  ;;  %v10537_v24 = vpop.f32.mrf.mxu0 }
 0xc2a   : > { %11430 = vmatmul.mubr.f32.vlgmr.msra.gmra.mxu0 %v11361_v27  ;;  %v10541_v63 = vadd.f32 %v10537_v24, %v10394_v31  ;;  %v10694_v6 = vadd.f32 %v10689_v43, %v10540_v20 }
 0xc2c   : > { %v10695_v40 = vadd.f32 %v10691_v7, %v10541_v63 }
 0xc67   : > { %v10999_v41 = vpop.f32.mrf.mxu1 }
 0xc68   : > { %v11458_v48 = vpop.permute.xlu0 %11457 }
 0xc69   : > { %v10844_v25 = vpop.f32.mrf.mxu0  ;;  %v11001_v55 = vpop.f32.mrf.mxu1 }
 0xc6a   : > { %v10849_v0 = vadd.f32 %v10844_v25, %v10694_v6 }
 0xc6b   : > { %v10846_v11 = vpop.f32.mrf.mxu0 }
 0xc6c   : > { %v10850_v52 = vadd.f32 %v10846_v11, %v10695_v40  ;;  %v11004_v19 = vadd.f32 %v10999_v41, %v10849_v0 }
 0xc6e   : > { %v11005_v53 = vadd.f32 %v11001_v55, %v10850_v52 }
 0xca9   : > { %v11285_v23 = vpop.f32.mrf.mxu1 }
 0xcaa   : > { %v11139_v56 = vpop.f32.mrf.mxu0 }
 0xcab   : > { %v11144_v61 = vadd.f32 %v11139_v56, %v11004_v19  ;;  %v11287_v16 = vpop.f32.mrf.mxu1 }
 0xcac   : > { %v11141_v26 = vpop.f32.mrf.mxu0 }
 0xcad   : > { %v11145_v17 = vadd.f32 %v11141_v26, %v11005_v53  ;;  %v11290_v27 = vadd.f32 %v11285_v23, %v11144_v61 }
 0xcaf   : > { %v11291_v47 = vadd.f32 %v11287_v16, %v11145_v17 }
 0xcea   : > { %v11431_v10 = vpop.f32.mrf.mxu0 }
 0xceb   : > { %v11436_v39 = vadd.f32 %v11431_v10, %v11290_v27 }
 0xcec   : > { %v11433_v57 = vpop.f32.mrf.mxu0 }
 0xced   : > { %v11450_v13 = vadd.f32 %v11443_v18, %v11436_v39  ;;  %v11437_v35 = vadd.f32 %v11433_v57, %v11291_v47 }
 0xcef   : > { %v11451_v22 = vadd.f32 %v11447_v12, %v11437_v35  ;;  %v11452_v14 = vmax.f32 %v11450_v13, 0.0 }
 0xcf1   : > { %v11453_v50 = vmax.f32 %v11451_v22, 0.0  ;;  %v11460_v34 = vmul.f32 %v11458_v48, %v11452_v14 }
 0xcf3   : > { %v11461_v1 = vmul.f32 %v11458_v48, %v11453_v50 }
 0xcf5   : > { %11558 = vmatprep.mubr.f32.mxu1 %v11461_v1 }
 0xcf6   : > { %11559 = vmatmul.mubr.f32.vlgmr.msra.gmra.mxu1 %v11460_v34 }
 0xdb6   : > { %v13391_v46 = vpop.f32.mrf.mxu1 }
 0xdb8   : > { %v13392_v51 = vpop.f32.mrf.mxu1 }
 0xdb9   : > { %v13393_v37 = vadd.f32 %v13392_v51, %v13391_v46 }
 0xdbb   : > { %v11565_v5 = vsel %vm11564_vm0, %v13393_v37, 0.0 }
 0xdbc   : > { %v11566_v49 = vrot.slane %v11565_v5, 4 }
 0xdbe   : > { %v11567_v59 = vadd.f32 %v11566_v49, %v11565_v5 }
 0xdc0   : > { %v11568_v28 = vrot.slane %v11567_v59, 2 }
 0xdc2   : > { %v11569_v29 = vadd.f32 %v11568_v28, %v11567_v59 }
 0xdc4   : > { %v11570_v32 = vrot.slane %v11569_v29, 1 }
 0xdc6   : > { %v11571_v2 = vadd.f32 %v11570_v32, %v11569_v29 }
 0xdc8   : > { %v11573_v45 = vadd.f32 %v11572_v33, %v11571_v2 }
 0xdca   : > { %11575 = vst.msk [vmem:[%s784_s2] sm:$0x1] %vm11574_vm1, %v11573_v45 }
 0xdcb   : > { %15249 = shalt.err (!%p15246_p11)
}
 0xdcc   : > { %s15250_s29 = scalar_lea.hbm %s11587_s20, 16  ;;  %s15254_s25 = scalar_lea.hbm %s19232_s26, 96 }
 0xdcd   : > { %p15251_p0 = scmp.ne.s32.totalorder %s11587_s20, %s15250_s29  ;;  %p15255_p13 = scmp.lt.s32.totalorder %s11587_s20, %s19232_s26 }
 0xdce   : > { %p15256_p9 = scmp.lt.s32.totalorder %s15254_s25, %s15250_s29 }
 0xdcf   : > { %p15252_p1 = pnand %p15251_p0, %p19233_p6 }
 0xdd0   : > { %p15257_p3 = por %p15256_p9, %p15255_p13 }
 0xdd1   : > { %p15253_p2 = pneg %p15252_p1 }
 0xdd3   : > { %p15258_p5 = pnand %p15257_p3, %p15253_p2 }
 0xdd5   : > { %15261 = shalt.err (!%p15258_p5)
}
 0xdd6   : > { %14732 = dma.vmem_to_hbm [thread:$0]  (%p19233_p6), %s11590_s27, 16, %s11587_s20, %s11577_s19  }
 0xdd7 PF: > { %s19234_s28 = sld [smem:[#allocation46_spill]] }
 0xdd8   : > { %s19235_s4 = sld [smem:[#allocation44_spill]] }
 0xdd9   : > { %s19236_s0 = sld [smem:[#allocation49_spill]] }
 0xddd   : > { %p14809_p12 = scmp.ge.s32.totalorder %s19234_s28, 2 }
 0xdde   : > { %s11601_s21 = sand.u32 1, %s19235_s4  }
 0xddf   : > { %p19237_p10 = scmp.ne.s32.totalorder %s19236_s0, 0  ;;  %s11602_s1 = scalar_lea.sflag [#allocation13], %s11601_s21 }
 0xde1   : > { %p14778_p4 = pnand %p14809_p12, %p19237_p10 }
 0xde3   : > { %p14779_p7 = pneg %p14778_p4 }
 0xde5   : > { %15311 = dma.done.wait (%p14779_p7), %s11602_s1, 16  }
 0xde6   : > { %15313 = vsyncadd (%p14779_p7), %s11602_s1, 4294967280  ;;  %s19238_s21 = sld [smem:[#allocation47_spill]]  ;;  %s19241_s0 = smov %s15320_s30 }
 0xde7   : > { %s19239_s29 = sld [smem:[#allocation45_spill]] }
 0xde8   : > { %s19240_s20 = sld [smem:[#allocation48_spill]] }
 0xdec   : > { %p37_p8 = scmp.ge.s32.totalorder %s19238_s21, 8  }
 0xded   : > { %s19242_s30 = smov %s19239_s29 }
 0xdee   :  { %39 = sbr.rel (!%p37_p8) target bundleno = 18 (0x12), region = 251 }
 0xdf3   :  { %11606 = vsyncpa [#allocation12], 1 }
 0xdf4   :  { %11608 = vsyncpa [#allocation12 + $0x1], 1 }
 0xdf5   :  { %11609 = vsyncpa [#allocation15], 1 }
 0xdf6   :  { %11610 = vsyncpa [#allocation18], 1 }
 0xdf7   :  { %11611 = vsyncpa [#allocation21], 1 }
 0xdf8   :  { %11612 = vsyncpa [#allocation24], 1 }
 0xdf9   :  { %11613 = vsyncpa [#allocation27], 1 }
 0xdfa   :  { %11614 = vsyncpa [#allocation30], 1 }
 0xdfb   :  { %11615 = vsyncpa [#allocation33], 1 }
 0xdfc   :  { %11616 = vsyncpa [#allocation13], 1 }
 0xdfd   :  { %11618 = vsyncpa [#allocation13 + $0x1], 1 }

</bundles_post_ra>
